<compile_context>
chip_gen: v7x
topology: tpu7x:2x2x1
jax: 0.10.0
libtpu: 0.0.40
codegen_flags: <defaults>
</compile_context>

<pallas_src>
import functools
from dataclasses import dataclass

import jax
import jax.numpy as jnp
from jax import lax
from jax.experimental import pallas as pl
from jax.experimental.pallas import tpu as pltpu


@dataclass
class Conv2dConfig:
    in_channels: int
    out_channels: int
    kernel_size: int
    stride: int
    padding: int


@dataclass
class MaxPoolConfig:
    kernel_size: int
    stride: int


NEG_SLOPE = 0.1                  # LeakyReLU negative slope (nn.LeakyReLU(0.1))
COMPUTE_DTYPE = jnp.bfloat16     # MXU-native matmul dtype (f32 accumulation)
TM_TARGET = 512                  # target rows of the (rows, Cout) matmul per grid step
LANES = 128
SUBLANES = 8
VMEM_LIMIT = 48 * 1024 * 1024    # fits v7x's 64 MiB VMEM with headroom; fine on v5e/v6e


def _round_up(x, m):
    return ((x + m - 1) // m) * m


# ---------------------------------------------------------------------------
# Pallas kernels
# ---------------------------------------------------------------------------
def _conv_leaky_fused_kernel(x_ref, w_ref, b_ref, o_ref, *, KH, KW, TR, OW_pad):
    """Fused stride-1 conv + bias + LeakyReLU for one (image, row-tile) grid cell.

    x_ref: (1, H_in, W_in, Cin)   whole padded image, resident across row tiles
    w_ref: (KH, KW, Cin, Coutp)   resident weights (Coutp lane-dense)
    b_ref: (1, Coutp)             f32 bias
    o_ref: (TR * OW_pad, Coutp)   lane-dense f32 output tile
    """
    i = pl.program_id(1)
    r0 = i * TR                      # first output row handled by this tile
    cin = x_ref.shape[-1]
    coutp = o_ref.shape[-1]

    acc = jnp.zeros((TR * OW_pad, coutp), jnp.float32)
    for kh in range(KH):
        for kw in range(KW):
            # Shifted window extracted in VMEM (no HBM im2col).
            patch = x_ref[0, pl.ds(r0 + kh, TR), pl.ds(kw, OW_pad), :]
            patch = patch.reshape(TR * OW_pad, cin)      # OW_pad % 8 == 0 -> cheap
            acc += jnp.dot(patch, w_ref[kh, kw],
                           preferred_element_type=jnp.float32)
    acc = acc + b_ref[...]                                # bias once per tile
    o_ref[...] = jnp.where(acc >= 0, acc, NEG_SLOPE * acc).astype(o_ref.dtype)


def _conv_leaky_matmul_kernel(p_ref, w_ref, b_ref, o_ref):
    # im2col fallback (stride != 1): (TM, Kp) @ (Kp, Coutp) + bias, LeakyReLU.
    acc = jnp.dot(p_ref[...], w_ref[...], preferred_element_type=jnp.float32)
    acc = acc + b_ref[...]
    o_ref[...] = jnp.where(acc >= 0, acc, NEG_SLOPE * acc).astype(o_ref.dtype)


def _maxpool_kernel(x_ref, o_ref):
    # x_ref: (KK, TM, Cp) stacked shifted windows -> elementwise max over axis 0.
    o_ref[...] = jnp.max(x_ref[...], axis=0)


# ---------------------------------------------------------------------------
# Layer wrappers
# ---------------------------------------------------------------------------
def _conv_leaky_fused(x_nhwc, w, b, padding):
    """stride == 1 path: in-kernel patch extraction, no HBM im2col."""
    N, H, W, Cin = x_nhwc.shape
    Cout, _, KH, KW = w.shape
    OH = H + 2 * padding - KH + 1
    OW = W + 2 * padding - KW + 1

    OW_pad = _round_up(OW, SUBLANES)
    TR = max(1, min(OH, TM_TARGET // OW_pad))   # output rows per tile
    OH_pad = _round_up(OH, TR)
    n_row_tiles = OH_pad // TR
    TMrows = TR * OW_pad

    H_in = OH_pad + KH - 1
    W_in = OW_pad + KW - 1
    Coutp = _round_up(Cout, LANES)

    xp = jnp.pad(x_nhwc.astype(COMPUTE_DTYPE),
                 ((0, 0),
                  (padding, H_in - H - padding),
                  (padding, W_in - W - padding),
                  (0, 0)))

    w_k = jnp.transpose(w, (2, 3, 1, 0)).astype(COMPUTE_DTYPE)   # (KH,KW,Cin,Cout)
    w_k = jnp.pad(w_k, ((0, 0), (0, 0), (0, 0), (0, Coutp - Cout)))
    b_k = jnp.pad(b, (0, Coutp - Cout)).astype(jnp.float32).reshape(1, Coutp)

    M_pad = N * OH_pad * OW_pad
    kernel = functools.partial(_conv_leaky_fused_kernel,
                               KH=KH, KW=KW, TR=TR, OW_pad=OW_pad)

    cost = pl.CostEstimate(
        flops=2 * N * OH * OW * KH * KW * Cin * Cout,
        transcendentals=0,
        bytes_accessed=int(xp.size * xp.dtype.itemsize
                           + w_k.size * w_k.dtype.itemsize
                           + M_pad * Coutp * 4))

    out = pl.pallas_call(
        kernel,
        out_shape=jax.ShapeDtypeStruct((M_pad, Coutp), jnp.float32),
        grid_spec=pltpu.PrefetchScalarGridSpec(
            num_scalar_prefetch=0,
            grid=(N, n_row_tiles),
            in_specs=[
                # Whole padded image: block index constant along the inner
                # row-tile axis, so Pallas elides the re-DMA (fetched once/img).
                pl.BlockSpec((1, H_in, W_in, Cin), lambda n, i: (n, 0, 0, 0)),
                pl.BlockSpec((KH, KW, Cin, Coutp), lambda n, i: (0, 0, 0, 0)),
                pl.BlockSpec((1, Coutp), lambda n, i: (0, 0)),
            ],
            out_specs=pl.BlockSpec((TMrows, Coutp),
                                   lambda n, i: (n * n_row_tiles + i, 0)),
        ),
        compiler_params=pltpu.CompilerParams(
            dimension_semantics=("parallel", "parallel"),
            vmem_limit_bytes=VMEM_LIMIT),
        cost_estimate=cost,
    )(xp, w_k, b_k)

    out = out.reshape(N, OH_pad, OW_pad, Coutp)
    return out[:, :OH, :OW, :Cout]


def _conv_leaky_im2col(x_nhwc, w, b, stride, padding):
    """Fallback path for stride != 1 (bf16, lane-dense K and Cout)."""
    N, H, W, Cin = x_nhwc.shape
    Cout, _, KH, KW = w.shape
    OH = (H + 2 * padding - KH) // stride + 1
    OW = (W + 2 * padding - KW) // stride + 1

    xp = jnp.pad(x_nhwc.astype(COMPUTE_DTYPE),
                 ((0, 0), (padding, padding), (padding, padding), (0, 0)))

    cols = []
    for kh in range(KH):
        for kw in range(KW):
            cols.append(xp[:, kh:kh + (OH - 1) * stride + 1:stride,
                              kw:kw + (OW - 1) * stride + 1:stride, :])
    K = KH * KW * Cin
    M = N * OH * OW
    patches = jnp.concatenate(cols, axis=-1).reshape(M, K)

    Kp = _round_up(K, LANES)
    Coutp = _round_up(Cout, LANES)
    TM = min(TM_TARGET, _round_up(M, SUBLANES))
    M_pad = _round_up(M, TM)

    patches = jnp.pad(patches, ((0, M_pad - M), (0, Kp - K)))
    w_mat = jnp.transpose(w, (2, 3, 1, 0)).reshape(K, Cout).astype(COMPUTE_DTYPE)
    w_mat = jnp.pad(w_mat, ((0, Kp - K), (0, Coutp - Cout)))
    b_mat = jnp.pad(b, (0, Coutp - Cout)).astype(jnp.float32).reshape(1, Coutp)

    cost = pl.CostEstimate(
        flops=2 * M * K * Cout, transcendentals=0,
        bytes_accessed=int(patches.size * 2 + w_mat.size * 2 + M_pad * Coutp * 4))

    out = pl.pallas_call(
        _conv_leaky_matmul_kernel,
        out_shape=jax.ShapeDtypeStruct((M_pad, Coutp), jnp.float32),
        grid_spec=pltpu.PrefetchScalarGridSpec(
            num_scalar_prefetch=0,
            grid=(M_pad // TM,),
            in_specs=[
                pl.BlockSpec((TM, Kp), lambda i: (i, 0)),
                pl.BlockSpec((Kp, Coutp), lambda i: (0, 0)),
                pl.BlockSpec((1, Coutp), lambda i: (0, 0)),
            ],
            out_specs=pl.BlockSpec((TM, Coutp), lambda i: (i, 0)),
        ),
        compiler_params=pltpu.CompilerParams(
            dimension_semantics=("parallel",),
            vmem_limit_bytes=VMEM_LIMIT),
        cost_estimate=cost,
    )(patches, w_mat, b_mat)

    return out[:M, :Cout].reshape(N, OH, OW, Cout)


def conv2d_leaky(x_nhwc, w, b, stride, padding):
    if stride == 1:
        return _conv_leaky_fused(x_nhwc, w, b, padding)
    return _conv_leaky_im2col(x_nhwc, w, b, stride, padding)


def maxpool2d(x_nhwc, kernel_size, stride):
    N, H, W, C = x_nhwc.shape
    k, s = kernel_size, stride
    OH = (H - k) // s + 1
    OW = (W - k) // s + 1
    M = N * OH * OW

    wins = []
    for kh in range(k):
        for kw in range(k):
            wins.append(x_nhwc[:, kh:kh + (OH - 1) * s + 1:s,
                                  kw:kw + (OW - 1) * s + 1:s, :])
    stacked = jnp.stack(wins, axis=0).reshape(k * k, M, C)

    Cp = _round_up(C, LANES)
    TMp = min(TM_TARGET, _round_up(M, SUBLANES))
    M_pad = _round_up(M, TMp)
    stacked = jnp.pad(stacked, ((0, 0), (0, M_pad - M), (0, Cp - C)))

    out = pl.pallas_call(
        _maxpool_kernel,
        out_shape=jax.ShapeDtypeStruct((M_pad, Cp), x_nhwc.dtype),
        grid_spec=pltpu.PrefetchScalarGridSpec(
            num_scalar_prefetch=0,
            grid=(M_pad // TMp,),
            in_specs=[pl.BlockSpec((k * k, TMp, Cp), lambda i: (0, i, 0))],
            out_specs=pl.BlockSpec((TMp, Cp), lambda i: (i, 0)),
        ),
        compiler_params=pltpu.CompilerParams(
            dimension_semantics=("parallel",),
            vmem_limit_bytes=VMEM_LIMIT),
    )(stacked)
    return out[:M, :C].reshape(N, OH, OW, C)


# ---------------------------------------------------------------------------
# Module
# ---------------------------------------------------------------------------
class ConvModule:
    """Mirrors networks/object_detection/yolov1.py::ConvModule.forward."""

    def __init__(self, conv_configs, max_pool_cfg=None, *, key):
        self.conv_configs = conv_configs
        self.max_pool_cfg = max_pool_cfg
        self.params = []
        for cfg in conv_configs:
            key, wk, bk = jax.random.split(key, 3)
            fan_in = cfg.in_channels * cfg.kernel_size * cfg.kernel_size
            bound = 1.0 / (fan_in ** 0.5)       # nn.Conv2d default init range
            w = jax.random.uniform(
                wk,
                (cfg.out_channels, cfg.in_channels, cfg.kernel_size, cfg.kernel_size),
                jnp.float32, minval=-bound, maxval=bound)
            b = jax.random.uniform(bk, (cfg.out_channels,), jnp.float32,
                                   minval=-bound, maxval=bound)
            self.params.append((w, b))

    def __call__(self, x_nchw):
        x = jnp.transpose(x_nchw, (0, 2, 3, 1))  # NCHW -> NHWC
        for cfg, (w, b) in zip(self.conv_configs, self.params):
            x = conv2d_leaky(x, w, b, cfg.stride, cfg.padding)
        if self.max_pool_cfg is not None:
            x = maxpool2d(x, self.max_pool_cfg.kernel_size, self.max_pool_cfg.stride)
        return jnp.transpose(x, (0, 3, 1, 2))    # NHWC -> NCHW


def _reference(x_nchw, module):
    """Pure-JAX reference (XLA conv, bf16 matmul / f32 accum like the kernels)."""
    x = x_nchw
    for cfg, (w, b) in zip(module.conv_configs, module.params):
        x = lax.conv_general_dilated(
            x.astype(COMPUTE_DTYPE), w.astype(COMPUTE_DTYPE),
            (cfg.stride, cfg.stride),
            [(cfg.padding, cfg.padding), (cfg.padding, cfg.padding)],
            dimension_numbers=('NCHW', 'OIHW', 'NCHW'),
            preferred_element_type=jnp.float32)
        x = x + b[None, :, None, None]
        x = jnp.where(x >= 0, x, NEG_SLOPE * x)
    if module.max_pool_cfg is not None:
        k, s = module.max_pool_cfg.kernel_size, module.max_pool_cfg.stride
        x = lax.reduce_window(x, -jnp.inf, lax.max,
                              (1, 1, k, k), (1, 1, s, s), 'VALID')
    return x


if __name__ == "__main__":
    key = jax.random.PRNGKey(0)
    key, xk, pk = jax.random.split(key, 3)

    # Small YOLOv1-style block: two 3x3 stride-1 convs + LeakyReLU, 2x2 maxpool.
    conv_cfgs = [
        Conv2dConfig(in_channels=4, out_channels=8, kernel_size=3, stride=1, padding=1),
        Conv2dConfig(in_channels=8, out_channels=16, kernel_size=3, stride=1, padding=1),
    ]
    pool_cfg = MaxPoolConfig(kernel_size=2, stride=2)

    module = ConvModule(conv_cfgs, pool_cfg, key=pk)

    x = jax.random.normal(xk, (2, 4, 16, 16), dtype=jnp.float32)  # NCHW

    fwd = jax.jit(lambda inp: module(inp))
    out = jax.block_until_ready(fwd(x))

    ref = jax.block_until_ready(_reference(x, module))
    assert out.shape == ref.shape == (2, 16, 8, 8), (out.shape, ref.shape)
    # bf16 matmuls (both paths) -> allow bf16-level tolerance.
    assert jnp.allclose(out, ref, atol=2e-2, rtol=2e-2), \
        float(jnp.max(jnp.abs(out - ref)))

    print("KERNEL_OK")
</pallas_src>

<mosaic_0001>
module attributes {stable_mosaic.version = 11 : i64} {
  func.func @_conv_leaky_fused_kernel(%arg0: i32, %arg1: i32, %arg2: memref<1x18x18x4xbf16, #tpu.memory_space<vmem>>, %arg3: memref<3x3x4x128xbf16, #tpu.memory_space<vmem>>, %arg4: memref<1x128xf32, #tpu.memory_space<vmem>>, %arg5: memref<256x128xf32, #tpu.memory_space<vmem>>) attributes {dimension_semantics = [#tpu.dimension_semantics<parallel>, #tpu.dimension_semantics<parallel>], iteration_bounds = array<i64: 2, 1>, scalar_prefetch = 0 : i64, scratch_operands = 0 : i64, tpu.core_type = #tpu.core_type<tc>, window_params = [{transform_indices = @transform_0, window_bounds = array<i64: 1, 18, 18, 4>}, {pipeline_mode = #tpu.pipeline_mode<synchronous>, transform_indices = @transform_1, window_bounds = array<i64: 3, 3, 4, 128>}, {pipeline_mode = #tpu.pipeline_mode<synchronous>, transform_indices = @transform_2, window_bounds = array<i64: 1, 128>}, {transform_indices = @transform_3, window_bounds = array<i64: 256, 128>}]} {
    %c16_i32 = arith.constant 16 : i32
    %0 = arith.muli %arg1, %c16_i32 : i32
    %cst = arith.constant 0.000000e+00 : f32
    %1 = vector.broadcast %cst : f32 to vector<256x128xf32>
    %c0_i32 = arith.constant 0 : i32
    %2 = arith.addi %0, %c0_i32 : i32
    %c0 = arith.constant 0 : index
    %3 = arith.index_cast %2 : i32 to index
    %c0_0 = arith.constant 0 : index
    %c0_1 = arith.constant 0 : index
    %4 = vector.load %arg2[%c0, %3, %c0_0, %c0_1] : memref<1x18x18x4xbf16, #tpu.memory_space<vmem>>, vector<1x16x16x4xbf16>
    %5 = vector.shape_cast %4 : vector<1x16x16x4xbf16> to vector<16x16x4xbf16>
    %6 = vector.shape_cast %5 : vector<16x16x4xbf16> to vector<256x4xbf16>
    %c0_2 = arith.constant 0 : index
    %c0_3 = arith.constant 0 : index
    %c0_4 = arith.constant 0 : index
    %c0_5 = arith.constant 0 : index
    %7 = vector.load %arg3[%c0_2, %c0_3, %c0_4, %c0_5] : memref<3x3x4x128xbf16, #tpu.memory_space<vmem>>, vector<1x1x4x128xbf16>
    %8 = vector.shape_cast %7 : vector<1x1x4x128xbf16> to vector<4x128xbf16>
    %cst_6 = arith.constant dense<0.000000e+00> : vector<256x128xf32>
    %9 = tpu.matmul %6, %8, %cst_6 {dimension_numbers = #tpu.dot_dimension_numbers<[1], [0], [0], [1], [0, 0, 1, 1], [], []>} : vector<256x4xbf16>, vector<4x128xbf16>, vector<256x128xf32> -> vector<256x128xf32>
    %10 = arith.addf %1, %9 : vector<256x128xf32>
    %c0_i32_7 = arith.constant 0 : i32
    %11 = arith.addi %0, %c0_i32_7 : i32
    %c0_8 = arith.constant 0 : index
    %12 = arith.index_cast %11 : i32 to index
    %c1 = arith.constant 1 : index
    %c0_9 = arith.constant 0 : index
    %13 = vector.load %arg2[%c0_8, %12, %c1, %c0_9] : memref<1x18x18x4xbf16, #tpu.memory_space<vmem>>, vector<1x16x16x4xbf16>
    %14 = vector.shape_cast %13 : vector<1x16x16x4xbf16> to vector<16x16x4xbf16>
    %15 = vector.shape_cast %14 : vector<16x16x4xbf16> to vector<256x4xbf16>
    %c0_10 = arith.constant 0 : index
    %c1_11 = arith.constant 1 : index
    %c0_12 = arith.constant 0 : index
    %c0_13 = arith.constant 0 : index
    %16 = vector.load %arg3[%c0_10, %c1_11, %c0_12, %c0_13] : memref<3x3x4x128xbf16, #tpu.memory_space<vmem>>, vector<1x1x4x128xbf16>
    %17 = vector.shape_cast %16 : vector<1x1x4x128xbf16> to vector<4x128xbf16>
    %cst_14 = arith.constant dense<0.000000e+00> : vector<256x128xf32>
    %18 = tpu.matmul %15, %17, %cst_14 {dimension_numbers = #tpu.dot_dimension_numbers<[1], [0], [0], [1], [0, 0, 1, 1], [], []>} : vector<256x4xbf16>, vector<4x128xbf16>, vector<256x128xf32> -> vector<256x128xf32>
    %19 = arith.addf %10, %18 : vector<256x128xf32>
    %c0_i32_15 = arith.constant 0 : i32
    %20 = arith.addi %0, %c0_i32_15 : i32
    %c0_16 = arith.constant 0 : index
    %21 = arith.index_cast %20 : i32 to index
    %c2 = arith.constant 2 : index
    %c0_17 = arith.constant 0 : index
    %22 = vector.load %arg2[%c0_16, %21, %c2, %c0_17] : memref<1x18x18x4xbf16, #tpu.memory_space<vmem>>, vector<1x16x16x4xbf16>
    %23 = vector.shape_cast %22 : vector<1x16x16x4xbf16> to vector<16x16x4xbf16>
    %24 = vector.shape_cast %23 : vector<16x16x4xbf16> to vector<256x4xbf16>
    %c0_18 = arith.constant 0 : index
    %c2_19 = arith.constant 2 : index
    %c0_20 = arith.constant 0 : index
    %c0_21 = arith.constant 0 : index
    %25 = vector.load %arg3[%c0_18, %c2_19, %c0_20, %c0_21] : memref<3x3x4x128xbf16, #tpu.memory_space<vmem>>, vector<1x1x4x128xbf16>
    %26 = vector.shape_cast %25 : vector<1x1x4x128xbf16> to vector<4x128xbf16>
    %cst_22 = arith.constant dense<0.000000e+00> : vector<256x128xf32>
    %27 = tpu.matmul %24, %26, %cst_22 {dimension_numbers = #tpu.dot_dimension_numbers<[1], [0], [0], [1], [0, 0, 1, 1], [], []>} : vector<256x4xbf16>, vector<4x128xbf16>, vector<256x128xf32> -> vector<256x128xf32>
    %28 = arith.addf %19, %27 : vector<256x128xf32>
    %c1_i32 = arith.constant 1 : i32
    %29 = arith.addi %0, %c1_i32 : i32
    %c0_23 = arith.constant 0 : index
    %30 = arith.index_cast %29 : i32 to index
    %c0_24 = arith.constant 0 : index
    %c0_25 = arith.constant 0 : index
    %31 = vector.load %arg2[%c0_23, %30, %c0_24, %c0_25] : memref<1x18x18x4xbf16, #tpu.memory_space<vmem>>, vector<1x16x16x4xbf16>
    %32 = vector.shape_cast %31 : vector<1x16x16x4xbf16> to vector<16x16x4xbf16>
    %33 = vector.shape_cast %32 : vector<16x16x4xbf16> to vector<256x4xbf16>
    %c1_26 = arith.constant 1 : index
    %c0_27 = arith.constant 0 : index
    %c0_28 = arith.constant 0 : index
    %c0_29 = arith.constant 0 : index
    %34 = vector.load %arg3[%c1_26, %c0_27, %c0_28, %c0_29] : memref<3x3x4x128xbf16, #tpu.memory_space<vmem>>, vector<1x1x4x128xbf16>
    %35 = vector.shape_cast %34 : vector<1x1x4x128xbf16> to vector<4x128xbf16>
    %cst_30 = arith.constant dense<0.000000e+00> : vector<256x128xf32>
    %36 = tpu.matmul %33, %35, %cst_30 {dimension_numbers = #tpu.dot_dimension_numbers<[1], [0], [0], [1], [0, 0, 1, 1], [], []>} : vector<256x4xbf16>, vector<4x128xbf16>, vector<256x128xf32> -> vector<256x128xf32>
    %37 = arith.addf %28, %36 : vector<256x128xf32>
    %c1_i32_31 = arith.constant 1 : i32
    %38 = arith.addi %0, %c1_i32_31 : i32
    %c0_32 = arith.constant 0 : index
    %39 = arith.index_cast %38 : i32 to index
    %c1_33 = arith.constant 1 : index
    %c0_34 = arith.constant 0 : index
    %40 = vector.load %arg2[%c0_32, %39, %c1_33, %c0_34] : memref<1x18x18x4xbf16, #tpu.memory_space<vmem>>, vector<1x16x16x4xbf16>
    %41 = vector.shape_cast %40 : vector<1x16x16x4xbf16> to vector<16x16x4xbf16>
    %42 = vector.shape_cast %41 : vector<16x16x4xbf16> to vector<256x4xbf16>
    %c1_35 = arith.constant 1 : index
    %c1_36 = arith.constant 1 : index
    %c0_37 = arith.constant 0 : index
    %c0_38 = arith.constant 0 : index
    %43 = vector.load %arg3[%c1_35, %c1_36, %c0_37, %c0_38] : memref<3x3x4x128xbf16, #tpu.memory_space<vmem>>, vector<1x1x4x128xbf16>
    %44 = vector.shape_cast %43 : vector<1x1x4x128xbf16> to vector<4x128xbf16>
    %cst_39 = arith.constant dense<0.000000e+00> : vector<256x128xf32>
    %45 = tpu.matmul %42, %44, %cst_39 {dimension_numbers = #tpu.dot_dimension_numbers<[1], [0], [0], [1], [0, 0, 1, 1], [], []>} : vector<256x4xbf16>, vector<4x128xbf16>, vector<256x128xf32> -> vector<256x128xf32>
    %46 = arith.addf %37, %45 : vector<256x128xf32>
    %c1_i32_40 = arith.constant 1 : i32
    %47 = arith.addi %0, %c1_i32_40 : i32
    %c0_41 = arith.constant 0 : index
    %48 = arith.index_cast %47 : i32 to index
    %c2_42 = arith.constant 2 : index
    %c0_43 = arith.constant 0 : index
    %49 = vector.load %arg2[%c0_41, %48, %c2_42, %c0_43] : memref<1x18x18x4xbf16, #tpu.memory_space<vmem>>, vector<1x16x16x4xbf16>
    %50 = vector.shape_cast %49 : vector<1x16x16x4xbf16> to vector<16x16x4xbf16>
    %51 = vector.shape_cast %50 : vector<16x16x4xbf16> to vector<256x4xbf16>
    %c1_44 = arith.constant 1 : index
    %c2_45 = arith.constant 2 : index
    %c0_46 = arith.constant 0 : index
    %c0_47 = arith.constant 0 : index
    %52 = vector.load %arg3[%c1_44, %c2_45, %c0_46, %c0_47] : memref<3x3x4x128xbf16, #tpu.memory_space<vmem>>, vector<1x1x4x128xbf16>
    %53 = vector.shape_cast %52 : vector<1x1x4x128xbf16> to vector<4x128xbf16>
    %cst_48 = arith.constant dense<0.000000e+00> : vector<256x128xf32>
    %54 = tpu.matmul %51, %53, %cst_48 {dimension_numbers = #tpu.dot_dimension_numbers<[1], [0], [0], [1], [0, 0, 1, 1], [], []>} : vector<256x4xbf16>, vector<4x128xbf16>, vector<256x128xf32> -> vector<256x128xf32>
    %55 = arith.addf %46, %54 : vector<256x128xf32>
    %c2_i32 = arith.constant 2 : i32
    %56 = arith.addi %0, %c2_i32 : i32
    %c0_49 = arith.constant 0 : index
    %57 = arith.index_cast %56 : i32 to index
    %c0_50 = arith.constant 0 : index
    %c0_51 = arith.constant 0 : index
    %58 = vector.load %arg2[%c0_49, %57, %c0_50, %c0_51] : memref<1x18x18x4xbf16, #tpu.memory_space<vmem>>, vector<1x16x16x4xbf16>
    %59 = vector.shape_cast %58 : vector<1x16x16x4xbf16> to vector<16x16x4xbf16>
    %60 = vector.shape_cast %59 : vector<16x16x4xbf16> to vector<256x4xbf16>
    %c2_52 = arith.constant 2 : index
    %c0_53 = arith.constant 0 : index
    %c0_54 = arith.constant 0 : index
    %c0_55 = arith.constant 0 : index
    %61 = vector.load %arg3[%c2_52, %c0_53, %c0_54, %c0_55] : memref<3x3x4x128xbf16, #tpu.memory_space<vmem>>, vector<1x1x4x128xbf16>
    %62 = vector.shape_cast %61 : vector<1x1x4x128xbf16> to vector<4x128xbf16>
    %cst_56 = arith.constant dense<0.000000e+00> : vector<256x128xf32>
    %63 = tpu.matmul %60, %62, %cst_56 {dimension_numbers = #tpu.dot_dimension_numbers<[1], [0], [0], [1], [0, 0, 1, 1], [], []>} : vector<256x4xbf16>, vector<4x128xbf16>, vector<256x128xf32> -> vector<256x128xf32>
    %64 = arith.addf %55, %63 : vector<256x128xf32>
    %c2_i32_57 = arith.constant 2 : i32
    %65 = arith.addi %0, %c2_i32_57 : i32
    %c0_58 = arith.constant 0 : index
    %66 = arith.index_cast %65 : i32 to index
    %c1_59 = arith.constant 1 : index
    %c0_60 = arith.constant 0 : index
    %67 = vector.load %arg2[%c0_58, %66, %c1_59, %c0_60] : memref<1x18x18x4xbf16, #tpu.memory_space<vmem>>, vector<1x16x16x4xbf16>
    %68 = vector.shape_cast %67 : vector<1x16x16x4xbf16> to vector<16x16x4xbf16>
    %69 = vector.shape_cast %68 : vector<16x16x4xbf16> to vector<256x4xbf16>
    %c2_61 = arith.constant 2 : index
    %c1_62 = arith.constant 1 : index
    %c0_63 = arith.constant 0 : index
    %c0_64 = arith.constant 0 : index
    %70 = vector.load %arg3[%c2_61, %c1_62, %c0_63, %c0_64] : memref<3x3x4x128xbf16, #tpu.memory_space<vmem>>, vector<1x1x4x128xbf16>
    %71 = vector.shape_cast %70 : vector<1x1x4x128xbf16> to vector<4x128xbf16>
    %cst_65 = arith.constant dense<0.000000e+00> : vector<256x128xf32>
    %72 = tpu.matmul %69, %71, %cst_65 {dimension_numbers = #tpu.dot_dimension_numbers<[1], [0], [0], [1], [0, 0, 1, 1], [], []>} : vector<256x4xbf16>, vector<4x128xbf16>, vector<256x128xf32> -> vector<256x128xf32>
    %73 = arith.addf %64, %72 : vector<256x128xf32>
    %c2_i32_66 = arith.constant 2 : i32
    %74 = arith.addi %0, %c2_i32_66 : i32
    %c0_67 = arith.constant 0 : index
    %75 = arith.index_cast %74 : i32 to index
    %c2_68 = arith.constant 2 : index
    %c0_69 = arith.constant 0 : index
    %76 = vector.load %arg2[%c0_67, %75, %c2_68, %c0_69] : memref<1x18x18x4xbf16, #tpu.memory_space<vmem>>, vector<1x16x16x4xbf16>
    %77 = vector.shape_cast %76 : vector<1x16x16x4xbf16> to vector<16x16x4xbf16>
    %78 = vector.shape_cast %77 : vector<16x16x4xbf16> to vector<256x4xbf16>
    %c2_70 = arith.constant 2 : index
    %c2_71 = arith.constant 2 : index
    %c0_72 = arith.constant 0 : index
    %c0_73 = arith.constant 0 : index
    %79 = vector.load %arg3[%c2_70, %c2_71, %c0_72, %c0_73] : memref<3x3x4x128xbf16, #tpu.memory_space<vmem>>, vector<1x1x4x128xbf16>
    %80 = vector.shape_cast %79 : vector<1x1x4x128xbf16> to vector<4x128xbf16>
    %cst_74 = arith.constant dense<0.000000e+00> : vector<256x128xf32>
    %81 = tpu.matmul %78, %80, %cst_74 {dimension_numbers = #tpu.dot_dimension_numbers<[1], [0], [0], [1], [0, 0, 1, 1], [], []>} : vector<256x4xbf16>, vector<4x128xbf16>, vector<256x128xf32> -> vector<256x128xf32>
    %82 = arith.addf %73, %81 : vector<256x128xf32>
    %c0_75 = arith.constant 0 : index
    %c0_76 = arith.constant 0 : index
    %83 = vector.load %arg4[%c0_75, %c0_76] : memref<1x128xf32, #tpu.memory_space<vmem>>, vector<1x128xf32>
    %84 = vector.broadcast %83 : vector<1x128xf32> to vector<256x128xf32>
    %85 = arith.addf %82, %84 : vector<256x128xf32>
    %cst_77 = arith.constant 0.000000e+00 : f32
    %86 = vector.broadcast %cst_77 : f32 to vector<256x128xf32>
    %87 = arith.cmpf oge, %85, %86 : vector<256x128xf32>
    %cst_78 = arith.constant 1.000000e-01 : f32
    %88 = vector.broadcast %cst_78 : f32 to vector<256x128xf32>
    %89 = arith.mulf %88, %85 : vector<256x128xf32>
    %90 = arith.select %87, %85, %89 : vector<256x128xi1>, vector<256x128xf32>
    %c0_79 = arith.constant 0 : index
    %c0_80 = arith.constant 0 : index
    %91 = vector.load %arg5[%c0_79, %c0_80] : memref<256x128xf32, #tpu.memory_space<vmem>>, vector<256x128xf32>
    tpu.vector_store %arg5[%c0_79, %c0_80], %90 {strides = array<i32>} : memref<256x128xf32, #tpu.memory_space<vmem>>, vector<256x128xf32>,
    return
  }
  func.func @transform_0(%arg0: i32, %arg1: i32) -> (i32, i32, i32, i32) {
    %c0_i32 = arith.constant 0 : i32
    %c0_i32_0 = arith.constant 0 : i32
    %c0_i32_1 = arith.constant 0 : i32
    %c0_i32_2 = arith.constant 0 : i32
    return %arg0, %c0_i32, %c0_i32_0, %c0_i32_1 : i32, i32, i32, i32
  }
  func.func @transform_1(%arg0: i32, %arg1: i32) -> (i32, i32, i32, i32) {
    %c0_i32 = arith.constant 0 : i32
    %c0_i32_0 = arith.constant 0 : i32
    %c0_i32_1 = arith.constant 0 : i32
    %c0_i32_2 = arith.constant 0 : i32
    %c0_i32_3 = arith.constant 0 : i32
    return %c0_i32, %c0_i32_0, %c0_i32_1, %c0_i32_2 : i32, i32, i32, i32
  }
  func.func @transform_2(%arg0: i32, %arg1: i32) -> (i32, i32) {
    %c0_i32 = arith.constant 0 : i32
    %c0_i32_0 = arith.constant 0 : i32
    %c0_i32_1 = arith.constant 0 : i32
    return %c0_i32, %c0_i32_0 : i32, i32
  }
  func.func @transform_3(%arg0: i32, %arg1: i32) -> (i32, i32) {
    %c1_i32 = arith.constant 1 : i32
    %0 = arith.muli %arg0, %c1_i32 : i32
    %1 = arith.addi %0, %arg1 : i32
    %c0_i32 = arith.constant 0 : i32
    %c0_i32_0 = arith.constant 0 : i32
    return %1, %c0_i32 : i32, i32
  }
}

module attributes {stable_mosaic.version = 11 : i64} {
  func.func @_conv_leaky_fused_kernel(%arg0: i32, %arg1: i32, %arg2: memref<1x18x18x8xbf16, #tpu.memory_space<vmem>>, %arg3: memref<3x3x8x128xbf16, #tpu.memory_space<vmem>>, %arg4: memref<1x128xf32, #tpu.memory_space<vmem>>, %arg5: memref<256x128xf32, #tpu.memory_space<vmem>>) attributes {dimension_semantics = [#tpu.dimension_semantics<parallel>, #tpu.dimension_semantics<parallel>], iteration_bounds = array<i64: 2, 1>, scalar_prefetch = 0 : i64, scratch_operands = 0 : i64, tpu.core_type = #tpu.core_type<tc>, window_params = [{transform_indices = @transform_0, window_bounds = array<i64: 1, 18, 18, 8>}, {pipeline_mode = #tpu.pipeline_mode<synchronous>, transform_indices = @transform_1, window_bounds = array<i64: 3, 3, 8, 128>}, {pipeline_mode = #tpu.pipeline_mode<synchronous>, transform_indices = @transform_2, window_bounds = array<i64: 1, 128>}, {transform_indices = @transform_3, window_bounds = array<i64: 256, 128>}]} {
    %c16_i32 = arith.constant 16 : i32
    %0 = arith.muli %arg1, %c16_i32 : i32
    %cst = arith.constant 0.000000e+00 : f32
    %1 = vector.broadcast %cst : f32 to vector<256x128xf32>
    %c0_i32 = arith.constant 0 : i32
    %2 = arith.addi %0, %c0_i32 : i32
    %c0 = arith.constant 0 : index
    %3 = arith.index_cast %2 : i32 to index
    %c0_0 = arith.constant 0 : index
    %c0_1 = arith.constant 0 : index
    %4 = vector.load %arg2[%c0, %3, %c0_0, %c0_1] : memref<1x18x18x8xbf16, #tpu.memory_space<vmem>>, vector<1x16x16x8xbf16>
    %5 = vector.shape_cast %4 : vector<1x16x16x8xbf16> to vector<16x16x8xbf16>
    %6 = vector.shape_cast %5 : vector<16x16x8xbf16> to vector<256x8xbf16>
    %c0_2 = arith.constant 0 : index
    %c0_3 = arith.constant 0 : index
    %c0_4 = arith.constant 0 : index
    %c0_5 = arith.constant 0 : index
    %7 = vector.load %arg3[%c0_2, %c0_3, %c0_4, %c0_5] : memref<3x3x8x128xbf16, #tpu.memory_space<vmem>>, vector<1x1x8x128xbf16>
    %8 = vector.shape_cast %7 : vector<1x1x8x128xbf16> to vector<8x128xbf16>
    %cst_6 = arith.constant dense<0.000000e+00> : vector<256x128xf32>
    %9 = tpu.matmul %6, %8, %cst_6 {dimension_numbers = #tpu.dot_dimension_numbers<[1], [0], [0], [1], [0, 0, 1, 1], [], []>} : vector<256x8xbf16>, vector<8x128xbf16>, vector<256x128xf32> -> vector<256x128xf32>
    %10 = arith.addf %1, %9 : vector<256x128xf32>
    %c0_i32_7 = arith.constant 0 : i32
    %11 = arith.addi %0, %c0_i32_7 : i32
    %c0_8 = arith.constant 0 : index
    %12 = arith.index_cast %11 : i32 to index
    %c1 = arith.constant 1 : index
    %c0_9 = arith.constant 0 : index
    %13 = vector.load %arg2[%c0_8, %12, %c1, %c0_9] : memref<1x18x18x8xbf16, #tpu.memory_space<vmem>>, vector<1x16x16x8xbf16>
    %14 = vector.shape_cast %13 : vector<1x16x16x8xbf16> to vector<16x16x8xbf16>
    %15 = vector.shape_cast %14 : vector<16x16x8xbf16> to vector<256x8xbf16>
    %c0_10 = arith.constant 0 : index
    %c1_11 = arith.constant 1 : index
    %c0_12 = arith.constant 0 : index
    %c0_13 = arith.constant 0 : index
    %16 = vector.load %arg3[%c0_10, %c1_11, %c0_12, %c0_13] : memref<3x3x8x128xbf16, #tpu.memory_space<vmem>>, vector<1x1x8x128xbf16>
    %17 = vector.shape_cast %16 : vector<1x1x8x128xbf16> to vector<8x128xbf16>
    %cst_14 = arith.constant dense<0.000000e+00> : vector<256x128xf32>
    %18 = tpu.matmul %15, %17, %cst_14 {dimension_numbers = #tpu.dot_dimension_numbers<[1], [0], [0], [1], [0, 0, 1, 1], [], []>} : vector<256x8xbf16>, vector<8x128xbf16>, vector<256x128xf32> -> vector<256x128xf32>
    %19 = arith.addf %10, %18 : vector<256x128xf32>
    %c0_i32_15 = arith.constant 0 : i32
    %20 = arith.addi %0, %c0_i32_15 : i32
    %c0_16 = arith.constant 0 : index
    %21 = arith.index_cast %20 : i32 to index
    %c2 = arith.constant 2 : index
    %c0_17 = arith.constant 0 : index
    %22 = vector.load %arg2[%c0_16, %21, %c2, %c0_17] : memref<1x18x18x8xbf16, #tpu.memory_space<vmem>>, vector<1x16x16x8xbf16>
    %23 = vector.shape_cast %22 : vector<1x16x16x8xbf16> to vector<16x16x8xbf16>
    %24 = vector.shape_cast %23 : vector<16x16x8xbf16> to vector<256x8xbf16>
    %c0_18 = arith.constant 0 : index
    %c2_19 = arith.constant 2 : index
    %c0_20 = arith.constant 0 : index
    %c0_21 = arith.constant 0 : index
    %25 = vector.load %arg3[%c0_18, %c2_19, %c0_20, %c0_21] : memref<3x3x8x128xbf16, #tpu.memory_space<vmem>>, vector<1x1x8x128xbf16>
    %26 = vector.shape_cast %25 : vector<1x1x8x128xbf16> to vector<8x128xbf16>
    %cst_22 = arith.constant dense<0.000000e+00> : vector<256x128xf32>
    %27 = tpu.matmul %24, %26, %cst_22 {dimension_numbers = #tpu.dot_dimension_numbers<[1], [0], [0], [1], [0, 0, 1, 1], [], []>} : vector<256x8xbf16>, vector<8x128xbf16>, vector<256x128xf32> -> vector<256x128xf32>
    %28 = arith.addf %19, %27 : vector<256x128xf32>
    %c1_i32 = arith.constant 1 : i32
    %29 = arith.addi %0, %c1_i32 : i32
    %c0_23 = arith.constant 0 : index
    %30 = arith.index_cast %29 : i32 to index
    %c0_24 = arith.constant 0 : index
    %c0_25 = arith.constant 0 : index
    %31 = vector.load %arg2[%c0_23, %30, %c0_24, %c0_25] : memref<1x18x18x8xbf16, #tpu.memory_space<vmem>>, vector<1x16x16x8xbf16>
    %32 = vector.shape_cast %31 : vector<1x16x16x8xbf16> to vector<16x16x8xbf16>
    %33 = vector.shape_cast %32 : vector<16x16x8xbf16> to vector<256x8xbf16>
    %c1_26 = arith.constant 1 : index
    %c0_27 = arith.constant 0 : index
    %c0_28 = arith.constant 0 : index
    %c0_29 = arith.constant 0 : index
    %34 = vector.load %arg3[%c1_26, %c0_27, %c0_28, %c0_29] : memref<3x3x8x128xbf16, #tpu.memory_space<vmem>>, vector<1x1x8x128xbf16>
    %35 = vector.shape_cast %34 : vector<1x1x8x128xbf16> to vector<8x128xbf16>
    %cst_30 = arith.constant dense<0.000000e+00> : vector<256x128xf32>
    %36 = tpu.matmul %33, %35, %cst_30 {dimension_numbers = #tpu.dot_dimension_numbers<[1], [0], [0], [1], [0, 0, 1, 1], [], []>} : vector<256x8xbf16>, vector<8x128xbf16>, vector<256x128xf32> -> vector<256x128xf32>
    %37 = arith.addf %28, %36 : vector<256x128xf32>
    %c1_i32_31 = arith.constant 1 : i32
    %38 = arith.addi %0, %c1_i32_31 : i32
    %c0_32 = arith.constant 0 : index
    %39 = arith.index_cast %38 : i32 to index
    %c1_33 = arith.constant 1 : index
    %c0_34 = arith.constant 0 : index
    %40 = vector.load %arg2[%c0_32, %39, %c1_33, %c0_34] : memref<1x18x18x8xbf16, #tpu.memory_space<vmem>>, vector<1x16x16x8xbf16>
    %41 = vector.shape_cast %40 : vector<1x16x16x8xbf16> to vector<16x16x8xbf16>
    %42 = vector.shape_cast %41 : vector<16x16x8xbf16> to vector<256x8xbf16>
    %c1_35 = arith.constant 1 : index
    %c1_36 = arith.constant 1 : index
    %c0_37 = arith.constant 0 : index
    %c0_38 = arith.constant 0 : index
    %43 = vector.load %arg3[%c1_35, %c1_36, %c0_37, %c0_38] : memref<3x3x8x128xbf16, #tpu.memory_space<vmem>>, vector<1x1x8x128xbf16>
    %44 = vector.shape_cast %43 : vector<1x1x8x128xbf16> to vector<8x128xbf16>
    %cst_39 = arith.constant dense<0.000000e+00> : vector<256x128xf32>
    %45 = tpu.matmul %42, %44, %cst_39 {dimension_numbers = #tpu.dot_dimension_numbers<[1], [0], [0], [1], [0, 0, 1, 1], [], []>} : vector<256x8xbf16>, vector<8x128xbf16>, vector<256x128xf32> -> vector<256x128xf32>
    %46 = arith.addf %37, %45 : vector<256x128xf32>
    %c1_i32_40 = arith.constant 1 : i32
    %47 = arith.addi %0, %c1_i32_40 : i32
    %c0_41 = arith.constant 0 : index
    %48 = arith.index_cast %47 : i32 to index
    %c2_42 = arith.constant 2 : index
    %c0_43 = arith.constant 0 : index
    %49 = vector.load %arg2[%c0_41, %48, %c2_42, %c0_43] : memref<1x18x18x8xbf16, #tpu.memory_space<vmem>>, vector<1x16x16x8xbf16>
    %50 = vector.shape_cast %49 : vector<1x16x16x8xbf16> to vector<16x16x8xbf16>
    %51 = vector.shape_cast %50 : vector<16x16x8xbf16> to vector<256x8xbf16>
    %c1_44 = arith.constant 1 : index
    %c2_45 = arith.constant 2 : index
    %c0_46 = arith.constant 0 : index
    %c0_47 = arith.constant 0 : index
    %52 = vector.load %arg3[%c1_44, %c2_45, %c0_46, %c0_47] : memref<3x3x8x128xbf16, #tpu.memory_space<vmem>>, vector<1x1x8x128xbf16>
    %53 = vector.shape_cast %52 : vector<1x1x8x128xbf16> to vector<8x128xbf16>
    %cst_48 = arith.constant dense<0.000000e+00> : vector<256x128xf32>
    %54 = tpu.matmul %51, %53, %cst_48 {dimension_numbers = #tpu.dot_dimension_numbers<[1], [0], [0], [1], [0, 0, 1, 1], [], []>} : vector<256x8xbf16>, vector<8x128xbf16>, vector<256x128xf32> -> vector<256x128xf32>
    %55 = arith.addf %46, %54 : vector<256x128xf32>
    %c2_i32 = arith.constant 2 : i32
    %56 = arith.addi %0, %c2_i32 : i32
    %c0_49 = arith.constant 0 : index
    %57 = arith.index_cast %56 : i32 to index
    %c0_50 = arith.constant 0 : index
    %c0_51 = arith.constant 0 : index
    %58 = vector.load %arg2[%c0_49, %57, %c0_50, %c0_51] : memref<1x18x18x8xbf16, #tpu.memory_space<vmem>>, vector<1x16x16x8xbf16>
    %59 = vector.shape_cast %58 : vector<1x16x16x8xbf16> to vector<16x16x8xbf16>
    %60 = vector.shape_cast %59 : vector<16x16x8xbf16> to vector<256x8xbf16>
    %c2_52 = arith.constant 2 : index
    %c0_53 = arith.constant 0 : index
    %c0_54 = arith.constant 0 : index
    %c0_55 = arith.constant 0 : index
    %61 = vector.load %arg3[%c2_52, %c0_53, %c0_54, %c0_55] : memref<3x3x8x128xbf16, #tpu.memory_space<vmem>>, vector<1x1x8x128xbf16>
    %62 = vector.shape_cast %61 : vector<1x1x8x128xbf16> to vector<8x128xbf16>
    %cst_56 = arith.constant dense<0.000000e+00> : vector<256x128xf32>
    %63 = tpu.matmul %60, %62, %cst_56 {dimension_numbers = #tpu.dot_dimension_numbers<[1], [0], [0], [1], [0, 0, 1, 1], [], []>} : vector<256x8xbf16>, vector<8x128xbf16>, vector<256x128xf32> -> vector<256x128xf32>
    %64 = arith.addf %55, %63 : vector<256x128xf32>
    %c2_i32_57 = arith.constant 2 : i32
    %65 = arith.addi %0, %c2_i32_57 : i32
    %c0_58 = arith.constant 0 : index
    %66 = arith.index_cast %65 : i32 to index
    %c1_59 = arith.constant 1 : index
    %c0_60 = arith.constant 0 : index
    %67 = vector.load %arg2[%c0_58, %66, %c1_59, %c0_60] : memref<1x18x18x8xbf16, #tpu.memory_space<vmem>>, vector<1x16x16x8xbf16>
    %68 = vector.shape_cast %67 : vector<1x16x16x8xbf16> to vector<16x16x8xbf16>
    %69 = vector.shape_cast %68 : vector<16x16x8xbf16> to vector<256x8xbf16>
    %c2_61 = arith.constant 2 : index
    %c1_62 = arith.constant 1 : index
    %c0_63 = arith.constant 0 : index
    %c0_64 = arith.constant 0 : index
    %70 = vector.load %arg3[%c2_61, %c1_62, %c0_63, %c0_64] : memref<3x3x8x128xbf16, #tpu.memory_space<vmem>>, vector<1x1x8x128xbf16>
    %71 = vector.shape_cast %70 : vector<1x1x8x128xbf16> to vector<8x128xbf16>
    %cst_65 = arith.constant dense<0.000000e+00> : vector<256x128xf32>
    %72 = tpu.matmul %69, %71, %cst_65 {dimension_numbers = #tpu.dot_dimension_numbers<[1], [0], [0], [1], [0, 0, 1, 1], [], []>} : vector<256x8xbf16>, vector<8x128xbf16>, vector<256x128xf32> -> vector<256x128xf32>
    %73 = arith.addf %64, %72 : vector<256x128xf32>
    %c2_i32_66 = arith.constant 2 : i32
    %74 = arith.addi %0, %c2_i32_66 : i32
    %c0_67 = arith.constant 0 : index
    %75 = arith.index_cast %74 : i32 to index
    %c2_68 = arith.constant 2 : index
    %c0_69 = arith.constant 0 : index
    %76 = vector.load %arg2[%c0_67, %75, %c2_68, %c0_69] : memref<1x18x18x8xbf16, #tpu.memory_space<vmem>>, vector<1x16x16x8xbf16>
    %77 = vector.shape_cast %76 : vector<1x16x16x8xbf16> to vector<16x16x8xbf16>
    %78 = vector.shape_cast %77 : vector<16x16x8xbf16> to vector<256x8xbf16>
    %c2_70 = arith.constant 2 : index
    %c2_71 = arith.constant 2 : index
    %c0_72 = arith.constant 0 : index
    %c0_73 = arith.constant 0 : index
    %79 = vector.load %arg3[%c2_70, %c2_71, %c0_72, %c0_73] : memref<3x3x8x128xbf16, #tpu.memory_space<vmem>>, vector<1x1x8x128xbf16>
    %80 = vector.shape_cast %79 : vector<1x1x8x128xbf16> to vector<8x128xbf16>
    %cst_74 = arith.constant dense<0.000000e+00> : vector<256x128xf32>
    %81 = tpu.matmul %78, %80, %cst_74 {dimension_numbers = #tpu.dot_dimension_numbers<[1], [0], [0], [1], [0, 0, 1, 1], [], []>} : vector<256x8xbf16>, vector<8x128xbf16>, vector<256x128xf32> -> vector<256x128xf32>
    %82 = arith.addf %73, %81 : vector<256x128xf32>
    %c0_75 = arith.constant 0 : index
    %c0_76 = arith.constant 0 : index
    %83 = vector.load %arg4[%c0_75, %c0_76] : memref<1x128xf32, #tpu.memory_space<vmem>>, vector<1x128xf32>
    %84 = vector.broadcast %83 : vector<1x128xf32> to vector<256x128xf32>
    %85 = arith.addf %82, %84 : vector<256x128xf32>
    %cst_77 = arith.constant 0.000000e+00 : f32
    %86 = vector.broadcast %cst_77 : f32 to vector<256x128xf32>
    %87 = arith.cmpf oge, %85, %86 : vector<256x128xf32>
    %cst_78 = arith.constant 1.000000e-01 : f32
    %88 = vector.broadcast %cst_78 : f32 to vector<256x128xf32>
    %89 = arith.mulf %88, %85 : vector<256x128xf32>
    %90 = arith.select %87, %85, %89 : vector<256x128xi1>, vector<256x128xf32>
    %c0_79 = arith.constant 0 : index
    %c0_80 = arith.constant 0 : index
    %91 = vector.load %arg5[%c0_79, %c0_80] : memref<256x128xf32, #tpu.memory_space<vmem>>, vector<256x128xf32>
    tpu.vector_store %arg5[%c0_79, %c0_80], %90 {strides = array<i32>} : memref<256x128xf32, #tpu.memory_space<vmem>>, vector<256x128xf32>,
    return
  }
  func.func @transform_0(%arg0: i32, %arg1: i32) -> (i32, i32, i32, i32) {
    %c0_i32 = arith.constant 0 : i32
    %c0_i32_0 = arith.constant 0 : i32
    %c0_i32_1 = arith.constant 0 : i32
    %c0_i32_2 = arith.constant 0 : i32
    return %arg0, %c0_i32, %c0_i32_0, %c0_i32_1 : i32, i32, i32, i32
  }
  func.func @transform_1(%arg0: i32, %arg1: i32) -> (i32, i32, i32, i32) {
    %c0_i32 = arith.constant 0 : i32
    %c0_i32_0 = arith.constant 0 : i32
    %c0_i32_1 = arith.constant 0 : i32
    %c0_i32_2 = arith.constant 0 : i32
    %c0_i32_3 = arith.constant 0 : i32
    return %c0_i32, %c0_i32_0, %c0_i32_1, %c0_i32_2 : i32, i32, i32, i32
  }
  func.func @transform_2(%arg0: i32, %arg1: i32) -> (i32, i32) {
    %c0_i32 = arith.constant 0 : i32
    %c0_i32_0 = arith.constant 0 : i32
    %c0_i32_1 = arith.constant 0 : i32
    return %c0_i32, %c0_i32_0 : i32, i32
  }
  func.func @transform_3(%arg0: i32, %arg1: i32) -> (i32, i32) {
    %c1_i32 = arith.constant 1 : i32
    %0 = arith.muli %arg0, %c1_i32 : i32
    %1 = arith.addi %0, %arg1 : i32
    %c0_i32 = arith.constant 0 : i32
    %c0_i32_0 = arith.constant 0 : i32
    return %1, %c0_i32 : i32, i32
  }
}

module attributes {stable_mosaic.version = 11 : i64} {
  func.func @_maxpool_kernel(%arg0: i32, %arg1: memref<4x128x128xf32, #tpu.memory_space<vmem>>, %arg2: memref<128x128xf32, #tpu.memory_space<vmem>>) attributes {dimension_semantics = [#tpu.dimension_semantics<parallel>], iteration_bounds = array<i64: 1>, scalar_prefetch = 0 : i64, scratch_operands = 0 : i64, tpu.core_type = #tpu.core_type<tc>, window_params = [{transform_indices = @transform_0, window_bounds = array<i64: 4, 128, 128>}, {transform_indices = @transform_1, window_bounds = array<i64: 128, 128>}]} {
    %c0 = arith.constant 0 : index
    %c0_0 = arith.constant 0 : index
    %c0_1 = arith.constant 0 : index
    %0 = vector.load %arg1[%c0, %c0_0, %c0_1] : memref<4x128x128xf32, #tpu.memory_space<vmem>>, vector<4x128x128xf32>
    %cst = arith.constant dense<0xFF800000> : vector<128x128xf32>
    %1 = vector.multi_reduction <maximumf>, %0, %cst [0] : vector<4x128x128xf32> to vector<128x128xf32>
    %c0_2 = arith.constant 0 : index
    %c0_3 = arith.constant 0 : index
    %2 = vector.load %arg2[%c0_2, %c0_3] : memref<128x128xf32, #tpu.memory_space<vmem>>, vector<128x128xf32>
    tpu.vector_store %arg2[%c0_2, %c0_3], %1 {strides = array<i32>} : memref<128x128xf32, #tpu.memory_space<vmem>>, vector<128x128xf32>,
    return
  }
  func.func @transform_0(%arg0: i32) -> (i32, i32, i32) {
    %c0_i32 = arith.constant 0 : i32
    %c0_i32_0 = arith.constant 0 : i32
    %c0_i32_1 = arith.constant 0 : i32
    return %c0_i32, %arg0, %c0_i32_0 : i32, i32, i32
  }
  func.func @transform_1(%arg0: i32) -> (i32, i32) {
    %c0_i32 = arith.constant 0 : i32
    %c0_i32_0 = arith.constant 0 : i32
    return %arg0, %c0_i32 : i32, i32
  }
}

</mosaic_0001>

<bundles_post_ra>
// kernel: _lambda_.5
= control target key start
LH: loop header
LB: loop body
LE: loop exit
PB: predicated region body
PF: predicated region fallthrough
CT: control target
= control target key end

     0   :  { %s397_s0 = inlined_call_operand.vmem [shape: f32[4,128,128], index: 0, kind: input, shape index: {}]   ;;  %s398_s1 = inlined_call_operand.hbm [shape: f32[128,128], index: 1, kind: output, shape index: {}]  }
   0x1   :  { %v9_v0 = vld [vmem:[%s397_s0] sm:$0xff]  ;;  %v10_v4 = vld [vmem:[%s397_s0 + $0x8] sm:$0xff]  ;;  %v11_v9 = vld [vmem:[%s397_s0 + $0x10] sm:$0xff] }
   0x2   :  { %v25_v1 = vld [vmem:[%s397_s0 + $0x80] sm:$0xff]  ;;  %v26_v5 = vld [vmem:[%s397_s0 + $0x88] sm:$0xff]  ;;  %v27_v12 = vld [vmem:[%s397_s0 + $0x90] sm:$0xff] }
   0x3   :  { %v41_v2 = vld [vmem:[%s397_s0 + $0x100] sm:$0xff]  ;;  %v73_v3 = vmax.f32 %v9_v0, %v25_v1  ;;  %v42_v7 = vld [vmem:[%s397_s0 + $0x108] sm:$0xff]  ;;  %v76_v8 = vmax.f32 %v10_v4, %v26_v5  ;;  %v43_v13 = vld [vmem:[%s397_s0 + $0x110] sm:$0xff]  ;;  %v79_v15 = vmax.f32 %v11_v9, %v27_v12 }
   0x4   :  { %v57_v6 = vld [vmem:[%s397_s0 + $0x180] sm:$0xff]  ;;  %v58_v11 = vld [vmem:[%s397_s0 + $0x188] sm:$0xff]  ;;  %v12_v16 = vld [vmem:[%s397_s0 + $0x18] sm:$0xff] }
   0x5   :  { %v74_v10 = vmax.f32 %v73_v3, %v41_v2  ;;  %v77_v14 = vmax.f32 %v76_v8, %v42_v7  ;;  %v28_v17 = vld [vmem:[%s397_s0 + $0x98] sm:$0xff]  ;;  %v59_v20 = vld [vmem:[%s397_s0 + $0x190] sm:$0xff]  ;;  %v13_v22 = vld [vmem:[%s397_s0 + $0x20] sm:$0xff]  ;;  %v80_v25 = vmax.f32 %v79_v15, %v43_v13 }
   0x6   :  { %v44_v18 = vld [vmem:[%s397_s0 + $0x118] sm:$0xff]  ;;  %v82_v21 = vmax.f32 %v12_v16, %v28_v17  ;;  %v29_v23 = vld [vmem:[%s397_s0 + $0xa0] sm:$0xff]  ;;  %v14_v29 = vld [vmem:[%s397_s0 + $0x28] sm:$0xff] }
   0x7   :  { %v75_v19 = vmax.f32 %v74_v10, %v57_v6  ;;  %v78_v24 = vmax.f32 %v77_v14, %v58_v11  ;;  %v60_v26 = vld [vmem:[%s397_s0 + $0x198] sm:$0xff]  ;;  %v45_v27 = vld [vmem:[%s397_s0 + $0x120] sm:$0xff]  ;;  %v85_v28 = vmax.f32 %v13_v22, %v29_v23  ;;  %v30_v32 = vld [vmem:[%s397_s0 + $0xa8] sm:$0xff]  ;;  %v81_v34 = vmax.f32 %v80_v25, %v59_v20 }
   0x8   :  { %v83_v30 = vmax.f32 %v82_v21, %v44_v18  ;;  %v61_v31 = vld [vmem:[%s397_s0 + $0x1a0] sm:$0xff]  ;;  %v46_v33 = vld [vmem:[%s397_s0 + $0x128] sm:$0xff]  ;;  %v88_v36 = vmax.f32 %v14_v29, %v30_v32  ;;  %v15_v37 = vld [vmem:[%s397_s0 + $0x30] sm:$0xff] }
   0x9   :  { %121 = vst [vmem:[#allocation2] sm:$0xff] %v75_v19  ;;  %122 = vst [vmem:[#allocation2 + $0x8] sm:$0xff] %v78_v24  ;;  %v86_v35 = vmax.f32 %v85_v28, %v45_v27  ;;  %v31_v38 = vld [vmem:[%s397_s0 + $0xb0] sm:$0xff]  ;;  %v62_v41 = vld [vmem:[%s397_s0 + $0x1a8] sm:$0xff] }
   0xa   :  { %v47_v39 = vld [vmem:[%s397_s0 + $0x130] sm:$0xff]  ;;  %v84_v40 = vmax.f32 %v83_v30, %v60_v26  ;;  %v91_v42 = vmax.f32 %v15_v37, %v31_v38  ;;  %v16_v43 = vld [vmem:[%s397_s0 + $0x38] sm:$0xff]  ;;  %123 = vst [vmem:[#allocation2 + $0x10] sm:$0xff] %v81_v34  ;;  %v89_v46 = vmax.f32 %v88_v36, %v46_v33  ;;  %v17_v50 = vld [vmem:[%s397_s0 + $0x40] sm:$0xff] }
   0xb   :  { %v32_v44 = vld [vmem:[%s397_s0 + $0xb8] sm:$0xff]  ;;  %v87_v45 = vmax.f32 %v86_v35, %v61_v31  ;;  %v63_v47 = vld [vmem:[%s397_s0 + $0x1b0] sm:$0xff]  ;;  %v33_v53 = vld [vmem:[%s397_s0 + $0xc0] sm:$0xff] }
   0xc   :  { %v48_v48 = vld [vmem:[%s397_s0 + $0x138] sm:$0xff]  ;;  %v94_v49 = vmax.f32 %v16_v43, %v32_v44  ;;  %124 = vst [vmem:[#allocation2 + $0x18] sm:$0xff] %v84_v40  ;;  %v92_v51 = vmax.f32 %v91_v42, %v47_v39  ;;  %v49_v54 = vld [vmem:[%s397_s0 + $0x140] sm:$0xff]  ;;  %v90_v55 = vmax.f32 %v89_v46, %v62_v41  ;;  %v97_v57 = vmax.f32 %v17_v50, %v33_v53  ;;  %v18_v58 = vld [vmem:[%s397_s0 + $0x48] sm:$0xff] }
   0xd   :  { %v64_v52 = vld [vmem:[%s397_s0 + $0x1b8] sm:$0xff]  ;;  %125 = vst [vmem:[#allocation2 + $0x20] sm:$0xff] %v87_v45  ;;  %v34_v59 = vld [vmem:[%s397_s0 + $0xc8] sm:$0xff]  ;;  %v65_v62 = vld [vmem:[%s397_s0 + $0x1c0] sm:$0xff] }
   0xe   :  { %v95_v56 = vmax.f32 %v94_v49, %v48_v48  ;;  %v50_v60 = vld [vmem:[%s397_s0 + $0x148] sm:$0xff]  ;;  %v93_v61 = vmax.f32 %v92_v51, %v63_v47  ;;  %v100_v63 = vmax.f32 %v18_v58, %v34_v59  ;;  %v19_v0 = vld [vmem:[%s397_s0 + $0x50] sm:$0xff]  ;;  %126 = vst [vmem:[#allocation2 + $0x28] sm:$0xff] %v90_v55  ;;  %v98_v3 = vmax.f32 %v97_v57, %v49_v54  ;;  %v20_v7 = vld [vmem:[%s397_s0 + $0x58] sm:$0xff] }
   0xf   :  { %v35_v1 = vld [vmem:[%s397_s0 + $0xd0] sm:$0xff]  ;;  %v66_v4 = vld [vmem:[%s397_s0 + $0x1c8] sm:$0xff]  ;;  %v36_v10 = vld [vmem:[%s397_s0 + $0xd8] sm:$0xff] }
  0x10   :  { %v96_v2 = vmax.f32 %v95_v56, %v64_v52  ;;  %v51_v5 = vld [vmem:[%s397_s0 + $0x150] sm:$0xff]  ;;  %v103_v6 = vmax.f32 %v19_v0, %v35_v1  ;;  %127 = vst [vmem:[#allocation2 + $0x30] sm:$0xff] %v93_v61  ;;  %v101_v8 = vmax.f32 %v100_v63, %v50_v60  ;;  %v52_v11 = vld [vmem:[%s397_s0 + $0x158] sm:$0xff]  ;;  %v99_v12 = vmax.f32 %v98_v3, %v65_v62  ;;  %v21_v15 = vld [vmem:[%s397_s0 + $0x60] sm:$0xff] }
  0x11   :  { %v67_v9 = vld [vmem:[%s397_s0 + $0x1d0] sm:$0xff]  ;;  %v106_v14 = vmax.f32 %v20_v7, %v36_v10  ;;  %v37_v16 = vld [vmem:[%s397_s0 + $0xe0] sm:$0xff]  ;;  %v68_v19 = vld [vmem:[%s397_s0 + $0x1d8] sm:$0xff] }
  0x12   :  { %128 = vst [vmem:[#allocation2 + $0x38] sm:$0xff] %v96_v2  ;;  %v104_v13 = vmax.f32 %v103_v6, %v51_v5  ;;  %v53_v17 = vld [vmem:[%s397_s0 + $0x160] sm:$0xff]  ;;  %v102_v18 = vmax.f32 %v101_v8, %v66_v4  ;;  %v109_v20 = vmax.f32 %v21_v15, %v37_v16  ;;  %v22_v21 = vld [vmem:[%s397_s0 + $0x68] sm:$0xff]  ;;  %129 = vst [vmem:[#allocation2 + $0x40] sm:$0xff] %v99_v12 }
  0x13   :  { %v38_v22 = vld [vmem:[%s397_s0 + $0xe8] sm:$0xff]  ;;  %v107_v24 = vmax.f32 %v106_v14, %v52_v11  ;;  %v69_v25 = vld [vmem:[%s397_s0 + $0x1e0] sm:$0xff]  ;;  %v23_v28 = vld [vmem:[%s397_s0 + $0x70] sm:$0xff] }
  0x14   :  { %v105_v23 = vmax.f32 %v104_v13, %v67_v9  ;;  %v54_v26 = vld [vmem:[%s397_s0 + $0x168] sm:$0xff]  ;;  %v112_v27 = vmax.f32 %v22_v21, %v38_v22  ;;  %130 = vst [vmem:[#allocation2 + $0x48] sm:$0xff] %v102_v18  ;;  %v110_v29 = vmax.f32 %v109_v20, %v53_v17  ;;  %v39_v31 = vld [vmem:[%s397_s0 + $0xf0] sm:$0xff]  ;;  %v24_v36 = vld [vmem:[%s397_s0 + $0x78] sm:$0xff] }
  0x15   :  { %v70_v30 = vld [vmem:[%s397_s0 + $0x1e8] sm:$0xff]  ;;  %v55_v32 = vld [vmem:[%s397_s0 + $0x170] sm:$0xff]  ;;  %v108_v33 = vmax.f32 %v107_v24, %v68_v19  ;;  %v115_v35 = vmax.f32 %v23_v28, %v39_v31  ;;  %v40_v37 = vld [vmem:[%s397_s0 + $0xf8] sm:$0xff] }
  0x16   :  { %131 = vst [vmem:[#allocation2 + $0x50] sm:$0xff] %v105_v23  ;;  %v113_v34 = vmax.f32 %v112_v27, %v54_v26  ;;  %v56_v38 = vld [vmem:[%s397_s0 + $0x178] sm:$0xff]  ;;  %v111_v39 = vmax.f32 %v110_v29, %v69_v25  ;;  %v71_v40 = vld [vmem:[%s397_s0 + $0x1f0] sm:$0xff]  ;;  %v118_v41 = vmax.f32 %v24_v36, %v40_v37 }
  0x17   :  { %6 = vsyncpa [#allocation3], 0  ;;  %132 = vst [vmem:[#allocation2 + $0x58] sm:$0xff] %v108_v33  ;;  %v116_v43 = vmax.f32 %v115_v35, %v55_v32  ;;  %v72_v44 = vld [vmem:[%s397_s0 + $0x1f8] sm:$0xff]  ;;  %s180_s18 = smov [#allocation2]  }
  0x18   :  { %v114_v42 = vmax.f32 %v113_v34, %v70_v30  ;;  %s142_s19 = sshll.u32 %s180_s18, 4  ;;  %133 = vst [vmem:[#allocation2 + $0x60] sm:$0xff] %v111_v39  ;;  %v119_v45 = vmax.f32 %v118_v41, %v56_v38  ;;  %s143_s19 = int_to_ptr.vmem [resolvable:$true] %s142_s19 }
  0x19   :  { %v117_v46 = vmax.f32 %v116_v43, %v71_v40  ;;  %s156_s20 = scalar_lea.vmem %s143_s19, 2048  ;;  %p161_p1 = scmp.lt.s32.totalorder %s143_s19, %s143_s19 }
  0x1a   :  { %134 = vst [vmem:[#allocation2 + $0x68] sm:$0xff] %v114_v42  ;;  %v120_v47 = vmax.f32 %v119_v45, %v72_v44  ;;  %p157_p0 = scmp.ne.s32.totalorder %s143_s19, %s156_s20  ;;  %p162_p2 = scmp.lt.s32.totalorder %s156_s20, %s156_s20 }
  0x1b   :  { %135 = vst [vmem:[#allocation2 + $0x70] sm:$0xff] %v117_v46 }
  0x1c   :  { %136 = vst [vmem:[#allocation2 + $0x78] sm:$0xff] %v120_v47  ;;  %p163_p3 = por %p162_p2, %p161_p1 }
  0x1e   :  { %p164_p4 = pnand %p163_p3, %p157_p0 }
  0x20   :  { %167 = shalt.err (!%p164_p4)
}
  0x21   :  { %s168_s0 = scalar_lea.hbm %s398_s1, 2048 }
  0x22   :  { %p169_p5 = scmp.ne.s32.totalorder %s398_s1, %s168_s0  ;;  %p172_p6 = scmp.lt.u32.totalorder %s168_s0, %s398_s1 }
  0x24   :  { %p174_p7 = pnand %p172_p6, %p169_p5 }
  0x26   :  { %177 = shalt.err (!%p174_p7)
}
  0x27   :  { %s181_s27 = smov 128   ;;  %s182_s28 = smov 8  }
  0x28   :  { %148 = dma.vmem_to_hbm [thread:$0]  %s143_s19, 2048, %s398_s1, [#allocation3], %s181_s27, %s181_s27, %s182_s28  }
  0x29   :  { %178 = dma.done.wait [#allocation3], 2048  }
  0x2a   :  { %179 = vsyncadd [#allocation3], 4294965248 }
  0x2b   :  { %152 = vsyncpa [#allocation3], 1 }

// kernel: _lambda_.3
= control target key start
LH: loop header
LB: loop body
LE: loop exit
PB: predicated region body
PF: predicated region fallthrough
CT: control target
= control target key end

     0   :  { %s6452_s12 = smov 0   ;;  %s6454_s13 = smov 0   ;;  %s8282_s0 = inlined_call_operand.vmem [shape: bf16[2,18,18,4], index: 0, kind: input, shape index: {}]   ;;  %s8283_s1 = inlined_call_operand.vmem [shape: bf16[3,3,4,128], index: 1, kind: input, shape index: {}]   ;;  %s8284_s2 = inlined_call_operand.vmem [shape: f32[1,128], index: 2, kind: input, shape index: {}]   ;;  %s8285_s3 = inlined_call_operand.vmem [shape: f32[512,128], index: 3, kind: output, shape index: {}]  }
   0x1   :  { %s6456_s14 = smov 0  }
   0x2 LB: > { %s25_s15 = sadd.s32 1, %s6426_s13  ;;  %p5008_p0 = scmp.ge.s32.totalorder %s6430_s14, 1  ;;  %s6430_s14 = sphi %s6456_s14, %s13_s14   ;;  %s6426_s13 = sphi %s6454_s13, %s8354_s13   ;;  %s6422_s12 = sphi %s6452_s12, %s8353_s12  }
   0x3   : > { %p27_p1 = scmp.ge.s32.totalorder %s25_s15, 2  ;;  %p151_p2 = scmp.lt.s32.totalorder %s6430_s14, 3 }
   0x5   : > { %s8356_s15 = smov (%p27_p1, %s25_s15), 0  ;;  %p152_p3 = pnand %p5008_p0, %p151_p2 }
   0x7   : > { %155 = sbr.rel (%p152_p3) target bundleno = 590 (0x24e), region = 32 }
   0xe   : > { %v5012_v0 = vld [vmem:[%s8283_s1 + $0x2] sm:$0x3]  ;;  %vm729_vm0 = vcmask 1041408   ;;  %v5239_v1 = vld [vmem:[%s8283_s1 + $0x8] sm:$0x3]  ;;  %p176_p4 = scmp.lt.s32.totalorder %s6422_s12, 1 }
   0xf   : > { %6268 = vmatprep.subr.msk.bf16.mxu1 %vm729_vm0, %v5012_v0  ;;  %6272 = vmatprep.subr.msk.bf16.mxu0 %vm729_vm0, %v5239_v1  ;;  %v731_v2 = vsel %vm729_vm0, %v5012_v0, 0  ;;  %v6483_v3 = vsel %vm729_vm0, %v5239_v1, 0  ;;  %v226_v4 = vld [vmem:[%s8283_s1] sm:$0x3]  ;;  %v5304_v5 = vld [vmem:[%s8283_s1 + $0xa] sm:$0x3] }
  0x10   : > { %8299 = vst [vmem:[#allocation2_spill] sm:$0xff] %v6483_v3  ;;  %5705 = vmatpush3.bf16.msra.mxu1 %v731_v2  ;;  %5841 = vmatpush3.bf16.msra.mxu0 %v6483_v3  ;;  %s177_s20 = scalar_select %p176_p4, %s6422_s12, 1  ;;  %vm243_vm1 = vsmask.f32 3328  ;;  %vm244_vm2 = vsmask.f32 7440 }
  0x11   : > { %6269 = vmatprep.subr.msk.bf16.mxu1 %vm729_vm0, %v226_v4  ;;  %6274 = vmatprep.subr.msk.bf16.mxu0 %vm729_vm0, %v5304_v5  ;;  %vm680_vm3 = vcmask 31744   ;;  %v6511_v17 = vsel %vm729_vm0, %v226_v4, 0  ;;  %v6517_v26 = vld [vmem:[%s8283_s1 + $0xc] sm:$0x3]  ;;  %vm6524_vm4 = vmor %vm243_vm1, %vm244_vm2  ;;  %v6530_v37 = vsel %vm729_vm0, %v5304_v5, 0  ;;  %vm1234_vm5 = vcmask 1042432  }
  0x12   : > { %s6278_s25 = smul.u32 216, %s177_s20  ;;  %v6534_v41 = vsel %vm729_vm0, %v6517_v26, 0  ;;  %vm1235_vm6 = vcmask 1046532   ;;  %s5010_s20 = sshll.u32 %s6422_s12, 5 }
  0x13   : > { %vm6750_vm7 = vmor %vm1234_vm5, %vm1235_vm6  ;;  %p183_p5 = scmp.lt.s32.totalorder %s5010_s20, 63 }
  0x14   : > { %s6498_s28 = scalar_lea.vmem %s8282_s0, %s6278_s25 }
  0x15   : > { %v194_v6 = vld [vmem:[%s6498_s28] sm:$0xf]  ;;  %v195_v7 = vld [vmem:[%s6498_s28 + $0x4] sm:$0xf]  ;;  %v227_v8 = vld [vmem:[%s6498_s28 + $0x8] sm:$0x1] }
  0x16   : > { %v247_v9 = vshrl.u32 %v194_v6, 16  ;;  %v250_v10 = vshll.u32 %v194_v6, 16  ;;  %v256_v11 = vshll.u32 %v195_v7, 16  ;;  %v260_v12 = vshrl.u32 %v195_v7, 16  ;;  %v5191_v13 = vld [vmem:[%s6498_s28 + $0xc] sm:$0xf] }
  0x17   : > { %v266_v14 = vshll.u32 %v227_v8, 16  ;;  %v6505_v15 = vld [vmem:[%s6498_s28 + $0x10] sm:$0xf]  ;;  %v6508_v16 = vld [vmem:[%s6498_s28 + $0x14] sm:$0x1]  ;;  %v2054_v23 = vshrl.u32 %v5191_v13, 16 }
  0x18   : > { %v249_v18 = vrot.slane %v247_v9, 4  ;;  %v252_v19 = vrot.slane %v250_v10, 5  ;;  %v258_v20 = vrot.slane %v256_v11, 5  ;;  %v262_v21 = vrot.slane %v260_v12, 4  ;;  %v196_v31 = vld [vmem:[%s6498_s28 + $0xc] sm:$0xf] }
  0x19   : > { %v268_v22 = vrot.slane %v266_v14, 5  ;;  %v2057_v24 = vshll.u32 %v5191_v13, 16  ;;  %v2063_v25 = vshll.u32 %v6505_v15, 16  ;;  %v2067_v29 = vshrl.u32 %v6505_v15, 16  ;;  %v197_v36 = vld [vmem:[%s6498_s28 + $0x10] sm:$0xf] }
  0x1a   : > { %v253_v27 = vor.u32 %v252_v19, %v249_v18  ;;  %v263_v28 = vor.u32 %v262_v21, %v258_v20  ;;  %v2073_v30 = vshll.u32 %v6508_v16, 16  ;;  %v2056_v33 = vrot.slane %v2054_v23, 4  ;;  %v228_v44 = vld [vmem:[%s6498_s28 + $0x14] sm:$0x1]  ;;  %v5194_v55 = vld [vmem:[%s6498_s28 + $0x18] sm:$0xf] }
  0x1b   : > { %v2059_v34 = vrot.slane %v2057_v24, 5  ;;  %v2065_v35 = vrot.slane %v2063_v25, 5  ;;  %v2069_v40 = vrot.slane %v2067_v29, 4  ;;  %v271_v45 = vshrl.u32 %v196_v31, 16  ;;  %v6543_v60 = vld [vmem:[%s6498_s28 + $0x1c] sm:$0xf] }
  0x1c   : > { %v254_v38 = vrot.slane %v253_v27, 4  ;;  %v264_v39 = vrot.slane %v263_v28, 4  ;;  %v2075_v43 = vrot.slane %v2073_v30, 5  ;;  %v274_v46 = vshll.u32 %v196_v31, 16  ;;  %v6551_v1 = vld [vmem:[%s6498_s28 + $0x20] sm:$0x1] }
  0x1d   : > { %v2060_v42 = vor.u32 %v2059_v34, %v2056_v33  ;;  %v2070_v49 = vor.u32 %v2069_v40, %v2065_v35  ;;  %v280_v50 = vshll.u32 %v197_v36, 16  ;;  %v273_v53 = vrot.slane %v271_v45, 4  ;;  %v198_v18 = vld [vmem:[%s6498_s28 + $0x18] sm:$0xf]  ;;  %v199_v23 = vld [vmem:[%s6498_s28 + $0x1c] sm:$0xf] }
  0x1e   : > { %v259_v47 = vsel %vm6524_vm4, %v254_v38, %v258_v20  ;;  %v269_v48 = vsel %vm6524_vm4, %v264_v39, %v268_v22  ;;  %v276_v54 = vrot.slane %v274_v46, 5  ;;  %v284_v58 = vshrl.u32 %v197_v36, 16  ;;  %v229_v31 = vld [vmem:[%s6498_s28 + $0x20] sm:$0x1]  ;;  %v5197_v40 = vld [vmem:[%s6498_s28 + $0x24] sm:$0xf] }
  0x1f   : > { %v5013_v51 = vcombine.low %v259_v47, %v269_v48  ;;  %v2061_v52 = vrot.slane %v2060_v42, 4  ;;  %v2071_v56 = vrot.slane %v2070_v49, 4  ;;  %v282_v57 = vrot.slane %v280_v50, 5  ;;  %v6574_v46 = vld [vmem:[%s6498_s28 + $0x28] sm:$0xf]  ;;  %s8358_s20 = smov (!%p183_p5, %s5010_s20), 63 }
  0x20   : > { %v290_v59 = vshll.u32 %v228_v44, 16  ;;  %v2797_v62 = vrot.slane %v6505_v15, 5  ;;  %v2800_v63 = vrot.slane %v6508_v16, 5  ;;  %v277_v0 = vor.u32 %v276_v54, %v273_v53  ;;  %v6583_v54 = vld [vmem:[%s6498_s28 + $0x2c] sm:$0x1]  ;;  %s5011_s23 = sshll.u32 %s8358_s20, 3 }
  0x21   : > { %5706 = vmatprep.mubr.msk.bf16.mxu1 %vm680_vm3, %v5013_v51  ;;  %v2066_v61 = vsel %vm6524_vm4, %v2061_v52, %v2065_v35  ;;  %v2076_v2 = vsel %vm6524_vm4, %v2071_v56, %v2075_v43  ;;  %v286_v4 = vrot.slane %v284_v58, 4  ;;  %v2078_v6 = vshrl.u32 %v5194_v55, 16  ;;  %v5093_v51 = vld [vmem:[%s8283_s1 + $0x4] sm:$0x3]  ;;  %v6783_v16 = vld [vmem:[%s6498_s28 + $0x7c] sm:$0xf]  ;;  %s8201_s25 = scalar_lea.vmem %s8285_s3, %s5011_s23 }
  0x22   : > { %v292_v5 = vrot.slane %v290_v59, 5  ;;  %v5240_v7 = vcombine.low %v2066_v61, %v2076_v2  ;;  %v278_v8 = vrot.slane %v277_v0, 4  ;;  %v2081_v9 = vshll.u32 %v5194_v55, 16  ;;  %v200_v0 = vld [vmem:[%s6498_s28 + $0x24] sm:$0xf] }
  0x23   : > { %v2087_v10 = vshll.u32 %v6543_v60, 16  ;;  %v287_v11 = vor.u32 %v286_v4, %v282_v57  ;;  %v2080_v12 = vrot.slane %v2078_v6, 4  ;;  %v2091_v13 = vshrl.u32 %v6543_v60, 16 }
  0x24   : > { %v2097_v14 = vshll.u32 %v6551_v1, 16  ;;  %5842 = vmatprep.mubr.msk.bf16.mxu0 %vm680_vm3, %v5240_v7  ;;  %v283_v19 = vsel %vm6524_vm4, %v278_v8, %v282_v57  ;;  %v2083_v20 = vrot.slane %v2081_v9, 5  ;;  %v2804_v22 = vrot.slane %v6543_v60, 5  ;;  %v201_v7 = vld [vmem:[%s6498_s28 + $0x28] sm:$0xf] }
  0x25   : > { %v2089_v21 = vrot.slane %v2087_v10, 5  ;;  %v288_v24 = vrot.slane %v287_v11, 4  ;;  %v2093_v25 = vrot.slane %v2091_v13, 4  ;;  %v2807_v28 = vrot.slane %v6551_v1, 5  ;;  %v230_v13 = vld [vmem:[%s6498_s28 + $0x2c] sm:$0x1] }
  0x26   : > { %v2099_v27 = vrot.slane %v2097_v14, 5  ;;  %v2084_v29 = vor.u32 %v2083_v20, %v2080_v12  ;;  %v6567_v30 = vrot.slane %v2804_v22, 4  ;;  %v295_v33 = vshrl.u32 %v198_v18, 16 }
  0x27   : > { %v298_v34 = vshll.u32 %v198_v18, 16  ;;  %v293_v35 = vsel %vm6524_vm4, %v288_v24, %v292_v5  ;;  %v2094_v36 = vor.u32 %v2093_v25, %v2089_v21  ;;  %v304_v38 = vshll.u32 %v199_v23, 16  ;;  %v5200_v24 = vld [vmem:[%s6498_s28 + $0x30] sm:$0xf] }
  0x28   : > { %v308_v39 = vshrl.u32 %v199_v23, 16  ;;  %v5014_v42 = vcombine.low %v283_v19, %v293_v35  ;;  %v2085_v43 = vrot.slane %v2084_v29, 4  ;;  %v297_v44 = vrot.slane %v295_v33, 4  ;;  %v6603_v33 = vld [vmem:[%s6498_s28 + $0x34] sm:$0xf] }
  0x29   : > { %v300_v45 = vrot.slane %v298_v34, 5  ;;  %v2095_v47 = vrot.slane %v2094_v36, 4  ;;  %v306_v48 = vrot.slane %v304_v38, 5  ;;  %v314_v50 = vshll.u32 %v229_v31, 16 }
  0x2a   : > { %v310_v49 = vrot.slane %v308_v39, 4  ;;  %5707 = vmatmul.mubr.msk.bf16.vlgmr.msra.gmra.mrb[0].mxu1 %vm680_vm3, %v5014_v42  ;;  %v2090_v52 = vsel %vm6524_vm4, %v2085_v43, %v2089_v21  ;;  %v2102_v55 = vshrl.u32 %v5197_v40, 16  ;;  %v2105_v56 = vshll.u32 %v5197_v40, 16  ;;  %v6611_v40 = vld [vmem:[%s6498_s28 + $0x38] sm:$0x1] }
  0x2b   : > { %v301_v53 = vor.u32 %v300_v45, %v297_v44  ;;  %5739 = vmatpush3.bf16.msra.mxu1 %v6511_v17  ;;  %v2100_v57 = vsel %vm6524_vm4, %v2095_v47, %v2099_v27  ;;  %v316_v59 = vrot.slane %v314_v50, 5  ;;  %v2111_v61 = vshll.u32 %v6574_v46, 16 }
  0x2c   : > { %v311_v58 = vor.u32 %v310_v49, %v306_v48  ;;  %v5241_v2 = vcombine.low %v2090_v52, %v2100_v57  ;;  %v2104_v5 = vrot.slane %v2102_v55, 4  ;;  %v2107_v6 = vrot.slane %v2105_v56, 5  ;;  %6270 = vmatprep.subr.msk.bf16.mxu1 %vm729_vm0, %v5093_v51  ;;  %v202_v52 = vld [vmem:[%s6498_s28 + $0x30] sm:$0xf] }
  0x2d   : > { %v302_v4 = vrot.slane %v301_v53, 4  ;;  %v2113_v9 = vrot.slane %v2111_v61, 5  ;;  %v2115_v17 = vshrl.u32 %v6574_v46, 16  ;;  %v2121_v10 = vshll.u32 %v6583_v54, 16 }
  0x2e   : > { %v312_v8 = vrot.slane %v311_v58, 4  ;;  %5843 = vmatmul.mubr.msk.bf16.vlgmr.msra.gmra.mrb[0].mxu0 %vm680_vm3, %v5241_v2  ;;  %v2108_v12 = vor.u32 %v2107_v6, %v2104_v5  ;;  %v319_v14 = vshrl.u32 %v200_v0, 16  ;;  %v322_v18 = vshll.u32 %v200_v0, 16  ;;  %v203_v58 = vld [vmem:[%s6498_s28 + $0x34] sm:$0xf] }
  0x2f   : > { %v307_v11 = vsel %vm6524_vm4, %v302_v4, %v306_v48  ;;  %5875 = vmatpush3.bf16.msra.mxu0 %v6530_v37  ;;  %v2117_v20 = vrot.slane %v2115_v17, 4  ;;  %v2123_v21 = vrot.slane %v2121_v10, 5  ;;  %v328_v23 = vshll.u32 %v201_v7, 16  ;;  %v231_v4 = vld [vmem:[%s6498_s28 + $0x38] sm:$0x1] }
  0x30   : > { %v317_v19 = vsel %vm6524_vm4, %v312_v8, %v316_v59  ;;  %v2109_v27 = vrot.slane %v2108_v12, 4  ;;  %v321_v29 = vrot.slane %v319_v14, 4  ;;  %v324_v31 = vrot.slane %v322_v18, 5  ;;  %6275 = vmatprep.subr.msk.bf16.mxu0 %vm729_vm0, %v6517_v26  ;;  %v5203_v12 = vld [vmem:[%s6498_s28 + $0x3c] sm:$0xf] }
  0x31   : > { %v5015_v25 = vcombine.low %v307_v11, %v317_v19  ;;  %v2118_v34 = vor.u32 %v2117_v20, %v2113_v9  ;;  %v330_v35 = vrot.slane %v328_v23, 5  ;;  %v332_v37 = vshrl.u32 %v201_v7, 16  ;;  %v6628_v20 = vld [vmem:[%s6498_s28 + $0x40] sm:$0xf] }
  0x32   : > { %v338_v36 = vshll.u32 %v230_v13, 16  ;;  %v2114_v38 = vsel %vm6524_vm4, %v2109_v27, %v2113_v9  ;;  %v325_v39 = vor.u32 %v324_v31, %v321_v29  ;;  %v2126_v42 = vshrl.u32 %v5200_v24, 16 }
  0x33   : > { %5710 = vmatprep.mubr.msk.bf16.mxu1 %vm680_vm3, %v5015_v25  ;;  %v2129_v43 = vshll.u32 %v5200_v24, 16  ;;  %v2119_v44 = vrot.slane %v2118_v34, 4  ;;  %v334_v45 = vrot.slane %v332_v37, 4  ;;  %v2135_v26 = vshll.u32 %v6603_v33, 16  ;;  %v6633_v34 = vld [vmem:[%s6498_s28 + $0x44] sm:$0x1] }
  0x34   : > { %v340_v47 = vrot.slane %v338_v36, 5  ;;  %v326_v48 = vrot.slane %v325_v39, 4  ;;  %v2128_v49 = vrot.slane %v2126_v42, 4  ;;  %v2139_v51 = vshrl.u32 %v6603_v33, 16  ;;  %v204_v42 = vld [vmem:[%s6498_s28 + $0x3c] sm:$0xf] }
  0x35   : > { %v2131_v50 = vrot.slane %v2129_v43, 5  ;;  %v2124_v53 = vsel %vm6524_vm4, %v2119_v44, %v2123_v21  ;;  %v335_v55 = vor.u32 %v334_v45, %v330_v35  ;;  %v2137_v56 = vrot.slane %v2135_v26, 5  ;;  %v205_v26 = vld [vmem:[%s6498_s28 + $0x40] sm:$0xf] }
  0x36   : > { %v2145_v57 = vshll.u32 %v6611_v40, 16  ;;  %v5242_v59 = vcombine.low %v2114_v38, %v2124_v53  ;;  %v331_v61 = vsel %vm6524_vm4, %v326_v48, %v330_v35  ;;  %v2141_v2 = vrot.slane %v2139_v51, 4 }
  0x37   : > { %v2132_v0 = vor.u32 %v2131_v50, %v2128_v49  ;;  %v336_v5 = vrot.slane %v335_v55, 4  ;;  %v343_v7 = vshrl.u32 %v202_v52, 16  ;;  %v346_v8 = vshll.u32 %v202_v52, 16 }
  0x38   : > { %v2147_v6 = vrot.slane %v2145_v57, 5  ;;  %5846 = vmatprep.mubr.msk.bf16.mxu0 %vm680_vm3, %v5242_v59  ;;  %v2142_v17 = vor.u32 %v2141_v2, %v2137_v56  ;;  %v352_v10 = vshll.u32 %v203_v58, 16  ;;  %v356_v11 = vshrl.u32 %v203_v58, 16  ;;  %v5206_v2 = vld [vmem:[%s6498_s28 + $0x48] sm:$0xf] }
  0x39   : > { %v2133_v9 = vrot.slane %v2132_v0, 4  ;;  %v341_v13 = vsel %vm6524_vm4, %v336_v5, %v340_v47  ;;  %v345_v14 = vrot.slane %v343_v7, 4  ;;  %v348_v18 = vrot.slane %v346_v8, 5  ;;  %v6651_v8 = vld [vmem:[%s6498_s28 + $0x4c] sm:$0xf] }
  0x3a   : > { %v362_v19 = vshll.u32 %v231_v4, 16  ;;  %v5016_v21 = vcombine.low %v331_v61, %v341_v13  ;;  %v2143_v24 = vrot.slane %v2142_v17, 4  ;;  %v354_v25 = vrot.slane %v352_v10, 5  ;;  %v232_v61 = vld [vmem:[%s6498_s28 + $0x44] sm:$0x1] }
  0x3b   : > { %v2138_v23 = vsel %vm6524_vm4, %v2133_v9, %v2137_v56  ;;  %v349_v27 = vor.u32 %v348_v18, %v345_v14  ;;  %v358_v29 = vrot.slane %v356_v11, 4  ;;  %v2150_v35 = vshrl.u32 %v5203_v12, 16 }
  0x3c   : > { %v364_v31 = vrot.slane %v362_v19, 5  ;;  %5711 = vmatmul.mubr.msk.bf16.gmra.mrb[4].mxu1 %vm680_vm3, %v5016_v21  ;;  %v2148_v37 = vsel %vm6524_vm4, %v2143_v24, %v2147_v6  ;;  %v2153_v36 = vshll.u32 %v5203_v12, 16  ;;  %v2159_v38 = vshll.u32 %v6628_v20, 16 }
  0x3d   : > { %v2163_v39 = vshrl.u32 %v6628_v20, 16  ;;  %v5243_v43 = vcombine.low %v2138_v23, %v2148_v37  ;;  %v350_v44 = vrot.slane %v349_v27, 4  ;;  %v359_v45 = vor.u32 %v358_v29, %v354_v25  ;;  %v6659_v23 = vld [vmem:[%s6498_s28 + $0x50] sm:$0x1]  ;;  %v6663_v27 = vld [vmem:[%s6498_s28 + $0x48] sm:$0xf] }
  0x3e   : > { %v2152_v47 = vrot.slane %v2150_v35, 4  ;;  %v2155_v48 = vrot.slane %v2153_v36, 5  ;;  %v2161_v49 = vrot.slane %v2159_v38, 5  ;;  %v2169_v51 = vshll.u32 %v6633_v34, 16  ;;  %v6666_v36 = vld [vmem:[%s6498_s28 + $0x4c] sm:$0xf] }
  0x3f   : > { %v2165_v50 = vrot.slane %v2163_v39, 4  ;;  %5847 = vmatmul.mubr.msk.bf16.gmra.mrb[4].mxu0 %vm680_vm3, %v5243_v43  ;;  %v355_v52 = vsel %vm6524_vm4, %v350_v44, %v354_v25  ;;  %v360_v53 = vrot.slane %v359_v45, 4  ;;  %v367_v55 = vshrl.u32 %v204_v42, 16 }
  0x40   : > { %v370_v56 = vshll.u32 %v204_v42, 16  ;;  %v2156_v57 = vor.u32 %v2155_v48, %v2152_v47  ;;  %v2171_v59 = vrot.slane %v2169_v51, 5  ;;  %v376_v0 = vshll.u32 %v205_v26, 16 }
  0x41   : > { %v2166_v58 = vor.u32 %v2165_v50, %v2161_v49  ;;  %v365_v4 = vsel %vm6524_vm4, %v360_v53, %v364_v31  ;;  %v369_v5 = vrot.slane %v367_v55, 4  ;;  %v380_v7 = vshrl.u32 %v205_v26, 16  ;;  %v233_v26 = vld [vmem:[%s6498_s28 + $0x50] sm:$0x1]  ;;  %v5209_v53 = vld [vmem:[%s6498_s28 + $0x54] sm:$0xf] }
  0x42   : > { %v372_v6 = vrot.slane %v370_v56, 5  ;;  %v5017_v9 = vcombine.low %v355_v52, %v365_v4  ;;  %v2157_v17 = vrot.slane %v2156_v57, 4  ;;  %v378_v11 = vrot.slane %v376_v0, 5  ;;  %v6682_v4 = vld [vmem:[%s6498_s28 + $0x58] sm:$0xf] }
  0x43   : > { %v2167_v10 = vrot.slane %v2166_v58, 4  ;;  %v382_v13 = vrot.slane %v380_v7, 4  ;;  %v386_v14 = vshll.u32 %v232_v61, 16  ;;  %v2174_v18 = vshrl.u32 %v5206_v2, 16 }
  0x44   : > { %v373_v12 = vor.u32 %v372_v6, %v369_v5  ;;  %5714 = vmatprep.mubr.msk.bf16.mxu1 %vm680_vm3, %v5017_v9  ;;  %v2162_v19 = vsel %vm6524_vm4, %v2157_v17, %v2161_v49  ;;  %v2177_v24 = vshll.u32 %v5206_v2, 16  ;;  %v2183_v25 = vshll.u32 %v6651_v8, 16 }
  0x45   : > { %v2172_v21 = vsel %vm6524_vm4, %v2167_v10, %v2171_v59  ;;  %v383_v35 = vor.u32 %v382_v13, %v378_v11  ;;  %v388_v37 = vrot.slane %v386_v14, 5  ;;  %v2176_v38 = vrot.slane %v2174_v18, 4 }
  0x46   : > { %v5244_v29 = vcombine.low %v2162_v19, %v2172_v21  ;;  %v374_v31 = vrot.slane %v373_v12, 4  ;;  %v2179_v39 = vrot.slane %v2177_v24, 5  ;;  %v2185_v42 = vrot.slane %v2183_v25, 5  ;;  %v6688_v12 = vld [vmem:[%s6498_s28 + $0x5c] sm:$0x1] }
  0x47   : > { %v2187_v43 = vshrl.u32 %v6651_v8, 16  ;;  %v384_v45 = vrot.slane %v383_v35, 4  ;;  %v2193_v47 = vshll.u32 %v6659_v23, 16  ;;  %v391_v48 = vshrl.u32 %v6663_v27, 16  ;;  %v6692_v24 = vld [vmem:[%s6498_s28 + $0x54] sm:$0xf] }
  0x48   : > { %5850 = vmatprep.mubr.msk.bf16.mxu0 %vm680_vm3, %v5244_v29  ;;  %v379_v44 = vsel %vm6524_vm4, %v374_v31, %v378_v11  ;;  %v2180_v49 = vor.u32 %v2179_v39, %v2176_v38  ;;  %v394_v51 = vshll.u32 %v6663_v27, 16  ;;  %v400_v52 = vshll.u32 %v6666_v36, 16 }
  0x49   : > { %v2189_v50 = vrot.slane %v2187_v43, 4  ;;  %v389_v55 = vsel %vm6524_vm4, %v384_v45, %v388_v37  ;;  %v2195_v56 = vrot.slane %v2193_v47, 5  ;;  %v393_v57 = vrot.slane %v391_v48, 4  ;;  %v6698_v37 = vld [vmem:[%s6498_s28 + $0x58] sm:$0xf] }
  0x4a   : > { %v404_v58 = vshrl.u32 %v6666_v36, 16  ;;  %v5018_v59 = vcombine.low %v379_v44, %v389_v55  ;;  %v2181_v61 = vrot.slane %v2180_v49, 4  ;;  %v396_v2 = vrot.slane %v394_v51, 5 }
  0x4b   : > { %v2190_v0 = vor.u32 %v2189_v50, %v2185_v42  ;;  %v402_v5 = vrot.slane %v400_v52, 5  ;;  %v410_v7 = vshll.u32 %v233_v26, 16  ;;  %v2198_v9 = vshrl.u32 %v5209_v53, 16  ;;  %v234_v26 = vld [vmem:[%s6498_s28 + $0x5c] sm:$0x1] }
  0x4c   : > { %v406_v6 = vrot.slane %v404_v58, 4  ;;  %5715 = vmatmul.mubr.msk.bf16.gmra.mrb[8].mxu1 %vm680_vm3, %v5018_v59  ;;  %v2186_v17 = vsel %vm6524_vm4, %v2181_v61, %v2185_v42  ;;  %v397_v11 = vor.u32 %v396_v2, %v393_v57  ;;  %v2201_v13 = vshll.u32 %v5209_v53, 16  ;;  %v5212_v53 = vld [vmem:[%s6498_s28 + $0x60] sm:$0xf]  ;;  %v6712_v59 = vld [vmem:[%s6498_s28 + $0x64] sm:$0xf] }
  0x4d   : > { %v2191_v10 = vrot.slane %v2190_v0, 4  ;;  %v412_v18 = vrot.slane %v410_v7, 5  ;;  %v2200_v19 = vrot.slane %v2198_v9, 4  ;;  %v2207_v21 = vshll.u32 %v6682_v4, 16  ;;  %v6719_v9 = vld [vmem:[%s6498_s28 + $0x68] sm:$0x1] }
  0x4e   : > { %v407_v14 = vor.u32 %v406_v6, %v402_v5  ;;  %v398_v29 = vrot.slane %v397_v11, 4  ;;  %v2203_v31 = vrot.slane %v2201_v13, 5  ;;  %v2211_v35 = vshrl.u32 %v6682_v4, 16 }
  0x4f   : > { %v2196_v25 = vsel %vm6524_vm4, %v2191_v10, %v2195_v56  ;;  %v2209_v42 = vrot.slane %v2207_v21, 5  ;;  %v2217_v43 = vshll.u32 %v6688_v12, 16  ;;  %v415_v48 = vshrl.u32 %v6692_v24, 16 }
  0x50   : > { %v5245_v38 = vcombine.low %v2186_v17, %v2196_v25  ;;  %v408_v39 = vrot.slane %v407_v14, 4  ;;  %v403_v44 = vsel %vm6524_vm4, %v398_v29, %v402_v5  ;;  %v2204_v45 = vor.u32 %v2203_v31, %v2200_v19  ;;  %v6723_v19 = vld [vmem:[%s6498_s28 + $0x60] sm:$0xf] }
  0x51   : > { %v2213_v47 = vrot.slane %v2211_v35, 4  ;;  %v2219_v50 = vrot.slane %v2217_v43, 5  ;;  %v418_v51 = vshll.u32 %v6692_v24, 16  ;;  %v424_v52 = vshll.u32 %v6698_v37, 16  ;;  %v6729_v35 = vld [vmem:[%s6498_s28 + $0x64] sm:$0xf] }
  0x52   : > { %5851 = vmatmul.mubr.msk.bf16.gmra.mrb[8].mxu0 %vm680_vm3, %v5245_v38  ;;  %v413_v49 = vsel %vm6524_vm4, %v408_v39, %v412_v18  ;;  %v2205_v56 = vrot.slane %v2204_v45, 4  ;;  %v417_v58 = vrot.slane %v415_v48, 4  ;;  %v428_v2 = vshrl.u32 %v6698_v37, 16 }
  0x53   : > { %v5019_v55 = vcombine.low %v403_v44, %v413_v49  ;;  %v2214_v57 = vor.u32 %v2213_v47, %v2209_v42  ;;  %v420_v61 = vrot.slane %v418_v51, 5  ;;  %v426_v0 = vrot.slane %v424_v52, 5 }
  0x54   : > { %v434_v5 = vshll.u32 %v234_v26, 16  ;;  %v2210_v6 = vsel %vm6524_vm4, %v2205_v56, %v2209_v42  ;;  %v2222_v17 = vshrl.u32 %v5212_v53, 16  ;;  %v2225_v10 = vshll.u32 %v5212_v53, 16 }
  0x55   : > { %5718 = vmatprep.mubr.msk.bf16.mxu1 %vm680_vm3, %v5019_v55  ;;  %v2215_v7 = vrot.slane %v2214_v57, 4  ;;  %v421_v11 = vor.u32 %v420_v61, %v417_v58  ;;  %v430_v13 = vrot.slane %v428_v2, 4  ;;  %v2231_v18 = vshll.u32 %v6712_v59, 16  ;;  %v5272_v58 = vld [vmem:[%s6498_s28 + $0xc] sm:$0xe] }
  0x56   : > { %v436_v14 = vrot.slane %v434_v5, 5  ;;  %v2224_v25 = vrot.slane %v2222_v17, 4  ;;  %v2227_v29 = vrot.slane %v2225_v10, 5  ;;  %v2235_v31 = vshrl.u32 %v6712_v59, 16 }
  0x57   : > { %v2220_v21 = vsel %vm6524_vm4, %v2215_v7, %v2219_v50  ;;  %v422_v39 = vrot.slane %v421_v11, 4  ;;  %v431_v42 = vor.u32 %v430_v13, %v426_v0  ;;  %v2233_v43 = vrot.slane %v2231_v18, 5  ;;  %v235_v50 = vld [vmem:[%s6498_s28 + $0x68] sm:$0x1] }
  0x58   : > { %v5246_v38 = vcombine.low %v2210_v6, %v2220_v21  ;;  %v2228_v44 = vor.u32 %v2227_v29, %v2224_v25  ;;  %v2237_v45 = vrot.slane %v2235_v31, 4  ;;  %v2241_v47 = vshll.u32 %v6719_v9, 16  ;;  %v6757_v29 = vld [vmem:[%s6498_s28 + $0x70] sm:$0xf] }
  0x59   : > { %v439_v26 = vshrl.u32 %v6723_v19, 16  ;;  %v427_v48 = vsel %vm6524_vm4, %v422_v39, %v426_v0  ;;  %v432_v49 = vrot.slane %v431_v42, 4  ;;  %v442_v51 = vshll.u32 %v6723_v19, 16  ;;  %v6744_v0 = vld [vmem:[%s6498_s28 + $0x6c] sm:$0xf] }
  0x5a   : > { %5854 = vmatprep.mubr.msk.bf16.mxu0 %vm680_vm3, %v5246_v38  ;;  %v448_v52 = vshll.u32 %v6729_v35, 16  ;;  %v2229_v53 = vrot.slane %v2228_v44, 4  ;;  %v2238_v55 = vor.u32 %v2237_v45, %v2233_v43  ;;  %v2243_v56 = vrot.slane %v2241_v47, 5 }
  0x5b   : > { %v441_v57 = vrot.slane %v439_v26, 4  ;;  %v437_v61 = vsel %vm6524_vm4, %v432_v49, %v436_v14  ;;  %v444_v2 = vrot.slane %v442_v51, 5  ;;  %v452_v6 = vshrl.u32 %v6729_v35, 16  ;;  %v236_v26 = vld [vmem:[%s6498_s28 + $0x74] sm:$0x1] }
  0x5c   : > { %v450_v5 = vrot.slane %v448_v52, 5  ;;  %v5020_v7 = vcombine.low %v427_v48, %v437_v61  ;;  %v2234_v17 = vsel %vm6524_vm4, %v2229_v53, %v2233_v43  ;;  %v2239_v10 = vrot.slane %v2238_v55, 4  ;;  %v5273_v48 = vld [vmem:[%s6498_s28 + $0x18] sm:$0xe] }
  0x5d   : > { %v458_v11 = vshll.u32 %v235_v50, 16  ;;  %v445_v14 = vor.u32 %v444_v2, %v441_v57  ;;  %v454_v18 = vrot.slane %v452_v6, 4  ;;  %v5288_v21 = vrot.slane %v5272_v58, 9  ;;  %v6776_v53 = vld [vmem:[%s6498_s28 + $0x78] sm:$0xf] }
  0x5e   : > { %v2799_v25 = vrot.slane %v2797_v62, 4  ;;  %5719 = vmatmul.mubr.msk.bf16.gmra.mrb[12].mxu1 %vm680_vm3, %v5020_v7  ;;  %v2244_v31 = vsel %vm6524_vm4, %v2239_v10, %v2243_v56  ;;  %v463_v39 = vshrl.u32 %v6744_v0, 16  ;;  %v466_v42 = vshll.u32 %v6744_v0, 16  ;;  %v237_v57 = vld [vmem:[%s6498_s28 + $0x80] sm:$0x1] }
  0x5f   : > { %v460_v38 = vrot.slane %v458_v11, 5  ;;  %v5247_v43 = vcombine.low %v2234_v17, %v2244_v31  ;;  %v446_v44 = vrot.slane %v445_v14, 4  ;;  %v455_v45 = vor.u32 %v454_v18, %v450_v5  ;;  %v5274_v10 = vld [vmem:[%s6498_s28 + $0x24] sm:$0xe] }
  0x60   : > { %v2798_v47 = vsel %vm6750_vm7, %v5288_v21, %v2797_v62  ;;  %v2801_v49 = vsel %vm6750_vm7, %v2799_v25, %v2800_v63  ;;  %v465_v50 = vrot.slane %v463_v39, 4  ;;  %v468_v51 = vrot.slane %v466_v42, 5  ;;  %v6802_v39 = vld [vmem:[%s6498_s28 + $0x84] sm:$0xf] }
  0x61   : > { %v472_v52 = vshll.u32 %v6757_v29, 16  ;;  %5855 = vmatmul.mubr.msk.bf16.gmra.mrb[12].mxu0 %vm680_vm3, %v5247_v43  ;;  %v451_v15 = vsel %vm6524_vm4, %v446_v44, %v450_v5  ;;  %v456_v62 = vrot.slane %v455_v45, 4  ;;  %v5305_v55 = vcombine.low %v2798_v47, %v2801_v49  ;;  %v6810_v43 = vld [vmem:[%s6498_s28 + $0x88] sm:$0xf] }
  0x62   : > { %v476_v56 = vshrl.u32 %v6757_v29, 16  ;;  %v469_v63 = vor.u32 %v468_v51, %v465_v50  ;;  %v482_v61 = vshll.u32 %v236_v26, 16  ;;  %v5289_v2 = vrot.slane %v5273_v48, 9 }
  0x63   : > { %v474_v58 = vrot.slane %v472_v52, 5  ;;  %v461_v6 = vsel %vm6524_vm4, %v456_v62, %v460_v38  ;;  %5876 = vmatprep.mubr.msk.bf16.mxu0 %vm680_vm3, %v5305_v55  ;;  %v2808_v5 = vsel %vm6750_vm7, %v6567_v30, %v2807_v28  ;;  %v487_v17 = vshrl.u32 %v6776_v53, 16  ;;  %v238_v52 = vld [vmem:[%s6498_s28 + $0x8c] sm:$0x1] }
  0x64   : > { %v478_v7 = vrot.slane %v476_v56, 4  ;;  %v5021_v11 = vcombine.low %v451_v15, %v461_v6  ;;  %v470_v14 = vrot.slane %v469_v63, 4  ;;  %v484_v18 = vrot.slane %v482_v61, 5 }
  0x65   : > { %v2805_v21 = vsel %vm6750_vm7, %v5289_v2, %v2804_v22  ;;  %v489_v38 = vrot.slane %v487_v17, 4  ;;  %v490_v1 = vshll.u32 %v6776_v53, 16  ;;  %v496_v30 = vshll.u32 %v6783_v16, 16  ;;  %v6815_v22 = vld [vmem:[%s8283_s1 + $0xe] sm:$0x3] }
  0x66   : > { %v479_v25 = vor.u32 %v478_v7, %v474_v58  ;;  %v5306_v31 = vcombine.low %v2805_v21, %v2808_v5  ;;  %5722 = vmatprep.mubr.msk.bf16.mxu1 %vm680_vm3, %v5021_v11  ;;  %v475_v28 = vsel %vm6524_vm4, %v470_v14, %v474_v58  ;;  %v500_v60 = vshrl.u32 %v6783_v16, 16  ;;  %v6834_v5 = vld [vmem:[%s6498_s28 + $0x90] sm:$0xf] }
  0x67   : > { %v506_v42 = vshll.u32 %v237_v57, 16  ;;  %v492_v45 = vrot.slane %v490_v1, 5  ;;  %v5290_v47 = vrot.slane %v5274_v10, 9  ;;  %v2811_v26 = vrot.slane %v6574_v46, 5  ;;  %v5275_v57 = vld [vmem:[%s6498_s28 + $0x30] sm:$0xe] }
  0x68   : > { %v480_v44 = vrot.slane %v479_v25, 4  ;;  %v498_v48 = vrot.slane %v496_v30, 5  ;;  %v502_v49 = vrot.slane %v500_v60, 4  ;;  %v2814_v51 = vrot.slane %v6583_v54, 5  ;;  %v6846_v30 = vld [vmem:[%s6498_s28 + $0x94] sm:$0xf] }
  0x69   : > { %v508_v50 = vrot.slane %v506_v42, 5  ;;  %5877 = vmatmul.mubr.msk.bf16.vlgmr.msra.gmra.mrb[0].mxu0 %vm680_vm3, %v5306_v31  ;;  %v493_v62 = vor.u32 %v492_v45, %v489_v38  ;;  %v2812_v55 = vsel %vm6750_vm7, %v5290_v47, %v2811_v26  ;;  %v2813_v56 = vrot.slane %v2811_v26, 4  ;;  %v239_v60 = vld [vmem:[%s6498_s28 + $0x98] sm:$0x1]  ;;  %v5276_v26 = vld [vmem:[%s6498_s28 + $0x3c] sm:$0xe] }
  0x6a   : > { %v485_v15 = vsel %vm6524_vm4, %v480_v44, %v484_v18  ;;  %5909 = vmatpush3.bf16.msra.mxu0 %v6534_v41  ;;  %v503_v46 = vor.u32 %v502_v49, %v498_v48  ;;  %v511_v58 = vshrl.u32 %v6802_v39, 16  ;;  %v514_v54 = vshll.u32 %v6802_v39, 16 }
  0x6b   : > { %v5022_v63 = vcombine.low %v475_v28, %v485_v15  ;;  %v494_v61 = vrot.slane %v493_v62, 4  ;;  %v2815_v2 = vsel %vm6750_vm7, %v2813_v56, %v2814_v51  ;;  %v520_v6 = vshll.u32 %v6810_v43, 16  ;;  %6276 = vmatprep.subr.msk.bf16.mxu0 %vm729_vm0, %v6815_v22 }
  0x6c   : > { %v524_v7 = vshrl.u32 %v6810_v43, 16  ;;  %v504_v41 = vrot.slane %v503_v46, 4  ;;  %v5307_v17 = vcombine.low %v2812_v55, %v2815_v2  ;;  %v513_v10 = vrot.slane %v511_v58, 4  ;;  %v6866_v46 = vld [vmem:[%s6498_s28 + $0xa0] sm:$0xf] }
  0x6d   : > { %5723 = vmatmul.mubr.msk.bf16.gmra.mrb[16].mxu1 %vm680_vm3, %v5022_v63  ;;  %v516_v11 = vrot.slane %v514_v54, 5  ;;  %v499_v14 = vsel %vm6524_vm4, %v494_v61, %v498_v48  ;;  %v522_v18 = vrot.slane %v520_v6, 5  ;;  %v530_v25 = vshll.u32 %v238_v52, 16  ;;  %v6855_v52 = vld [vmem:[%s6498_s28 + $0x9c] sm:$0xf] }
  0x6e   : > { %v526_v21 = vrot.slane %v524_v7, 4  ;;  %v509_v31 = vsel %vm6524_vm4, %v504_v41, %v508_v50  ;;  %5880 = vmatprep.mubr.msk.bf16.mxu0 %vm680_vm3, %v5307_v17  ;;  %v5291_v1 = vrot.slane %v5275_v57, 9  ;;  %v2818_v28 = vrot.slane %v6603_v33, 5 }
  0x6f   : > { %v517_v38 = vor.u32 %v516_v11, %v513_v10  ;;  %v5023_v42 = vcombine.low %v499_v14, %v509_v31  ;;  %v532_v45 = vrot.slane %v530_v25, 5  ;;  %v2821_v47 = vrot.slane %v6611_v40, 5  ;;  %v240_v10 = vld [vmem:[%s6498_s28 + $0xa4] sm:$0x1]  ;;  %v5277_v11 = vld [vmem:[%s6498_s28 + $0x48] sm:$0xe] }
  0x70   : > { %v527_v44 = vor.u32 %v526_v21, %v522_v18  ;;  %v2819_v49 = vsel %vm6750_vm7, %v5291_v1, %v2818_v28  ;;  %v2820_v50 = vrot.slane %v2818_v28, 4  ;;  %v535_v51 = vshrl.u32 %v6834_v5, 16 }
  0x71   : > { %v518_v48 = vrot.slane %v517_v38, 4  ;;  %5726 = vmatprep.mubr.msk.bf16.mxu1 %vm680_vm3, %v5023_v42  ;;  %v538_v15 = vshll.u32 %v6834_v5, 16  ;;  %v544_v62 = vshll.u32 %v6846_v30, 16  ;;  %v548_v40 = vshrl.u32 %v6846_v30, 16 }
  0x72   : > { %v528_v33 = vrot.slane %v527_v44, 4  ;;  %v2822_v56 = vsel %vm6750_vm7, %v2820_v50, %v2821_v47  ;;  %v537_v57 = vrot.slane %v535_v51, 4  ;;  %v554_v63 = vshll.u32 %v239_v60, 16 }
  0x73   : > { %v523_v55 = vsel %vm6524_vm4, %v518_v48, %v522_v18  ;;  %v5308_v54 = vcombine.low %v2819_v49, %v2822_v56  ;;  %v540_v61 = vrot.slane %v538_v15, 5  ;;  %v546_v2 = vrot.slane %v544_v62, 5  ;;  %v6892_v56 = vld [vmem:[%s6498_s28 + $0xac] sm:$0xf] }
  0x74   : > { %v533_v58 = vsel %vm6524_vm4, %v528_v33, %v532_v45  ;;  %v550_v7 = vrot.slane %v548_v40, 4  ;;  %v556_v41 = vrot.slane %v554_v63, 5  ;;  %v5292_v17 = vrot.slane %v5276_v26, 9  ;;  %v6887_v33 = vld [vmem:[%s6498_s28 + $0xa8] sm:$0xf] }
  0x75   : > { %v5024_v6 = vcombine.low %v523_v55, %v533_v58  ;;  %5881 = vmatmul.mubr.msk.bf16.gmra.mrb[4].mxu0 %vm680_vm3, %v5308_v54  ;;  %v541_v14 = vor.u32 %v540_v61, %v537_v57  ;;  %v2825_v18 = vrot.slane %v6628_v20, 5  ;;  %v2828_v21 = vrot.slane %v6633_v34, 5  ;;  %v241_v61 = vld [vmem:[%s6498_s28 + $0xb0] sm:$0x1] }
  0x76   : > { %v559_v25 = vshrl.u32 %v6855_v52, 16  ;;  %v551_v31 = vor.u32 %v550_v7, %v546_v2  ;;  %v562_v38 = vshll.u32 %v6855_v52, 16  ;;  %v568_v1 = vshll.u32 %v6866_v46, 16 }
  0x77   : > { %5727 = vmatmul.mubr.msk.bf16.gmra.mrb[20].mxu1 %vm680_vm3, %v5024_v6  ;;  %v572_v28 = vshrl.u32 %v6866_v46, 16  ;;  %v542_v60 = vrot.slane %v541_v14, 4  ;;  %v2826_v42 = vsel %vm6750_vm7, %v5292_v17, %v2825_v18  ;;  %v2827_v20 = vrot.slane %v2825_v18, 4  ;;  %v6907_v14 = vld [vmem:[%s6498_s28 + $0xb4] sm:$0xf] }
  0x78   : > { %v561_v44 = vrot.slane %v559_v25, 4  ;;  %v552_v34 = vrot.slane %v551_v31, 4  ;;  %v564_v45 = vrot.slane %v562_v38, 5  ;;  %v570_v47 = vrot.slane %v568_v1, 5 }
  0x79   : > { %v574_v26 = vrot.slane %v572_v28, 4  ;;  %v547_v48 = vsel %vm6524_vm4, %v542_v60, %v546_v2  ;;  %v2829_v49 = vsel %vm6750_vm7, %v2827_v20, %v2828_v21  ;;  %v578_v50 = vshll.u32 %v240_v10, 16  ;;  %v5278_v2 = vld [vmem:[%s6498_s28 + $0x54] sm:$0xe] }
  0x7a   : > { %v5293_v51 = vrot.slane %v5277_v11, 9  ;;  %v557_v15 = vsel %vm6524_vm4, %v552_v34, %v556_v41  ;;  %v5309_v62 = vcombine.low %v2826_v42, %v2829_v49  ;;  %v565_v40 = vor.u32 %v564_v45, %v561_v44  ;;  %v6916_v42 = vld [vmem:[%s6498_s28 + $0xb8] sm:$0xf]  ;;  %v242_v49 = vld [vmem:[%s6498_s28 + $0xbc] sm:$0x1] }
  0x7b   : > { %v575_v55 = vor.u32 %v574_v26, %v570_v47  ;;  %v5025_v57 = vcombine.low %v547_v48, %v557_v15  ;;  %v580_v63 = vrot.slane %v578_v50, 5  ;;  %v2832_v58 = vrot.slane %v6651_v8, 5 }
  0x7c   : > { %v2835_v54 = vrot.slane %v6659_v23, 5  ;;  %5884 = vmatprep.mubr.msk.bf16.mxu0 %vm680_vm3, %v5309_v62  ;;  %v566_v6 = vrot.slane %v565_v40, 4  ;;  %v583_v41 = vshrl.u32 %v6887_v33, 16  ;;  %v586_v17 = vshll.u32 %v6887_v33, 16 }
  0x7d   : > { %v576_v7 = vrot.slane %v575_v55, 4  ;;  %5730 = vmatprep.mubr.msk.bf16.mxu1 %vm680_vm3, %v5025_v57  ;;  %v2833_v10 = vsel %vm6750_vm7, %v5293_v51, %v2832_v58  ;;  %v2834_v11 = vrot.slane %v2832_v58, 4  ;;  %v592_v8 = vshll.u32 %v6892_v56, 16  ;;  %v5279_v55 = vld [vmem:[%s6498_s28 + $0x60] sm:$0xe] }
  0x7e   : > { %v596_v23 = vshrl.u32 %v6892_v56, 16  ;;  %v571_v18 = vsel %vm6524_vm4, %v566_v6, %v570_v47  ;;  %v585_v25 = vrot.slane %v583_v41, 4  ;;  %v588_v31 = vrot.slane %v586_v17, 5  ;;  %v5280_v6 = vld [vmem:[%s6498_s28 + $0x6c] sm:$0xe] }
  0x7f   : > { %v581_v21 = vsel %vm6524_vm4, %v576_v7, %v580_v63  ;;  %v2836_v1 = vsel %vm6750_vm7, %v2834_v11, %v2835_v54  ;;  %v594_v28 = vrot.slane %v592_v8, 5  ;;  %v602_v34 = vshll.u32 %v241_v61, 16  ;;  %v5216_v11 = vld [vmem:[%s6498_s28 + $0x70] sm:$0xf]  ;;  %v5217_v8 = vld [vmem:[%s6498_s28 + $0x74] sm:$0x1] }
  0x80   : > { %v5026_v38 = vcombine.low %v571_v18, %v581_v21  ;;  %v598_v60 = vrot.slane %v596_v23, 4  ;;  %v5310_v20 = vcombine.low %v2833_v10, %v2836_v1  ;;  %v589_v44 = vor.u32 %v588_v31, %v585_v25 }
  0x81   : > { %v5294_v45 = vrot.slane %v5278_v2, 9  ;;  %v2839_v26 = vrot.slane %v6682_v4, 5  ;;  %v2842_v48 = vrot.slane %v6688_v12, 5  ;;  %v607_v50 = vshrl.u32 %v6907_v14, 16 }
  0x82   : > { %5731 = vmatmul.mubr.msk.bf16.gmra.mrb[24].mxu1 %vm680_vm3, %v5026_v38  ;;  %v599_v47 = vor.u32 %v598_v60, %v594_v28  ;;  %5885 = vmatmul.mubr.msk.bf16.gmra.mrb[8].mxu0 %vm680_vm3, %v5310_v20  ;;  %v590_v51 = vrot.slane %v589_v44, 4  ;;  %v604_v15 = vrot.slane %v602_v34, 5  ;;  %v610_v62 = vshll.u32 %v6907_v14, 16 }
  0x83   : > { %v616_v40 = vshll.u32 %v6916_v42, 16  ;;  %v2840_v4 = vsel %vm6750_vm7, %v5294_v45, %v2839_v26  ;;  %v2841_v12 = vrot.slane %v2839_v26, 4  ;;  %v609_v63 = vrot.slane %v607_v50, 4 }
  0x84   : > { %v600_v57 = vrot.slane %v599_v47, 4  ;;  %v595_v58 = vsel %vm6524_vm4, %v590_v51, %v594_v28  ;;  %v612_v54 = vrot.slane %v610_v62, 5  ;;  %v620_v2 = vshrl.u32 %v6916_v42, 16  ;;  %v5281_v47 = vld [vmem:[%s6498_s28 + $0x78] sm:$0xe] }
  0x85   : > { %v618_v61 = vrot.slane %v616_v40, 5  ;;  %v2843_v41 = vsel %vm6750_vm7, %v2841_v12, %v2842_v48  ;;  %v626_v17 = vshll.u32 %v242_v49, 16  ;;  %v5295_v10 = vrot.slane %v5279_v55, 9  ;;  %v6351_v51 = vld [vmem:[%s6498_s28] sm:$0xf] }
  0x86   : > { %v605_v7 = vsel %vm6524_vm4, %v600_v57, %v604_v15  ;;  %v5311_v18 = vcombine.low %v2840_v4, %v2843_v41  ;;  %v613_v21 = vor.u32 %v612_v54, %v609_v63  ;;  %v622_v25 = vrot.slane %v620_v2, 4  ;;  %v6954_v15 = vld [vmem:[%s6498_s28 + $0x4] sm:$0xf]  ;;  %v6958_v40 = vld [vmem:[%s6498_s28 + $0x7c] sm:$0xf] }
  0x87   : > { %v5027_v23 = vcombine.low %v595_v58, %v605_v7  ;;  %v628_v31 = vrot.slane %v626_v17, 5  ;;  %v2846_v38 = vrot.slane %v6712_v59, 5  ;;  %v2849_v1 = vrot.slane %v6719_v9, 5  ;;  %v6961_v55 = vld [vmem:[%s6498_s28 + $0x80] sm:$0x1] }
  0x88   : > { %v5296_v28 = vrot.slane %v5280_v6, 9  ;;  %5888 = vmatprep.mubr.msk.bf16.mxu0 %vm680_vm3, %v5311_v18  ;;  %v614_v60 = vrot.slane %v613_v21, 4  ;;  %v623_v20 = vor.u32 %v622_v25, %v618_v61  ;;  %v2853_v44 = vrot.slane %v5216_v11, 5  ;;  %v5222_v57 = vld [vmem:[%s6498_s28 + $0x88] sm:$0xf] }
  0x89   : > { %5734 = vmatprep.mubr.msk.bf16.mxu1 %vm680_vm3, %v5027_v23  ;;  %v2856_v34 = vrot.slane %v5217_v8, 5  ;;  %v2847_v45 = vsel %vm6750_vm7, %v5295_v10, %v2846_v38  ;;  %v2848_v59 = vrot.slane %v2846_v38, 4  ;;  %v5045_v62 = vcombine.low %v6351_v51, %v6954_v15  ;;  %v5223_v54 = vld [vmem:[%s6498_s28 + $0x8c] sm:$0x1]  ;;  %v5225_v17 = vld [vmem:[%s6498_s28 + $0x94] sm:$0xf] }
  0x8a   : > { %v619_v9 = vsel %vm6524_vm4, %v614_v60, %v618_v61  ;;  %v624_v26 = vrot.slane %v623_v20, 4  ;;  %v2854_v48 = vsel %vm6750_vm7, %v5296_v28, %v2853_v44  ;;  %v2855_v49 = vrot.slane %v2853_v44, 4  ;;  %v5282_v61 = vld [vmem:[%s6498_s28 + $0x84] sm:$0xe]  ;;  %v5283_v23 = vld [vmem:[%s6498_s28 + $0x90] sm:$0xe] }
  0x8b   : > { %v2850_v50 = vsel %vm6750_vm7, %v2848_v59, %v2849_v1  ;;  %v5297_v58 = vrot.slane %v5281_v47, 9  ;;  %v2860_v7 = vrot.slane %v6958_v40, 5  ;;  %v2863_v41 = vrot.slane %v6961_v55, 5  ;;  %v5226_v25 = vld [vmem:[%s6498_s28 + $0x98] sm:$0x1] }
  0x8c   : > { %v629_v4 = vsel %vm6524_vm4, %v624_v26, %v628_v31  ;;  %v5312_v12 = vcombine.low %v2847_v45, %v2850_v50  ;;  %v2857_v63 = vsel %vm6750_vm7, %v2855_v49, %v2856_v34  ;;  %v5298_v10 = vrot.slane %v5282_v61, 9  ;;  %v5228_v31 = vld [vmem:[%s6498_s28 + $0xa0] sm:$0xf]  ;;  %v5229_v60 = vld [vmem:[%s6498_s28 + $0xa4] sm:$0x1] }
  0x8d   : > { %v5028_v2 = vcombine.low %v619_v9, %v629_v4  ;;  %v5313_v6 = vcombine.low %v2854_v48, %v2857_v63  ;;  %v2867_v11 = vrot.slane %v5222_v57, 5  ;;  %v2870_v8 = vrot.slane %v5223_v54, 5  ;;  %v5284_v20 = vld [vmem:[%s6498_s28 + $0x9c] sm:$0xe]  ;;  %v6353_v44 = vld [vmem:[%s6498_s28 + $0xc] sm:$0xf] }
  0x8e   : > { %5889 = vmatmul.mubr.msk.bf16.gmra.mrb[12].mxu0 %vm680_vm3, %v5312_v12  ;;  %v2861_v18 = vsel %vm6750_vm7, %v5297_v58, %v2860_v7  ;;  %v2862_v21 = vrot.slane %v2860_v7, 4  ;;  %v2874_v28 = vrot.slane %v5225_v17, 5  ;;  %v6988_v34 = vld [vmem:[%s6498_s28 + $0x10] sm:$0xf]  ;;  %v6355_v47 = vld [vmem:[%s6498_s28 + $0x18] sm:$0xf] }
  0x8f   : > { %5735 = vmatmul.mubr.msk.bf16.gmra.mrb[28].mxu1 %vm680_vm3, %v5028_v2  ;;  %5892 = vmatprep.mubr.msk.bf16.mxu0 %vm680_vm3, %v5313_v6  ;;  %v2868_v38 = vsel %vm6750_vm7, %v5298_v10, %v2867_v11  ;;  %v2869_v1 = vrot.slane %v2867_v11, 4  ;;  %v5046_v45 = vcombine.low %v6353_v44, %v6988_v34  ;;  %v6995_v9 = vld [vmem:[%s6498_s28 + $0x1c] sm:$0xf]  ;;  %v5299_v48 = vrot.slane %v5283_v23, 9  ;;  %v5231_v57 = vld [vmem:[%s6498_s28 + $0xac] sm:$0xf] }
  0x90   : > { %5740 = vmatprep.mubr.msk.bf16.mxu1 %vm680_vm3, %v5045_v62  ;;  %v2864_v59 = vsel %vm6750_vm7, %v2862_v21, %v2863_v41  ;;  %v5047_v26 = vcombine.low %v6355_v47, %v6995_v9  ;;  %v2876_v51 = vrot.slane %v2874_v28, 4  ;;  %v2877_v62 = vrot.slane %v5226_v25, 5  ;;  %v6357_v54 = vld [vmem:[%s8283_s1 + $0x4] sm:$0x3]  ;;  %v5234_v2 = vld [vmem:[%s6498_s28 + $0xb8] sm:$0xf] }
  0x91   : > { %v5314_v49 = vcombine.low %v2861_v18, %v2864_v59  ;;  %v2871_v50 = vsel %vm6750_vm7, %v2869_v1, %v2870_v8  ;;  %v5300_v12 = vrot.slane %v5284_v20, 9  ;;  %v2881_v63 = vrot.slane %v5228_v31, 5  ;;  %v7010_v7 = vld [vmem:[%s8283_s1 + $0x6] sm:$0x3]  ;;  %v5232_v10 = vld [vmem:[%s6498_s28 + $0xb0] sm:$0x1] }
  0x92   : > { %v5315_v4 = vcombine.low %v2868_v38, %v2871_v50  ;;  %v2884_v58 = vrot.slane %v5229_v60, 5  ;;  %v1448_v61 = vsel %vm729_vm0, %v6357_v54, 0  ;;  %v2875_v41 = vsel %vm6750_vm7, %v5299_v48, %v2874_v28  ;;  %v5285_v11 = vld [vmem:[%s6498_s28 + $0xa8] sm:$0xe]  ;;  %v5235_v25 = vld [vmem:[%s6498_s28 + $0xbc] sm:$0x1] }
  0x93   : > { %v2883_v6 = vrot.slane %v2881_v63, 4  ;;  %v2878_v17 = vsel %vm6750_vm7, %v2876_v51, %v2877_v62  ;;  %v2888_v8 = vrot.slane %v5231_v57, 5  ;;  %v2882_v23 = vsel %vm6750_vm7, %v5300_v12, %v2881_v63  ;;  %v5286_v31 = vld [vmem:[%s6498_s28 + $0xb4] sm:$0xe]  ;;  %v6358_v38 = vld [vmem:[%s6498_s28 + $0x24] sm:$0xf] }
  0x94   : > { %v2895_v21 = vrot.slane %v5234_v2, 5  ;;  %v7031_v1 = vld [vmem:[%s6498_s28 + $0x28] sm:$0xf]  ;;  %v5316_v60 = vcombine.low %v2875_v41, %v2878_v17  ;;  %v5301_v44 = vrot.slane %v5285_v11, 9  ;;  %v2891_v59 = vrot.slane %v5232_v10, 5 }
  0x95   : > { %v2885_v18 = vsel %vm6750_vm7, %v2883_v6, %v2884_v58  ;;  %v5048_v28 = vcombine.low %v6358_v38, %v7031_v1  ;;  %v6360_v47 = vld [vmem:[%s6498_s28 + $0x30] sm:$0xf]  ;;  %v2898_v51 = vrot.slane %v5235_v25, 5  ;;  %v5237_v62 = vld [vmem:[%s6498_s28 + $0xc4] sm:$0xf]  ;;  %v2283_v25 = vshrl.u32 %v6958_v40, 16 }
  0x96   : > { %5893 = vmatmul.mubr.msk.bf16.gmra.mrb[16].mxu0 %vm680_vm3, %v5314_v49  ;;  %v5317_v20 = vcombine.low %v2882_v23, %v2885_v18  ;;  %v5302_v49 = vrot.slane %v5286_v31, 9  ;;  %v2897_v50 = vrot.slane %v2895_v21, 4  ;;  %v2889_v57 = vsel %vm6750_vm7, %v5301_v44, %v2888_v8  ;;  %v5287_v12 = vld [vmem:[%s6498_s28 + $0xc0] sm:$0xe]  ;;  %v6362_v41 = vld [vmem:[%s6498_s28 + $0x3c] sm:$0xf] }
  0x97   : > { %5741 = vmatmul.mubr.msk.bf16.vlgmr.msra.gmra.mrb[0].mxu1 %vm680_vm3, %v5046_v45  ;;  %5896 = vmatprep.mubr.msk.bf16.mxu0 %vm680_vm3, %v5315_v4  ;;  %v2890_v45 = vrot.slane %v2888_v8, 4  ;;  %v2902_v63 = vrot.slane %v5237_v62, 5  ;;  %v5303_v6 = vrot.slane %v5287_v12, 9  ;;  %v7056_v17 = vld [vmem:[%s6498_s28 + $0x40] sm:$0xf]  ;;  %v5051_v18 = vcombine.low %v6663_v27, %v6666_v36  ;;  %v6314_v62 = vld [vmem:[%s6498_s28 + $0x24] sm:$0xff]  }
  0x98   : > { %5773 = vmatpush3.bf16.msra.mxu1 %v1448_v61  ;;  %5744 = vmatprep.mubr.msk.bf16.mxu1 %vm680_vm3, %v5047_v26  ;;  %v7036_v26 = vld [vmem:[%s6498_s28 + $0x34] sm:$0xf]  ;;  %v2896_v58 = vsel %vm6750_vm7, %v5302_v49, %v2895_v21  ;;  %v2899_v54 = vsel %vm6750_vm7, %v2897_v50, %v2898_v51  ;;  %v5238_v61 = vld [vmem:[%s6498_s28 + $0xc8] sm:$0x1]  ;;  %v5050_v10 = vcombine.low %v6362_v41, %v7056_v17  ;;  %v2279_v21 = vshll.u32 %v6958_v40, 16 }
  0x99   : > { %6271 = vmatprep.subr.msk.bf16.mxu1 %vm729_vm0, %v7010_v7  ;;  %v5049_v48 = vcombine.low %v6360_v47, %v7036_v26  ;;  %v2892_v4 = vsel %vm6750_vm7, %v2890_v45, %v2891_v59  ;;  %v5319_v11 = vcombine.low %v2896_v58, %v2899_v54  ;;  %v2904_v8 = vrot.slane %v2902_v63, 4  ;;  %v1186_v45 = vld [vmem:[%s6498_s28] sm:$0xe]  ;;  %v1187_v59 = vld [vmem:[%s6498_s28 + $0xc] sm:$0xe] }
  0x9a   : > { %v5318_v2 = vcombine.low %v2889_v57, %v2892_v4  ;;  %v2905_v23 = vrot.slane %v5238_v61, 5  ;;  %v2903_v31 = vsel %vm6750_vm7, %v5303_v6, %v2902_v63  ;;  %v7071_v27 = vrot.slane %v2279_v21, 5  ;;  %v1190_v41 = vld [vmem:[%s6498_s28 + $0x30] sm:$0xe] }
  0x9b   : > { %v2285_v36 = vrot.slane %v2283_v25, 4  ;;  %v5053_v44 = vcombine.low %v6723_v19, %v6729_v35  ;;  %v2289_v47 = vshll.u32 %v6961_v55, 16  ;;  %v5077_v19 = vrot.slane %v1186_v45, 9 }
  0x9c   : > { %v2906_v38 = vsel %vm6750_vm7, %v2904_v8, %v2905_v23  ;;  %8304 = vst [vmem:[#allocation3_spill] sm:$0xff] %v7071_v27  ;;  %v5078_v35 = vrot.slane %v1187_v59, 9  ;;  %v1253_v4 = vrot.slane %v6995_v9, 5  ;;  %v1260_v12 = vrot.slane %v7031_v1, 5  ;;  %v1191_v8 = vld [vmem:[%s6498_s28 + $0x3c] sm:$0xe] }
  0x9d   : > { %v5320_v40 = vcombine.low %v2903_v31, %v2906_v38  ;;  %v2286_v49 = vor.u32 %v2285_v36, %v7071_v27  ;;  %v7091_v51 = vrot.slane %v2289_v47, 5  ;;  %v5054_v58 = vcombine.low %v6744_v0, %v6757_v29  ;;  %v1192_v31 = vld [vmem:[%s6498_s28 + $0x48] sm:$0xe]  ;;  %v6368_v59 = vld [vmem:[%s6498_s28 + $0x38] sm:$0x1] }
  0x9e   : > { %5897 = vmatmul.mubr.msk.bf16.gmra.mrb[20].mxu0 %vm680_vm3, %v5316_v60  ;;  %v5052_v60 = vcombine.low %v6692_v24, %v6698_v37  ;;  %v6365_v24 = vld [vmem:[%s6498_s28 + $0x14] sm:$0x1]  ;;  %v4094_v54 = vsel %vm729_vm0, %v6815_v22, 0  ;;  %v5055_v61 = vcombine.low %v6776_v53, %v6783_v16  ;;  %v5056_v6 = vcombine.low %v6802_v39, %v6810_v43  ;;  %v6366_v16 = vld [vmem:[%s6498_s28 + $0x20] sm:$0x1] }
  0x9f   : > { %5745 = vmatmul.mubr.msk.bf16.gmra.mrb[4].mxu1 %vm680_vm3, %v5048_v28  ;;  %5900 = vmatprep.mubr.msk.bf16.mxu0 %vm680_vm3, %v5317_v20  ;;  %v1246_v28 = vrot.slane %v6988_v34, 5  ;;  %v6312_v20 = vld [vmem:[%s6498_s28 + $0x18] sm:$0xff]   ;;  %v6364_v34 = vld [vmem:[%s6498_s28 + $0x8] sm:$0x1]  ;;  %v1249_v37 = vrot.slane %v6365_v24, 5  ;;  %8305 = vst [vmem:[#allocation4_spill] sm:$0xff] %v7091_v51  ;;  %v5057_v9 = vcombine.low %v6834_v5, %v6846_v30 }
  0xa0   : > { %5748 = vmatprep.mubr.msk.bf16.mxu1 %vm680_vm3, %v5049_v48  ;;  %v1239_v48 = vrot.slane %v6954_v15, 5  ;;  %v1242_v50 = vrot.slane %v6364_v34, 5  ;;  %v1188_v15 = vld [vmem:[%s6498_s28 + $0x18] sm:$0xe]  ;;  %v7096_v63 = vrot.slane %v2286_v49, 4  ;;  %v1256_v22 = vrot.slane %v6366_v16, 5 }
  0xa1   : > { %v1248_v55 = vrot.slane %v1246_v28, 4  ;;  %v5079_v1 = vrot.slane %v1188_v15, 9  ;;  %v7118_v29 = vsel %vm6750_vm7, %v5078_v35, %v1246_v28  ;;  %v1262_v25 = vrot.slane %v1260_v12, 4  ;;  %v5402_v24 = vld [vmem:[%s6498_s28 + $0x18] sm:$0xf] }
  0xa2   : > { %v1241_v57 = vrot.slane %v1239_v48, 4  ;;  %8306 = vst [vmem:[#allocation5_spill] sm:$0xff] %v7096_v63  ;;  %v7114_v0 = vsel %vm6750_vm7, %v5077_v19, %v1239_v48  ;;  %v1270_v47 = vrot.slane %v6368_v59, 5  ;;  %v7155_v49 = vsel %vm729_vm0, %v7010_v7, 0  ;;  %v5403_v7 = vld [vmem:[%s6498_s28 + $0x1c] sm:$0xf] }
  0xa3   : > { %v7122_v53 = vsel %vm6750_vm7, %v1248_v55, %v1249_v37  ;;  %v7159_v34 = vsel %vm6750_vm7, %v5079_v1, %v1253_v4  ;;  %v6318_v37 = vld [vmem:[%s6498_s28 + $0x3c] sm:$0xff]   ;;  %v5082_v35 = vrot.slane %v1191_v8, 9  ;;  %v6369_v55 = vld [vmem:[%s6498_s28 + $0x44] sm:$0x1]  ;;  %v3615_v8 = vshll.u32 %v5402_v24, 16 }
  0xa4   : > { %v7133_v23 = vsel %vm6750_vm7, %v1241_v57, %v1242_v50  ;;  %v1193_v50 = vld [vmem:[%s6498_s28 + $0x54] sm:$0xe]  ;;  %v1277_v15 = vrot.slane %v6369_v55, 5  ;;  %v5406_v39 = vld [vmem:[%s6498_s28 + $0x28] sm:$0xf] }
  0xa5   : > { %v6376_v5 = vld [vmem:[%s6498_s28 + $0x70] sm:$0xf] }
  0xa6   : > { %5901 = vmatmul.mubr.msk.bf16.gmra.mrb[24].mxu0 %vm680_vm3, %v5318_v2  ;;  %v1189_v2 = vld [vmem:[%s6498_s28 + $0x24] sm:$0xe]  ;;  %v1302_v30 = vrot.slane %v6376_v5, 5 }
  0xa7   : > { %5749 = vmatmul.mubr.msk.bf16.gmra.mrb[8].mxu1 %vm680_vm3, %v5050_v10  ;;  %5904 = vmatprep.mubr.msk.bf16.mxu0 %vm680_vm3, %v5319_v11  ;;  %v1267_v10 = vrot.slane %v7036_v26, 5  ;;  %v6316_v11 = vld [vmem:[%s6498_s28 + $0x30] sm:$0xff]   ;;  %v5080_v21 = vrot.slane %v1189_v2, 9 }
  0xa8   : > { %5752 = vmatprep.mubr.msk.bf16.mxu1 %vm680_vm3, %v5051_v18  ;;  %v7129_v26 = vld [vmem:[%s8283_s1 + $0x10] sm:$0x3]  ;;  %v1255_v18 = vrot.slane %v1253_v4, 4  ;;  %v1304_v48 = vrot.slane %v1302_v30, 4 }
  0xa9   : > { %v1269_v45 = vrot.slane %v1267_v10, 4  ;;  %v7166_v19 = vsel %vm6750_vm7, %v5080_v21, %v1260_v12  ;;  %v3625_v21 = vshrl.u32 %v5403_v7, 16 }
  0xaa   : > { %v7175_v4 = vsel %vm6750_vm7, %v1255_v18, %v1256_v22  ;;  %v3612_v22 = vshrl.u32 %v5402_v24, 16  ;;  %v3621_v18 = vshll.u32 %v5403_v7, 16  ;;  %v5405_v24 = vld [vmem:[%s6498_s28 + $0x24] sm:$0xf] }
  0xab   : > { %v7188_v1 = vsel %vm6750_vm7, %v1269_v45, %v1270_v47 }
  0xac   : > { %v3614_v43 = vrot.slane %v3612_v22, 4  ;;  %v7230_v7 = vrot.slane %v3621_v18, 5  ;;  %v3639_v22 = vshll.u32 %v5405_v24, 16  ;;  %v3649_v18 = vshrl.u32 %v5406_v39, 16 }
  0xae   : > { %5905 = vmatmul.mubr.msk.bf16.gmra.mrb[28].mxu0 %vm680_vm3, %v5320_v40  ;;  %v6367_v40 = vld [vmem:[%s6498_s28 + $0x2c] sm:$0x1]  ;;  %v3641_v27 = vrot.slane %v3639_v22, 5 }
  0xaf   : > { %5753 = vmatmul.mubr.msk.bf16.gmra.mrb[12].mxu1 %vm680_vm3, %v5052_v60  ;;  %5910 = vmatprep.mubr.msk.bf16.mxu0 %vm680_vm3, %v6312_v20  ;;  %v1263_v28 = vrot.slane %v6367_v40, 5  ;;  %v1274_v60 = vrot.slane %v7056_v17, 5  ;;  %v6372_v40 = vld [vmem:[%s6498_s28 + $0x50] sm:$0x1]  ;;  %v6377_v17 = vld [vmem:[%s6498_s28 + $0x74] sm:$0x1] }
  0xb0   : > { %5756 = vmatprep.mubr.msk.bf16.mxu1 %vm680_vm3, %v5053_v44  ;;  %v5081_v44 = vrot.slane %v1190_v41, 9  ;;  %v5084_v41 = vrot.slane %v1193_v50, 9  ;;  %v1194_v50 = vld [vmem:[%s6498_s28 + $0x60] sm:$0xe]  ;;  %v5407_v20 = vld [vmem:[%s6498_s28 + $0x2c] sm:$0x1] }
  0xb1   : > { %v1276_v12 = vrot.slane %v1274_v60, 4  ;;  %v7201_v45 = vsel %vm6750_vm7, %v5082_v35, %v1274_v60  ;;  %v6373_v35 = vld [vmem:[%s6498_s28 + $0x5c] sm:$0x1] }
  0xb2   : > { %v7184_v2 = vsel %vm6750_vm7, %v5081_v44, %v1267_v10  ;;  %v1291_v55 = vrot.slane %v6373_v35, 5  ;;  %v1195_v35 = vld [vmem:[%s6498_s28 + $0x6c] sm:$0xe] }
  0xb3   : > { %v7205_v59 = vsel %vm6750_vm7, %v1276_v12, %v1277_v15  ;;  %v6374_v15 = vld [vmem:[%s6498_s28 + $0x64] sm:$0xf]  ;;  %v3627_v12 = vrot.slane %v3625_v21, 4  ;;  %v5086_v5 = vrot.slane %v1195_v35, 9 }
  0xb4   : > { %v6324_v21 = vld [vmem:[%s6498_s28 + $0x60] sm:$0xff]  }
  0xb6   : > { %5911 = vmatmul.mubr.msk.bf16.vlgmr.msra.gmra.mrb[0].mxu0 %vm680_vm3, %v6314_v62  ;;  %v6370_v62 = vld [vmem:[%s6498_s28 + $0x4c] sm:$0xf] }
  0xb7   : > { %5757 = vmatmul.mubr.msk.bf16.gmra.mrb[16].mxu1 %vm680_vm3, %v5054_v58  ;;  %5943 = vmatpush3.bf16.msra.mxu0 %v4094_v54  ;;  %v1281_v57 = vrot.slane %v6370_v62, 5  ;;  %v7179_v58 = vsel %vm6750_vm7, %v1262_v25, %v1263_v28  ;;  %v5083_v54 = vrot.slane %v1192_v31, 9  ;;  %v1284_v28 = vrot.slane %v6372_v40, 5 }
  0xb8   : > { %5760 = vmatprep.mubr.msk.bf16.mxu1 %vm680_vm3, %v5055_v61  ;;  %5914 = vmatprep.mubr.msk.bf16.mxu0 %vm680_vm3, %v6316_v11  ;;  %v6320_v61 = vld [vmem:[%s6498_s28 + $0x48] sm:$0xff]   ;;  %v6371_v11 = vld [vmem:[%s6498_s28 + $0x58] sm:$0xf]  ;;  %v1295_v62 = vrot.slane %v6374_v15, 5  ;;  %v5409_v15 = vld [vmem:[%s6498_s28 + $0x34] sm:$0xf] }
  0xb9   : > { %6277 = vmatprep.subr.msk.bf16.mxu0 %vm729_vm0, %v7129_v26  ;;  %v1288_v16 = vrot.slane %v6371_v11, 5  ;;  %v1283_v31 = vrot.slane %v1281_v57, 4  ;;  %v7209_v47 = vsel %vm6750_vm7, %v5083_v54, %v1281_v57  ;;  %v5404_v57 = vld [vmem:[%s6498_s28 + $0x20] sm:$0x1]  ;;  %v5408_v54 = vld [vmem:[%s6498_s28 + $0x30] sm:$0xf] }
  0xba   : > { %v5085_v11 = vrot.slane %v1194_v50, 9  ;;  %v3663_v50 = vshll.u32 %v5408_v54, 16  ;;  %v3631_v25 = vshll.u32 %v5404_v57, 16  ;;  %v3669_v36 = vshll.u32 %v5409_v15, 16 }
  0xbb   : > { %v7220_v60 = vsel %vm6750_vm7, %v5084_v41, %v1288_v16  ;;  %v7236_v41 = vsel %vm6750_vm7, %v1283_v31, %v1284_v28  ;;  %v1297_v31 = vrot.slane %v1295_v62, 4  ;;  %v3660_v28 = vshrl.u32 %v5408_v54, 16 }
  0xbc   : > { %v7278_v35 = vrot.slane %v3669_v36, 5 }
  0xbe   : > { %5915 = vmatmul.mubr.msk.bf16.gmra.mrb[4].mxu0 %vm680_vm3, %v6318_v37  ;;  %v1290_v37 = vrot.slane %v1288_v16, 4  ;;  %v6375_v16 = vld [vmem:[%s6498_s28 + $0x68] sm:$0x1] }
  0xbf   : > { %5761 = vmatmul.mubr.msk.bf16.gmra.mrb[20].mxu1 %vm680_vm3, %v5056_v6  ;;  %5918 = vmatprep.mubr.msk.bf16.mxu0 %vm680_vm3, %v6320_v61  ;;  %v3617_v6 = vrot.slane %v3615_v8, 5  ;;  %v6322_v61 = vld [vmem:[%s6498_s28 + $0x54] sm:$0xff]   ;;  %v1298_v40 = vrot.slane %v6375_v16, 5  ;;  %v3645_v8 = vshll.u32 %v5406_v39, 16  ;;  %v3628_v16 = vor.u32 %v3627_v12, %v7230_v7 }
  0xc0   : > { %5764 = vmatprep.mubr.msk.bf16.mxu1 %vm680_vm3, %v5057_v9  ;;  %v3636_v9 = vshrl.u32 %v5405_v24, 16  ;;  %v7245_v44 = vsel %vm6750_vm7, %v1290_v37, %v1291_v55  ;;  %v1305_v24 = vrot.slane %v6377_v17, 5  ;;  %v3673_v39 = vshrl.u32 %v5409_v15, 16 }
  0xc1   : > { %v3618_v10 = vor.u32 %v3617_v6, %v3614_v43  ;;  %v7251_v37 = vrot.slane %v3645_v8, 5  ;;  %v3651_v55 = vrot.slane %v3649_v18, 4  ;;  %v8307_v43 = vcombine.low %v6855_v52, %v6866_v46  ;;  %v6378_v8 = vld [vmem:[%s6498_s28 + $0x7c] sm:$0xf]  ;;  %v7287_v18 = vld [vmem:[%s6498_s28 + $0x38] sm:$0x1] }
  0xc2   : > { %v3638_v38 = vrot.slane %v3636_v9, 4  ;;  %v7260_v17 = vsel %vm6750_vm7, %v5085_v11, %v1295_v62  ;;  %v7264_v57 = vsel %vm6750_vm7, %v1297_v31, %v1298_v40  ;;  %v3662_v6 = vrot.slane %v3660_v28, 4  ;;  %8309 = vst [vmem:[#allocation6_spill] sm:$0xff] %v7287_v18 }
  0xc3   : > { %v3665_v12 = vrot.slane %v3663_v50, 5  ;;  %v8308_v52 = vcombine.low %v6887_v33, %v6892_v56  ;;  %v3619_v46 = vrot.slane %v3618_v10, 4  ;;  %v3629_v54 = vrot.slane %v3628_v16, 4  ;;  %v6326_v33 = vld [vmem:[%s6498_s28 + $0x6c] sm:$0xff]   ;;  %v1197_v16 = vld [vmem:[%s6498_s28 + $0x84] sm:$0xe] }
  0xc4   : > { %v3655_v62 = vshll.u32 %v5407_v20, 16  ;;  %v7272_v11 = vsel %vm6750_vm7, %v5086_v5, %v1302_v30  ;;  %v7276_v40 = vsel %vm6750_vm7, %v1304_v48, %v1305_v24  ;;  %v3675_v9 = vrot.slane %v3673_v39, 4  ;;  %v6327_v48 = vld [vmem:[%s6498_s28 + $0x78] sm:$0xff]  }
  0xc5   : > { %v3642_v10 = vor.u32 %v3641_v27, %v3638_v38  ;;  %v3652_v20 = vor.u32 %v3651_v55, %v7251_v37  ;;  %v1309_v30 = vrot.slane %v6378_v8, 5  ;;  %v3666_v38 = vor.u32 %v3665_v12, %v3662_v6  ;;  %v5411_v5 = vld [vmem:[%s6498_s28 + $0x3c] sm:$0xf] }
  0xc6   : > { %5919 = vmatmul.mubr.msk.bf16.gmra.mrb[8].mxu0 %vm680_vm3, %v6322_v61  ;;  %v3633_v61 = vrot.slane %v3631_v25, 5  ;;  %v1196_v25 = vld [vmem:[%s6498_s28 + $0x78] sm:$0xe]  ;;  %v7303_v50 = vrot.slane %v3655_v62, 5  ;;  %v3676_v39 = vor.u32 %v3675_v9, %v7278_v35  ;;  %v3679_v55 = vshll.u32 %v7287_v18, 16 }
  0xc7   : > { %5765 = vmatmul.mubr.msk.bf16.gmra.mrb[24].mxu1 %vm680_vm3, %v8307_v43  ;;  %5922 = vmatprep.mubr.msk.bf16.mxu0 %vm680_vm3, %v6324_v21  ;;  %v3624_v21 = vsel %vm6524_vm4, %v3619_v46, %v7230_v7  ;;  %v5087_v24 = vrot.slane %v1196_v25, 9  ;;  %v6379_v43 = vld [vmem:[%s6498_s28 + $0x88] sm:$0xf]  ;;  %v7311_v7 = vld [vmem:[%s6498_s28 + $0x40] sm:$0xf]  ;;  %v3643_v12 = vrot.slane %v3642_v10, 4  ;;  %v8311_v62 = vcombine.low %v6907_v14, %v6916_v42 }
  0xc8   : > { %5768 = vmatprep.mubr.msk.bf16.mxu1 %vm680_vm3, %v8308_v52  ;;  %v3634_v31 = vsel %vm6524_vm4, %v3629_v54, %v3633_v61  ;;  %v1316_v6 = vrot.slane %v6379_v43, 5  ;;  %8310 = vst [vmem:[#allocation7_spill] sm:$0xff] %v7311_v7  ;;  %v3653_v52 = vrot.slane %v3652_v20, 4  ;;  %v1311_v46 = vrot.slane %v1309_v30, 4  ;;  %v6380_v54 = vld [vmem:[%s6498_s28 + $0x80] sm:$0x1] }
  0xc9   : > { %v1312_v61 = vrot.slane %v6380_v54, 5  ;;  %v3667_v9 = vrot.slane %v3666_v38, 4  ;;  %v5088_v25 = vrot.slane %v1197_v16, 9  ;;  %v3684_v8 = vshrl.u32 %v5411_v5, 16  ;;  %v6328_v10 = vld [vmem:[%s6498_s28 + $0x84] sm:$0xff]  }
  0xca   : > { %v3687_v43 = vshll.u32 %v5411_v5, 16  ;;  %v7325_v20 = vcombine.low %v3624_v21, %v3634_v31  ;;  %v7329_v14 = vsel %vm729_vm0, %v7129_v26, 0  ;;  %v3697_v38 = vshrl.u32 %v7311_v7, 16  ;;  %v6329_v21 = vld [vmem:[%s6498_s28 + $0x90] sm:$0xff]   ;;  %v6385_v18 = vld [vmem:[%s6498_s28 + $0xa0] sm:$0xf] }
  0xcb   : > { %v3677_v16 = vrot.slane %v3676_v39, 4  ;;  %v3681_v5 = vrot.slane %v3679_v55, 5  ;;  %v1318_v54 = vrot.slane %v1316_v6, 4  ;;  %v3648_v31 = vsel %vm6524_vm4, %v3643_v12, %v7251_v37 }
  0xcc   : > { %v3658_v26 = vsel %vm6524_vm4, %v3653_v52, %v7303_v50  ;;  %v7344_v39 = vsel %vm6750_vm7, %v5087_v24, %v1309_v30  ;;  %v7348_v55 = vsel %vm6750_vm7, %v1311_v46, %v1312_v61  ;;  %v3672_v37 = vsel %vm6524_vm4, %v3667_v9, %v7278_v35  ;;  %v5417_v30 = vld [vmem:[%s6498_s28 + $0x54] sm:$0xf]  ;;  %v7365_v24 = vld [vmem:[%s6498_s28 + $0x58] sm:$0xf]  ;;  %v7370_v61 = vld [vmem:[%s6498_s28 + $0x90] sm:$0xe] }
  0xcd   : > { %v7361_v12 = vsel %vm6750_vm7, %v5088_v25, %v1316_v6  ;;  %v3686_v50 = vrot.slane %v3684_v8, 4  ;;  %v3689_v52 = vrot.slane %v3687_v43, 5  ;;  %v3699_v46 = vrot.slane %v3697_v38, 4 }
  0xce   : > { %5923 = vmatmul.mubr.msk.bf16.gmra.mrb[12].mxu0 %vm680_vm3, %v6326_v33  ;;  %v8312_v33 = vcombine.low %v7114_v0, %v7133_v23  ;;  %v6381_v0 = vld [vmem:[%s6498_s28 + $0x8c] sm:$0x1]  ;;  %v3682_v36 = vsel %vm6524_vm4, %v3677_v16, %v3681_v5  ;;  %v3732_v25 = vshrl.u32 %v5417_v30, 16  ;;  %v3735_v8 = vshll.u32 %v5417_v30, 16 }
  0xcf   : > { %5769 = vmatmul.mubr.msk.bf16.gmra.mrb[28].mxu1 %vm680_vm3, %v8311_v62  ;;  %5926 = vmatprep.mubr.msk.bf16.mxu0 %vm680_vm3, %v6327_v48  ;;  %v3693_v48 = vshll.u32 %v7311_v7, 16  ;;  %v1319_v23 = vrot.slane %v6381_v0, 5  ;;  %v5414_v62 = vld [vmem:[%s6498_s28 + $0x48] sm:$0xf]  ;;  %v7354_v0 = vld [vmem:[%s6498_s28 + $0x4c] sm:$0xf]  ;;  %v8314_v38 = vcombine.low %v7118_v29, %v7122_v53  ;;  %v7388_v16 = vcombine.low %v3648_v31, %v3658_v26 }
  0xd0   : > { %5774 = vmatprep.mubr.msk.bf16.mxu1 %vm680_vm3, %v8312_v33  ;;  %v7351_v33 = vld [vmem:[%s6498_s28 + $0x44] sm:$0x1]  ;;  %v3708_v27 = vshrl.u32 %v5414_v62, 16  ;;  %v3711_v15 = vshll.u32 %v5414_v62, 16  ;;  %v3717_v6 = vshll.u32 %v7354_v0, 16  ;;  %v3721_v9 = vshrl.u32 %v7354_v0, 16 }
  0xd1   : > { %8313 = vst [vmem:[#allocation8_spill] sm:$0xff] %v7351_v33  ;;  %v7367_v28 = vrot.slane %v3693_v48, 5  ;;  %v7376_v35 = vsel %vm6750_vm7, %v1318_v54, %v1319_v23  ;;  %v3741_v43 = vshll.u32 %v7365_v24, 16  ;;  %v3745_v48 = vshrl.u32 %v7365_v24, 16  ;;  %v5420_v31 = vld [vmem:[%s6498_s28 + $0x60] sm:$0xf] }
  0xd2   : > { %v3703_v5 = vshll.u32 %v7351_v33, 16  ;;  %v5089_v54 = vrot.slane %v7370_v61, 9  ;;  %v8315_v23 = vcombine.low %v7159_v34, %v7175_v4  ;;  %v7399_v29 = vcombine.low %v3672_v37, %v3682_v36  ;;  %v6330_v26 = vld [vmem:[%s6498_s28 + $0x9c] sm:$0xff]   ;;  %v6331_v30 = vld [vmem:[%s6498_s28 + $0xa8] sm:$0xff]  }
  0xd3   : > { %v3690_v53 = vor.u32 %v3689_v52, %v3686_v50  ;;  %v3710_v62 = vrot.slane %v3708_v27, 4  ;;  %v7410_v34 = vrot.slane %v3717_v6, 5  ;;  %v3723_v4 = vrot.slane %v3721_v9, 4  ;;  %v6382_v36 = vld [vmem:[%s8283_s1 + $0x8] sm:$0x3] }
  0xd4   : > { %v3734_v27 = vrot.slane %v3732_v25, 4  ;;  %v3737_v37 = vrot.slane %v3735_v8, 5  ;;  %v7419_v50 = vrot.slane %v3741_v43, 5  ;;  %v3747_v52 = vrot.slane %v3745_v48, 4  ;;  %v6383_v6 = vld [vmem:[%s6498_s28 + $0x94] sm:$0xf] }
  0xd5   : > { %v7425_v9 = vld [vmem:[%s6498_s28 + $0x64] sm:$0xf]  ;;  %v3756_v61 = vshrl.u32 %v5420_v31, 16  ;;  %v7427_v22 = vrot.slane %v3690_v53, 4  ;;  %v1330_v25 = vrot.slane %v6385_v18, 5  ;;  %v3724_v43 = vor.u32 %v3723_v4, %v7410_v34 }
  0xd6   : > { %5927 = vmatmul.mubr.msk.bf16.gmra.mrb[16].mxu0 %vm680_vm3, %v6328_v10  ;;  %8316 = vst [vmem:[#allocation9_spill] sm:$0xff] %v7425_v9  ;;  %v3759_v10 = vshll.u32 %v5420_v31, 16  ;;  %v3738_v31 = vor.u32 %v3737_v37, %v3734_v27  ;;  %v3748_v53 = vor.u32 %v3747_v52, %v7419_v50  ;;  %v8317_v18 = vcombine.low %v7166_v19, %v7179_v58  ;;  %v6332_v37 = vld [vmem:[%s6498_s28 + $0xb4] sm:$0xff]  }
  0xd7   : > { %5775 = vmatmul.mubr.msk.bf16.vlgmr.msra.gmra.mrb[0].mxu1 %vm680_vm3, %v8314_v38  ;;  %5930 = vmatprep.mubr.msk.bf16.mxu0 %vm680_vm3, %v6329_v21  ;;  %v3713_v21 = vrot.slane %v3711_v15, 5  ;;  %v7408_v38 = vld [vmem:[%s6498_s28 + $0x50] sm:$0x1]  ;;  %v7417_v15 = vld [vmem:[%s6498_s28 + $0x5c] sm:$0x1]  ;;  %v8318_v27 = vcombine.low %v7184_v2, %v7188_v1  ;;  %v1332_v52 = vrot.slane %v1330_v25, 4 }
  0xd8   : > { %5807 = vmatpush3.bf16.msra.mxu1 %v7155_v49  ;;  %5778 = vmatprep.mubr.msk.bf16.mxu1 %vm680_vm3, %v8315_v23  ;;  %v3700_v49 = vor.u32 %v3699_v46, %v7367_v28  ;;  %v7421_v46 = vrot.slane %v3703_v5, 5  ;;  %v1323_v23 = vrot.slane %v6383_v6, 5  ;;  %v3727_v48 = vshll.u32 %v7408_v38, 16  ;;  %v1199_v5 = vld [vmem:[%s6498_s28 + $0x9c] sm:$0xe] }
  0xd9   : > { %6273 = vmatprep.subr.msk.bf16.mxu1 %vm729_vm0, %v6382_v36  ;;  %v6384_v36 = vld [vmem:[%s6498_s28 + $0x98] sm:$0x1]  ;;  %v3714_v7 = vor.u32 %v3713_v21, %v3710_v62  ;;  %v3751_v6 = vshll.u32 %v7417_v15, 16  ;;  %v3769_v62 = vshrl.u32 %v7425_v9, 16  ;;  %v3761_v4 = vrot.slane %v3759_v10, 5 }
  0xda   : > { %v1326_v33 = vrot.slane %v6384_v36, 5  ;;  %v3701_v8 = vrot.slane %v3700_v49, 4  ;;  %v3765_v36 = vshll.u32 %v7425_v9, 16  ;;  %v7446_v21 = vsel %vm6750_vm7, %v5089_v54, %v1323_v23  ;;  %v7457_v2 = vld [vmem:[%s6498_s28 + $0x68] sm:$0x1] }
  0xdb   : > { %v3758_v49 = vrot.slane %v3756_v61, 4  ;;  %v3715_v19 = vrot.slane %v3714_v7, 4  ;;  %v5090_v58 = vrot.slane %v1199_v5, 9  ;;  %v3725_v3 = vrot.slane %v3724_v43, 4  ;;  %8319 = vst [vmem:[#allocation10_spill] sm:$0xff] %v7457_v2  ;;  %v6333_v5 = vld [vmem:[%s6498_s28 + $0xc0] sm:$0xff]  }
  0xdc   : > { %v3729_v54 = vrot.slane %v3727_v48, 5  ;;  %v3753_v63 = vrot.slane %v3751_v6, 5  ;;  %v1337_v61 = vrot.slane %v6892_v56, 5  ;;  %v3739_v10 = vrot.slane %v3738_v31, 4  ;;  %v1201_v31 = vld [vmem:[%s6498_s28 + $0xb4] sm:$0xe] }
  0xdd   : > { %v3749_v51 = vrot.slane %v3748_v53, 4  ;;  %v7459_v1 = vrot.slane %v3765_v36, 5  ;;  %v3771_v7 = vrot.slane %v3769_v62, 4  ;;  %v3696_v43 = vsel %vm6524_vm4, %v7427_v22, %v7367_v28  ;;  %v6387_v62 = vld [vmem:[%s6498_s28 + $0xb0] sm:$0x1] }
  0xde   : > { %5931 = vmatmul.mubr.msk.bf16.gmra.mrb[20].mxu0 %vm680_vm3, %v6330_v26  ;;  %v1325_v26 = vrot.slane %v1323_v23, 4  ;;  %v1200_v23 = vld [vmem:[%s6498_s28 + $0xa8] sm:$0xe]  ;;  %v3706_v48 = vsel %vm6524_vm4, %v3701_v8, %v7421_v46  ;;  %v3762_v6 = vor.u32 %v3761_v4, %v3758_v49  ;;  %v3720_v53 = vsel %vm6524_vm4, %v3715_v19, %v7410_v34  ;;  %v5423_v46 = vld [vmem:[%s6498_s28 + $0x6c] sm:$0xf] }
  0xdf   : > { %5779 = vmatmul.mubr.msk.bf16.gmra.mrb[4].mxu1 %vm680_vm3, %v8317_v18  ;;  %5934 = vmatprep.mubr.msk.bf16.mxu0 %vm680_vm3, %v6331_v30  ;;  %v6386_v18 = vld [vmem:[%s6498_s28 + $0xa4] sm:$0x1]  ;;  %v7479_v36 = vsel %vm6750_vm7, %v5090_v58, %v1330_v25  ;;  %v5091_v28 = vrot.slane %v1200_v23, 9  ;;  %v1339_v8 = vrot.slane %v1337_v61, 4  ;;  %v3775_v49 = vshll.u32 %v7457_v2, 16 }
  0xe0   : > { %5782 = vmatprep.mubr.msk.bf16.mxu1 %vm680_vm3, %v8318_v27  ;;  %v1333_v30 = vrot.slane %v6386_v18, 5  ;;  %v7471_v56 = vsel %vm6750_vm7, %v1325_v26, %v1326_v33  ;;  %v3730_v33 = vsel %vm6524_vm4, %v3725_v3, %v3729_v54  ;;  %v1340_v26 = vrot.slane %v6387_v62, 5  ;;  %v5426_v18 = vld [vmem:[%s6498_s28 + $0x78] sm:$0xf]  ;;  %v7534_v54 = vld [vmem:[%s6498_s28 + $0xbc] sm:$0x1] }
  0xe1   : > { %v3744_v34 = vsel %vm6524_vm4, %v3739_v10, %v7419_v50  ;;  %v3754_v25 = vsel %vm6524_vm4, %v3749_v51, %v3753_v63  ;;  %v3772_v4 = vor.u32 %v3771_v7, %v7459_v1  ;;  %v5092_v27 = vrot.slane %v1201_v31, 9  ;;  %v7508_v51 = vld [vmem:[%s6498_s28 + $0x70] sm:$0xf]  ;;  %v7538_v10 = vld [vmem:[%s6498_s28 + $0x7c] sm:$0xf] }
  0xe2   : > { %v7483_v22 = vsel %vm6750_vm7, %v1332_v52, %v1333_v30  ;;  %v8321_v3 = vcombine.low %v7201_v45, %v7205_v59  ;;  %v7504_v19 = vrot.slane %v3762_v6, 4  ;;  %v1344_v50 = vrot.slane %v6916_v42, 5  ;;  %8322 = vst [vmem:[#allocation12_spill] sm:$0xff] %v7508_v51  ;;  %8324 = vst [vmem:[#allocation13_spill] sm:$0xff] %v7538_v10  ;;  %v5429_v7 = vld [vmem:[%s6498_s28 + $0x84] sm:$0xf] }
  0xe3   : > { %8320 = vst [vmem:[#allocation11_spill] sm:$0xff] %v7483_v22  ;;  %v3780_v63 = vshrl.u32 %v5423_v46, 16  ;;  %v8323_v45 = vcombine.low %v7209_v47, %v7236_v41  ;;  %v7516_v58 = vcombine.low %v3720_v53, %v3730_v33  ;;  %v7522_v42 = vsel %vm6750_vm7, %v5091_v28, %v1337_v61  ;;  %v6334_v61 = vld [vmem:[%s6498_s28 + $0xcc] sm:$0xff]   ;;  %v7550_v31 = vld [vmem:[%s6498_s28 + $0x88] sm:$0xf] }
  0xe4   : > { %v7525_v30 = vcombine.low %v3744_v34, %v3754_v25  ;;  %v7529_v47 = vsel %vm6750_vm7, %v1339_v8, %v1340_v26  ;;  %v7531_v41 = vrot.slane %v3775_v49, 5  ;;  %v3789_v6 = vshll.u32 %v7508_v51, 16  ;;  %8325 = vst [vmem:[#allocation14_spill] sm:$0xff] %v7550_v31  ;;  %v5432_v62 = vld [vmem:[%s6498_s28 + $0x90] sm:$0xf] }
  0xe5   : > { %v7556_v28 = vrot.slane %v1344_v50, 4  ;;  %v7558_v33 = vrot.slane %v3780_v63, 4  ;;  %v3793_v8 = vshrl.u32 %v7508_v51, 16  ;;  %v3804_v26 = vshrl.u32 %v5426_v18, 16  ;;  %v7565_v25 = vld [vmem:[%s6498_s28 + $0x94] sm:$0xf] }
  0xe6   : > { %5935 = vmatmul.mubr.msk.bf16.gmra.mrb[24].mxu0 %vm680_vm3, %v6332_v37  ;;  %v7502_v37 = vcombine.low %v3696_v43, %v3706_v48  ;;  %v7546_v43 = vsel %vm6750_vm7, %v5092_v27, %v1344_v50  ;;  %v3783_v48 = vshll.u32 %v5423_v46, 16  ;;  %v3807_v49 = vshll.u32 %v5426_v18, 16  ;;  %8326 = vst [vmem:[#allocation15_spill] sm:$0xff] %v7565_v25  ;;  %v7603_v2 = vld [vmem:[%s6498_s28 + $0x8c] sm:$0x1] }
  0xe7   : > { %5783 = vmatmul.mubr.msk.bf16.gmra.mrb[8].mxu1 %vm680_vm3, %v8321_v3  ;;  %5938 = vmatprep.mubr.msk.bf16.mxu0 %vm680_vm3, %v6333_v5  ;;  %v7542_v5 = vrot.slane %v3772_v4, 4  ;;  %v3813_v46 = vshll.u32 %v7538_v10, 16  ;;  %v3817_v34 = vshrl.u32 %v7538_v10, 16  ;;  %v3828_v4 = vshrl.u32 %v5429_v7, 16 }
  0xe8   : > { %5786 = vmatprep.mubr.msk.bf16.mxu1 %vm680_vm3, %v8323_v45  ;;  %v3831_v27 = vshll.u32 %v5429_v7, 16  ;;  %v3837_v3 = vshll.u32 %v7550_v31, 16  ;;  %v3841_v50 = vshrl.u32 %v7550_v31, 16  ;;  %v7575_v45 = vld [vmem:[%s6498_s28 + $0x74] sm:$0x1]  ;;  %v3785_v18 = vrot.slane %v3783_v48, 5 }
  0xe9   : > { %v3852_v52 = vshrl.u32 %v5432_v62, 16  ;;  %v3855_v53 = vshll.u32 %v5432_v62, 16  ;;  %v8327_v7 = vcombine.low %v7220_v60, %v7245_v44  ;;  %v3795_v59 = vrot.slane %v3793_v8, 4  ;;  %v5435_v48 = vld [vmem:[%s6498_s28 + $0x9c] sm:$0xf] }
  0xea   : > { %v3861_v63 = vshll.u32 %v7565_v25, 16  ;;  %v3865_v23 = vshrl.u32 %v7565_v25, 16  ;;  %v8328_v62 = vcombine.low %v7260_v17, %v7264_v57  ;;  %v7593_v44 = vld [vmem:[%s6498_s28 + $0x80] sm:$0x1]  ;;  %v3806_v60 = vrot.slane %v3804_v26, 4 }
  0xeb   : > { %8329 = vst [vmem:[#allocation16_spill] sm:$0xff] %v7593_v44  ;;  %v3830_v31 = vrot.slane %v3828_v4, 4  ;;  %v3833_v8 = vrot.slane %v3831_v27, 5  ;;  %v7597_v10 = vrot.slane %v3837_v3, 5  ;;  %v3843_v51 = vrot.slane %v3841_v50, 4 }
  0xec   : > { %v7600_v25 = vld [vmem:[%s6498_s28 + $0xa0] sm:$0xf]  ;;  %v3854_v17 = vrot.slane %v3852_v52, 4  ;;  %v3857_v57 = vrot.slane %v3855_v53, 5  ;;  %v3879_v9 = vshll.u32 %v5435_v48, 16  ;;  %v3786_v26 = vor.u32 %v3785_v18, %v7558_v33 }
  0xed   : > { %v3823_v27 = vshll.u32 %v7593_v44, 16  ;;  %v7612_v3 = vld [vmem:[%s6498_s28 + $0x98] sm:$0x1]  ;;  %v3885_v50 = vshll.u32 %v7600_v25, 16  ;;  %v3889_v52 = vshrl.u32 %v7600_v25, 16  ;;  %v3834_v22 = vor.u32 %v3833_v8, %v3830_v31 }
  0xee   : > { %5939 = vmatmul.mubr.msk.bf16.gmra.mrb[28].mxu0 %vm680_vm3, %v6334_v61  ;;  %v7583_v61 = vrot.slane %v3789_v6, 5  ;;  %v3819_v6 = vrot.slane %v3817_v34, 4  ;;  %v3867_v34 = vrot.slane %v3865_v23, 4  ;;  %v3847_v33 = vshll.u32 %v7603_v2, 16 }
  0xef   : > { %5787 = vmatmul.mubr.msk.bf16.gmra.mrb[12].mxu1 %vm680_vm3, %v8327_v7  ;;  %5944 = vmatprep.mubr.msk.bf16.mxu0 %vm680_vm3, %v7325_v20  ;;  %v3809_v7 = vrot.slane %v3807_v49, 5  ;;  %v7595_v20 = vrot.slane %v3813_v46, 5  ;;  %v3799_v49 = vshll.u32 %v7575_v45, 16  ;;  %v7607_v46 = vrot.slane %v3861_v63, 5 }
  0xf0   : > { %5790 = vmatprep.mubr.msk.bf16.mxu1 %vm680_vm3, %v8328_v62  ;;  %v3876_v62 = vshrl.u32 %v5435_v48, 16  ;;  %v3796_v4 = vor.u32 %v3795_v59, %v7583_v61  ;;  %v3844_v23 = vor.u32 %v3843_v51, %v7597_v10  ;;  %v3858_v59 = vor.u32 %v3857_v57, %v3854_v17  ;;  %v7645_v57 = vld [vmem:[%s6498_s28 + $0xa4] sm:$0x1] }
  0xf1   : > { %v3810_v53 = vor.u32 %v3809_v7, %v3806_v60  ;;  %v3820_v48 = vor.u32 %v3819_v6, %v7595_v20  ;;  %v3881_v18 = vrot.slane %v3879_v9, 5  ;;  %v8330_v44 = vcombine.low %v7272_v11, %v7276_v40 }
  0xf2   : > { %v3878_v63 = vrot.slane %v3876_v62, 4  ;;  %v8331_v31 = vrot.slane %v7534_v54, 5  ;;  %v3801_v51 = vrot.slane %v3799_v49, 5  ;;  %v3868_v60 = vor.u32 %v3867_v34, %v7607_v46  ;;  %v7648_v34 = vld [vmem:[%s6498_s28 + $0xac] sm:$0xf] }
  0xf3   : > { %v3871_v9 = vshll.u32 %v7612_v3, 16  ;;  %v8332_v11 = vcombine.low %v7344_v39, %v7348_v55  ;;  %v3787_v40 = vrot.slane %v3786_v26, 4  ;;  %v7641_v54 = vrot.slane %v3885_v50, 5 }
  0xf4   : > { %v3811_v7 = vrot.slane %v3810_v53, 4  ;;  %v3821_v6 = vrot.slane %v3820_v48, 4  ;;  %v3825_v8 = vrot.slane %v3823_v27, 5  ;;  %v3849_v17 = vrot.slane %v3847_v33, 5  ;;  %v7658_v48 = vld [vmem:[%s6498_s28 + $0xb0] sm:$0x1] }
  0xf5   : > { %v3835_v39 = vrot.slane %v3834_v22, 4  ;;  %v3845_v55 = vrot.slane %v3844_v23, 4  ;;  %v3859_v62 = vrot.slane %v3858_v59, 4  ;;  %v3882_v49 = vor.u32 %v3881_v18, %v3878_v63 }
  0xf6   : > { %5945 = vmatmul.mubr.msk.bf16.vlgmr.msra.gmra.mrb[0].mxu0 %vm680_vm3, %v7388_v16  ;;  %v7631_v16 = vsel %vm6750_vm7, %v7556_v28, %v8331_v31  ;;  %v3891_v28 = vrot.slane %v3889_v52, 4  ;;  %v3873_v26 = vrot.slane %v3871_v9, 5  ;;  %v3792_v52 = vsel %vm6524_vm4, %v3787_v40, %v7583_v61 }
  0xf7   : > { %5791 = vmatmul.mubr.msk.bf16.gmra.mrb[16].mxu1 %vm680_vm3, %v8330_v44  ;;  %5977 = vmatpush3.bf16.msra.mxu0 %v7329_v14  ;;  %v3797_v14 = vrot.slane %v3796_v4, 4  ;;  %v5438_v44 = vld [vmem:[%s6498_s28 + $0xa8] sm:$0xf]  ;;  %v3895_v22 = vshll.u32 %v7645_v57, 16  ;;  %v3816_v33 = vsel %vm6524_vm4, %v3811_v7, %v7595_v20  ;;  %v3826_v23 = vsel %vm6524_vm4, %v3821_v6, %v3825_v8 }
  0xf8   : > { %5794 = vmatprep.mubr.msk.bf16.mxu1 %vm680_vm3, %v8332_v11  ;;  %5948 = vmatprep.mubr.msk.bf16.mxu0 %vm680_vm3, %v7399_v29  ;;  %v3869_v29 = vrot.slane %v3868_v60, 4  ;;  %v3900_v4 = vshrl.u32 %v5438_v44, 16  ;;  %v3903_v50 = vshll.u32 %v5438_v44, 16  ;;  %v3892_v53 = vor.u32 %v3891_v28, %v7641_v54  ;;  %v5487_v11 = vld [vmem:[%s6498_s28 + $0x48] sm:$0xe] }
  0xf9   : > { %v3802_v27 = vsel %vm6524_vm4, %v3797_v14, %v3801_v51  ;;  %v3909_v59 = vshll.u32 %v7648_v34, 16  ;;  %v3913_v61 = vshrl.u32 %v7648_v34, 16  ;;  %v3840_v63 = vsel %vm6524_vm4, %v3835_v39, %v7597_v10  ;;  %v7723_v39 = vld [vmem:[%s6498_s28 + $0xb8] sm:$0xf] }
  0xfa   : > { %v3850_v18 = vsel %vm6524_vm4, %v3845_v55, %v3849_v17  ;;  %v3864_v20 = vsel %vm6524_vm4, %v3859_v62, %v7607_v46  ;;  %v3883_v31 = vrot.slane %v3882_v49, 4  ;;  %v8333_v51 = vcombine.low %v7361_v12, %v7376_v35 }
  0xfb   : > { %v3902_v10 = vrot.slane %v3900_v4, 4  ;;  %v3905_v60 = vrot.slane %v3903_v50, 5  ;;  %v3919_v9 = vshll.u32 %v7658_v48, 16  ;;  %v8334_v46 = vcombine.low %v7446_v21, %v7471_v56  ;;  %v5441_v21 = vld [vmem:[%s6498_s28 + $0xb4] sm:$0xf] }
  0xfc   : > { %v5108_v12 = vcombine.low %v7522_v42, %v7529_v47  ;;  %v8335_v35 = vsel %vm6524_vm4, %v7542_v5, %v7531_v41  ;;  %v3893_v14 = vrot.slane %v3892_v53, 4  ;;  %v3897_v28 = vrot.slane %v3895_v22, 5  ;;  %v5489_v4 = vld [vmem:[%s6498_s28 + $0x60] sm:$0xe]  ;;  %v5490_v53 = vld [vmem:[%s6498_s28 + $0x6c] sm:$0xe] }
  0xfd   : > { %v5109_v56 = vcombine.low %v7546_v43, %v7631_v16  ;;  %v7706_v44 = vcombine.low %v3792_v52, %v3802_v27  ;;  %v7708_v42 = vrot.slane %v3909_v59, 5  ;;  %v3915_v47 = vrot.slane %v3913_v61, 4  ;;  %v8344_v16 = vld [vmem:[#allocation4_spill] sm:$0xff] }
  0xfe   : > { %5949 = vmatmul.mubr.msk.bf16.gmra.mrb[4].mxu0 %vm680_vm3, %v7502_v37  ;;  %v3874_v37 = vsel %vm6524_vm4, %v3869_v29, %v3873_v26  ;;  %v7710_v41 = vcombine.low %v3816_v33, %v3826_v23  ;;  %v7712_v5 = vcombine.low %v3840_v63, %v3850_v18  ;;  %v3888_v6 = vsel %vm6524_vm4, %v3883_v31, %v7641_v54  ;;  %v8337_v23 = vld [vmem:[#allocation11_spill] sm:$0xff]  ;;  %v5444_v63 = vld [vmem:[%s6498_s28 + $0xc0] sm:$0xf]  ;;  %v8339_v18 = vld [vmem:[#allocation9_spill] sm:$0xff] }
  0xff   : > { %5795 = vmatmul.mubr.msk.bf16.gmra.mrb[20].mxu1 %vm680_vm3, %v8333_v51  ;;  %5952 = vmatprep.mubr.msk.bf16.mxu0 %vm680_vm3, %v7516_v58  ;;  %v8336_v58 = vsel %vm6524_vm4, %v7504_v19, %v7459_v1  ;;  %v7714_v7 = vcombine.low %v3864_v20, %v3874_v37  ;;  %v5503_v1 = vrot.slane %v5487_v11, 9  ;;  %v5488_v19 = vld [vmem:[%s6498_s28 + $0x54] sm:$0xe]  ;;  %v3906_v8 = vor.u32 %v3905_v60, %v3902_v10  ;;  %v8340_v31 = vld [vmem:[#allocation10_spill] sm:$0xff] }
 0x100   : > { %5798 = vmatprep.mubr.msk.bf16.mxu1 %vm680_vm3, %v8334_v46  ;;  %v5457_v40 = vcombine.low %v8336_v58, %v8335_v35  ;;  %v7720_v17 = vrot.slane %v3919_v9, 5  ;;  %v3924_v55 = vshrl.u32 %v5441_v21, 16  ;;  %v3898_v62 = vsel %vm6524_vm4, %v3893_v14, %v3897_v28  ;;  %v8341_v9 = vld [vmem:[#allocation12_spill] sm:$0xff]  ;;  %v7772_v35 = vld [vmem:[%s6498_s28 + $0xbc] sm:$0x1] }
 0x101   : > { %v3927_v49 = vshll.u32 %v5441_v21, 16  ;;  %v4383_v29 = vrot.slane %v7354_v0, 5  ;;  %v4386_v26 = vrot.slane %v7408_v38, 5  ;;  %v3916_v50 = vor.u32 %v3915_v47, %v7708_v42  ;;  %v7775_v58 = vld [vmem:[%s6498_s28 + $0xc4] sm:$0xf] }
 0x102   : > { %v5504_v52 = vrot.slane %v5488_v19, 9  ;;  %v4390_v54 = vrot.slane %v7365_v24, 5  ;;  %v4393_v27 = vrot.slane %v7417_v15, 5  ;;  %v3933_v22 = vshll.u32 %v7723_v39, 16  ;;  %v5491_v19 = vld [vmem:[%s6498_s28 + $0x78] sm:$0xe] }
 0x103   : > { %v3937_v33 = vshrl.u32 %v7723_v39, 16  ;;  %v7740_v0 = vsel %vm6750_vm7, %v5503_v1, %v4383_v29  ;;  %v4385_v38 = vrot.slane %v4383_v29, 4  ;;  %v8338_v59 = vcombine.low %v7479_v36, %v8337_v23  ;;  %v8342_v23 = vld [vmem:[#allocation13_spill] sm:$0xff] }
 0x104   : > { %v7747_v24 = vcombine.low %v3888_v6, %v3898_v62  ;;  %v7751_v15 = vsel %vm6750_vm7, %v5504_v52, %v4390_v54  ;;  %v5505_v61 = vrot.slane %v5489_v4, 9  ;;  %v4397_v20 = vrot.slane %v8339_v18, 5  ;;  %v6335_v6 = vld [vmem:[%s6498_s28 + $0xc] sm:$0xff]  }
 0x105   : > { %v7757_v36 = vsel %vm6750_vm7, %v4385_v38, %v4386_v26  ;;  %v4400_v51 = vrot.slane %v8340_v31, 5  ;;  %v5506_v37 = vrot.slane %v5490_v53, 9  ;;  %v4404_v11 = vrot.slane %v8341_v9, 5 }
 0x106   : > { %5953 = vmatmul.mubr.msk.bf16.gmra.mrb[8].mxu0 %vm680_vm3, %v7525_v30  ;;  %v4392_v30 = vrot.slane %v4390_v54, 4  ;;  %v5520_v10 = vcombine.low %v7740_v0, %v7757_v36  ;;  %v4407_v46 = vrot.slane %v7575_v45, 5  ;;  %v7781_v14 = vsel %vm6750_vm7, %v5505_v61, %v4397_v20 }
 0x107   : > { %5799 = vmatmul.mubr.msk.bf16.gmra.mrb[24].mxu1 %vm680_vm3, %v8338_v59  ;;  %5956 = vmatprep.mubr.msk.bf16.mxu0 %vm680_vm3, %v5457_v40  ;;  %v4399_v28 = vrot.slane %v4397_v20, 4  ;;  %v7783_v21 = vrot.slane %v3924_v55, 4  ;;  %v3948_v47 = vshrl.u32 %v5444_v63, 16  ;;  %v7787_v45 = vsel %vm6750_vm7, %v5506_v37, %v4404_v11  ;;  %v5218_v55 = vld [vmem:[%s6498_s28 + $0x78] sm:$0xf]  ;;  %v8343_v59 = vld [vmem:[#allocation16_spill] sm:$0xff] }
 0x108   : > { %5802 = vmatprep.mubr.msk.bf16.mxu1 %vm680_vm3, %v5108_v12  ;;  %v7765_v60 = vsel %vm6750_vm7, %v4392_v30, %v4393_v27  ;;  %v7769_v12 = vrot.slane %v3906_v8, 4  ;;  %v4406_v1 = vrot.slane %v4404_v11, 4  ;;  %v7791_v8 = vrot.slane %v3916_v50, 4 }
 0x109   : > { %v5521_v40 = vcombine.low %v7751_v15, %v7765_v60  ;;  %v7793_v62 = vrot.slane %v3927_v49, 5  ;;  %v3951_v29 = vshll.u32 %v5444_v63, 16  ;;  %v7797_v26 = vsel %vm6750_vm7, %v4399_v28, %v4400_v51  ;;  %v8346_v28 = vld [vmem:[#allocation14_spill] sm:$0xff] }
 0x10a   : > { %v7800_v4 = vrot.slane %v3933_v22, 5  ;;  %v7802_v52 = vrot.slane %v3937_v33, 4  ;;  %v5522_v54 = vcombine.low %v7781_v14, %v7797_v26  ;;  %v7808_v27 = vsel %vm6750_vm7, %v4406_v1, %v4407_v46  ;;  %v5492_v33 = vld [vmem:[%s6498_s28 + $0x84] sm:$0xe]  ;;  %v6336_v1 = vld [vmem:[%s6498_s28 + $0x18] sm:$0xff]  }
 0x10b   : > { %v3943_v49 = vshll.u32 %v7772_v35, 16  ;;  %v3957_v50 = vshll.u32 %v7775_v58, 16  ;;  %v5523_v53 = vcombine.low %v7787_v45, %v7808_v27  ;;  %v5507_v22 = vrot.slane %v5491_v19, 9  ;;  %v6398_v60 = vld [vmem:[%s6498_s28 + $0xa0] sm:$0xf] }
 0x10c   : > { %v3950_v38 = vrot.slane %v3948_v47, 4  ;;  %v4414_v30 = vrot.slane %v8343_v59, 5  ;;  %v2270_v61 = vshrl.u32 %v5218_v55, 16  ;;  %v3953_v63 = vrot.slane %v3951_v29, 5  ;;  %v5447_v29 = vld [vmem:[%s6498_s28 + $0xcc] sm:$0xf] }
 0x10d   : > { %v3961_v18 = vshrl.u32 %v7775_v58, 16  ;;  %v2273_v43 = vshll.u32 %v5218_v55, 16  ;;  %v5508_v37 = vrot.slane %v5492_v33, 9  ;;  %v3912_v9 = vsel %vm6524_vm4, %v7769_v12, %v7708_v42  ;;  %v7851_v55 = vld [vmem:[%s6498_s28 + $0xd0] sm:$0xf] }
 0x10e   : > { %5957 = vmatmul.mubr.msk.bf16.gmra.mrb[12].mxu0 %vm680_vm3, %v7706_v44  ;;  %v4411_v44 = vrot.slane %v8342_v23, 5  ;;  %v2272_v51 = vrot.slane %v2270_v61, 4  ;;  %v3930_v11 = vor.u32 %v7793_v62, %v7783_v21  ;;  %v4418_v47 = vrot.slane %v8346_v28, 5  ;;  %v6337_v21 = vld [vmem:[%s6498_s28 + $0x24] sm:$0xff]   ;;  %v6402_v27 = vld [vmem:[%s6498_s28 + $0xac] sm:$0xf] }
 0x10f   : > { %5803 = vmatmul.mubr.msk.bf16.gmra.mrb[28].mxu1 %vm680_vm3, %v5109_v56  ;;  %5960 = vmatprep.mubr.msk.bf16.mxu0 %vm680_vm3, %v7710_v41  ;;  %v8345_v56 = vld [vmem:[#allocation5_spill] sm:$0xff]  ;;  %v2275_v46 = vrot.slane %v2273_v43, 5  ;;  %v3922_v19 = vsel %vm6524_vm4, %v7791_v8, %v7720_v17  ;;  %v4421_v12 = vrot.slane %v7603_v2, 5  ;;  %v7859_v62 = vrot.slane %v3957_v50, 5  ;;  %v5493_v8 = vld [vmem:[%s6498_s28 + $0x90] sm:$0xe] }
 0x110   : > { %5808 = vmatprep.mubr.msk.bf16.mxu1 %vm680_vm3, %v6335_v6  ;;  %v2292_v41 = vsel %vm6524_vm4, %v8345_v56, %v8344_v16  ;;  %v7833_v20 = vsel %vm6750_vm7, %v5507_v22, %v4411_v44  ;;  %v4413_v31 = vrot.slane %v4411_v44, 4  ;;  %v3940_v6 = vor.u32 %v7802_v52, %v7800_v4  ;;  %v7865_v52 = vld [vmem:[%s6498_s28 + $0xc8] sm:$0x1]  ;;  %v8348_v16 = vld [vmem:[#allocation2_spill] sm:$0xff] }
 0x111   : > { %v3963_v22 = vrot.slane %v3961_v18, 4  ;;  %v2276_v17 = vor.u32 %v2275_v46, %v2272_v51  ;;  %v3945_v23 = vrot.slane %v3943_v49, 5  ;;  %v3954_v44 = vor.u32 %v3953_v63, %v3950_v38  ;;  %v8349_v51 = vld [vmem:[#allocation3_spill] sm:$0xff] }
 0x112   : > { %v7855_v42 = vsel %vm6750_vm7, %v4413_v31, %v4414_v30  ;;  %v7869_v59 = vsel %vm6750_vm7, %v5508_v37, %v4418_v47  ;;  %v4420_v30 = vrot.slane %v4418_v47, 4  ;;  %v3972_v2 = vshrl.u32 %v5447_v29, 16 }
 0x113   : > { %v5524_v33 = vcombine.low %v7833_v20, %v7855_v42  ;;  %v3975_v50 = vshll.u32 %v5447_v29, 16  ;;  %v3981_v61 = vshll.u32 %v7851_v55, 16  ;;  %v2277_v18 = vrot.slane %v2276_v17, 4  ;;  %v6338_v29 = vld [vmem:[%s6498_s28 + $0x30] sm:$0xff]  }
 0x114   : > { %v3985_v49 = vshrl.u32 %v7851_v55, 16  ;;  %v7880_v38 = vsel %vm6750_vm7, %v4420_v30, %v4421_v12  ;;  %v5509_v63 = vrot.slane %v5493_v8, 9  ;;  %v3964_v56 = vor.u32 %v3963_v22, %v7859_v62 }
 0x115   : > { %v3967_v31 = vshll.u32 %v7865_v52, 16  ;;  %v5525_v37 = vcombine.low %v7869_v59, %v7880_v38  ;;  %v5463_v46 = vcombine.low %v3912_v9, %v3922_v19  ;;  %v3931_v28 = vrot.slane %v3930_v11, 4  ;;  %v5494_v11 = vld [vmem:[%s6498_s28 + $0x9c] sm:$0xe] }
 0x116   : > { %5961 = vmatmul.mubr.msk.bf16.gmra.mrb[16].mxu0 %vm680_vm3, %v7712_v5  ;;  %v8347_v5 = vld [vmem:[#allocation15_spill] sm:$0xff]  ;;  %v3941_v47 = vrot.slane %v3940_v6, 4  ;;  %v3955_v12 = vrot.slane %v3954_v44, 4  ;;  %v4428_v8 = vrot.slane %v7612_v3, 5  ;;  %v3974_v30 = vrot.slane %v3972_v2, 4  ;;  %v6339_v19 = vld [vmem:[%s6498_s28 + $0x3c] sm:$0xff]  }
 0x117   : > { %5809 = vmatmul.mubr.msk.bf16.vlgmr.msra.gmra.mrb[0].mxu1 %vm680_vm3, %v6336_v1  ;;  %5964 = vmatprep.mubr.msk.bf16.mxu0 %vm680_vm3, %v7714_v7  ;;  %v4425_v43 = vrot.slane %v8347_v5, 5  ;;  %v2282_v7 = vsel %vm6524_vm4, %v2277_v18, %v8349_v51  ;;  %v3977_v18 = vrot.slane %v3975_v50, 5  ;;  %v7903_v5 = vrot.slane %v3981_v61, 5 }
 0x118   : > { %6011 = vmatpush3.bf16.msra.mxu1 %v8348_v16  ;;  %5812 = vmatprep.mubr.msk.bf16.mxu1 %vm680_vm3, %v6337_v21  ;;  %v7892_v1 = vcombine.low %v2282_v7, %v2292_v41  ;;  %v7896_v21 = vld [vmem:[%s6498_s28 + $0xd4] sm:$0x1]  ;;  %v3987_v9 = vrot.slane %v3985_v49, 4  ;;  %v3965_v41 = vrot.slane %v3964_v56, 4  ;;  %v3969_v6 = vrot.slane %v3967_v31, 5 }
 0x119   : > { %v7900_v22 = vsel %vm6750_vm7, %v5509_v63, %v4425_v43  ;;  %v4427_v17 = vrot.slane %v4425_v43, 4  ;;  %v3936_v63 = vsel %vm6524_vm4, %v3931_v28, %v7800_v4  ;;  %v3946_v2 = vsel %vm6524_vm4, %v3941_v47, %v3945_v23  ;;  %v6389_v16 = vld [vmem:[%s6498_s28 + $0x1c] sm:$0xf]  ;;  %v5495_v28 = vld [vmem:[%s6498_s28 + $0xa8] sm:$0xe] }
 0x11a   : > { %v3991_v50 = vshll.u32 %v7896_v21, 16  ;;  %v5510_v61 = vrot.slane %v5494_v11, 9  ;;  %v4432_v49 = vrot.slane %v7600_v25, 5  ;;  %v3960_v4 = vsel %vm6524_vm4, %v3955_v12, %v7859_v62  ;;  %v5483_v62 = vld [vmem:[%s6498_s28 + $0x18] sm:$0xe]  ;;  %v6340_v47 = vld [vmem:[%s6498_s28 + $0x48] sm:$0xff]  }
 0x11b   : > { %v7909_v44 = vsel %vm6750_vm7, %v4427_v17, %v4428_v8  ;;  %v3988_v43 = vor.u32 %v3987_v9, %v7903_v5  ;;  %v4435_v23 = vrot.slane %v7645_v57, 5  ;;  %v3970_v25 = vsel %vm6524_vm4, %v3965_v41, %v3969_v6  ;;  %v6390_v11 = vld [vmem:[%s6498_s28 + $0x20] sm:$0x1] }
 0x11c   : > { %v5526_v3 = vcombine.low %v7900_v22, %v7909_v44  ;;  %v4355_v56 = vrot.slane %v6389_v16, 5  ;;  %v7935_v31 = vsel %vm6750_vm7, %v5510_v61, %v4432_v49  ;;  %v4434_v51 = vrot.slane %v4432_v49, 4  ;;  %v5496_v49 = vld [vmem:[%s6498_s28 + $0xb4] sm:$0xe] }
 0x11d   : > { %v5464_v7 = vcombine.low %v3936_v63, %v3946_v2  ;;  %v3989_v17 = vrot.slane %v3988_v43, 4  ;;  %v5511_v41 = vrot.slane %v5495_v28, 9  ;;  %v4439_v6 = vrot.slane %v7648_v34, 5  ;;  %v5484_v2 = vld [vmem:[%s6498_s28 + $0x24] sm:$0xe] }
 0x11e   : > { %5965 = vmatmul.mubr.msk.bf16.gmra.mrb[20].mxu0 %vm680_vm3, %v7747_v24  ;;  %v3978_v24 = vor.u32 %v3977_v18, %v3974_v30  ;;  %v7940_v57 = vsel %vm6750_vm7, %v4434_v51, %v4435_v23  ;;  %v6341_v30 = vld [vmem:[%s6498_s28 + $0x54] sm:$0xff]   ;;  %v5499_v18 = vrot.slane %v5483_v62, 9  ;;  %v4357_v9 = vrot.slane %v4355_v56, 4  ;;  %v6393_v28 = vld [vmem:[%s6498_s28 + $0x2c] sm:$0x1] }
 0x11f   : > { %5813 = vmatmul.mubr.msk.bf16.gmra.mrb[4].mxu1 %vm680_vm3, %v6338_v29  ;;  %5968 = vmatprep.mubr.msk.bf16.mxu0 %vm680_vm3, %v5463_v46  ;;  %v3993_v46 = vrot.slane %v3991_v50, 5  ;;  %v5465_v29 = vcombine.low %v3960_v4, %v3970_v25  ;;  %v5527_v8 = vcombine.low %v7935_v31, %v7940_v57  ;;  %v4442_v63 = vrot.slane %v7658_v48, 5  ;;  %v6391_v50 = vld [vmem:[%s6498_s28 + $0x28] sm:$0xf]  ;;  %v5485_v25 = vld [vmem:[%s6498_s28 + $0x30] sm:$0xe] }
 0x120   : > { %5816 = vmatprep.mubr.msk.bf16.mxu1 %vm680_vm3, %v6339_v19  ;;  %v3979_v12 = vrot.slane %v3978_v24, 4  ;;  %v4358_v19 = vrot.slane %v6390_v11, 5  ;;  %v4362_v61 = vrot.slane %v6391_v50, 5  ;;  %v7963_v48 = vsel %vm6750_vm7, %v5511_v41, %v4439_v6  ;;  %v6343_v11 = vld [vmem:[%s6498_s28 + $0x6c] sm:$0xff]   ;;  %v8350_v41 = vld [vmem:[#allocation6_spill] sm:$0xff] }
 0x121   : > { %v3994_v34 = vsel %vm6524_vm4, %v3989_v17, %v3993_v46  ;;  %v4441_v24 = vrot.slane %v4439_v6, 4  ;;  %v4356_v43 = vsel %vm6750_vm7, %v5499_v18, %v4355_v56  ;;  %v5500_v51 = vrot.slane %v5484_v2, 9  ;;  %v5497_v50 = vld [vmem:[%s6498_s28 + $0xc0] sm:$0xe]  ;;  %v6407_v31 = vld [vmem:[%s6498_s28 + $0xc8] sm:$0x1] }
 0x122   : > { %v3984_v4 = vsel %vm6524_vm4, %v3979_v12, %v7903_v5  ;;  %v4359_v23 = vsel %vm6750_vm7, %v4357_v9, %v4358_v19  ;;  %v6392_v5 = vld [vmem:[%s6498_s28 + $0x34] sm:$0xf]  ;;  %v6342_v12 = vld [vmem:[%s6498_s28 + $0x60] sm:$0xff]   ;;  %v5501_v18 = vrot.slane %v5485_v25, 9  ;;  %v4449_v9 = vrot.slane %v7772_v35, 5 }
 0x123   : > { %v4369_v16 = vrot.slane %v6392_v5, 5  ;;  %v7974_v62 = vsel %vm6750_vm7, %v4441_v24, %v4442_v63  ;;  %v5466_v46 = vcombine.low %v3984_v4, %v3994_v34  ;;  %v5516_v17 = vcombine.low %v4356_v43, %v4359_v23  ;;  %v5486_v24 = vld [vmem:[%s6498_s28 + $0x3c] sm:$0xe] }
 0x124   : > { %v5528_v56 = vcombine.low %v7963_v48, %v7974_v62  ;;  %v4372_v6 = vrot.slane %v8350_v41, 5  ;;  %v4363_v35 = vsel %vm6750_vm7, %v5500_v51, %v4362_v61  ;;  %v5513_v5 = vrot.slane %v5497_v50, 9 }
 0x125   : > { %v4371_v19 = vrot.slane %v4369_v16, 4  ;;  %v4370_v23 = vsel %vm6750_vm7, %v5501_v18, %v4369_v16  ;;  %v4456_v51 = vrot.slane %v7865_v52, 5  ;;  %v2433_v57 = vshll.u32 %v6407_v31, 16 }
 0x126   : > { %5969 = vmatmul.mubr.msk.bf16.gmra.mrb[24].mxu0 %vm680_vm3, %v5464_v7  ;;  %v5512_v7 = vrot.slane %v5496_v49, 9 }
 0x127   : > { %5817 = vmatmul.mubr.msk.bf16.gmra.mrb[8].mxu1 %vm680_vm3, %v6340_v47  ;;  %5972 = vmatprep.mubr.msk.bf16.mxu0 %vm680_vm3, %v5465_v29  ;;  %v4365_v47 = vrot.slane %v6393_v28, 5  ;;  %v4446_v29 = vrot.slane %v7723_v39, 5  ;;  %v8351_v39 = vld [vmem:[#allocation7_spill] sm:$0xff]  ;;  %v4373_v25 = vsel %vm6750_vm7, %v4371_v19, %v4372_v6  ;;  %v5502_v28 = vrot.slane %v5486_v24, 9 }
 0x128   : > { %5820 = vmatprep.mubr.msk.bf16.mxu1 %vm680_vm3, %v6341_v30  ;;  %v4364_v30 = vrot.slane %v4362_v61, 4  ;;  %v4376_v49 = vrot.slane %v8351_v39, 5  ;;  %v4453_v61 = vrot.slane %v7775_v58, 5  ;;  %v6394_v39 = vld [vmem:[%s6498_s28 + $0x70] sm:$0xf]  ;;  %v4460_v24 = vrot.slane %v7851_v55, 5 }
 0x129   : > { %v7986_v63 = vsel %vm6750_vm7, %v5512_v7, %v4446_v29  ;;  %v4448_v2 = vrot.slane %v4446_v29, 4  ;;  %v5215_v7 = vld [vmem:[%s6498_s28 + $0x6c] sm:$0xf]  ;;  %v8352_v29 = vld [vmem:[#allocation8_spill] sm:$0xff] }
 0x12a   : > { %v4366_v34 = vsel %vm6750_vm7, %v4364_v30, %v4365_v47  ;;  %v4378_v47 = vrot.slane %v4376_v49, 4  ;;  %v6344_v30 = vld [vmem:[%s6498_s28 + $0x78] sm:$0xff]   ;;  %v8017_v16 = vsel %vm6750_vm7, %v5513_v5, %v4453_v61  ;;  %v4455_v18 = vrot.slane %v4453_v61, 4 }
 0x12b   : > { %v7993_v4 = vsel %vm6750_vm7, %v4448_v2, %v4449_v9  ;;  %v5518_v9 = vcombine.low %v4370_v23, %v4373_v25  ;;  %v2246_v19 = vshrl.u32 %v5215_v7, 16  ;;  %v2249_v41 = vshll.u32 %v5215_v7, 16 }
 0x12c   : > { %v5529_v43 = vcombine.low %v7986_v63, %v7993_v4  ;;  %v8022_v58 = vsel %vm6750_vm7, %v4455_v18, %v4456_v51  ;;  %v4377_v6 = vsel %vm6750_vm7, %v5502_v28, %v4376_v49  ;;  %v4463_v49 = vrot.slane %v7896_v21, 5  ;;  %v6346_v51 = vld [vmem:[%s6498_s28 + $0x90] sm:$0xff]   ;;  %v6347_v21 = vld [vmem:[%s6498_s28 + $0x9c] sm:$0xff]  }
 0x12d   : > { %v5530_v50 = vcombine.low %v8017_v16, %v8022_v58  ;;  %v2248_v23 = vrot.slane %v2246_v19, 4  ;;  %v2251_v25 = vrot.slane %v2249_v41, 5  ;;  %v4462_v7 = vrot.slane %v4460_v24, 4 }
 0x12e   : > { %5973 = vmatmul.mubr.msk.bf16.gmra.mrb[28].mxu0 %vm680_vm3, %v5466_v46  ;;  %v5517_v46 = vcombine.low %v4363_v35, %v4366_v34  ;;  %v2255_v35 = vshll.u32 %v6394_v39, 16  ;;  %v2259_v34 = vshrl.u32 %v6394_v39, 16 }
 0x12f   : > { %5821 = vmatmul.mubr.msk.bf16.gmra.mrb[12].mxu1 %vm680_vm3, %v6342_v12  ;;  %5978 = vmatprep.mubr.msk.bf16.mxu0 %vm680_vm3, %v5516_v17  ;;  %v4379_v12 = vrot.slane %v8352_v29, 5  ;;  %v5498_v17 = vld [vmem:[%s6498_s28 + $0xcc] sm:$0xe]  ;;  %v8044_v55 = vsel %vm6750_vm7, %v4462_v7, %v4463_v49 }
 0x130   : > { %5824 = vmatprep.mubr.msk.bf16.mxu1 %vm680_vm3, %v6343_v11  ;;  %v6345_v11 = vld [vmem:[%s6498_s28 + $0x84] sm:$0xff]   ;;  %v5514_v52 = vrot.slane %v5498_v17, 9  ;;  %v2261_v28 = vrot.slane %v2259_v34, 4  ;;  %v6395_v17 = vld [vmem:[%s6498_s28 + $0x74] sm:$0x1] }
 0x131   : > { %v4380_v2 = vsel %vm6750_vm7, %v4378_v47, %v4379_v12  ;;  %v5221_v47 = vld [vmem:[%s6498_s28 + $0x84] sm:$0xf]  ;;  %v2252_v12 = vor.u32 %v2251_v25, %v2248_v23  ;;  %v6349_v34 = vld [vmem:[%s6498_s28 + $0xb4] sm:$0xff]  }
 0x132   : > { %v8039_v5 = vsel %vm6750_vm7, %v5514_v52, %v4460_v24  ;;  %v5519_v61 = vcombine.low %v4377_v6, %v4380_v2  ;;  %v2297_v18 = vshll.u32 %v5221_v47, 16  ;;  %v5224_v6 = vld [vmem:[%s6498_s28 + $0x90] sm:$0xf]  ;;  %v6348_v2 = vld [vmem:[%s6498_s28 + $0xa8] sm:$0xff]  }
 0x133   : > { %v5531_v29 = vcombine.low %v8039_v5, %v8044_v55  ;;  %v2253_v52 = vrot.slane %v2252_v12, 4  ;;  %v2318_v23 = vshrl.u32 %v5224_v6, 16  ;;  %v2321_v25 = vshll.u32 %v5224_v6, 16 }
 0x134   : > { %v2351_v12 = vshll.u32 %v6398_v60, 16 }
 0x135   : > { %v2323_v14 = vrot.slane %v2321_v25, 5  ;;  %v6401_v25 = vld [vmem:[%s6498_s28 + $0xa4] sm:$0x1] }
 0x136   : > { %5979 = vmatmul.mubr.msk.bf16.vlgmr.msra.gmra.mrb[0].mxu0 %vm680_vm3, %v5517_v46  ;;  %v2257_v46 = vrot.slane %v2255_v35, 5  ;;  %v5227_v35 = vld [vmem:[%s6498_s28 + $0x9c] sm:$0xf]  ;;  %v8086_v6 = vrot.slane %v2351_v12, 5 }
 0x137   : > { %5825 = vmatmul.mubr.msk.bf16.gmra.mrb[16].mxu1 %vm680_vm3, %v6344_v30  ;;  %5982 = vmatprep.mubr.msk.bf16.mxu0 %vm680_vm3, %v5518_v9  ;;  %v2265_v30 = vshll.u32 %v6395_v17, 16  ;;  %v2294_v9 = vshrl.u32 %v5221_v47, 16  ;;  %v2345_v47 = vshll.u32 %v5227_v35, 16  ;;  %v6399_v17 = vld [vmem:[%s6498_s28 + $0x8c] sm:$0x1] }
 0x138   : > { %5828 = vmatprep.mubr.msk.bf16.mxu1 %vm680_vm3, %v6345_v11  ;;  %v2262_v13 = vor.u32 %v2261_v28, %v2257_v46  ;;  %v6396_v11 = vld [vmem:[%s6498_s28 + $0x88] sm:$0xf]  ;;  %v2258_v7 = vsel %vm6524_vm4, %v2253_v52, %v2257_v46 }
 0x139   : > { %v2303_v19 = vshll.u32 %v6396_v11, 16  ;;  %v2307_v41 = vshrl.u32 %v6396_v11, 16  ;;  %v2267_v0 = vrot.slane %v2265_v30, 5  ;;  %v2296_v36 = vrot.slane %v2294_v9, 4 }
 0x13a   : > { %v2263_v39 = vrot.slane %v2262_v13, 4  ;;  %v2313_v30 = vshll.u32 %v6399_v17, 16  ;;  %v2320_v9 = vrot.slane %v2318_v23, 4  ;;  %v2347_v11 = vrot.slane %v2345_v47, 5 }
 0x13b   : > { %v8063_v24 = vrot.slane %v2303_v19, 5  ;;  %v2309_v49 = vrot.slane %v2307_v41, 4  ;;  %v6350_v19 = vld [vmem:[%s6498_s28 + $0xc0] sm:$0xff]  }
 0x13c   : > { %v2268_v46 = vsel %vm6524_vm4, %v2263_v39, %v2267_v0  ;;  %v5230_v39 = vld [vmem:[%s6498_s28 + $0xa8] sm:$0xf] }
 0x13d   : > { %v2310_v13 = vor.u32 %v2309_v49, %v8063_v24  ;;  %v5248_v41 = vcombine.low %v2258_v7, %v2268_v46  ;;  %v2361_v7 = vshll.u32 %v6401_v25, 16  ;;  %v2369_v45 = vshll.u32 %v5230_v39, 16 }
 0x13e   : > { %5983 = vmatmul.mubr.msk.bf16.gmra.mrb[4].mxu0 %vm680_vm3, %v5519_v61  ;;  %v6397_v61 = vld [vmem:[%s6498_s28 + $0x94] sm:$0xf] }
 0x13f   : > { %5829 = vmatmul.mubr.msk.bf16.gmra.mrb[20].mxu1 %vm680_vm3, %v6346_v51  ;;  %5986 = vmatprep.mubr.msk.bf16.mxu0 %vm680_vm3, %v5520_v10  ;;  %v2299_v10 = vrot.slane %v2297_v18, 5  ;;  %v2327_v51 = vshll.u32 %v6397_v61, 16  ;;  %v2331_v28 = vshrl.u32 %v6397_v61, 16  ;;  %v2311_v0 = vrot.slane %v2310_v13, 4 }
 0x140   : > { %5832 = vmatprep.mubr.msk.bf16.mxu1 %vm680_vm3, %v6347_v21  ;;  %v2342_v21 = vshrl.u32 %v5227_v35, 16  ;;  %v6400_v35 = vld [vmem:[%s6498_s28 + $0x98] sm:$0x1]  ;;  %v2366_v61 = vshrl.u32 %v5230_v39, 16  ;;  %v5236_v39 = vld [vmem:[%s6498_s28 + $0xc0] sm:$0xf] }
 0x141   : > { %v2300_v15 = vor.u32 %v2299_v10, %v2296_v36  ;;  %v8083_v26 = vrot.slane %v2327_v51, 5  ;;  %v2315_v36 = vrot.slane %v2313_v30, 5  ;;  %v2324_v10 = vor.u32 %v2323_v14, %v2320_v9  ;;  %v5233_v51 = vld [vmem:[%s6498_s28 + $0xb4] sm:$0xf] }
 0x142   : > { %v2344_v18 = vrot.slane %v2342_v21, 4  ;;  %v2379_v21 = vshrl.u32 %v6402_v27, 16  ;;  %v2390_v20 = vshrl.u32 %v5233_v51, 16  ;;  %v2393_v42 = vshll.u32 %v5233_v51, 16 }
 0x143   : > { %v2301_v52 = vrot.slane %v2300_v15, 4  ;;  %v2316_v46 = vsel %vm6524_vm4, %v2311_v0, %v2315_v36  ;;  %v2325_v15 = vrot.slane %v2324_v10, 4  ;;  %v2363_v30 = vrot.slane %v2361_v7, 5 }
 0x144   : > { %v2348_v23 = vor.u32 %v2347_v11, %v2344_v18  ;;  %v2368_v9 = vrot.slane %v2366_v61, 4  ;;  %v2381_v11 = vrot.slane %v2379_v21, 4  ;;  %v6406_v61 = vld [vmem:[%s6498_s28 + $0xbc] sm:$0x1] }
 0x145   : > { %v2306_v47 = vsel %vm6524_vm4, %v2301_v52, %v8063_v24  ;;  %v2330_v0 = vsel %vm6524_vm4, %v2325_v15, %v8083_v26  ;;  %v2409_v22 = vshll.u32 %v6406_v61, 16 }
 0x146   : > { %5987 = vmatmul.mubr.msk.bf16.gmra.mrb[8].mxu0 %vm680_vm3, %v5521_v40  ;;  %v2355_v40 = vshrl.u32 %v6398_v60, 16  ;;  %v2349_v17 = vrot.slane %v2348_v23, 4  ;;  %v5250_v24 = vcombine.low %v2306_v47, %v2316_v46 }
 0x147   : > { %5833 = vmatmul.mubr.msk.bf16.gmra.mrb[24].mxu1 %vm680_vm3, %v6348_v2  ;;  %5990 = vmatprep.mubr.msk.bf16.mxu0 %vm680_vm3, %v5522_v54  ;;  %v2333_v54 = vrot.slane %v2331_v28, 4 }
 0x148   : > { %5836 = vmatprep.mubr.msk.bf16.mxu1 %vm680_vm3, %v6349_v34  ;;  %v2357_v2 = vrot.slane %v2355_v40, 4  ;;  %v2337_v34 = vshll.u32 %v6400_v35, 16  ;;  %v2354_v10 = vsel %vm6524_vm4, %v2349_v17, %v8086_v6  ;;  %v2435_v17 = vrot.slane %v2433_v57, 5 }
 0x149   : > { %v2334_v49 = vor.u32 %v2333_v54, %v8083_v26  ;;  %v2371_v54 = vrot.slane %v2369_v45, 5  ;;  %v6404_v26 = vld [vmem:[%s6498_s28 + $0xb0] sm:$0x1] }
 0x14a   : > { %v2358_v28 = vor.u32 %v2357_v2, %v8086_v6  ;;  %v2339_v60 = vrot.slane %v2337_v34, 5  ;;  %v2385_v35 = vshll.u32 %v6404_v26, 16  ;;  %v2414_v34 = vshrl.u32 %v5236_v39, 16 }
 0x14b   : > { %v2335_v13 = vrot.slane %v2334_v49, 4  ;;  %v2372_v38 = vor.u32 %v2371_v54, %v2368_v9  ;;  %v2417_v6 = vshll.u32 %v5236_v39, 16  ;;  %v6405_v49 = vld [vmem:[%s6498_s28 + $0xc4] sm:$0xf] }
 0x14c   : > { %v2359_v14 = vrot.slane %v2358_v28, 4  ;;  %v2423_v23 = vshll.u32 %v6405_v49, 16  ;;  %v2427_v25 = vshrl.u32 %v6405_v49, 16  ;;  %v2387_v45 = vrot.slane %v2385_v35, 5 }
 0x14d   : > { %v2340_v36 = vsel %vm6524_vm4, %v2335_v13, %v2339_v60  ;;  %v2373_v51 = vrot.slane %v2372_v38, 4  ;;  %v2411_v60 = vrot.slane %v2409_v22, 5 }
 0x14e   : > { %5991 = vmatmul.mubr.msk.bf16.gmra.mrb[12].mxu0 %vm680_vm3, %v5523_v53  ;;  %v2375_v53 = vshll.u32 %v6402_v27, 16  ;;  %v2364_v59 = vsel %vm6524_vm4, %v2359_v14, %v2363_v30  ;;  %v5251_v44 = vcombine.low %v2330_v0, %v2340_v36  ;;  %v2416_v27 = vrot.slane %v2414_v34, 4 }
 0x14f   : > { %5837 = vmatmul.mubr.msk.bf16.gmra.mrb[28].mxu1 %vm680_vm3, %v6350_v19  ;;  %5994 = vmatprep.mubr.msk.bf16.mxu0 %vm680_vm3, %v5524_v33  ;;  %v6403_v33 = vld [vmem:[%s6498_s28 + $0xb8] sm:$0xf]  ;;  %v2392_v19 = vrot.slane %v2390_v20, 4  ;;  %v2425_v21 = vrot.slane %v2423_v23, 5  ;;  %v2429_v47 = vrot.slane %v2427_v25, 4 }
 0x150   : > { %5858 = vmatprep.mubr.msk.bf16.mxu1 %vm680_vm3, %v5248_v41  ;;  %v2399_v12 = vshll.u32 %v6403_v33, 16  ;;  %v2403_v40 = vshrl.u32 %v6403_v33, 16  ;;  %v2377_v18 = vrot.slane %v2375_v53, 5  ;;  %v2395_v41 = vrot.slane %v2393_v42, 5 }
 0x151   : > { %v2419_v53 = vrot.slane %v2417_v6, 5 }
 0x152   : > { %v2401_v52 = vrot.slane %v2399_v12, 5  ;;  %v2405_v2 = vrot.slane %v2403_v40, 4  ;;  %v2378_v20 = vsel %vm6524_vm4, %v2373_v51, %v2377_v18  ;;  %v2430_v12 = vor.u32 %v2429_v47, %v2425_v21 }
 0x153   : > { %v2420_v33 = vor.u32 %v2419_v53, %v2416_v27 }
 0x154   : > { %v2406_v7 = vor.u32 %v2405_v2, %v2401_v52  ;;  %v2431_v13 = vrot.slane %v2430_v12, 4  ;;  %v8194_v2 = vld [vmem:[%s8284_s2] ss:$0 sm:$0xff] }
 0x155   : > { %v2421_v40 = vrot.slane %v2420_v33, 4 }
 0x156   : > { %5995 = vmatmul.mubr.msk.bf16.gmra.mrb[16].mxu0 %vm680_vm3, %v5525_v37  ;;  %v2382_v37 = vor.u32 %v2381_v11, %v2377_v18  ;;  %v2407_v15 = vrot.slane %v2406_v7, 4  ;;  %v2436_v9 = vsel %vm6524_vm4, %v2431_v13, %v2435_v17 }
 0x157   : > { %5859 = vmatmul.mubr.msk.bf16.vlgmr.msra.gmra.mrb[16].mxu1 %vm680_vm3, %v7892_v1  ;;  %5998 = vmatprep.mubr.msk.bf16.mxu0 %vm680_vm3, %v5526_v3  ;;  %v2396_v1 = vor.u32 %v2395_v41, %v2392_v19  ;;  %v5252_v3 = vcombine.low %v2354_v10, %v2364_v59  ;;  %v2426_v30 = vsel %vm6524_vm4, %v2421_v40, %v2425_v21 }
 0x158   : > { %5862 = vmatprep.mubr.msk.bf16.mxu1 %vm680_vm3, %v5250_v24  ;;  %v2383_v28 = vrot.slane %v2382_v37, 4  ;;  %v2412_v48 = vsel %vm6524_vm4, %v2407_v15, %v2411_v60  ;;  %v5255_v14 = vcombine.low %v2426_v30, %v2436_v9 }
 0x159   : > { %v2397_v46 = vrot.slane %v2396_v1, 4 }
 0x15a   : > { %v2388_v42 = vsel %vm6524_vm4, %v2383_v28, %v2387_v45 }
 0x15b   : > { %v5253_v62 = vcombine.low %v2378_v20, %v2388_v42 }
 0x15e   : > { %5999 = vmatmul.mubr.msk.bf16.gmra.mrb[20].mxu0 %vm680_vm3, %v5527_v8  ;;  %v2402_v8 = vsel %vm6524_vm4, %v2397_v46, %v2401_v52 }
 0x15f   : > { %5863 = vmatmul.mubr.msk.bf16.gmra.mrb[20].mxu1 %vm680_vm3, %v5251_v44  ;;  %6002 = vmatprep.mubr.msk.bf16.mxu0 %vm680_vm3, %v5528_v56  ;;  %v5254_v56 = vcombine.low %v2402_v8, %v2412_v48 }
 0x160   : > { %5866 = vmatprep.mubr.msk.bf16.mxu1 %vm680_vm3, %v5252_v3 }
 0x166   : > { %6003 = vmatmul.mubr.msk.bf16.gmra.mrb[24].mxu0 %vm680_vm3, %v5529_v43 }
 0x167   : > { %5867 = vmatmul.mubr.msk.bf16.gmra.mrb[24].mxu1 %vm680_vm3, %v5253_v62  ;;  %6006 = vmatprep.mubr.msk.bf16.mxu0 %vm680_vm3, %v5530_v50 }
 0x168   : > { %5870 = vmatprep.mubr.msk.bf16.mxu1 %vm680_vm3, %v5254_v56 }
 0x16e   : > { %6007 = vmatmul.mubr.msk.bf16.gmra.mrb[28].mxu0 %vm680_vm3, %v5531_v29 }
 0x16f   : > { %5871 = vmatmul.mubr.msk.bf16.gmra.mrb[28].mxu1 %vm680_vm3, %v5255_v14 }
 0x1ea   : > { %v5810_v63 = vpop.f32.mrb[0].mxu1 }
 0x1eb   : > { %v1846_v4 = vpop.f32.mrb[1].mxu1 }
 0x1ec   : > { %v5811_v43 = vpop.f32.mrb[2].mxu1 }
 0x1ed   : > { %v1849_v16 = vpop.f32.mrb[3].mxu1 }
 0x1f2   : > { %v5814_v58 = vpop.f32.mrb[4].mxu1 }
 0x1f3   : > { %v1862_v50 = vpop.f32.mrb[5].mxu1 }
 0x1f4   : > { %v5815_v54 = vpop.f32.mrb[6].mxu1 }
 0x1f5   : > { %v1865_v18 = vpop.f32.mrb[7].mxu1 }
 0x1fa   : > { %v8174_v11 = vpop.f32.mrb[8].mxu1 }
 0x1fb   : > { %v8176_v32 = vpop.f32.mrb[9].mxu1 }
 0x1fc   : > { %v8178_v24 = vpop.f32.mrb[10].mxu1 }
 0x1fd   : > { %v8180_v19 = vpop.f32.mrb[11].mxu1 }
 0x202   : > { %v8183_v5 = vpop.f32.mrb[12].mxu1 }
 0x203   : > { %v8185_v55 = vpop.f32.mrb[13].mxu1 }
 0x204   : > { %v8187_v29 = vpop.f32.mrb[14].mxu1 }
 0x205   : > { %v8189_v41 = vpop.f32.mrb[15].mxu1 }
 0x209   : > { %v5980_v52 = vpop.f32.mrb[0].mxu0 }
 0x20a   : > { %v6012_v39 = vadd.f32 %v5980_v52, %v5810_v63  ;;  %v4600_v0 = vpop.f32.mrb[1].mxu0 }
 0x20b   : > { %v6013_v36 = vadd.f32 %v4600_v0, %v1846_v4  ;;  %v5981_v10 = vpop.f32.mrb[2].mxu0 }
 0x20c   : > { %v4768_v59 = vadd.f32 %v6012_v39, %v8194_v2  ;;  %v6014_v38 = vadd.f32 %v5981_v10, %v5811_v43  ;;  %v4603_v37 = vpop.f32.mrb[3].mxu0 }
 0x20d   : > { %v4766_v26 = vadd.f32 %v6013_v36, %v8194_v2  ;;  %v6015_v35 = vadd.f32 %v4603_v37, %v1849_v16 }
 0x20e   : > { %vm4800_vm8 = vcmp.ge.f32.partialorder %v4768_v59, 0.0  ;;  %v4832_v34 = vmul.f32 0.1, %v4768_v59  ;;  %v4769_v6 = vadd.f32 %v6014_v38, %v8194_v2 }
 0x20f   : > { %vm4798_vm9 = vcmp.ge.f32.partialorder %v4766_v26, 0.0  ;;  %v4830_v49 = vmul.f32 0.1, %v4766_v26  ;;  %v4767_v23 = vadd.f32 %v6015_v35, %v8194_v2 }
 0x210   : > { %v4864_v25 = vsel %vm4800_vm8, %v4768_v59, %v4832_v34  ;;  %vm4801_vm10 = vcmp.ge.f32.partialorder %v4769_v6, 0.0  ;;  %v4833_v1 = vmul.f32 0.1, %v4769_v6 }
 0x211   : > { %4896 = vst [vmem:[%s8201_s25 + $0x10] sm:$0xff] %v4864_v25  ;;  %v4862_v7 = vsel %vm4798_vm9, %v4766_v26, %v4830_v49  ;;  %vm4799_vm11 = vcmp.ge.f32.partialorder %v4767_v23, 0.0  ;;  %v4831_v61 = vmul.f32 0.1, %v4767_v23  ;;  %v5984_v22 = vpop.f32.mrb[4].mxu0 }
 0x212   : > { %4894 = vst [vmem:[%s8201_s25] sm:$0xff] %v4862_v7  ;;  %v4865_v44 = vsel %vm4801_vm10, %v4769_v6, %v4833_v1  ;;  %v6016_v3 = vadd.f32 %v5984_v22, %v5814_v58  ;;  %v4616_v51 = vpop.f32.mrb[5].mxu0 }
 0x213   : > { %4897 = vst [vmem:[%s8201_s25 + $0x18] sm:$0xff] %v4865_v44  ;;  %v4863_v28 = vsel %vm4799_vm11, %v4767_v23, %v4831_v61  ;;  %v6017_v45 = vadd.f32 %v4616_v51, %v1862_v50  ;;  %v5985_v27 = vpop.f32.mrb[6].mxu0 }
 0x214   : > { %4895 = vst [vmem:[%s8201_s25 + $0x8] sm:$0xff] %v4863_v28  ;;  %v4772_v53 = vadd.f32 %v6016_v3, %v8194_v2  ;;  %v6018_v21 = vadd.f32 %v5985_v27, %v5815_v54  ;;  %v4619_v47 = vpop.f32.mrb[7].mxu0 }
 0x215   : > { %v4770_v46 = vadd.f32 %v6017_v45, %v8194_v2  ;;  %v6019_v15 = vadd.f32 %v4619_v47, %v1865_v18 }
 0x216   : > { %vm4804_vm12 = vcmp.ge.f32.partialorder %v4772_v53, 0.0  ;;  %v4836_v60 = vmul.f32 0.1, %v4772_v53  ;;  %v4773_v20 = vadd.f32 %v6018_v21, %v8194_v2 }
 0x217   : > { %vm4802_vm13 = vcmp.ge.f32.partialorder %v4770_v46, 0.0  ;;  %v4834_v42 = vmul.f32 0.1, %v4770_v46  ;;  %v4771_v33 = vadd.f32 %v6019_v15, %v8194_v2 }
 0x218   : > { %v4868_v12 = vsel %vm4804_vm12, %v4772_v53, %v4836_v60  ;;  %vm4805_vm14 = vcmp.ge.f32.partialorder %v4773_v20, 0.0  ;;  %v4837_v31 = vmul.f32 0.1, %v4773_v20 }
 0x219   : > { %4900 = vst [vmem:[%s8201_s25 + $0x30] sm:$0xff] %v4868_v12  ;;  %v4866_v57 = vsel %vm4802_vm13, %v4770_v46, %v4834_v42  ;;  %vm4803_vm15 = vcmp.ge.f32.partialorder %v4771_v33, 0.0  ;;  %v4835_v8 = vmul.f32 0.1, %v4771_v33  ;;  %v5988_v48 = vpop.f32.mrb[8].mxu0 }
 0x21a   : > { %4898 = vst [vmem:[%s8201_s25 + $0x20] sm:$0xff] %v4866_v57  ;;  %v4869_v62 = vsel %vm4805_vm14, %v4773_v20, %v4837_v31  ;;  %v6020_v56 = vadd.f32 %v5988_v48, %v8174_v11  ;;  %v4632_v40 = vpop.f32.mrb[9].mxu0 }
 0x21b   : > { %4901 = vst [vmem:[%s8201_s25 + $0x38] sm:$0xff] %v4869_v62  ;;  %v4867_v13 = vsel %vm4803_vm15, %v4771_v33, %v4835_v8  ;;  %v6021_v17 = vadd.f32 %v4632_v40, %v8176_v32  ;;  %v5989_v30 = vpop.f32.mrb[10].mxu0 }
 0x21c   : > { %4899 = vst [vmem:[%s8201_s25 + $0x28] sm:$0xff] %v4867_v13  ;;  %v4776_v9 = vadd.f32 %v6020_v56, %v8194_v2  ;;  %v6022_v14 = vadd.f32 %v5989_v30, %v8178_v24  ;;  %v4635_v63 = vpop.f32.mrb[11].mxu0 }
 0x21d   : > { %v4774_v4 = vadd.f32 %v6021_v17, %v8194_v2  ;;  %v6023_v43 = vadd.f32 %v4635_v63, %v8180_v19 }
 0x21e   : > { %vm4808_vm0 = vcmp.ge.f32.partialorder %v4776_v9, 0.0  ;;  %v4840_v16 = vmul.f32 0.1, %v4776_v9  ;;  %v4777_v58 = vadd.f32 %v6022_v14, %v8194_v2 }
 0x21f   : > { %vm4806_vm1 = vcmp.ge.f32.partialorder %v4774_v4, 0.0  ;;  %v4838_v50 = vmul.f32 0.1, %v4774_v4  ;;  %v4775_v54 = vadd.f32 %v6023_v43, %v8194_v2 }
 0x220   : > { %v4872_v18 = vsel %vm4808_vm0, %v4776_v9, %v4840_v16  ;;  %vm4809_vm2 = vcmp.ge.f32.partialorder %v4777_v58, 0.0  ;;  %v4841_v11 = vmul.f32 0.1, %v4777_v58 }
 0x221   : > { %4904 = vst [vmem:[%s8201_s25 + $0x50] sm:$0xff] %v4872_v18  ;;  %v4870_v32 = vsel %vm4806_vm1, %v4774_v4, %v4838_v50  ;;  %vm4807_vm3 = vcmp.ge.f32.partialorder %v4775_v54, 0.0  ;;  %v4839_v24 = vmul.f32 0.1, %v4775_v54  ;;  %v5992_v52 = vpop.f32.mrb[12].mxu0 }
 0x222   : > { %4902 = vst [vmem:[%s8201_s25 + $0x40] sm:$0xff] %v4870_v32  ;;  %v4873_v19 = vsel %vm4809_vm2, %v4777_v58, %v4841_v11  ;;  %v6024_v39 = vadd.f32 %v5992_v52, %v8183_v5  ;;  %v4648_v0 = vpop.f32.mrb[13].mxu0 }
 0x223   : > { %4905 = vst [vmem:[%s8201_s25 + $0x58] sm:$0xff] %v4873_v19  ;;  %v4871_v36 = vsel %vm4807_vm3, %v4775_v54, %v4839_v24  ;;  %v6025_v10 = vadd.f32 %v4648_v0, %v8185_v55  ;;  %v5993_v59 = vpop.f32.mrb[14].mxu0 }
 0x224   : > { %4903 = vst [vmem:[%s8201_s25 + $0x48] sm:$0xff] %v4871_v36  ;;  %v4780_v38 = vadd.f32 %v6024_v39, %v8194_v2  ;;  %v6026_v37 = vadd.f32 %v5993_v59, %v8187_v29  ;;  %v4651_v26 = vpop.f32.mrb[15].mxu0 }
 0x225   : > { %v4778_v35 = vadd.f32 %v6025_v10, %v8194_v2  ;;  %v6027_v34 = vadd.f32 %v4651_v26, %v8189_v41 }
 0x226   : > { %vm4812_vm4 = vcmp.ge.f32.partialorder %v4780_v38, 0.0  ;;  %v4844_v5 = vmul.f32 0.1, %v4780_v38  ;;  %v4781_v6 = vadd.f32 %v6026_v37, %v8194_v2 }
 0x227   : > { %vm4810_vm5 = vcmp.ge.f32.partialorder %v4778_v35, 0.0  ;;  %v4842_v55 = vmul.f32 0.1, %v4778_v35  ;;  %v4779_v49 = vadd.f32 %v6027_v34, %v8194_v2 }
 0x228   : > { %v4876_v23 = vsel %vm4812_vm4, %v4780_v38, %v4844_v5  ;;  %vm4813_vm6 = vcmp.ge.f32.partialorder %v4781_v6, 0.0  ;;  %v4845_v25 = vmul.f32 0.1, %v4781_v6 }
 0x229   : > { %4908 = vst [vmem:[%s8201_s25 + $0x70] sm:$0xff] %v4876_v23  ;;  %v4874_v29 = vsel %vm4810_vm5, %v4778_v35, %v4842_v55  ;;  %vm4811_vm7 = vcmp.ge.f32.partialorder %v4779_v49, 0.0  ;;  %v4843_v1 = vmul.f32 0.1, %v4779_v49  ;;  %v5996_v7 = vpop.f32.mrb[16].mxu0 }
 0x22a   : > { %4906 = vst [vmem:[%s8201_s25 + $0x60] sm:$0xff] %v4874_v29  ;;  %v4877_v41 = vsel %vm4813_vm6, %v4781_v6, %v4845_v25  ;;  %v5860_v61 = vpop.f32.mrb[16].mxu1  ;;  %v4664_v22 = vpop.f32.mrb[17].mxu0 }
 0x22b   : > { %4909 = vst [vmem:[%s8201_s25 + $0x78] sm:$0xff] %v4877_v41  ;;  %v4875_v44 = vsel %vm4811_vm7, %v4779_v49, %v4843_v1  ;;  %v6028_v3 = vadd.f32 %v5996_v7, %v5860_v61  ;;  %v2636_v51 = vpop.f32.mrb[17].mxu1  ;;  %v5997_v28 = vpop.f32.mrb[18].mxu0 }
 0x22c   : > { %4907 = vst [vmem:[%s8201_s25 + $0x68] sm:$0xff] %v4875_v44  ;;  %v6029_v45 = vadd.f32 %v4664_v22, %v2636_v51  ;;  %v5861_v27 = vpop.f32.mrb[18].mxu1  ;;  %v4667_v53 = vpop.f32.mrb[19].mxu0 }
 0x22d   : > { %v4784_v21 = vadd.f32 %v6028_v3, %v8194_v2  ;;  %v6030_v47 = vadd.f32 %v5997_v28, %v5861_v27  ;;  %v2639_v46 = vpop.f32.mrb[19].mxu1 }
 0x22e   : > { %v4782_v15 = vadd.f32 %v6029_v45, %v8194_v2  ;;  %v6031_v60 = vadd.f32 %v4667_v53, %v2639_v46 }
 0x22f   : > { %vm4816_vm8 = vcmp.ge.f32.partialorder %v4784_v21, 0.0  ;;  %v4848_v20 = vmul.f32 0.1, %v4784_v21  ;;  %v4785_v42 = vadd.f32 %v6030_v47, %v8194_v2 }
 0x230   : > { %vm4814_vm9 = vcmp.ge.f32.partialorder %v4782_v15, 0.0  ;;  %v4846_v33 = vmul.f32 0.1, %v4782_v15  ;;  %v4783_v12 = vadd.f32 %v6031_v60, %v8194_v2 }
 0x231   : > { %v4880_v31 = vsel %vm4816_vm8, %v4784_v21, %v4848_v20  ;;  %vm4817_vm10 = vcmp.ge.f32.partialorder %v4785_v42, 0.0  ;;  %v4849_v57 = vmul.f32 0.1, %v4785_v42  ;;  %v6000_v8 = vpop.f32.mrb[20].mxu0 }
 0x232   : > { %4912 = vst [vmem:[%s8201_s25 + $0x90] sm:$0xff] %v4880_v31  ;;  %v4878_v48 = vsel %vm4814_vm9, %v4782_v15, %v4846_v33  ;;  %vm4815_vm11 = vcmp.ge.f32.partialorder %v4783_v12, 0.0  ;;  %v4847_v62 = vmul.f32 0.1, %v4783_v12  ;;  %v5864_v56 = vpop.f32.mrb[20].mxu1  ;;  %v4680_v40 = vpop.f32.mrb[21].mxu0 }
 0x233   : > { %4910 = vst [vmem:[%s8201_s25 + $0x80] sm:$0xff] %v4878_v48  ;;  %v4881_v13 = vsel %vm4817_vm10, %v4785_v42, %v4849_v57  ;;  %v6032_v17 = vadd.f32 %v6000_v8, %v5864_v56  ;;  %v2652_v30 = vpop.f32.mrb[21].mxu1  ;;  %v6001_v9 = vpop.f32.mrb[22].mxu0 }
 0x234   : > { %4913 = vst [vmem:[%s8201_s25 + $0x98] sm:$0xff] %v4881_v13  ;;  %v4879_v14 = vsel %vm4815_vm11, %v4783_v12, %v4847_v62  ;;  %v6033_v63 = vadd.f32 %v4680_v40, %v2652_v30  ;;  %v5865_v4 = vpop.f32.mrb[22].mxu1  ;;  %v4683_v43 = vpop.f32.mrb[23].mxu0 }
 0x235   : > { %4911 = vst [vmem:[%s8201_s25 + $0x88] sm:$0xff] %v4879_v14  ;;  %v4788_v16 = vadd.f32 %v6032_v17, %v8194_v2  ;;  %v6034_v58 = vadd.f32 %v6001_v9, %v5865_v4  ;;  %v2655_v50 = vpop.f32.mrb[23].mxu1 }
 0x236   : > { %v4786_v54 = vadd.f32 %v6033_v63, %v8194_v2  ;;  %v6035_v18 = vadd.f32 %v4683_v43, %v2655_v50 }
 0x237   : > { %vm4820_vm12 = vcmp.ge.f32.partialorder %v4788_v16, 0.0  ;;  %v4852_v11 = vmul.f32 0.1, %v4788_v16  ;;  %v4789_v32 = vadd.f32 %v6034_v58, %v8194_v2 }
 0x238   : > { %vm4818_vm13 = vcmp.ge.f32.partialorder %v4786_v54, 0.0  ;;  %v4850_v24 = vmul.f32 0.1, %v4786_v54  ;;  %v4787_v52 = vadd.f32 %v6035_v18, %v8194_v2 }
 0x239   : > { %v4884_v19 = vsel %vm4820_vm12, %v4788_v16, %v4852_v11  ;;  %vm4821_vm14 = vcmp.ge.f32.partialorder %v4789_v32, 0.0  ;;  %v4853_v39 = vmul.f32 0.1, %v4789_v32  ;;  %v6004_v0 = vpop.f32.mrb[24].mxu0 }
 0x23a   : > { %4916 = vst [vmem:[%s8201_s25 + $0xb0] sm:$0xff] %v4884_v19  ;;  %v4882_v36 = vsel %vm4818_vm13, %v4786_v54, %v4850_v24  ;;  %vm4819_vm15 = vcmp.ge.f32.partialorder %v4787_v52, 0.0  ;;  %v4851_v10 = vmul.f32 0.1, %v4787_v52  ;;  %v5868_v59 = vpop.f32.mrb[24].mxu1  ;;  %v4696_v38 = vpop.f32.mrb[25].mxu0 }
 0x23b   : > { %4914 = vst [vmem:[%s8201_s25 + $0xa0] sm:$0xff] %v4882_v36  ;;  %v4885_v37 = vsel %vm4821_vm14, %v4789_v32, %v4853_v39  ;;  %v6036_v26 = vadd.f32 %v6004_v0, %v5868_v59  ;;  %v2668_v35 = vpop.f32.mrb[25].mxu1  ;;  %v6005_v34 = vpop.f32.mrb[26].mxu0 }
 0x23c   : > { %4917 = vst [vmem:[%s8201_s25 + $0xb8] sm:$0xff] %v4885_v37  ;;  %v4883_v5 = vsel %vm4819_vm15, %v4787_v52, %v4851_v10  ;;  %v6037_v6 = vadd.f32 %v4696_v38, %v2668_v35  ;;  %v5869_v55 = vpop.f32.mrb[26].mxu1  ;;  %v4699_v49 = vpop.f32.mrb[27].mxu0 }
 0x23d   : > { %4915 = vst [vmem:[%s8201_s25 + $0xa8] sm:$0xff] %v4883_v5  ;;  %v4792_v23 = vadd.f32 %v6036_v26, %v8194_v2  ;;  %v6038_v25 = vadd.f32 %v6005_v34, %v5869_v55  ;;  %v2671_v29 = vpop.f32.mrb[27].mxu1 }
 0x23e   : > { %v4790_v1 = vadd.f32 %v6037_v6, %v8194_v2  ;;  %v6039_v7 = vadd.f32 %v4699_v49, %v2671_v29 }
 0x23f   : > { %vm4824_vm0 = vcmp.ge.f32.partialorder %v4792_v23, 0.0  ;;  %v4856_v41 = vmul.f32 0.1, %v4792_v23  ;;  %v4793_v61 = vadd.f32 %v6038_v25, %v8194_v2 }
 0x240   : > { %vm4822_vm1 = vcmp.ge.f32.partialorder %v4790_v1, 0.0  ;;  %v4854_v22 = vmul.f32 0.1, %v4790_v1  ;;  %v4791_v44 = vadd.f32 %v6039_v7, %v8194_v2 }
 0x241   : > { %v4888_v3 = vsel %vm4824_vm0, %v4792_v23, %v4856_v41  ;;  %vm4825_vm2 = vcmp.ge.f32.partialorder %v4793_v61, 0.0  ;;  %v4857_v51 = vmul.f32 0.1, %v4793_v61  ;;  %v6008_v28 = vpop.f32.mrb[28].mxu0 }
 0x242   : > { %4920 = vst [vmem:[%s8201_s25 + $0xd0] sm:$0xff] %v4888_v3  ;;  %v4886_v45 = vsel %vm4822_vm1, %v4790_v1, %v4854_v22  ;;  %vm4823_vm3 = vcmp.ge.f32.partialorder %v4791_v44, 0.0  ;;  %v4855_v27 = vmul.f32 0.1, %v4791_v44  ;;  %v5872_v53 = vpop.f32.mrb[28].mxu1  ;;  %v4712_v21 = vpop.f32.mrb[29].mxu0 }
 0x243   : > { %4918 = vst [vmem:[%s8201_s25 + $0xc0] sm:$0xff] %v4886_v45  ;;  %v4889_v47 = vsel %vm4825_vm2, %v4793_v61, %v4857_v51  ;;  %v6040_v46 = vadd.f32 %v6008_v28, %v5872_v53  ;;  %v2684_v15 = vpop.f32.mrb[29].mxu1  ;;  %v6009_v60 = vpop.f32.mrb[30].mxu0 }
 0x244   : > { %4921 = vst [vmem:[%s8201_s25 + $0xd8] sm:$0xff] %v4889_v47  ;;  %v4887_v20 = vsel %vm4823_vm3, %v4791_v44, %v4855_v27  ;;  %v6041_v42 = vadd.f32 %v4712_v21, %v2684_v15  ;;  %v5873_v33 = vpop.f32.mrb[30].mxu1  ;;  %v4715_v12 = vpop.f32.mrb[31].mxu0 }
 0x245   : > { %4919 = vst [vmem:[%s8201_s25 + $0xc8] sm:$0xff] %v4887_v20  ;;  %v4796_v31 = vadd.f32 %v6040_v46, %v8194_v2  ;;  %v6042_v57 = vadd.f32 %v6009_v60, %v5873_v33  ;;  %v2687_v8 = vpop.f32.mrb[31].mxu1 }
 0x246   : > { %v4794_v48 = vadd.f32 %v6041_v42, %v8194_v2  ;;  %v6043_v62 = vadd.f32 %v4715_v12, %v2687_v8 }
 0x247   : > { %vm4828_vm4 = vcmp.ge.f32.partialorder %v4796_v31, 0.0  ;;  %v4860_v56 = vmul.f32 0.1, %v4796_v31  ;;  %v4797_v40 = vadd.f32 %v6042_v57, %v8194_v2 }
 0x248   : > { %vm4826_vm5 = vcmp.ge.f32.partialorder %v4794_v48, 0.0  ;;  %v4858_v13 = vmul.f32 0.1, %v4794_v48  ;;  %v4795_v17 = vadd.f32 %v6043_v62, %v8194_v2 }
 0x249   : > { %v4892_v30 = vsel %vm4828_vm4, %v4796_v31, %v4860_v56  ;;  %vm4829_vm6 = vcmp.ge.f32.partialorder %v4797_v40, 0.0  ;;  %v4861_v9 = vmul.f32 0.1, %v4797_v40 }
 0x24a   : > { %4924 = vst [vmem:[%s8201_s25 + $0xf0] sm:$0xff] %v4892_v30  ;;  %v4890_v14 = vsel %vm4826_vm5, %v4794_v48, %v4858_v13  ;;  %vm4827_vm7 = vcmp.ge.f32.partialorder %v4795_v17, 0.0  ;;  %v4859_v63 = vmul.f32 0.1, %v4795_v17 }
 0x24b   : > { %4922 = vst [vmem:[%s8201_s25 + $0xe0] sm:$0xff] %v4890_v14  ;;  %v4893_v4 = vsel %vm4829_vm6, %v4797_v40, %v4861_v9 }
 0x24c   : > { %4925 = vst [vmem:[%s8201_s25 + $0xf8] sm:$0xff] %v4893_v4  ;;  %v4891_v43 = vsel %vm4827_vm7, %v4795_v17, %v4859_v63 }
 0x24d   : > { %4923 = vst [vmem:[%s8201_s25 + $0xe8] sm:$0xff] %v4891_v43 }
 0x24e PF: > { %s13_s14 = sadd.s32 1, %s6430_s14   ;;  %s8353_s12 = smov %s6426_s13 }
 0x24f   : > { %p10_p6 = scmp.ge.s32.totalorder %s13_s14, 4   ;;  %s8354_s13 = smov %s8356_s15 }
 0x251   :  { %12 = sbr.rel (!%p10_p6) target bundleno = 2 (0x2), region = 73 }

// kernel: _lambda_.4
= control target key start
LH: loop header
LB: loop body
LE: loop exit
PB: predicated region body
PF: predicated region fallthrough
CT: control target
= control target key end

     0   :  { %s6452_s12 = smov 0   ;;  %s6454_s13 = smov 0   ;;  %s8282_s0 = inlined_call_operand.vmem [shape: bf16[2,18,18,8], index: 0, kind: input, shape index: {}]   ;;  %s8283_s1 = inlined_call_operand.vmem [shape: bf16[3,3,8,128], index: 1, kind: input, shape index: {}]   ;;  %s8284_s2 = inlined_call_operand.vmem [shape: f32[1,128], index: 2, kind: input, shape index: {}]   ;;  %s8285_s3 = inlined_call_operand.vmem [shape: f32[512,128], index: 3, kind: output, shape index: {}]  }
   0x1   :  { %s6456_s14 = smov 0  }
   0x2 LB: > { %s25_s15 = sadd.s32 1, %s6426_s13  ;;  %p5008_p0 = scmp.ge.s32.totalorder %s6430_s14, 1  ;;  %s6430_s14 = sphi %s6456_s14, %s13_s14   ;;  %s6426_s13 = sphi %s6454_s13, %s8354_s13   ;;  %s6422_s12 = sphi %s6452_s12, %s8353_s12  }
   0x3   : > { %p27_p1 = scmp.ge.s32.totalorder %s25_s15, 2  ;;  %p151_p2 = scmp.lt.s32.totalorder %s6430_s14, 3 }
   0x5   : > { %s8356_s15 = smov (%p27_p1, %s25_s15), 0  ;;  %p152_p3 = pnand %p5008_p0, %p151_p2 }
   0x7   : > { %155 = sbr.rel (%p152_p3) target bundleno = 590 (0x24e), region = 32 }
   0xe   : > { %v5012_v0 = vld [vmem:[%s8283_s1 + $0x4] sm:$0xf]  ;;  %vm729_vm0 = vcmask 1043456   ;;  %v5239_v1 = vld [vmem:[%s8283_s1 + $0x10] sm:$0xf]  ;;  %p176_p4 = scmp.lt.s32.totalorder %s6422_s12, 1 }
   0xf   : > { %6268 = vmatprep.subr.msk.bf16.mxu1 %vm729_vm0, %v5012_v0  ;;  %6272 = vmatprep.subr.msk.bf16.mxu0 %vm729_vm0, %v5239_v1  ;;  %v731_v2 = vsel %vm729_vm0, %v5012_v0, 0  ;;  %v6483_v3 = vsel %vm729_vm0, %v5239_v1, 0  ;;  %v226_v4 = vld [vmem:[%s8283_s1] sm:$0xf]  ;;  %v5304_v5 = vld [vmem:[%s8283_s1 + $0x14] sm:$0xf] }
  0x10   : > { %8299 = vst [vmem:[#allocation2_spill] sm:$0xff] %v6483_v3  ;;  %5705 = vmatpush3.bf16.msra.mxu1 %v731_v2  ;;  %5841 = vmatpush3.bf16.msra.mxu0 %v6483_v3  ;;  %s177_s20 = scalar_select %p176_p4, %s6422_s12, 1  ;;  %vm243_vm1 = vsmask.f32 3328  ;;  %vm244_vm2 = vsmask.f32 7440 }
  0x11   : > { %6269 = vmatprep.subr.msk.bf16.mxu1 %vm729_vm0, %v226_v4  ;;  %6274 = vmatprep.subr.msk.bf16.mxu0 %vm729_vm0, %v5304_v5  ;;  %vm680_vm3 = vcmask 64512   ;;  %v6511_v17 = vsel %vm729_vm0, %v226_v4, 0  ;;  %v6517_v26 = vld [vmem:[%s8283_s1 + $0x18] sm:$0xf]  ;;  %vm6524_vm4 = vmor %vm243_vm1, %vm244_vm2  ;;  %v6530_v37 = vsel %vm729_vm0, %v5304_v5, 0  ;;  %vm1234_vm5 = vcmask 1042432  }
  0x12   : > { %s6278_s25 = smul.u32 216, %s177_s20  ;;  %v6534_v41 = vsel %vm729_vm0, %v6517_v26, 0  ;;  %vm1235_vm6 = vcmask 1046532   ;;  %s5010_s20 = sshll.u32 %s6422_s12, 5 }
  0x13   : > { %vm6750_vm7 = vmor %vm1234_vm5, %vm1235_vm6  ;;  %p183_p5 = scmp.lt.s32.totalorder %s5010_s20, 63 }
  0x14   : > { %s6498_s28 = scalar_lea.vmem %s8282_s0, %s6278_s25 }
  0x15   : > { %v194_v6 = vld [vmem:[%s6498_s28] sm:$0xf]  ;;  %v195_v7 = vld [vmem:[%s6498_s28 + $0x4] sm:$0xf]  ;;  %v227_v8 = vld [vmem:[%s6498_s28 + $0x8] sm:$0x1] }
  0x16   : > { %v247_v9 = vshrl.u32 %v194_v6, 16  ;;  %v250_v10 = vshll.u32 %v194_v6, 16  ;;  %v256_v11 = vshll.u32 %v195_v7, 16  ;;  %v260_v12 = vshrl.u32 %v195_v7, 16  ;;  %v5191_v13 = vld [vmem:[%s6498_s28 + $0xc] sm:$0xf] }
  0x17   : > { %v266_v14 = vshll.u32 %v227_v8, 16  ;;  %v6505_v15 = vld [vmem:[%s6498_s28 + $0x10] sm:$0xf]  ;;  %v6508_v16 = vld [vmem:[%s6498_s28 + $0x14] sm:$0x1]  ;;  %v2054_v23 = vshrl.u32 %v5191_v13, 16 }
  0x18   : > { %v249_v18 = vrot.slane %v247_v9, 4  ;;  %v252_v19 = vrot.slane %v250_v10, 5  ;;  %v258_v20 = vrot.slane %v256_v11, 5  ;;  %v262_v21 = vrot.slane %v260_v12, 4  ;;  %v196_v31 = vld [vmem:[%s6498_s28 + $0xc] sm:$0xf] }
  0x19   : > { %v268_v22 = vrot.slane %v266_v14, 5  ;;  %v2057_v24 = vshll.u32 %v5191_v13, 16  ;;  %v2063_v25 = vshll.u32 %v6505_v15, 16  ;;  %v2067_v29 = vshrl.u32 %v6505_v15, 16  ;;  %v197_v36 = vld [vmem:[%s6498_s28 + $0x10] sm:$0xf] }
  0x1a   : > { %v253_v27 = vor.u32 %v252_v19, %v249_v18  ;;  %v263_v28 = vor.u32 %v262_v21, %v258_v20  ;;  %v2073_v30 = vshll.u32 %v6508_v16, 16  ;;  %v2056_v33 = vrot.slane %v2054_v23, 4  ;;  %v228_v44 = vld [vmem:[%s6498_s28 + $0x14] sm:$0x1]  ;;  %v5194_v55 = vld [vmem:[%s6498_s28 + $0x18] sm:$0xf] }
  0x1b   : > { %v2059_v34 = vrot.slane %v2057_v24, 5  ;;  %v2065_v35 = vrot.slane %v2063_v25, 5  ;;  %v2069_v40 = vrot.slane %v2067_v29, 4  ;;  %v271_v45 = vshrl.u32 %v196_v31, 16  ;;  %v6543_v60 = vld [vmem:[%s6498_s28 + $0x1c] sm:$0xf] }
  0x1c   : > { %v254_v38 = vrot.slane %v253_v27, 4  ;;  %v264_v39 = vrot.slane %v263_v28, 4  ;;  %v2075_v43 = vrot.slane %v2073_v30, 5  ;;  %v274_v46 = vshll.u32 %v196_v31, 16  ;;  %v6551_v1 = vld [vmem:[%s6498_s28 + $0x20] sm:$0x1] }
  0x1d   : > { %v2060_v42 = vor.u32 %v2059_v34, %v2056_v33  ;;  %v2070_v49 = vor.u32 %v2069_v40, %v2065_v35  ;;  %v280_v50 = vshll.u32 %v197_v36, 16  ;;  %v273_v53 = vrot.slane %v271_v45, 4  ;;  %v198_v18 = vld [vmem:[%s6498_s28 + $0x18] sm:$0xf]  ;;  %v199_v23 = vld [vmem:[%s6498_s28 + $0x1c] sm:$0xf] }
  0x1e   : > { %v259_v47 = vsel %vm6524_vm4, %v254_v38, %v258_v20  ;;  %v269_v48 = vsel %vm6524_vm4, %v264_v39, %v268_v22  ;;  %v276_v54 = vrot.slane %v274_v46, 5  ;;  %v284_v58 = vshrl.u32 %v197_v36, 16  ;;  %v229_v31 = vld [vmem:[%s6498_s28 + $0x20] sm:$0x1]  ;;  %v5197_v40 = vld [vmem:[%s6498_s28 + $0x24] sm:$0xf] }
  0x1f   : > { %v5013_v51 = vcombine.low %v259_v47, %v269_v48  ;;  %v2061_v52 = vrot.slane %v2060_v42, 4  ;;  %v2071_v56 = vrot.slane %v2070_v49, 4  ;;  %v282_v57 = vrot.slane %v280_v50, 5  ;;  %v6574_v46 = vld [vmem:[%s6498_s28 + $0x28] sm:$0xf]  ;;  %s8358_s20 = smov (!%p183_p5, %s5010_s20), 63 }
  0x20   : > { %v290_v59 = vshll.u32 %v228_v44, 16  ;;  %v2797_v62 = vrot.slane %v6505_v15, 5  ;;  %v2800_v63 = vrot.slane %v6508_v16, 5  ;;  %v277_v0 = vor.u32 %v276_v54, %v273_v53  ;;  %v6583_v54 = vld [vmem:[%s6498_s28 + $0x2c] sm:$0x1]  ;;  %s5011_s23 = sshll.u32 %s8358_s20, 3 }
  0x21   : > { %5706 = vmatprep.mubr.msk.bf16.mxu1 %vm680_vm3, %v5013_v51  ;;  %v2066_v61 = vsel %vm6524_vm4, %v2061_v52, %v2065_v35  ;;  %v2076_v2 = vsel %vm6524_vm4, %v2071_v56, %v2075_v43  ;;  %v286_v4 = vrot.slane %v284_v58, 4  ;;  %v2078_v6 = vshrl.u32 %v5194_v55, 16  ;;  %v5093_v51 = vld [vmem:[%s8283_s1 + $0x8] sm:$0xf]  ;;  %v6783_v16 = vld [vmem:[%s6498_s28 + $0x7c] sm:$0xf]  ;;  %s8201_s25 = scalar_lea.vmem %s8285_s3, %s5011_s23 }
  0x22   : > { %v292_v5 = vrot.slane %v290_v59, 5  ;;  %v5240_v7 = vcombine.low %v2066_v61, %v2076_v2  ;;  %v278_v8 = vrot.slane %v277_v0, 4  ;;  %v2081_v9 = vshll.u32 %v5194_v55, 16  ;;  %v200_v0 = vld [vmem:[%s6498_s28 + $0x24] sm:$0xf] }
  0x23   : > { %v2087_v10 = vshll.u32 %v6543_v60, 16  ;;  %v287_v11 = vor.u32 %v286_v4, %v282_v57  ;;  %v2080_v12 = vrot.slane %v2078_v6, 4  ;;  %v2091_v13 = vshrl.u32 %v6543_v60, 16 }
  0x24   : > { %v2097_v14 = vshll.u32 %v6551_v1, 16  ;;  %5842 = vmatprep.mubr.msk.bf16.mxu0 %vm680_vm3, %v5240_v7  ;;  %v283_v19 = vsel %vm6524_vm4, %v278_v8, %v282_v57  ;;  %v2083_v20 = vrot.slane %v2081_v9, 5  ;;  %v2804_v22 = vrot.slane %v6543_v60, 5  ;;  %v201_v7 = vld [vmem:[%s6498_s28 + $0x28] sm:$0xf] }
  0x25   : > { %v2089_v21 = vrot.slane %v2087_v10, 5  ;;  %v288_v24 = vrot.slane %v287_v11, 4  ;;  %v2093_v25 = vrot.slane %v2091_v13, 4  ;;  %v2807_v28 = vrot.slane %v6551_v1, 5  ;;  %v230_v13 = vld [vmem:[%s6498_s28 + $0x2c] sm:$0x1] }
  0x26   : > { %v2099_v27 = vrot.slane %v2097_v14, 5  ;;  %v2084_v29 = vor.u32 %v2083_v20, %v2080_v12  ;;  %v6567_v30 = vrot.slane %v2804_v22, 4  ;;  %v295_v33 = vshrl.u32 %v198_v18, 16 }
  0x27   : > { %v298_v34 = vshll.u32 %v198_v18, 16  ;;  %v293_v35 = vsel %vm6524_vm4, %v288_v24, %v292_v5  ;;  %v2094_v36 = vor.u32 %v2093_v25, %v2089_v21  ;;  %v304_v38 = vshll.u32 %v199_v23, 16  ;;  %v5200_v24 = vld [vmem:[%s6498_s28 + $0x30] sm:$0xf] }
  0x28   : > { %v308_v39 = vshrl.u32 %v199_v23, 16  ;;  %v5014_v42 = vcombine.low %v283_v19, %v293_v35  ;;  %v2085_v43 = vrot.slane %v2084_v29, 4  ;;  %v297_v44 = vrot.slane %v295_v33, 4  ;;  %v6603_v33 = vld [vmem:[%s6498_s28 + $0x34] sm:$0xf] }
  0x29   : > { %v300_v45 = vrot.slane %v298_v34, 5  ;;  %v2095_v47 = vrot.slane %v2094_v36, 4  ;;  %v306_v48 = vrot.slane %v304_v38, 5  ;;  %v314_v50 = vshll.u32 %v229_v31, 16 }
  0x2a   : > { %v310_v49 = vrot.slane %v308_v39, 4  ;;  %5707 = vmatmul.mubr.msk.bf16.vlgmr.msra.gmra.mrb[0].mxu1 %vm680_vm3, %v5014_v42  ;;  %v2090_v52 = vsel %vm6524_vm4, %v2085_v43, %v2089_v21  ;;  %v2102_v55 = vshrl.u32 %v5197_v40, 16  ;;  %v2105_v56 = vshll.u32 %v5197_v40, 16  ;;  %v6611_v40 = vld [vmem:[%s6498_s28 + $0x38] sm:$0x1] }
  0x2b   : > { %v301_v53 = vor.u32 %v300_v45, %v297_v44  ;;  %5739 = vmatpush3.bf16.msra.mxu1 %v6511_v17  ;;  %v2100_v57 = vsel %vm6524_vm4, %v2095_v47, %v2099_v27  ;;  %v316_v59 = vrot.slane %v314_v50, 5  ;;  %v2111_v61 = vshll.u32 %v6574_v46, 16 }
  0x2c   : > { %v311_v58 = vor.u32 %v310_v49, %v306_v48  ;;  %v5241_v2 = vcombine.low %v2090_v52, %v2100_v57  ;;  %v2104_v5 = vrot.slane %v2102_v55, 4  ;;  %v2107_v6 = vrot.slane %v2105_v56, 5  ;;  %6270 = vmatprep.subr.msk.bf16.mxu1 %vm729_vm0, %v5093_v51  ;;  %v202_v52 = vld [vmem:[%s6498_s28 + $0x30] sm:$0xf] }
  0x2d   : > { %v302_v4 = vrot.slane %v301_v53, 4  ;;  %v2113_v9 = vrot.slane %v2111_v61, 5  ;;  %v2115_v17 = vshrl.u32 %v6574_v46, 16  ;;  %v2121_v10 = vshll.u32 %v6583_v54, 16 }
  0x2e   : > { %v312_v8 = vrot.slane %v311_v58, 4  ;;  %5843 = vmatmul.mubr.msk.bf16.vlgmr.msra.gmra.mrb[0].mxu0 %vm680_vm3, %v5241_v2  ;;  %v2108_v12 = vor.u32 %v2107_v6, %v2104_v5  ;;  %v319_v14 = vshrl.u32 %v200_v0, 16  ;;  %v322_v18 = vshll.u32 %v200_v0, 16  ;;  %v203_v58 = vld [vmem:[%s6498_s28 + $0x34] sm:$0xf] }
  0x2f   : > { %v307_v11 = vsel %vm6524_vm4, %v302_v4, %v306_v48  ;;  %5875 = vmatpush3.bf16.msra.mxu0 %v6530_v37  ;;  %v2117_v20 = vrot.slane %v2115_v17, 4  ;;  %v2123_v21 = vrot.slane %v2121_v10, 5  ;;  %v328_v23 = vshll.u32 %v201_v7, 16  ;;  %v231_v4 = vld [vmem:[%s6498_s28 + $0x38] sm:$0x1] }
  0x30   : > { %v317_v19 = vsel %vm6524_vm4, %v312_v8, %v316_v59  ;;  %v2109_v27 = vrot.slane %v2108_v12, 4  ;;  %v321_v29 = vrot.slane %v319_v14, 4  ;;  %v324_v31 = vrot.slane %v322_v18, 5  ;;  %6275 = vmatprep.subr.msk.bf16.mxu0 %vm729_vm0, %v6517_v26  ;;  %v5203_v12 = vld [vmem:[%s6498_s28 + $0x3c] sm:$0xf] }
  0x31   : > { %v5015_v25 = vcombine.low %v307_v11, %v317_v19  ;;  %v2118_v34 = vor.u32 %v2117_v20, %v2113_v9  ;;  %v330_v35 = vrot.slane %v328_v23, 5  ;;  %v332_v37 = vshrl.u32 %v201_v7, 16  ;;  %v6628_v20 = vld [vmem:[%s6498_s28 + $0x40] sm:$0xf] }
  0x32   : > { %v338_v36 = vshll.u32 %v230_v13, 16  ;;  %v2114_v38 = vsel %vm6524_vm4, %v2109_v27, %v2113_v9  ;;  %v325_v39 = vor.u32 %v324_v31, %v321_v29  ;;  %v2126_v42 = vshrl.u32 %v5200_v24, 16 }
  0x33   : > { %5710 = vmatprep.mubr.msk.bf16.mxu1 %vm680_vm3, %v5015_v25  ;;  %v2129_v43 = vshll.u32 %v5200_v24, 16  ;;  %v2119_v44 = vrot.slane %v2118_v34, 4  ;;  %v334_v45 = vrot.slane %v332_v37, 4  ;;  %v2135_v26 = vshll.u32 %v6603_v33, 16  ;;  %v6633_v34 = vld [vmem:[%s6498_s28 + $0x44] sm:$0x1] }
  0x34   : > { %v340_v47 = vrot.slane %v338_v36, 5  ;;  %v326_v48 = vrot.slane %v325_v39, 4  ;;  %v2128_v49 = vrot.slane %v2126_v42, 4  ;;  %v2139_v51 = vshrl.u32 %v6603_v33, 16  ;;  %v204_v42 = vld [vmem:[%s6498_s28 + $0x3c] sm:$0xf] }
  0x35   : > { %v2131_v50 = vrot.slane %v2129_v43, 5  ;;  %v2124_v53 = vsel %vm6524_vm4, %v2119_v44, %v2123_v21  ;;  %v335_v55 = vor.u32 %v334_v45, %v330_v35  ;;  %v2137_v56 = vrot.slane %v2135_v26, 5  ;;  %v205_v26 = vld [vmem:[%s6498_s28 + $0x40] sm:$0xf] }
  0x36   : > { %v2145_v57 = vshll.u32 %v6611_v40, 16  ;;  %v5242_v59 = vcombine.low %v2114_v38, %v2124_v53  ;;  %v331_v61 = vsel %vm6524_vm4, %v326_v48, %v330_v35  ;;  %v2141_v2 = vrot.slane %v2139_v51, 4 }
  0x37   : > { %v2132_v0 = vor.u32 %v2131_v50, %v2128_v49  ;;  %v336_v5 = vrot.slane %v335_v55, 4  ;;  %v343_v7 = vshrl.u32 %v202_v52, 16  ;;  %v346_v8 = vshll.u32 %v202_v52, 16 }
  0x38   : > { %v2147_v6 = vrot.slane %v2145_v57, 5  ;;  %5846 = vmatprep.mubr.msk.bf16.mxu0 %vm680_vm3, %v5242_v59  ;;  %v2142_v17 = vor.u32 %v2141_v2, %v2137_v56  ;;  %v352_v10 = vshll.u32 %v203_v58, 16  ;;  %v356_v11 = vshrl.u32 %v203_v58, 16  ;;  %v5206_v2 = vld [vmem:[%s6498_s28 + $0x48] sm:$0xf] }
  0x39   : > { %v2133_v9 = vrot.slane %v2132_v0, 4  ;;  %v341_v13 = vsel %vm6524_vm4, %v336_v5, %v340_v47  ;;  %v345_v14 = vrot.slane %v343_v7, 4  ;;  %v348_v18 = vrot.slane %v346_v8, 5  ;;  %v6651_v8 = vld [vmem:[%s6498_s28 + $0x4c] sm:$0xf] }
  0x3a   : > { %v362_v19 = vshll.u32 %v231_v4, 16  ;;  %v5016_v21 = vcombine.low %v331_v61, %v341_v13  ;;  %v2143_v24 = vrot.slane %v2142_v17, 4  ;;  %v354_v25 = vrot.slane %v352_v10, 5  ;;  %v232_v61 = vld [vmem:[%s6498_s28 + $0x44] sm:$0x1] }
  0x3b   : > { %v2138_v23 = vsel %vm6524_vm4, %v2133_v9, %v2137_v56  ;;  %v349_v27 = vor.u32 %v348_v18, %v345_v14  ;;  %v358_v29 = vrot.slane %v356_v11, 4  ;;  %v2150_v35 = vshrl.u32 %v5203_v12, 16 }
  0x3c   : > { %v364_v31 = vrot.slane %v362_v19, 5  ;;  %5711 = vmatmul.mubr.msk.bf16.gmra.mrb[4].mxu1 %vm680_vm3, %v5016_v21  ;;  %v2148_v37 = vsel %vm6524_vm4, %v2143_v24, %v2147_v6  ;;  %v2153_v36 = vshll.u32 %v5203_v12, 16  ;;  %v2159_v38 = vshll.u32 %v6628_v20, 16 }
  0x3d   : > { %v2163_v39 = vshrl.u32 %v6628_v20, 16  ;;  %v5243_v43 = vcombine.low %v2138_v23, %v2148_v37  ;;  %v350_v44 = vrot.slane %v349_v27, 4  ;;  %v359_v45 = vor.u32 %v358_v29, %v354_v25  ;;  %v6659_v23 = vld [vmem:[%s6498_s28 + $0x50] sm:$0x1]  ;;  %v6663_v27 = vld [vmem:[%s6498_s28 + $0x48] sm:$0xf] }
  0x3e   : > { %v2152_v47 = vrot.slane %v2150_v35, 4  ;;  %v2155_v48 = vrot.slane %v2153_v36, 5  ;;  %v2161_v49 = vrot.slane %v2159_v38, 5  ;;  %v2169_v51 = vshll.u32 %v6633_v34, 16  ;;  %v6666_v36 = vld [vmem:[%s6498_s28 + $0x4c] sm:$0xf] }
  0x3f   : > { %v2165_v50 = vrot.slane %v2163_v39, 4  ;;  %5847 = vmatmul.mubr.msk.bf16.gmra.mrb[4].mxu0 %vm680_vm3, %v5243_v43  ;;  %v355_v52 = vsel %vm6524_vm4, %v350_v44, %v354_v25  ;;  %v360_v53 = vrot.slane %v359_v45, 4  ;;  %v367_v55 = vshrl.u32 %v204_v42, 16 }
  0x40   : > { %v370_v56 = vshll.u32 %v204_v42, 16  ;;  %v2156_v57 = vor.u32 %v2155_v48, %v2152_v47  ;;  %v2171_v59 = vrot.slane %v2169_v51, 5  ;;  %v376_v0 = vshll.u32 %v205_v26, 16 }
  0x41   : > { %v2166_v58 = vor.u32 %v2165_v50, %v2161_v49  ;;  %v365_v4 = vsel %vm6524_vm4, %v360_v53, %v364_v31  ;;  %v369_v5 = vrot.slane %v367_v55, 4  ;;  %v380_v7 = vshrl.u32 %v205_v26, 16  ;;  %v233_v26 = vld [vmem:[%s6498_s28 + $0x50] sm:$0x1]  ;;  %v5209_v53 = vld [vmem:[%s6498_s28 + $0x54] sm:$0xf] }
  0x42   : > { %v372_v6 = vrot.slane %v370_v56, 5  ;;  %v5017_v9 = vcombine.low %v355_v52, %v365_v4  ;;  %v2157_v17 = vrot.slane %v2156_v57, 4  ;;  %v378_v11 = vrot.slane %v376_v0, 5  ;;  %v6682_v4 = vld [vmem:[%s6498_s28 + $0x58] sm:$0xf] }
  0x43   : > { %v2167_v10 = vrot.slane %v2166_v58, 4  ;;  %v382_v13 = vrot.slane %v380_v7, 4  ;;  %v386_v14 = vshll.u32 %v232_v61, 16  ;;  %v2174_v18 = vshrl.u32 %v5206_v2, 16 }
  0x44   : > { %v373_v12 = vor.u32 %v372_v6, %v369_v5  ;;  %5714 = vmatprep.mubr.msk.bf16.mxu1 %vm680_vm3, %v5017_v9  ;;  %v2162_v19 = vsel %vm6524_vm4, %v2157_v17, %v2161_v49  ;;  %v2177_v24 = vshll.u32 %v5206_v2, 16  ;;  %v2183_v25 = vshll.u32 %v6651_v8, 16 }
  0x45   : > { %v2172_v21 = vsel %vm6524_vm4, %v2167_v10, %v2171_v59  ;;  %v383_v35 = vor.u32 %v382_v13, %v378_v11  ;;  %v388_v37 = vrot.slane %v386_v14, 5  ;;  %v2176_v38 = vrot.slane %v2174_v18, 4 }
  0x46   : > { %v5244_v29 = vcombine.low %v2162_v19, %v2172_v21  ;;  %v374_v31 = vrot.slane %v373_v12, 4  ;;  %v2179_v39 = vrot.slane %v2177_v24, 5  ;;  %v2185_v42 = vrot.slane %v2183_v25, 5  ;;  %v6688_v12 = vld [vmem:[%s6498_s28 + $0x5c] sm:$0x1] }
  0x47   : > { %v2187_v43 = vshrl.u32 %v6651_v8, 16  ;;  %v384_v45 = vrot.slane %v383_v35, 4  ;;  %v2193_v47 = vshll.u32 %v6659_v23, 16  ;;  %v391_v48 = vshrl.u32 %v6663_v27, 16  ;;  %v6692_v24 = vld [vmem:[%s6498_s28 + $0x54] sm:$0xf] }
  0x48   : > { %5850 = vmatprep.mubr.msk.bf16.mxu0 %vm680_vm3, %v5244_v29  ;;  %v379_v44 = vsel %vm6524_vm4, %v374_v31, %v378_v11  ;;  %v2180_v49 = vor.u32 %v2179_v39, %v2176_v38  ;;  %v394_v51 = vshll.u32 %v6663_v27, 16  ;;  %v400_v52 = vshll.u32 %v6666_v36, 16 }
  0x49   : > { %v2189_v50 = vrot.slane %v2187_v43, 4  ;;  %v389_v55 = vsel %vm6524_vm4, %v384_v45, %v388_v37  ;;  %v2195_v56 = vrot.slane %v2193_v47, 5  ;;  %v393_v57 = vrot.slane %v391_v48, 4  ;;  %v6698_v37 = vld [vmem:[%s6498_s28 + $0x58] sm:$0xf] }
  0x4a   : > { %v404_v58 = vshrl.u32 %v6666_v36, 16  ;;  %v5018_v59 = vcombine.low %v379_v44, %v389_v55  ;;  %v2181_v61 = vrot.slane %v2180_v49, 4  ;;  %v396_v2 = vrot.slane %v394_v51, 5 }
  0x4b   : > { %v2190_v0 = vor.u32 %v2189_v50, %v2185_v42  ;;  %v402_v5 = vrot.slane %v400_v52, 5  ;;  %v410_v7 = vshll.u32 %v233_v26, 16  ;;  %v2198_v9 = vshrl.u32 %v5209_v53, 16  ;;  %v234_v26 = vld [vmem:[%s6498_s28 + $0x5c] sm:$0x1] }
  0x4c   : > { %v406_v6 = vrot.slane %v404_v58, 4  ;;  %5715 = vmatmul.mubr.msk.bf16.gmra.mrb[8].mxu1 %vm680_vm3, %v5018_v59  ;;  %v2186_v17 = vsel %vm6524_vm4, %v2181_v61, %v2185_v42  ;;  %v397_v11 = vor.u32 %v396_v2, %v393_v57  ;;  %v2201_v13 = vshll.u32 %v5209_v53, 16  ;;  %v5212_v53 = vld [vmem:[%s6498_s28 + $0x60] sm:$0xf]  ;;  %v6712_v59 = vld [vmem:[%s6498_s28 + $0x64] sm:$0xf] }
  0x4d   : > { %v2191_v10 = vrot.slane %v2190_v0, 4  ;;  %v412_v18 = vrot.slane %v410_v7, 5  ;;  %v2200_v19 = vrot.slane %v2198_v9, 4  ;;  %v2207_v21 = vshll.u32 %v6682_v4, 16  ;;  %v6719_v9 = vld [vmem:[%s6498_s28 + $0x68] sm:$0x1] }
  0x4e   : > { %v407_v14 = vor.u32 %v406_v6, %v402_v5  ;;  %v398_v29 = vrot.slane %v397_v11, 4  ;;  %v2203_v31 = vrot.slane %v2201_v13, 5  ;;  %v2211_v35 = vshrl.u32 %v6682_v4, 16 }
  0x4f   : > { %v2196_v25 = vsel %vm6524_vm4, %v2191_v10, %v2195_v56  ;;  %v2209_v42 = vrot.slane %v2207_v21, 5  ;;  %v2217_v43 = vshll.u32 %v6688_v12, 16  ;;  %v415_v48 = vshrl.u32 %v6692_v24, 16 }
  0x50   : > { %v5245_v38 = vcombine.low %v2186_v17, %v2196_v25  ;;  %v408_v39 = vrot.slane %v407_v14, 4  ;;  %v403_v44 = vsel %vm6524_vm4, %v398_v29, %v402_v5  ;;  %v2204_v45 = vor.u32 %v2203_v31, %v2200_v19  ;;  %v6723_v19 = vld [vmem:[%s6498_s28 + $0x60] sm:$0xf] }
  0x51   : > { %v2213_v47 = vrot.slane %v2211_v35, 4  ;;  %v2219_v50 = vrot.slane %v2217_v43, 5  ;;  %v418_v51 = vshll.u32 %v6692_v24, 16  ;;  %v424_v52 = vshll.u32 %v6698_v37, 16  ;;  %v6729_v35 = vld [vmem:[%s6498_s28 + $0x64] sm:$0xf] }
  0x52   : > { %5851 = vmatmul.mubr.msk.bf16.gmra.mrb[8].mxu0 %vm680_vm3, %v5245_v38  ;;  %v413_v49 = vsel %vm6524_vm4, %v408_v39, %v412_v18  ;;  %v2205_v56 = vrot.slane %v2204_v45, 4  ;;  %v417_v58 = vrot.slane %v415_v48, 4  ;;  %v428_v2 = vshrl.u32 %v6698_v37, 16 }
  0x53   : > { %v5019_v55 = vcombine.low %v403_v44, %v413_v49  ;;  %v2214_v57 = vor.u32 %v2213_v47, %v2209_v42  ;;  %v420_v61 = vrot.slane %v418_v51, 5  ;;  %v426_v0 = vrot.slane %v424_v52, 5 }
  0x54   : > { %v434_v5 = vshll.u32 %v234_v26, 16  ;;  %v2210_v6 = vsel %vm6524_vm4, %v2205_v56, %v2209_v42  ;;  %v2222_v17 = vshrl.u32 %v5212_v53, 16  ;;  %v2225_v10 = vshll.u32 %v5212_v53, 16 }
  0x55   : > { %5718 = vmatprep.mubr.msk.bf16.mxu1 %vm680_vm3, %v5019_v55  ;;  %v2215_v7 = vrot.slane %v2214_v57, 4  ;;  %v421_v11 = vor.u32 %v420_v61, %v417_v58  ;;  %v430_v13 = vrot.slane %v428_v2, 4  ;;  %v2231_v18 = vshll.u32 %v6712_v59, 16  ;;  %v5272_v58 = vld [vmem:[%s6498_s28 + $0xc] sm:$0xe] }
  0x56   : > { %v436_v14 = vrot.slane %v434_v5, 5  ;;  %v2224_v25 = vrot.slane %v2222_v17, 4  ;;  %v2227_v29 = vrot.slane %v2225_v10, 5  ;;  %v2235_v31 = vshrl.u32 %v6712_v59, 16 }
  0x57   : > { %v2220_v21 = vsel %vm6524_vm4, %v2215_v7, %v2219_v50  ;;  %v422_v39 = vrot.slane %v421_v11, 4  ;;  %v431_v42 = vor.u32 %v430_v13, %v426_v0  ;;  %v2233_v43 = vrot.slane %v2231_v18, 5  ;;  %v235_v50 = vld [vmem:[%s6498_s28 + $0x68] sm:$0x1] }
  0x58   : > { %v5246_v38 = vcombine.low %v2210_v6, %v2220_v21  ;;  %v2228_v44 = vor.u32 %v2227_v29, %v2224_v25  ;;  %v2237_v45 = vrot.slane %v2235_v31, 4  ;;  %v2241_v47 = vshll.u32 %v6719_v9, 16  ;;  %v6757_v29 = vld [vmem:[%s6498_s28 + $0x70] sm:$0xf] }
  0x59   : > { %v439_v26 = vshrl.u32 %v6723_v19, 16  ;;  %v427_v48 = vsel %vm6524_vm4, %v422_v39, %v426_v0  ;;  %v432_v49 = vrot.slane %v431_v42, 4  ;;  %v442_v51 = vshll.u32 %v6723_v19, 16  ;;  %v6744_v0 = vld [vmem:[%s6498_s28 + $0x6c] sm:$0xf] }
  0x5a   : > { %5854 = vmatprep.mubr.msk.bf16.mxu0 %vm680_vm3, %v5246_v38  ;;  %v448_v52 = vshll.u32 %v6729_v35, 16  ;;  %v2229_v53 = vrot.slane %v2228_v44, 4  ;;  %v2238_v55 = vor.u32 %v2237_v45, %v2233_v43  ;;  %v2243_v56 = vrot.slane %v2241_v47, 5 }
  0x5b   : > { %v441_v57 = vrot.slane %v439_v26, 4  ;;  %v437_v61 = vsel %vm6524_vm4, %v432_v49, %v436_v14  ;;  %v444_v2 = vrot.slane %v442_v51, 5  ;;  %v452_v6 = vshrl.u32 %v6729_v35, 16  ;;  %v236_v26 = vld [vmem:[%s6498_s28 + $0x74] sm:$0x1] }
  0x5c   : > { %v450_v5 = vrot.slane %v448_v52, 5  ;;  %v5020_v7 = vcombine.low %v427_v48, %v437_v61  ;;  %v2234_v17 = vsel %vm6524_vm4, %v2229_v53, %v2233_v43  ;;  %v2239_v10 = vrot.slane %v2238_v55, 4  ;;  %v5273_v48 = vld [vmem:[%s6498_s28 + $0x18] sm:$0xe] }
  0x5d   : > { %v458_v11 = vshll.u32 %v235_v50, 16  ;;  %v445_v14 = vor.u32 %v444_v2, %v441_v57  ;;  %v454_v18 = vrot.slane %v452_v6, 4  ;;  %v5288_v21 = vrot.slane %v5272_v58, 9  ;;  %v6776_v53 = vld [vmem:[%s6498_s28 + $0x78] sm:$0xf] }
  0x5e   : > { %v2799_v25 = vrot.slane %v2797_v62, 4  ;;  %5719 = vmatmul.mubr.msk.bf16.gmra.mrb[12].mxu1 %vm680_vm3, %v5020_v7  ;;  %v2244_v31 = vsel %vm6524_vm4, %v2239_v10, %v2243_v56  ;;  %v463_v39 = vshrl.u32 %v6744_v0, 16  ;;  %v466_v42 = vshll.u32 %v6744_v0, 16  ;;  %v237_v57 = vld [vmem:[%s6498_s28 + $0x80] sm:$0x1] }
  0x5f   : > { %v460_v38 = vrot.slane %v458_v11, 5  ;;  %v5247_v43 = vcombine.low %v2234_v17, %v2244_v31  ;;  %v446_v44 = vrot.slane %v445_v14, 4  ;;  %v455_v45 = vor.u32 %v454_v18, %v450_v5  ;;  %v5274_v10 = vld [vmem:[%s6498_s28 + $0x24] sm:$0xe] }
  0x60   : > { %v2798_v47 = vsel %vm6750_vm7, %v5288_v21, %v2797_v62  ;;  %v2801_v49 = vsel %vm6750_vm7, %v2799_v25, %v2800_v63  ;;  %v465_v50 = vrot.slane %v463_v39, 4  ;;  %v468_v51 = vrot.slane %v466_v42, 5  ;;  %v6802_v39 = vld [vmem:[%s6498_s28 + $0x84] sm:$0xf] }
  0x61   : > { %v472_v52 = vshll.u32 %v6757_v29, 16  ;;  %5855 = vmatmul.mubr.msk.bf16.gmra.mrb[12].mxu0 %vm680_vm3, %v5247_v43  ;;  %v451_v15 = vsel %vm6524_vm4, %v446_v44, %v450_v5  ;;  %v456_v62 = vrot.slane %v455_v45, 4  ;;  %v5305_v55 = vcombine.low %v2798_v47, %v2801_v49  ;;  %v6810_v43 = vld [vmem:[%s6498_s28 + $0x88] sm:$0xf] }
  0x62   : > { %v476_v56 = vshrl.u32 %v6757_v29, 16  ;;  %v469_v63 = vor.u32 %v468_v51, %v465_v50  ;;  %v482_v61 = vshll.u32 %v236_v26, 16  ;;  %v5289_v2 = vrot.slane %v5273_v48, 9 }
  0x63   : > { %v474_v58 = vrot.slane %v472_v52, 5  ;;  %v461_v6 = vsel %vm6524_vm4, %v456_v62, %v460_v38  ;;  %5876 = vmatprep.mubr.msk.bf16.mxu0 %vm680_vm3, %v5305_v55  ;;  %v2808_v5 = vsel %vm6750_vm7, %v6567_v30, %v2807_v28  ;;  %v487_v17 = vshrl.u32 %v6776_v53, 16  ;;  %v238_v52 = vld [vmem:[%s6498_s28 + $0x8c] sm:$0x1] }
  0x64   : > { %v478_v7 = vrot.slane %v476_v56, 4  ;;  %v5021_v11 = vcombine.low %v451_v15, %v461_v6  ;;  %v470_v14 = vrot.slane %v469_v63, 4  ;;  %v484_v18 = vrot.slane %v482_v61, 5 }
  0x65   : > { %v2805_v21 = vsel %vm6750_vm7, %v5289_v2, %v2804_v22  ;;  %v489_v38 = vrot.slane %v487_v17, 4  ;;  %v490_v1 = vshll.u32 %v6776_v53, 16  ;;  %v496_v30 = vshll.u32 %v6783_v16, 16  ;;  %v6815_v22 = vld [vmem:[%s8283_s1 + $0x1c] sm:$0xf] }
  0x66   : > { %v479_v25 = vor.u32 %v478_v7, %v474_v58  ;;  %v5306_v31 = vcombine.low %v2805_v21, %v2808_v5  ;;  %5722 = vmatprep.mubr.msk.bf16.mxu1 %vm680_vm3, %v5021_v11  ;;  %v475_v28 = vsel %vm6524_vm4, %v470_v14, %v474_v58  ;;  %v500_v60 = vshrl.u32 %v6783_v16, 16  ;;  %v6834_v5 = vld [vmem:[%s6498_s28 + $0x90] sm:$0xf] }
  0x67   : > { %v506_v42 = vshll.u32 %v237_v57, 16  ;;  %v492_v45 = vrot.slane %v490_v1, 5  ;;  %v5290_v47 = vrot.slane %v5274_v10, 9  ;;  %v2811_v26 = vrot.slane %v6574_v46, 5  ;;  %v5275_v57 = vld [vmem:[%s6498_s28 + $0x30] sm:$0xe] }
  0x68   : > { %v480_v44 = vrot.slane %v479_v25, 4  ;;  %v498_v48 = vrot.slane %v496_v30, 5  ;;  %v502_v49 = vrot.slane %v500_v60, 4  ;;  %v2814_v51 = vrot.slane %v6583_v54, 5  ;;  %v6846_v30 = vld [vmem:[%s6498_s28 + $0x94] sm:$0xf] }
  0x69   : > { %v508_v50 = vrot.slane %v506_v42, 5  ;;  %5877 = vmatmul.mubr.msk.bf16.vlgmr.msra.gmra.mrb[0].mxu0 %vm680_vm3, %v5306_v31  ;;  %v493_v62 = vor.u32 %v492_v45, %v489_v38  ;;  %v2812_v55 = vsel %vm6750_vm7, %v5290_v47, %v2811_v26  ;;  %v2813_v56 = vrot.slane %v2811_v26, 4  ;;  %v239_v60 = vld [vmem:[%s6498_s28 + $0x98] sm:$0x1]  ;;  %v5276_v26 = vld [vmem:[%s6498_s28 + $0x3c] sm:$0xe] }
  0x6a   : > { %v485_v15 = vsel %vm6524_vm4, %v480_v44, %v484_v18  ;;  %5909 = vmatpush3.bf16.msra.mxu0 %v6534_v41  ;;  %v503_v46 = vor.u32 %v502_v49, %v498_v48  ;;  %v511_v58 = vshrl.u32 %v6802_v39, 16  ;;  %v514_v54 = vshll.u32 %v6802_v39, 16 }
  0x6b   : > { %v5022_v63 = vcombine.low %v475_v28, %v485_v15  ;;  %v494_v61 = vrot.slane %v493_v62, 4  ;;  %v2815_v2 = vsel %vm6750_vm7, %v2813_v56, %v2814_v51  ;;  %v520_v6 = vshll.u32 %v6810_v43, 16  ;;  %6276 = vmatprep.subr.msk.bf16.mxu0 %vm729_vm0, %v6815_v22 }
  0x6c   : > { %v524_v7 = vshrl.u32 %v6810_v43, 16  ;;  %v504_v41 = vrot.slane %v503_v46, 4  ;;  %v5307_v17 = vcombine.low %v2812_v55, %v2815_v2  ;;  %v513_v10 = vrot.slane %v511_v58, 4  ;;  %v6866_v46 = vld [vmem:[%s6498_s28 + $0xa0] sm:$0xf] }
  0x6d   : > { %5723 = vmatmul.mubr.msk.bf16.gmra.mrb[16].mxu1 %vm680_vm3, %v5022_v63  ;;  %v516_v11 = vrot.slane %v514_v54, 5  ;;  %v499_v14 = vsel %vm6524_vm4, %v494_v61, %v498_v48  ;;  %v522_v18 = vrot.slane %v520_v6, 5  ;;  %v530_v25 = vshll.u32 %v238_v52, 16  ;;  %v6855_v52 = vld [vmem:[%s6498_s28 + $0x9c] sm:$0xf] }
  0x6e   : > { %v526_v21 = vrot.slane %v524_v7, 4  ;;  %v509_v31 = vsel %vm6524_vm4, %v504_v41, %v508_v50  ;;  %5880 = vmatprep.mubr.msk.bf16.mxu0 %vm680_vm3, %v5307_v17  ;;  %v5291_v1 = vrot.slane %v5275_v57, 9  ;;  %v2818_v28 = vrot.slane %v6603_v33, 5 }
  0x6f   : > { %v517_v38 = vor.u32 %v516_v11, %v513_v10  ;;  %v5023_v42 = vcombine.low %v499_v14, %v509_v31  ;;  %v532_v45 = vrot.slane %v530_v25, 5  ;;  %v2821_v47 = vrot.slane %v6611_v40, 5  ;;  %v240_v10 = vld [vmem:[%s6498_s28 + $0xa4] sm:$0x1]  ;;  %v5277_v11 = vld [vmem:[%s6498_s28 + $0x48] sm:$0xe] }
  0x70   : > { %v527_v44 = vor.u32 %v526_v21, %v522_v18  ;;  %v2819_v49 = vsel %vm6750_vm7, %v5291_v1, %v2818_v28  ;;  %v2820_v50 = vrot.slane %v2818_v28, 4  ;;  %v535_v51 = vshrl.u32 %v6834_v5, 16 }
  0x71   : > { %v518_v48 = vrot.slane %v517_v38, 4  ;;  %5726 = vmatprep.mubr.msk.bf16.mxu1 %vm680_vm3, %v5023_v42  ;;  %v538_v15 = vshll.u32 %v6834_v5, 16  ;;  %v544_v62 = vshll.u32 %v6846_v30, 16  ;;  %v548_v40 = vshrl.u32 %v6846_v30, 16 }
  0x72   : > { %v528_v33 = vrot.slane %v527_v44, 4  ;;  %v2822_v56 = vsel %vm6750_vm7, %v2820_v50, %v2821_v47  ;;  %v537_v57 = vrot.slane %v535_v51, 4  ;;  %v554_v63 = vshll.u32 %v239_v60, 16 }
  0x73   : > { %v523_v55 = vsel %vm6524_vm4, %v518_v48, %v522_v18  ;;  %v5308_v54 = vcombine.low %v2819_v49, %v2822_v56  ;;  %v540_v61 = vrot.slane %v538_v15, 5  ;;  %v546_v2 = vrot.slane %v544_v62, 5  ;;  %v6892_v56 = vld [vmem:[%s6498_s28 + $0xac] sm:$0xf] }
  0x74   : > { %v533_v58 = vsel %vm6524_vm4, %v528_v33, %v532_v45  ;;  %v550_v7 = vrot.slane %v548_v40, 4  ;;  %v556_v41 = vrot.slane %v554_v63, 5  ;;  %v5292_v17 = vrot.slane %v5276_v26, 9  ;;  %v6887_v33 = vld [vmem:[%s6498_s28 + $0xa8] sm:$0xf] }
  0x75   : > { %v5024_v6 = vcombine.low %v523_v55, %v533_v58  ;;  %5881 = vmatmul.mubr.msk.bf16.gmra.mrb[4].mxu0 %vm680_vm3, %v5308_v54  ;;  %v541_v14 = vor.u32 %v540_v61, %v537_v57  ;;  %v2825_v18 = vrot.slane %v6628_v20, 5  ;;  %v2828_v21 = vrot.slane %v6633_v34, 5  ;;  %v241_v61 = vld [vmem:[%s6498_s28 + $0xb0] sm:$0x1] }
  0x76   : > { %v559_v25 = vshrl.u32 %v6855_v52, 16  ;;  %v551_v31 = vor.u32 %v550_v7, %v546_v2  ;;  %v562_v38 = vshll.u32 %v6855_v52, 16  ;;  %v568_v1 = vshll.u32 %v6866_v46, 16 }
  0x77   : > { %5727 = vmatmul.mubr.msk.bf16.gmra.mrb[20].mxu1 %vm680_vm3, %v5024_v6  ;;  %v572_v28 = vshrl.u32 %v6866_v46, 16  ;;  %v542_v60 = vrot.slane %v541_v14, 4  ;;  %v2826_v42 = vsel %vm6750_vm7, %v5292_v17, %v2825_v18  ;;  %v2827_v20 = vrot.slane %v2825_v18, 4  ;;  %v6907_v14 = vld [vmem:[%s6498_s28 + $0xb4] sm:$0xf] }
  0x78   : > { %v561_v44 = vrot.slane %v559_v25, 4  ;;  %v552_v34 = vrot.slane %v551_v31, 4  ;;  %v564_v45 = vrot.slane %v562_v38, 5  ;;  %v570_v47 = vrot.slane %v568_v1, 5 }
  0x79   : > { %v574_v26 = vrot.slane %v572_v28, 4  ;;  %v547_v48 = vsel %vm6524_vm4, %v542_v60, %v546_v2  ;;  %v2829_v49 = vsel %vm6750_vm7, %v2827_v20, %v2828_v21  ;;  %v578_v50 = vshll.u32 %v240_v10, 16  ;;  %v5278_v2 = vld [vmem:[%s6498_s28 + $0x54] sm:$0xe] }
  0x7a   : > { %v5293_v51 = vrot.slane %v5277_v11, 9  ;;  %v557_v15 = vsel %vm6524_vm4, %v552_v34, %v556_v41  ;;  %v5309_v62 = vcombine.low %v2826_v42, %v2829_v49  ;;  %v565_v40 = vor.u32 %v564_v45, %v561_v44  ;;  %v6916_v42 = vld [vmem:[%s6498_s28 + $0xb8] sm:$0xf]  ;;  %v242_v49 = vld [vmem:[%s6498_s28 + $0xbc] sm:$0x1] }
  0x7b   : > { %v575_v55 = vor.u32 %v574_v26, %v570_v47  ;;  %v5025_v57 = vcombine.low %v547_v48, %v557_v15  ;;  %v580_v63 = vrot.slane %v578_v50, 5  ;;  %v2832_v58 = vrot.slane %v6651_v8, 5 }
  0x7c   : > { %v2835_v54 = vrot.slane %v6659_v23, 5  ;;  %5884 = vmatprep.mubr.msk.bf16.mxu0 %vm680_vm3, %v5309_v62  ;;  %v566_v6 = vrot.slane %v565_v40, 4  ;;  %v583_v41 = vshrl.u32 %v6887_v33, 16  ;;  %v586_v17 = vshll.u32 %v6887_v33, 16 }
  0x7d   : > { %v576_v7 = vrot.slane %v575_v55, 4  ;;  %5730 = vmatprep.mubr.msk.bf16.mxu1 %vm680_vm3, %v5025_v57  ;;  %v2833_v10 = vsel %vm6750_vm7, %v5293_v51, %v2832_v58  ;;  %v2834_v11 = vrot.slane %v2832_v58, 4  ;;  %v592_v8 = vshll.u32 %v6892_v56, 16  ;;  %v5279_v55 = vld [vmem:[%s6498_s28 + $0x60] sm:$0xe] }
  0x7e   : > { %v596_v23 = vshrl.u32 %v6892_v56, 16  ;;  %v571_v18 = vsel %vm6524_vm4, %v566_v6, %v570_v47  ;;  %v585_v25 = vrot.slane %v583_v41, 4  ;;  %v588_v31 = vrot.slane %v586_v17, 5  ;;  %v5280_v6 = vld [vmem:[%s6498_s28 + $0x6c] sm:$0xe] }
  0x7f   : > { %v581_v21 = vsel %vm6524_vm4, %v576_v7, %v580_v63  ;;  %v2836_v1 = vsel %vm6750_vm7, %v2834_v11, %v2835_v54  ;;  %v594_v28 = vrot.slane %v592_v8, 5  ;;  %v602_v34 = vshll.u32 %v241_v61, 16  ;;  %v5216_v11 = vld [vmem:[%s6498_s28 + $0x70] sm:$0xf]  ;;  %v5217_v8 = vld [vmem:[%s6498_s28 + $0x74] sm:$0x1] }
  0x80   : > { %v5026_v38 = vcombine.low %v571_v18, %v581_v21  ;;  %v598_v60 = vrot.slane %v596_v23, 4  ;;  %v5310_v20 = vcombine.low %v2833_v10, %v2836_v1  ;;  %v589_v44 = vor.u32 %v588_v31, %v585_v25 }
  0x81   : > { %v5294_v45 = vrot.slane %v5278_v2, 9  ;;  %v2839_v26 = vrot.slane %v6682_v4, 5  ;;  %v2842_v48 = vrot.slane %v6688_v12, 5  ;;  %v607_v50 = vshrl.u32 %v6907_v14, 16 }
  0x82   : > { %5731 = vmatmul.mubr.msk.bf16.gmra.mrb[24].mxu1 %vm680_vm3, %v5026_v38  ;;  %v599_v47 = vor.u32 %v598_v60, %v594_v28  ;;  %5885 = vmatmul.mubr.msk.bf16.gmra.mrb[8].mxu0 %vm680_vm3, %v5310_v20  ;;  %v590_v51 = vrot.slane %v589_v44, 4  ;;  %v604_v15 = vrot.slane %v602_v34, 5  ;;  %v610_v62 = vshll.u32 %v6907_v14, 16 }
  0x83   : > { %v616_v40 = vshll.u32 %v6916_v42, 16  ;;  %v2840_v4 = vsel %vm6750_vm7, %v5294_v45, %v2839_v26  ;;  %v2841_v12 = vrot.slane %v2839_v26, 4  ;;  %v609_v63 = vrot.slane %v607_v50, 4 }
  0x84   : > { %v600_v57 = vrot.slane %v599_v47, 4  ;;  %v595_v58 = vsel %vm6524_vm4, %v590_v51, %v594_v28  ;;  %v612_v54 = vrot.slane %v610_v62, 5  ;;  %v620_v2 = vshrl.u32 %v6916_v42, 16  ;;  %v5281_v47 = vld [vmem:[%s6498_s28 + $0x78] sm:$0xe] }
  0x85   : > { %v618_v61 = vrot.slane %v616_v40, 5  ;;  %v2843_v41 = vsel %vm6750_vm7, %v2841_v12, %v2842_v48  ;;  %v626_v17 = vshll.u32 %v242_v49, 16  ;;  %v5295_v10 = vrot.slane %v5279_v55, 9  ;;  %v6351_v51 = vld [vmem:[%s6498_s28] sm:$0xf] }
  0x86   : > { %v605_v7 = vsel %vm6524_vm4, %v600_v57, %v604_v15  ;;  %v5311_v18 = vcombine.low %v2840_v4, %v2843_v41  ;;  %v613_v21 = vor.u32 %v612_v54, %v609_v63  ;;  %v622_v25 = vrot.slane %v620_v2, 4  ;;  %v6954_v15 = vld [vmem:[%s6498_s28 + $0x4] sm:$0xf]  ;;  %v6958_v40 = vld [vmem:[%s6498_s28 + $0x7c] sm:$0xf] }
  0x87   : > { %v5027_v23 = vcombine.low %v595_v58, %v605_v7  ;;  %v628_v31 = vrot.slane %v626_v17, 5  ;;  %v2846_v38 = vrot.slane %v6712_v59, 5  ;;  %v2849_v1 = vrot.slane %v6719_v9, 5  ;;  %v6961_v55 = vld [vmem:[%s6498_s28 + $0x80] sm:$0x1] }
  0x88   : > { %v5296_v28 = vrot.slane %v5280_v6, 9  ;;  %5888 = vmatprep.mubr.msk.bf16.mxu0 %vm680_vm3, %v5311_v18  ;;  %v614_v60 = vrot.slane %v613_v21, 4  ;;  %v623_v20 = vor.u32 %v622_v25, %v618_v61  ;;  %v2853_v44 = vrot.slane %v5216_v11, 5  ;;  %v5222_v57 = vld [vmem:[%s6498_s28 + $0x88] sm:$0xf] }
  0x89   : > { %5734 = vmatprep.mubr.msk.bf16.mxu1 %vm680_vm3, %v5027_v23  ;;  %v2856_v34 = vrot.slane %v5217_v8, 5  ;;  %v2847_v45 = vsel %vm6750_vm7, %v5295_v10, %v2846_v38  ;;  %v2848_v59 = vrot.slane %v2846_v38, 4  ;;  %v5045_v62 = vcombine.low %v6351_v51, %v6954_v15  ;;  %v5223_v54 = vld [vmem:[%s6498_s28 + $0x8c] sm:$0x1]  ;;  %v5225_v17 = vld [vmem:[%s6498_s28 + $0x94] sm:$0xf] }
  0x8a   : > { %v619_v9 = vsel %vm6524_vm4, %v614_v60, %v618_v61  ;;  %v624_v26 = vrot.slane %v623_v20, 4  ;;  %v2854_v48 = vsel %vm6750_vm7, %v5296_v28, %v2853_v44  ;;  %v2855_v49 = vrot.slane %v2853_v44, 4  ;;  %v5282_v61 = vld [vmem:[%s6498_s28 + $0x84] sm:$0xe]  ;;  %v5283_v23 = vld [vmem:[%s6498_s28 + $0x90] sm:$0xe] }
  0x8b   : > { %v2850_v50 = vsel %vm6750_vm7, %v2848_v59, %v2849_v1  ;;  %v5297_v58 = vrot.slane %v5281_v47, 9  ;;  %v2860_v7 = vrot.slane %v6958_v40, 5  ;;  %v2863_v41 = vrot.slane %v6961_v55, 5  ;;  %v5226_v25 = vld [vmem:[%s6498_s28 + $0x98] sm:$0x1] }
  0x8c   : > { %v629_v4 = vsel %vm6524_vm4, %v624_v26, %v628_v31  ;;  %v5312_v12 = vcombine.low %v2847_v45, %v2850_v50  ;;  %v2857_v63 = vsel %vm6750_vm7, %v2855_v49, %v2856_v34  ;;  %v5298_v10 = vrot.slane %v5282_v61, 9  ;;  %v5228_v31 = vld [vmem:[%s6498_s28 + $0xa0] sm:$0xf]  ;;  %v5229_v60 = vld [vmem:[%s6498_s28 + $0xa4] sm:$0x1] }
  0x8d   : > { %v5028_v2 = vcombine.low %v619_v9, %v629_v4  ;;  %v5313_v6 = vcombine.low %v2854_v48, %v2857_v63  ;;  %v2867_v11 = vrot.slane %v5222_v57, 5  ;;  %v2870_v8 = vrot.slane %v5223_v54, 5  ;;  %v5284_v20 = vld [vmem:[%s6498_s28 + $0x9c] sm:$0xe]  ;;  %v6353_v44 = vld [vmem:[%s6498_s28 + $0xc] sm:$0xf] }
  0x8e   : > { %5889 = vmatmul.mubr.msk.bf16.gmra.mrb[12].mxu0 %vm680_vm3, %v5312_v12  ;;  %v2861_v18 = vsel %vm6750_vm7, %v5297_v58, %v2860_v7  ;;  %v2862_v21 = vrot.slane %v2860_v7, 4  ;;  %v2874_v28 = vrot.slane %v5225_v17, 5  ;;  %v6988_v34 = vld [vmem:[%s6498_s28 + $0x10] sm:$0xf]  ;;  %v6355_v47 = vld [vmem:[%s6498_s28 + $0x18] sm:$0xf] }
  0x8f   : > { %5735 = vmatmul.mubr.msk.bf16.gmra.mrb[28].mxu1 %vm680_vm3, %v5028_v2  ;;  %5892 = vmatprep.mubr.msk.bf16.mxu0 %vm680_vm3, %v5313_v6  ;;  %v2868_v38 = vsel %vm6750_vm7, %v5298_v10, %v2867_v11  ;;  %v2869_v1 = vrot.slane %v2867_v11, 4  ;;  %v5046_v45 = vcombine.low %v6353_v44, %v6988_v34  ;;  %v6995_v9 = vld [vmem:[%s6498_s28 + $0x1c] sm:$0xf]  ;;  %v5299_v48 = vrot.slane %v5283_v23, 9  ;;  %v5231_v57 = vld [vmem:[%s6498_s28 + $0xac] sm:$0xf] }
  0x90   : > { %5740 = vmatprep.mubr.msk.bf16.mxu1 %vm680_vm3, %v5045_v62  ;;  %v2864_v59 = vsel %vm6750_vm7, %v2862_v21, %v2863_v41  ;;  %v5047_v26 = vcombine.low %v6355_v47, %v6995_v9  ;;  %v2876_v51 = vrot.slane %v2874_v28, 4  ;;  %v2877_v62 = vrot.slane %v5226_v25, 5  ;;  %v6357_v54 = vld [vmem:[%s8283_s1 + $0x8] sm:$0xf]  ;;  %v5234_v2 = vld [vmem:[%s6498_s28 + $0xb8] sm:$0xf] }
  0x91   : > { %v5314_v49 = vcombine.low %v2861_v18, %v2864_v59  ;;  %v2871_v50 = vsel %vm6750_vm7, %v2869_v1, %v2870_v8  ;;  %v5300_v12 = vrot.slane %v5284_v20, 9  ;;  %v2881_v63 = vrot.slane %v5228_v31, 5  ;;  %v7010_v7 = vld [vmem:[%s8283_s1 + $0xc] sm:$0xf]  ;;  %v5232_v10 = vld [vmem:[%s6498_s28 + $0xb0] sm:$0x1] }
  0x92   : > { %v5315_v4 = vcombine.low %v2868_v38, %v2871_v50  ;;  %v2884_v58 = vrot.slane %v5229_v60, 5  ;;  %v1448_v61 = vsel %vm729_vm0, %v6357_v54, 0  ;;  %v2875_v41 = vsel %vm6750_vm7, %v5299_v48, %v2874_v28  ;;  %v5285_v11 = vld [vmem:[%s6498_s28 + $0xa8] sm:$0xe]  ;;  %v5235_v25 = vld [vmem:[%s6498_s28 + $0xbc] sm:$0x1] }
  0x93   : > { %v2883_v6 = vrot.slane %v2881_v63, 4  ;;  %v2878_v17 = vsel %vm6750_vm7, %v2876_v51, %v2877_v62  ;;  %v2888_v8 = vrot.slane %v5231_v57, 5  ;;  %v2882_v23 = vsel %vm6750_vm7, %v5300_v12, %v2881_v63  ;;  %v5286_v31 = vld [vmem:[%s6498_s28 + $0xb4] sm:$0xe]  ;;  %v6358_v38 = vld [vmem:[%s6498_s28 + $0x24] sm:$0xf] }
  0x94   : > { %v2895_v21 = vrot.slane %v5234_v2, 5  ;;  %v7031_v1 = vld [vmem:[%s6498_s28 + $0x28] sm:$0xf]  ;;  %v5316_v60 = vcombine.low %v2875_v41, %v2878_v17  ;;  %v5301_v44 = vrot.slane %v5285_v11, 9  ;;  %v2891_v59 = vrot.slane %v5232_v10, 5 }
  0x95   : > { %v2885_v18 = vsel %vm6750_vm7, %v2883_v6, %v2884_v58  ;;  %v5048_v28 = vcombine.low %v6358_v38, %v7031_v1  ;;  %v6360_v47 = vld [vmem:[%s6498_s28 + $0x30] sm:$0xf]  ;;  %v2898_v51 = vrot.slane %v5235_v25, 5  ;;  %v5237_v62 = vld [vmem:[%s6498_s28 + $0xc4] sm:$0xf]  ;;  %v2283_v25 = vshrl.u32 %v6958_v40, 16 }
  0x96   : > { %5893 = vmatmul.mubr.msk.bf16.gmra.mrb[16].mxu0 %vm680_vm3, %v5314_v49  ;;  %v5317_v20 = vcombine.low %v2882_v23, %v2885_v18  ;;  %v5302_v49 = vrot.slane %v5286_v31, 9  ;;  %v2897_v50 = vrot.slane %v2895_v21, 4  ;;  %v2889_v57 = vsel %vm6750_vm7, %v5301_v44, %v2888_v8  ;;  %v5287_v12 = vld [vmem:[%s6498_s28 + $0xc0] sm:$0xe]  ;;  %v6362_v41 = vld [vmem:[%s6498_s28 + $0x3c] sm:$0xf] }
  0x97   : > { %5741 = vmatmul.mubr.msk.bf16.vlgmr.msra.gmra.mrb[0].mxu1 %vm680_vm3, %v5046_v45  ;;  %5896 = vmatprep.mubr.msk.bf16.mxu0 %vm680_vm3, %v5315_v4  ;;  %v2890_v45 = vrot.slane %v2888_v8, 4  ;;  %v2902_v63 = vrot.slane %v5237_v62, 5  ;;  %v5303_v6 = vrot.slane %v5287_v12, 9  ;;  %v7056_v17 = vld [vmem:[%s6498_s28 + $0x40] sm:$0xf]  ;;  %v5051_v18 = vcombine.low %v6663_v27, %v6666_v36  ;;  %v6314_v62 = vld [vmem:[%s6498_s28 + $0x24] sm:$0xff]  }
  0x98   : > { %5773 = vmatpush3.bf16.msra.mxu1 %v1448_v61  ;;  %5744 = vmatprep.mubr.msk.bf16.mxu1 %vm680_vm3, %v5047_v26  ;;  %v7036_v26 = vld [vmem:[%s6498_s28 + $0x34] sm:$0xf]  ;;  %v2896_v58 = vsel %vm6750_vm7, %v5302_v49, %v2895_v21  ;;  %v2899_v54 = vsel %vm6750_vm7, %v2897_v50, %v2898_v51  ;;  %v5238_v61 = vld [vmem:[%s6498_s28 + $0xc8] sm:$0x1]  ;;  %v5050_v10 = vcombine.low %v6362_v41, %v7056_v17  ;;  %v2279_v21 = vshll.u32 %v6958_v40, 16 }
  0x99   : > { %6271 = vmatprep.subr.msk.bf16.mxu1 %vm729_vm0, %v7010_v7  ;;  %v5049_v48 = vcombine.low %v6360_v47, %v7036_v26  ;;  %v2892_v4 = vsel %vm6750_vm7, %v2890_v45, %v2891_v59  ;;  %v5319_v11 = vcombine.low %v2896_v58, %v2899_v54  ;;  %v2904_v8 = vrot.slane %v2902_v63, 4  ;;  %v1186_v45 = vld [vmem:[%s6498_s28] sm:$0xe]  ;;  %v1187_v59 = vld [vmem:[%s6498_s28 + $0xc] sm:$0xe] }
  0x9a   : > { %v5318_v2 = vcombine.low %v2889_v57, %v2892_v4  ;;  %v2905_v23 = vrot.slane %v5238_v61, 5  ;;  %v2903_v31 = vsel %vm6750_vm7, %v5303_v6, %v2902_v63  ;;  %v7071_v27 = vrot.slane %v2279_v21, 5  ;;  %v1190_v41 = vld [vmem:[%s6498_s28 + $0x30] sm:$0xe] }
  0x9b   : > { %v2285_v36 = vrot.slane %v2283_v25, 4  ;;  %v5053_v44 = vcombine.low %v6723_v19, %v6729_v35  ;;  %v2289_v47 = vshll.u32 %v6961_v55, 16  ;;  %v5077_v19 = vrot.slane %v1186_v45, 9 }
  0x9c   : > { %v2906_v38 = vsel %vm6750_vm7, %v2904_v8, %v2905_v23  ;;  %8304 = vst [vmem:[#allocation3_spill] sm:$0xff] %v7071_v27  ;;  %v5078_v35 = vrot.slane %v1187_v59, 9  ;;  %v1253_v4 = vrot.slane %v6995_v9, 5  ;;  %v1260_v12 = vrot.slane %v7031_v1, 5  ;;  %v1191_v8 = vld [vmem:[%s6498_s28 + $0x3c] sm:$0xe] }
  0x9d   : > { %v5320_v40 = vcombine.low %v2903_v31, %v2906_v38  ;;  %v2286_v49 = vor.u32 %v2285_v36, %v7071_v27  ;;  %v7091_v51 = vrot.slane %v2289_v47, 5  ;;  %v5054_v58 = vcombine.low %v6744_v0, %v6757_v29  ;;  %v1192_v31 = vld [vmem:[%s6498_s28 + $0x48] sm:$0xe]  ;;  %v6368_v59 = vld [vmem:[%s6498_s28 + $0x38] sm:$0x1] }
  0x9e   : > { %5897 = vmatmul.mubr.msk.bf16.gmra.mrb[20].mxu0 %vm680_vm3, %v5316_v60  ;;  %v5052_v60 = vcombine.low %v6692_v24, %v6698_v37  ;;  %v6365_v24 = vld [vmem:[%s6498_s28 + $0x14] sm:$0x1]  ;;  %v4094_v54 = vsel %vm729_vm0, %v6815_v22, 0  ;;  %v5055_v61 = vcombine.low %v6776_v53, %v6783_v16  ;;  %v5056_v6 = vcombine.low %v6802_v39, %v6810_v43  ;;  %v6366_v16 = vld [vmem:[%s6498_s28 + $0x20] sm:$0x1] }
  0x9f   : > { %5745 = vmatmul.mubr.msk.bf16.gmra.mrb[4].mxu1 %vm680_vm3, %v5048_v28  ;;  %5900 = vmatprep.mubr.msk.bf16.mxu0 %vm680_vm3, %v5317_v20  ;;  %v1246_v28 = vrot.slane %v6988_v34, 5  ;;  %v6312_v20 = vld [vmem:[%s6498_s28 + $0x18] sm:$0xff]   ;;  %v6364_v34 = vld [vmem:[%s6498_s28 + $0x8] sm:$0x1]  ;;  %v1249_v37 = vrot.slane %v6365_v24, 5  ;;  %8305 = vst [vmem:[#allocation4_spill] sm:$0xff] %v7091_v51  ;;  %v5057_v9 = vcombine.low %v6834_v5, %v6846_v30 }
  0xa0   : > { %5748 = vmatprep.mubr.msk.bf16.mxu1 %vm680_vm3, %v5049_v48  ;;  %v1239_v48 = vrot.slane %v6954_v15, 5  ;;  %v1242_v50 = vrot.slane %v6364_v34, 5  ;;  %v1188_v15 = vld [vmem:[%s6498_s28 + $0x18] sm:$0xe]  ;;  %v7096_v63 = vrot.slane %v2286_v49, 4  ;;  %v1256_v22 = vrot.slane %v6366_v16, 5 }
  0xa1   : > { %v1248_v55 = vrot.slane %v1246_v28, 4  ;;  %v5079_v1 = vrot.slane %v1188_v15, 9  ;;  %v7118_v29 = vsel %vm6750_vm7, %v5078_v35, %v1246_v28  ;;  %v1262_v25 = vrot.slane %v1260_v12, 4  ;;  %v5402_v24 = vld [vmem:[%s6498_s28 + $0x18] sm:$0xf] }
  0xa2   : > { %v1241_v57 = vrot.slane %v1239_v48, 4  ;;  %8306 = vst [vmem:[#allocation5_spill] sm:$0xff] %v7096_v63  ;;  %v7114_v0 = vsel %vm6750_vm7, %v5077_v19, %v1239_v48  ;;  %v1270_v47 = vrot.slane %v6368_v59, 5  ;;  %v7155_v49 = vsel %vm729_vm0, %v7010_v7, 0  ;;  %v5403_v7 = vld [vmem:[%s6498_s28 + $0x1c] sm:$0xf] }
  0xa3   : > { %v7122_v53 = vsel %vm6750_vm7, %v1248_v55, %v1249_v37  ;;  %v7159_v34 = vsel %vm6750_vm7, %v5079_v1, %v1253_v4  ;;  %v6318_v37 = vld [vmem:[%s6498_s28 + $0x3c] sm:$0xff]   ;;  %v5082_v35 = vrot.slane %v1191_v8, 9  ;;  %v6369_v55 = vld [vmem:[%s6498_s28 + $0x44] sm:$0x1]  ;;  %v3615_v8 = vshll.u32 %v5402_v24, 16 }
  0xa4   : > { %v7133_v23 = vsel %vm6750_vm7, %v1241_v57, %v1242_v50  ;;  %v1193_v50 = vld [vmem:[%s6498_s28 + $0x54] sm:$0xe]  ;;  %v1277_v15 = vrot.slane %v6369_v55, 5  ;;  %v5406_v39 = vld [vmem:[%s6498_s28 + $0x28] sm:$0xf] }
  0xa5   : > { %v6376_v5 = vld [vmem:[%s6498_s28 + $0x70] sm:$0xf] }
  0xa6   : > { %5901 = vmatmul.mubr.msk.bf16.gmra.mrb[24].mxu0 %vm680_vm3, %v5318_v2  ;;  %v1189_v2 = vld [vmem:[%s6498_s28 + $0x24] sm:$0xe]  ;;  %v1302_v30 = vrot.slane %v6376_v5, 5 }
  0xa7   : > { %5749 = vmatmul.mubr.msk.bf16.gmra.mrb[8].mxu1 %vm680_vm3, %v5050_v10  ;;  %5904 = vmatprep.mubr.msk.bf16.mxu0 %vm680_vm3, %v5319_v11  ;;  %v1267_v10 = vrot.slane %v7036_v26, 5  ;;  %v6316_v11 = vld [vmem:[%s6498_s28 + $0x30] sm:$0xff]   ;;  %v7129_v26 = vld [vmem:[%s8283_s1 + $0x20] sm:$0xf]  ;;  %v5080_v21 = vrot.slane %v1189_v2, 9 }
  0xa8   : > { %5752 = vmatprep.mubr.msk.bf16.mxu1 %vm680_vm3, %v5051_v18  ;;  %v1255_v18 = vrot.slane %v1253_v4, 4  ;;  %v1304_v48 = vrot.slane %v1302_v30, 4 }
  0xa9   : > { %v1269_v45 = vrot.slane %v1267_v10, 4  ;;  %v7166_v19 = vsel %vm6750_vm7, %v5080_v21, %v1260_v12  ;;  %v3625_v21 = vshrl.u32 %v5403_v7, 16 }
  0xaa   : > { %v7175_v4 = vsel %vm6750_vm7, %v1255_v18, %v1256_v22  ;;  %v3612_v22 = vshrl.u32 %v5402_v24, 16  ;;  %v3621_v18 = vshll.u32 %v5403_v7, 16  ;;  %v5405_v24 = vld [vmem:[%s6498_s28 + $0x24] sm:$0xf] }
  0xab   : > { %v7188_v1 = vsel %vm6750_vm7, %v1269_v45, %v1270_v47 }
  0xac   : > { %v3614_v43 = vrot.slane %v3612_v22, 4  ;;  %v7230_v7 = vrot.slane %v3621_v18, 5  ;;  %v3639_v22 = vshll.u32 %v5405_v24, 16  ;;  %v3649_v18 = vshrl.u32 %v5406_v39, 16 }
  0xae   : > { %5905 = vmatmul.mubr.msk.bf16.gmra.mrb[28].mxu0 %vm680_vm3, %v5320_v40  ;;  %v6367_v40 = vld [vmem:[%s6498_s28 + $0x2c] sm:$0x1]  ;;  %v3641_v27 = vrot.slane %v3639_v22, 5 }
  0xaf   : > { %5753 = vmatmul.mubr.msk.bf16.gmra.mrb[12].mxu1 %vm680_vm3, %v5052_v60  ;;  %5910 = vmatprep.mubr.msk.bf16.mxu0 %vm680_vm3, %v6312_v20  ;;  %v1263_v28 = vrot.slane %v6367_v40, 5  ;;  %v1274_v60 = vrot.slane %v7056_v17, 5  ;;  %v6372_v40 = vld [vmem:[%s6498_s28 + $0x50] sm:$0x1]  ;;  %v6377_v17 = vld [vmem:[%s6498_s28 + $0x74] sm:$0x1] }
  0xb0   : > { %5756 = vmatprep.mubr.msk.bf16.mxu1 %vm680_vm3, %v5053_v44  ;;  %v5081_v44 = vrot.slane %v1190_v41, 9  ;;  %v5084_v41 = vrot.slane %v1193_v50, 9  ;;  %v1194_v50 = vld [vmem:[%s6498_s28 + $0x60] sm:$0xe]  ;;  %v5407_v20 = vld [vmem:[%s6498_s28 + $0x2c] sm:$0x1] }
  0xb1   : > { %v1276_v12 = vrot.slane %v1274_v60, 4  ;;  %v7201_v45 = vsel %vm6750_vm7, %v5082_v35, %v1274_v60  ;;  %v6373_v35 = vld [vmem:[%s6498_s28 + $0x5c] sm:$0x1] }
  0xb2   : > { %v7184_v2 = vsel %vm6750_vm7, %v5081_v44, %v1267_v10  ;;  %v1291_v55 = vrot.slane %v6373_v35, 5  ;;  %v1195_v35 = vld [vmem:[%s6498_s28 + $0x6c] sm:$0xe] }
  0xb3   : > { %v7205_v59 = vsel %vm6750_vm7, %v1276_v12, %v1277_v15  ;;  %v6374_v15 = vld [vmem:[%s6498_s28 + $0x64] sm:$0xf]  ;;  %v3627_v12 = vrot.slane %v3625_v21, 4  ;;  %v5086_v5 = vrot.slane %v1195_v35, 9 }
  0xb4   : > { %v6324_v21 = vld [vmem:[%s6498_s28 + $0x60] sm:$0xff]  }
  0xb6   : > { %5911 = vmatmul.mubr.msk.bf16.vlgmr.msra.gmra.mrb[0].mxu0 %vm680_vm3, %v6314_v62  ;;  %v6370_v62 = vld [vmem:[%s6498_s28 + $0x4c] sm:$0xf] }
  0xb7   : > { %5757 = vmatmul.mubr.msk.bf16.gmra.mrb[16].mxu1 %vm680_vm3, %v5054_v58  ;;  %5943 = vmatpush3.bf16.msra.mxu0 %v4094_v54  ;;  %v1281_v57 = vrot.slane %v6370_v62, 5  ;;  %v7179_v58 = vsel %vm6750_vm7, %v1262_v25, %v1263_v28  ;;  %v5083_v54 = vrot.slane %v1192_v31, 9  ;;  %v1284_v28 = vrot.slane %v6372_v40, 5 }
  0xb8   : > { %5760 = vmatprep.mubr.msk.bf16.mxu1 %vm680_vm3, %v5055_v61  ;;  %5914 = vmatprep.mubr.msk.bf16.mxu0 %vm680_vm3, %v6316_v11  ;;  %v6320_v61 = vld [vmem:[%s6498_s28 + $0x48] sm:$0xff]   ;;  %v6371_v11 = vld [vmem:[%s6498_s28 + $0x58] sm:$0xf]  ;;  %v1295_v62 = vrot.slane %v6374_v15, 5  ;;  %v5409_v15 = vld [vmem:[%s6498_s28 + $0x34] sm:$0xf] }
  0xb9   : > { %6277 = vmatprep.subr.msk.bf16.mxu0 %vm729_vm0, %v7129_v26  ;;  %v1288_v16 = vrot.slane %v6371_v11, 5  ;;  %v1283_v31 = vrot.slane %v1281_v57, 4  ;;  %v7209_v47 = vsel %vm6750_vm7, %v5083_v54, %v1281_v57  ;;  %v5404_v57 = vld [vmem:[%s6498_s28 + $0x20] sm:$0x1]  ;;  %v5408_v54 = vld [vmem:[%s6498_s28 + $0x30] sm:$0xf] }
  0xba   : > { %v5085_v11 = vrot.slane %v1194_v50, 9  ;;  %v3663_v50 = vshll.u32 %v5408_v54, 16  ;;  %v3631_v25 = vshll.u32 %v5404_v57, 16  ;;  %v3669_v36 = vshll.u32 %v5409_v15, 16 }
  0xbb   : > { %v7220_v60 = vsel %vm6750_vm7, %v5084_v41, %v1288_v16  ;;  %v7236_v41 = vsel %vm6750_vm7, %v1283_v31, %v1284_v28  ;;  %v1297_v31 = vrot.slane %v1295_v62, 4  ;;  %v3660_v28 = vshrl.u32 %v5408_v54, 16 }
  0xbc   : > { %v7278_v35 = vrot.slane %v3669_v36, 5 }
  0xbe   : > { %5915 = vmatmul.mubr.msk.bf16.gmra.mrb[4].mxu0 %vm680_vm3, %v6318_v37  ;;  %v1290_v37 = vrot.slane %v1288_v16, 4  ;;  %v6375_v16 = vld [vmem:[%s6498_s28 + $0x68] sm:$0x1] }
  0xbf   : > { %5761 = vmatmul.mubr.msk.bf16.gmra.mrb[20].mxu1 %vm680_vm3, %v5056_v6  ;;  %5918 = vmatprep.mubr.msk.bf16.mxu0 %vm680_vm3, %v6320_v61  ;;  %v3617_v6 = vrot.slane %v3615_v8, 5  ;;  %v6322_v61 = vld [vmem:[%s6498_s28 + $0x54] sm:$0xff]   ;;  %v1298_v40 = vrot.slane %v6375_v16, 5  ;;  %v3645_v8 = vshll.u32 %v5406_v39, 16  ;;  %v3628_v16 = vor.u32 %v3627_v12, %v7230_v7 }
  0xc0   : > { %5764 = vmatprep.mubr.msk.bf16.mxu1 %vm680_vm3, %v5057_v9  ;;  %v3636_v9 = vshrl.u32 %v5405_v24, 16  ;;  %v7245_v44 = vsel %vm6750_vm7, %v1290_v37, %v1291_v55  ;;  %v1305_v24 = vrot.slane %v6377_v17, 5  ;;  %v3673_v39 = vshrl.u32 %v5409_v15, 16 }
  0xc1   : > { %v3618_v10 = vor.u32 %v3617_v6, %v3614_v43  ;;  %v7251_v37 = vrot.slane %v3645_v8, 5  ;;  %v3651_v55 = vrot.slane %v3649_v18, 4  ;;  %v8307_v43 = vcombine.low %v6855_v52, %v6866_v46  ;;  %v6378_v8 = vld [vmem:[%s6498_s28 + $0x7c] sm:$0xf]  ;;  %v7287_v18 = vld [vmem:[%s6498_s28 + $0x38] sm:$0x1] }
  0xc2   : > { %v3638_v38 = vrot.slane %v3636_v9, 4  ;;  %v7260_v17 = vsel %vm6750_vm7, %v5085_v11, %v1295_v62  ;;  %v7264_v57 = vsel %vm6750_vm7, %v1297_v31, %v1298_v40  ;;  %v3662_v6 = vrot.slane %v3660_v28, 4  ;;  %8309 = vst [vmem:[#allocation6_spill] sm:$0xff] %v7287_v18 }
  0xc3   : > { %v3665_v12 = vrot.slane %v3663_v50, 5  ;;  %v8308_v52 = vcombine.low %v6887_v33, %v6892_v56  ;;  %v3619_v46 = vrot.slane %v3618_v10, 4  ;;  %v3629_v54 = vrot.slane %v3628_v16, 4  ;;  %v6326_v33 = vld [vmem:[%s6498_s28 + $0x6c] sm:$0xff]   ;;  %v1197_v16 = vld [vmem:[%s6498_s28 + $0x84] sm:$0xe] }
  0xc4   : > { %v3655_v62 = vshll.u32 %v5407_v20, 16  ;;  %v7272_v11 = vsel %vm6750_vm7, %v5086_v5, %v1302_v30  ;;  %v7276_v40 = vsel %vm6750_vm7, %v1304_v48, %v1305_v24  ;;  %v3675_v9 = vrot.slane %v3673_v39, 4  ;;  %v6327_v48 = vld [vmem:[%s6498_s28 + $0x78] sm:$0xff]  }
  0xc5   : > { %v3642_v10 = vor.u32 %v3641_v27, %v3638_v38  ;;  %v3652_v20 = vor.u32 %v3651_v55, %v7251_v37  ;;  %v1309_v30 = vrot.slane %v6378_v8, 5  ;;  %v3666_v38 = vor.u32 %v3665_v12, %v3662_v6  ;;  %v5411_v5 = vld [vmem:[%s6498_s28 + $0x3c] sm:$0xf] }
  0xc6   : > { %5919 = vmatmul.mubr.msk.bf16.gmra.mrb[8].mxu0 %vm680_vm3, %v6322_v61  ;;  %v3633_v61 = vrot.slane %v3631_v25, 5  ;;  %v1196_v25 = vld [vmem:[%s6498_s28 + $0x78] sm:$0xe]  ;;  %v7303_v50 = vrot.slane %v3655_v62, 5  ;;  %v3676_v39 = vor.u32 %v3675_v9, %v7278_v35  ;;  %v3679_v55 = vshll.u32 %v7287_v18, 16 }
  0xc7   : > { %5765 = vmatmul.mubr.msk.bf16.gmra.mrb[24].mxu1 %vm680_vm3, %v8307_v43  ;;  %5922 = vmatprep.mubr.msk.bf16.mxu0 %vm680_vm3, %v6324_v21  ;;  %v3624_v21 = vsel %vm6524_vm4, %v3619_v46, %v7230_v7  ;;  %v5087_v24 = vrot.slane %v1196_v25, 9  ;;  %v6379_v43 = vld [vmem:[%s6498_s28 + $0x88] sm:$0xf]  ;;  %v7311_v7 = vld [vmem:[%s6498_s28 + $0x40] sm:$0xf]  ;;  %v3643_v12 = vrot.slane %v3642_v10, 4  ;;  %v8311_v62 = vcombine.low %v6907_v14, %v6916_v42 }
  0xc8   : > { %5768 = vmatprep.mubr.msk.bf16.mxu1 %vm680_vm3, %v8308_v52  ;;  %v3634_v31 = vsel %vm6524_vm4, %v3629_v54, %v3633_v61  ;;  %v1316_v6 = vrot.slane %v6379_v43, 5  ;;  %8310 = vst [vmem:[#allocation7_spill] sm:$0xff] %v7311_v7  ;;  %v3653_v52 = vrot.slane %v3652_v20, 4  ;;  %v1311_v46 = vrot.slane %v1309_v30, 4  ;;  %v6380_v54 = vld [vmem:[%s6498_s28 + $0x80] sm:$0x1] }
  0xc9   : > { %v1312_v61 = vrot.slane %v6380_v54, 5  ;;  %v3667_v9 = vrot.slane %v3666_v38, 4  ;;  %v5088_v25 = vrot.slane %v1197_v16, 9  ;;  %v3684_v8 = vshrl.u32 %v5411_v5, 16  ;;  %v6328_v10 = vld [vmem:[%s6498_s28 + $0x84] sm:$0xff]  }
  0xca   : > { %v3687_v43 = vshll.u32 %v5411_v5, 16  ;;  %v7325_v20 = vcombine.low %v3624_v21, %v3634_v31  ;;  %v7329_v14 = vsel %vm729_vm0, %v7129_v26, 0  ;;  %v3697_v38 = vshrl.u32 %v7311_v7, 16  ;;  %v6329_v21 = vld [vmem:[%s6498_s28 + $0x90] sm:$0xff]   ;;  %v6385_v18 = vld [vmem:[%s6498_s28 + $0xa0] sm:$0xf] }
  0xcb   : > { %v3677_v16 = vrot.slane %v3676_v39, 4  ;;  %v3681_v5 = vrot.slane %v3679_v55, 5  ;;  %v1318_v54 = vrot.slane %v1316_v6, 4  ;;  %v3648_v31 = vsel %vm6524_vm4, %v3643_v12, %v7251_v37 }
  0xcc   : > { %v3658_v26 = vsel %vm6524_vm4, %v3653_v52, %v7303_v50  ;;  %v7344_v39 = vsel %vm6750_vm7, %v5087_v24, %v1309_v30  ;;  %v7348_v55 = vsel %vm6750_vm7, %v1311_v46, %v1312_v61  ;;  %v3672_v37 = vsel %vm6524_vm4, %v3667_v9, %v7278_v35  ;;  %v5417_v30 = vld [vmem:[%s6498_s28 + $0x54] sm:$0xf]  ;;  %v7365_v24 = vld [vmem:[%s6498_s28 + $0x58] sm:$0xf]  ;;  %v7370_v61 = vld [vmem:[%s6498_s28 + $0x90] sm:$0xe] }
  0xcd   : > { %v7361_v12 = vsel %vm6750_vm7, %v5088_v25, %v1316_v6  ;;  %v3686_v50 = vrot.slane %v3684_v8, 4  ;;  %v3689_v52 = vrot.slane %v3687_v43, 5  ;;  %v3699_v46 = vrot.slane %v3697_v38, 4 }
  0xce   : > { %5923 = vmatmul.mubr.msk.bf16.gmra.mrb[12].mxu0 %vm680_vm3, %v6326_v33  ;;  %v8312_v33 = vcombine.low %v7114_v0, %v7133_v23  ;;  %v6381_v0 = vld [vmem:[%s6498_s28 + $0x8c] sm:$0x1]  ;;  %v3682_v36 = vsel %vm6524_vm4, %v3677_v16, %v3681_v5  ;;  %v3732_v25 = vshrl.u32 %v5417_v30, 16  ;;  %v3735_v8 = vshll.u32 %v5417_v30, 16 }
  0xcf   : > { %5769 = vmatmul.mubr.msk.bf16.gmra.mrb[28].mxu1 %vm680_vm3, %v8311_v62  ;;  %5926 = vmatprep.mubr.msk.bf16.mxu0 %vm680_vm3, %v6327_v48  ;;  %v3693_v48 = vshll.u32 %v7311_v7, 16  ;;  %v1319_v23 = vrot.slane %v6381_v0, 5  ;;  %v5414_v62 = vld [vmem:[%s6498_s28 + $0x48] sm:$0xf]  ;;  %v7354_v0 = vld [vmem:[%s6498_s28 + $0x4c] sm:$0xf]  ;;  %v8314_v38 = vcombine.low %v7118_v29, %v7122_v53  ;;  %v7388_v16 = vcombine.low %v3648_v31, %v3658_v26 }
  0xd0   : > { %5774 = vmatprep.mubr.msk.bf16.mxu1 %vm680_vm3, %v8312_v33  ;;  %v7351_v33 = vld [vmem:[%s6498_s28 + $0x44] sm:$0x1]  ;;  %v3708_v27 = vshrl.u32 %v5414_v62, 16  ;;  %v3711_v15 = vshll.u32 %v5414_v62, 16  ;;  %v3717_v6 = vshll.u32 %v7354_v0, 16  ;;  %v3721_v9 = vshrl.u32 %v7354_v0, 16 }
  0xd1   : > { %8313 = vst [vmem:[#allocation8_spill] sm:$0xff] %v7351_v33  ;;  %v7367_v28 = vrot.slane %v3693_v48, 5  ;;  %v7376_v35 = vsel %vm6750_vm7, %v1318_v54, %v1319_v23  ;;  %v3741_v43 = vshll.u32 %v7365_v24, 16  ;;  %v3745_v48 = vshrl.u32 %v7365_v24, 16  ;;  %v5420_v31 = vld [vmem:[%s6498_s28 + $0x60] sm:$0xf] }
  0xd2   : > { %v3703_v5 = vshll.u32 %v7351_v33, 16  ;;  %v5089_v54 = vrot.slane %v7370_v61, 9  ;;  %v8315_v23 = vcombine.low %v7159_v34, %v7175_v4  ;;  %v7399_v29 = vcombine.low %v3672_v37, %v3682_v36  ;;  %v6330_v26 = vld [vmem:[%s6498_s28 + $0x9c] sm:$0xff]   ;;  %v6331_v30 = vld [vmem:[%s6498_s28 + $0xa8] sm:$0xff]   ;;  %v6382_v36 = vld [vmem:[%s8283_s1 + $0x10] sm:$0xf] }
  0xd3   : > { %v3690_v53 = vor.u32 %v3689_v52, %v3686_v50  ;;  %v3710_v62 = vrot.slane %v3708_v27, 4  ;;  %v7410_v34 = vrot.slane %v3717_v6, 5  ;;  %v3723_v4 = vrot.slane %v3721_v9, 4  ;;  %v6383_v6 = vld [vmem:[%s6498_s28 + $0x94] sm:$0xf] }
  0xd4   : > { %v3734_v27 = vrot.slane %v3732_v25, 4  ;;  %v3737_v37 = vrot.slane %v3735_v8, 5  ;;  %v7419_v50 = vrot.slane %v3741_v43, 5  ;;  %v3747_v52 = vrot.slane %v3745_v48, 4  ;;  %v7425_v9 = vld [vmem:[%s6498_s28 + $0x64] sm:$0xf] }
  0xd5   : > { %8316 = vst [vmem:[#allocation9_spill] sm:$0xff] %v7425_v9  ;;  %v3756_v61 = vshrl.u32 %v5420_v31, 16  ;;  %v7427_v22 = vrot.slane %v3690_v53, 4  ;;  %v1330_v25 = vrot.slane %v6385_v18, 5  ;;  %v3724_v43 = vor.u32 %v3723_v4, %v7410_v34 }
  0xd6   : > { %5927 = vmatmul.mubr.msk.bf16.gmra.mrb[16].mxu0 %vm680_vm3, %v6328_v10  ;;  %v3759_v10 = vshll.u32 %v5420_v31, 16  ;;  %v3738_v31 = vor.u32 %v3737_v37, %v3734_v27  ;;  %v3748_v53 = vor.u32 %v3747_v52, %v7419_v50  ;;  %v8317_v18 = vcombine.low %v7166_v19, %v7179_v58  ;;  %v6332_v37 = vld [vmem:[%s6498_s28 + $0xb4] sm:$0xff]  }
  0xd7   : > { %5775 = vmatmul.mubr.msk.bf16.vlgmr.msra.gmra.mrb[0].mxu1 %vm680_vm3, %v8314_v38  ;;  %5930 = vmatprep.mubr.msk.bf16.mxu0 %vm680_vm3, %v6329_v21  ;;  %v3713_v21 = vrot.slane %v3711_v15, 5  ;;  %v7408_v38 = vld [vmem:[%s6498_s28 + $0x50] sm:$0x1]  ;;  %v7417_v15 = vld [vmem:[%s6498_s28 + $0x5c] sm:$0x1]  ;;  %v8318_v27 = vcombine.low %v7184_v2, %v7188_v1  ;;  %v1332_v52 = vrot.slane %v1330_v25, 4 }
  0xd8   : > { %5807 = vmatpush3.bf16.msra.mxu1 %v7155_v49  ;;  %5778 = vmatprep.mubr.msk.bf16.mxu1 %vm680_vm3, %v8315_v23  ;;  %v3700_v49 = vor.u32 %v3699_v46, %v7367_v28  ;;  %v7421_v46 = vrot.slane %v3703_v5, 5  ;;  %v1323_v23 = vrot.slane %v6383_v6, 5  ;;  %v3727_v48 = vshll.u32 %v7408_v38, 16  ;;  %v1199_v5 = vld [vmem:[%s6498_s28 + $0x9c] sm:$0xe] }
  0xd9   : > { %6273 = vmatprep.subr.msk.bf16.mxu1 %vm729_vm0, %v6382_v36  ;;  %v6384_v36 = vld [vmem:[%s6498_s28 + $0x98] sm:$0x1]  ;;  %v3714_v7 = vor.u32 %v3713_v21, %v3710_v62  ;;  %v3751_v6 = vshll.u32 %v7417_v15, 16  ;;  %v3769_v62 = vshrl.u32 %v7425_v9, 16  ;;  %v3761_v4 = vrot.slane %v3759_v10, 5 }
  0xda   : > { %v1326_v33 = vrot.slane %v6384_v36, 5  ;;  %v3701_v8 = vrot.slane %v3700_v49, 4  ;;  %v3765_v36 = vshll.u32 %v7425_v9, 16  ;;  %v7446_v21 = vsel %vm6750_vm7, %v5089_v54, %v1323_v23  ;;  %v7457_v2 = vld [vmem:[%s6498_s28 + $0x68] sm:$0x1] }
  0xdb   : > { %v3758_v49 = vrot.slane %v3756_v61, 4  ;;  %v3715_v19 = vrot.slane %v3714_v7, 4  ;;  %v5090_v58 = vrot.slane %v1199_v5, 9  ;;  %v3725_v3 = vrot.slane %v3724_v43, 4  ;;  %8319 = vst [vmem:[#allocation10_spill] sm:$0xff] %v7457_v2  ;;  %v6333_v5 = vld [vmem:[%s6498_s28 + $0xc0] sm:$0xff]  }
  0xdc   : > { %v3729_v54 = vrot.slane %v3727_v48, 5  ;;  %v3753_v63 = vrot.slane %v3751_v6, 5  ;;  %v1337_v61 = vrot.slane %v6892_v56, 5  ;;  %v3739_v10 = vrot.slane %v3738_v31, 4  ;;  %v1201_v31 = vld [vmem:[%s6498_s28 + $0xb4] sm:$0xe] }
  0xdd   : > { %v3749_v51 = vrot.slane %v3748_v53, 4  ;;  %v7459_v1 = vrot.slane %v3765_v36, 5  ;;  %v3771_v7 = vrot.slane %v3769_v62, 4  ;;  %v3696_v43 = vsel %vm6524_vm4, %v7427_v22, %v7367_v28  ;;  %v6387_v62 = vld [vmem:[%s6498_s28 + $0xb0] sm:$0x1] }
  0xde   : > { %5931 = vmatmul.mubr.msk.bf16.gmra.mrb[20].mxu0 %vm680_vm3, %v6330_v26  ;;  %v1325_v26 = vrot.slane %v1323_v23, 4  ;;  %v1200_v23 = vld [vmem:[%s6498_s28 + $0xa8] sm:$0xe]  ;;  %v3706_v48 = vsel %vm6524_vm4, %v3701_v8, %v7421_v46  ;;  %v3762_v6 = vor.u32 %v3761_v4, %v3758_v49  ;;  %v3720_v53 = vsel %vm6524_vm4, %v3715_v19, %v7410_v34  ;;  %v5423_v46 = vld [vmem:[%s6498_s28 + $0x6c] sm:$0xf] }
  0xdf   : > { %5779 = vmatmul.mubr.msk.bf16.gmra.mrb[4].mxu1 %vm680_vm3, %v8317_v18  ;;  %5934 = vmatprep.mubr.msk.bf16.mxu0 %vm680_vm3, %v6331_v30  ;;  %v6386_v18 = vld [vmem:[%s6498_s28 + $0xa4] sm:$0x1]  ;;  %v7479_v36 = vsel %vm6750_vm7, %v5090_v58, %v1330_v25  ;;  %v5091_v28 = vrot.slane %v1200_v23, 9  ;;  %v1339_v8 = vrot.slane %v1337_v61, 4  ;;  %v3775_v49 = vshll.u32 %v7457_v2, 16 }
  0xe0   : > { %5782 = vmatprep.mubr.msk.bf16.mxu1 %vm680_vm3, %v8318_v27  ;;  %v1333_v30 = vrot.slane %v6386_v18, 5  ;;  %v7471_v56 = vsel %vm6750_vm7, %v1325_v26, %v1326_v33  ;;  %v3730_v33 = vsel %vm6524_vm4, %v3725_v3, %v3729_v54  ;;  %v1340_v26 = vrot.slane %v6387_v62, 5  ;;  %v5426_v18 = vld [vmem:[%s6498_s28 + $0x78] sm:$0xf]  ;;  %v7534_v54 = vld [vmem:[%s6498_s28 + $0xbc] sm:$0x1] }
  0xe1   : > { %v3744_v34 = vsel %vm6524_vm4, %v3739_v10, %v7419_v50  ;;  %v3754_v25 = vsel %vm6524_vm4, %v3749_v51, %v3753_v63  ;;  %v3772_v4 = vor.u32 %v3771_v7, %v7459_v1  ;;  %v5092_v27 = vrot.slane %v1201_v31, 9  ;;  %v7508_v51 = vld [vmem:[%s6498_s28 + $0x70] sm:$0xf]  ;;  %v7538_v10 = vld [vmem:[%s6498_s28 + $0x7c] sm:$0xf] }
  0xe2   : > { %v7483_v22 = vsel %vm6750_vm7, %v1332_v52, %v1333_v30  ;;  %v8321_v3 = vcombine.low %v7201_v45, %v7205_v59  ;;  %v7504_v19 = vrot.slane %v3762_v6, 4  ;;  %v1344_v50 = vrot.slane %v6916_v42, 5  ;;  %8322 = vst [vmem:[#allocation12_spill] sm:$0xff] %v7508_v51  ;;  %8324 = vst [vmem:[#allocation13_spill] sm:$0xff] %v7538_v10  ;;  %v5429_v7 = vld [vmem:[%s6498_s28 + $0x84] sm:$0xf] }
  0xe3   : > { %8320 = vst [vmem:[#allocation11_spill] sm:$0xff] %v7483_v22  ;;  %v3780_v63 = vshrl.u32 %v5423_v46, 16  ;;  %v8323_v45 = vcombine.low %v7209_v47, %v7236_v41  ;;  %v7516_v58 = vcombine.low %v3720_v53, %v3730_v33  ;;  %v7522_v42 = vsel %vm6750_vm7, %v5091_v28, %v1337_v61  ;;  %v6334_v61 = vld [vmem:[%s6498_s28 + $0xcc] sm:$0xff]   ;;  %v7550_v31 = vld [vmem:[%s6498_s28 + $0x88] sm:$0xf] }
  0xe4   : > { %v7525_v30 = vcombine.low %v3744_v34, %v3754_v25  ;;  %v7529_v47 = vsel %vm6750_vm7, %v1339_v8, %v1340_v26  ;;  %v7531_v41 = vrot.slane %v3775_v49, 5  ;;  %v3789_v6 = vshll.u32 %v7508_v51, 16  ;;  %8325 = vst [vmem:[#allocation14_spill] sm:$0xff] %v7550_v31  ;;  %v5432_v62 = vld [vmem:[%s6498_s28 + $0x90] sm:$0xf] }
  0xe5   : > { %v7556_v28 = vrot.slane %v1344_v50, 4  ;;  %v7558_v33 = vrot.slane %v3780_v63, 4  ;;  %v3793_v8 = vshrl.u32 %v7508_v51, 16  ;;  %v3804_v26 = vshrl.u32 %v5426_v18, 16  ;;  %v7565_v25 = vld [vmem:[%s6498_s28 + $0x94] sm:$0xf] }
  0xe6   : > { %5935 = vmatmul.mubr.msk.bf16.gmra.mrb[24].mxu0 %vm680_vm3, %v6332_v37  ;;  %v7502_v37 = vcombine.low %v3696_v43, %v3706_v48  ;;  %v7546_v43 = vsel %vm6750_vm7, %v5092_v27, %v1344_v50  ;;  %v3783_v48 = vshll.u32 %v5423_v46, 16  ;;  %v3807_v49 = vshll.u32 %v5426_v18, 16  ;;  %8326 = vst [vmem:[#allocation15_spill] sm:$0xff] %v7565_v25  ;;  %v7603_v2 = vld [vmem:[%s6498_s28 + $0x8c] sm:$0x1] }
  0xe7   : > { %5783 = vmatmul.mubr.msk.bf16.gmra.mrb[8].mxu1 %vm680_vm3, %v8321_v3  ;;  %5938 = vmatprep.mubr.msk.bf16.mxu0 %vm680_vm3, %v6333_v5  ;;  %v7542_v5 = vrot.slane %v3772_v4, 4  ;;  %v3813_v46 = vshll.u32 %v7538_v10, 16  ;;  %v3817_v34 = vshrl.u32 %v7538_v10, 16  ;;  %v3828_v4 = vshrl.u32 %v5429_v7, 16 }
  0xe8   : > { %5786 = vmatprep.mubr.msk.bf16.mxu1 %vm680_vm3, %v8323_v45  ;;  %v3831_v27 = vshll.u32 %v5429_v7, 16  ;;  %v3837_v3 = vshll.u32 %v7550_v31, 16  ;;  %v3841_v50 = vshrl.u32 %v7550_v31, 16  ;;  %v7575_v45 = vld [vmem:[%s6498_s28 + $0x74] sm:$0x1]  ;;  %v3785_v18 = vrot.slane %v3783_v48, 5 }
  0xe9   : > { %v3852_v52 = vshrl.u32 %v5432_v62, 16  ;;  %v3855_v53 = vshll.u32 %v5432_v62, 16  ;;  %v8327_v7 = vcombine.low %v7220_v60, %v7245_v44  ;;  %v3795_v59 = vrot.slane %v3793_v8, 4  ;;  %v5435_v48 = vld [vmem:[%s6498_s28 + $0x9c] sm:$0xf] }
  0xea   : > { %v3861_v63 = vshll.u32 %v7565_v25, 16  ;;  %v3865_v23 = vshrl.u32 %v7565_v25, 16  ;;  %v8328_v62 = vcombine.low %v7260_v17, %v7264_v57  ;;  %v7593_v44 = vld [vmem:[%s6498_s28 + $0x80] sm:$0x1]  ;;  %v3806_v60 = vrot.slane %v3804_v26, 4 }
  0xeb   : > { %8329 = vst [vmem:[#allocation16_spill] sm:$0xff] %v7593_v44  ;;  %v3830_v31 = vrot.slane %v3828_v4, 4  ;;  %v3833_v8 = vrot.slane %v3831_v27, 5  ;;  %v7597_v10 = vrot.slane %v3837_v3, 5  ;;  %v3843_v51 = vrot.slane %v3841_v50, 4 }
  0xec   : > { %v7600_v25 = vld [vmem:[%s6498_s28 + $0xa0] sm:$0xf]  ;;  %v3854_v17 = vrot.slane %v3852_v52, 4  ;;  %v3857_v57 = vrot.slane %v3855_v53, 5  ;;  %v3879_v9 = vshll.u32 %v5435_v48, 16  ;;  %v3786_v26 = vor.u32 %v3785_v18, %v7558_v33 }
  0xed   : > { %v3823_v27 = vshll.u32 %v7593_v44, 16  ;;  %v7612_v3 = vld [vmem:[%s6498_s28 + $0x98] sm:$0x1]  ;;  %v3885_v50 = vshll.u32 %v7600_v25, 16  ;;  %v3889_v52 = vshrl.u32 %v7600_v25, 16  ;;  %v3834_v22 = vor.u32 %v3833_v8, %v3830_v31 }
  0xee   : > { %5939 = vmatmul.mubr.msk.bf16.gmra.mrb[28].mxu0 %vm680_vm3, %v6334_v61  ;;  %v7583_v61 = vrot.slane %v3789_v6, 5  ;;  %v3819_v6 = vrot.slane %v3817_v34, 4  ;;  %v3867_v34 = vrot.slane %v3865_v23, 4  ;;  %v3847_v33 = vshll.u32 %v7603_v2, 16 }
  0xef   : > { %5787 = vmatmul.mubr.msk.bf16.gmra.mrb[12].mxu1 %vm680_vm3, %v8327_v7  ;;  %5944 = vmatprep.mubr.msk.bf16.mxu0 %vm680_vm3, %v7325_v20  ;;  %v3809_v7 = vrot.slane %v3807_v49, 5  ;;  %v7595_v20 = vrot.slane %v3813_v46, 5  ;;  %v3799_v49 = vshll.u32 %v7575_v45, 16  ;;  %v7607_v46 = vrot.slane %v3861_v63, 5 }
  0xf0   : > { %5790 = vmatprep.mubr.msk.bf16.mxu1 %vm680_vm3, %v8328_v62  ;;  %v3876_v62 = vshrl.u32 %v5435_v48, 16  ;;  %v3796_v4 = vor.u32 %v3795_v59, %v7583_v61  ;;  %v3844_v23 = vor.u32 %v3843_v51, %v7597_v10  ;;  %v3858_v59 = vor.u32 %v3857_v57, %v3854_v17  ;;  %v7645_v57 = vld [vmem:[%s6498_s28 + $0xa4] sm:$0x1] }
  0xf1   : > { %v3810_v53 = vor.u32 %v3809_v7, %v3806_v60  ;;  %v3820_v48 = vor.u32 %v3819_v6, %v7595_v20  ;;  %v3881_v18 = vrot.slane %v3879_v9, 5  ;;  %v8330_v44 = vcombine.low %v7272_v11, %v7276_v40 }
  0xf2   : > { %v3878_v63 = vrot.slane %v3876_v62, 4  ;;  %v8331_v31 = vrot.slane %v7534_v54, 5  ;;  %v3801_v51 = vrot.slane %v3799_v49, 5  ;;  %v3868_v60 = vor.u32 %v3867_v34, %v7607_v46  ;;  %v7648_v34 = vld [vmem:[%s6498_s28 + $0xac] sm:$0xf] }
  0xf3   : > { %v3871_v9 = vshll.u32 %v7612_v3, 16  ;;  %v8332_v11 = vcombine.low %v7344_v39, %v7348_v55  ;;  %v3787_v40 = vrot.slane %v3786_v26, 4  ;;  %v7641_v54 = vrot.slane %v3885_v50, 5 }
  0xf4   : > { %v3811_v7 = vrot.slane %v3810_v53, 4  ;;  %v3821_v6 = vrot.slane %v3820_v48, 4  ;;  %v3825_v8 = vrot.slane %v3823_v27, 5  ;;  %v3849_v17 = vrot.slane %v3847_v33, 5  ;;  %v7658_v48 = vld [vmem:[%s6498_s28 + $0xb0] sm:$0x1] }
  0xf5   : > { %v3835_v39 = vrot.slane %v3834_v22, 4  ;;  %v3845_v55 = vrot.slane %v3844_v23, 4  ;;  %v3859_v62 = vrot.slane %v3858_v59, 4  ;;  %v3882_v49 = vor.u32 %v3881_v18, %v3878_v63 }
  0xf6   : > { %5945 = vmatmul.mubr.msk.bf16.vlgmr.msra.gmra.mrb[0].mxu0 %vm680_vm3, %v7388_v16  ;;  %v7631_v16 = vsel %vm6750_vm7, %v7556_v28, %v8331_v31  ;;  %v3891_v28 = vrot.slane %v3889_v52, 4  ;;  %v3873_v26 = vrot.slane %v3871_v9, 5  ;;  %v3792_v52 = vsel %vm6524_vm4, %v3787_v40, %v7583_v61 }
  0xf7   : > { %5791 = vmatmul.mubr.msk.bf16.gmra.mrb[16].mxu1 %vm680_vm3, %v8330_v44  ;;  %5977 = vmatpush3.bf16.msra.mxu0 %v7329_v14  ;;  %v3797_v14 = vrot.slane %v3796_v4, 4  ;;  %v5438_v44 = vld [vmem:[%s6498_s28 + $0xa8] sm:$0xf]  ;;  %v3895_v22 = vshll.u32 %v7645_v57, 16  ;;  %v3816_v33 = vsel %vm6524_vm4, %v3811_v7, %v7595_v20  ;;  %v3826_v23 = vsel %vm6524_vm4, %v3821_v6, %v3825_v8 }
  0xf8   : > { %5794 = vmatprep.mubr.msk.bf16.mxu1 %vm680_vm3, %v8332_v11  ;;  %5948 = vmatprep.mubr.msk.bf16.mxu0 %vm680_vm3, %v7399_v29  ;;  %v3869_v29 = vrot.slane %v3868_v60, 4  ;;  %v3900_v4 = vshrl.u32 %v5438_v44, 16  ;;  %v3903_v50 = vshll.u32 %v5438_v44, 16  ;;  %v3892_v53 = vor.u32 %v3891_v28, %v7641_v54  ;;  %v5487_v11 = vld [vmem:[%s6498_s28 + $0x48] sm:$0xe] }
  0xf9   : > { %v3802_v27 = vsel %vm6524_vm4, %v3797_v14, %v3801_v51  ;;  %v3909_v59 = vshll.u32 %v7648_v34, 16  ;;  %v3913_v61 = vshrl.u32 %v7648_v34, 16  ;;  %v3840_v63 = vsel %vm6524_vm4, %v3835_v39, %v7597_v10  ;;  %v7723_v39 = vld [vmem:[%s6498_s28 + $0xb8] sm:$0xf] }
  0xfa   : > { %v3850_v18 = vsel %vm6524_vm4, %v3845_v55, %v3849_v17  ;;  %v3864_v20 = vsel %vm6524_vm4, %v3859_v62, %v7607_v46  ;;  %v3883_v31 = vrot.slane %v3882_v49, 4  ;;  %v8333_v51 = vcombine.low %v7361_v12, %v7376_v35 }
  0xfb   : > { %v3902_v10 = vrot.slane %v3900_v4, 4  ;;  %v3905_v60 = vrot.slane %v3903_v50, 5  ;;  %v3919_v9 = vshll.u32 %v7658_v48, 16  ;;  %v8334_v46 = vcombine.low %v7446_v21, %v7471_v56  ;;  %v5441_v21 = vld [vmem:[%s6498_s28 + $0xb4] sm:$0xf] }
  0xfc   : > { %v5108_v12 = vcombine.low %v7522_v42, %v7529_v47  ;;  %v8335_v35 = vsel %vm6524_vm4, %v7542_v5, %v7531_v41  ;;  %v3893_v14 = vrot.slane %v3892_v53, 4  ;;  %v3897_v28 = vrot.slane %v3895_v22, 5  ;;  %v5489_v4 = vld [vmem:[%s6498_s28 + $0x60] sm:$0xe]  ;;  %v5490_v53 = vld [vmem:[%s6498_s28 + $0x6c] sm:$0xe] }
  0xfd   : > { %v5109_v56 = vcombine.low %v7546_v43, %v7631_v16  ;;  %v7706_v44 = vcombine.low %v3792_v52, %v3802_v27  ;;  %v7708_v42 = vrot.slane %v3909_v59, 5  ;;  %v3915_v47 = vrot.slane %v3913_v61, 4  ;;  %v8344_v16 = vld [vmem:[#allocation4_spill] sm:$0xff] }
  0xfe   : > { %5949 = vmatmul.mubr.msk.bf16.gmra.mrb[4].mxu0 %vm680_vm3, %v7502_v37  ;;  %v3874_v37 = vsel %vm6524_vm4, %v3869_v29, %v3873_v26  ;;  %v7710_v41 = vcombine.low %v3816_v33, %v3826_v23  ;;  %v7712_v5 = vcombine.low %v3840_v63, %v3850_v18  ;;  %v3888_v6 = vsel %vm6524_vm4, %v3883_v31, %v7641_v54  ;;  %v8337_v23 = vld [vmem:[#allocation11_spill] sm:$0xff]  ;;  %v5444_v63 = vld [vmem:[%s6498_s28 + $0xc0] sm:$0xf]  ;;  %v8339_v18 = vld [vmem:[#allocation9_spill] sm:$0xff] }
  0xff   : > { %5795 = vmatmul.mubr.msk.bf16.gmra.mrb[20].mxu1 %vm680_vm3, %v8333_v51  ;;  %5952 = vmatprep.mubr.msk.bf16.mxu0 %vm680_vm3, %v7516_v58  ;;  %v8336_v58 = vsel %vm6524_vm4, %v7504_v19, %v7459_v1  ;;  %v7714_v7 = vcombine.low %v3864_v20, %v3874_v37  ;;  %v5503_v1 = vrot.slane %v5487_v11, 9  ;;  %v5488_v19 = vld [vmem:[%s6498_s28 + $0x54] sm:$0xe]  ;;  %v3906_v8 = vor.u32 %v3905_v60, %v3902_v10  ;;  %v8340_v31 = vld [vmem:[#allocation10_spill] sm:$0xff] }
 0x100   : > { %5798 = vmatprep.mubr.msk.bf16.mxu1 %vm680_vm3, %v8334_v46  ;;  %v5457_v40 = vcombine.low %v8336_v58, %v8335_v35  ;;  %v7720_v17 = vrot.slane %v3919_v9, 5  ;;  %v3924_v55 = vshrl.u32 %v5441_v21, 16  ;;  %v3898_v62 = vsel %vm6524_vm4, %v3893_v14, %v3897_v28  ;;  %v8341_v9 = vld [vmem:[#allocation12_spill] sm:$0xff]  ;;  %v7772_v35 = vld [vmem:[%s6498_s28 + $0xbc] sm:$0x1] }
 0x101   : > { %v3927_v49 = vshll.u32 %v5441_v21, 16  ;;  %v4383_v29 = vrot.slane %v7354_v0, 5  ;;  %v4386_v26 = vrot.slane %v7408_v38, 5  ;;  %v3916_v50 = vor.u32 %v3915_v47, %v7708_v42  ;;  %v7775_v58 = vld [vmem:[%s6498_s28 + $0xc4] sm:$0xf] }
 0x102   : > { %v5504_v52 = vrot.slane %v5488_v19, 9  ;;  %v4390_v54 = vrot.slane %v7365_v24, 5  ;;  %v4393_v27 = vrot.slane %v7417_v15, 5  ;;  %v3933_v22 = vshll.u32 %v7723_v39, 16  ;;  %v5491_v19 = vld [vmem:[%s6498_s28 + $0x78] sm:$0xe] }
 0x103   : > { %v3937_v33 = vshrl.u32 %v7723_v39, 16  ;;  %v7740_v0 = vsel %vm6750_vm7, %v5503_v1, %v4383_v29  ;;  %v4385_v38 = vrot.slane %v4383_v29, 4  ;;  %v8338_v59 = vcombine.low %v7479_v36, %v8337_v23  ;;  %v8342_v23 = vld [vmem:[#allocation13_spill] sm:$0xff] }
 0x104   : > { %v7747_v24 = vcombine.low %v3888_v6, %v3898_v62  ;;  %v7751_v15 = vsel %vm6750_vm7, %v5504_v52, %v4390_v54  ;;  %v5505_v61 = vrot.slane %v5489_v4, 9  ;;  %v4397_v20 = vrot.slane %v8339_v18, 5  ;;  %v6335_v6 = vld [vmem:[%s6498_s28 + $0xc] sm:$0xff]  }
 0x105   : > { %v7757_v36 = vsel %vm6750_vm7, %v4385_v38, %v4386_v26  ;;  %v4400_v51 = vrot.slane %v8340_v31, 5  ;;  %v5506_v37 = vrot.slane %v5490_v53, 9  ;;  %v4404_v11 = vrot.slane %v8341_v9, 5 }
 0x106   : > { %5953 = vmatmul.mubr.msk.bf16.gmra.mrb[8].mxu0 %vm680_vm3, %v7525_v30  ;;  %v4392_v30 = vrot.slane %v4390_v54, 4  ;;  %v5520_v10 = vcombine.low %v7740_v0, %v7757_v36  ;;  %v4407_v46 = vrot.slane %v7575_v45, 5  ;;  %v7781_v14 = vsel %vm6750_vm7, %v5505_v61, %v4397_v20 }
 0x107   : > { %5799 = vmatmul.mubr.msk.bf16.gmra.mrb[24].mxu1 %vm680_vm3, %v8338_v59  ;;  %5956 = vmatprep.mubr.msk.bf16.mxu0 %vm680_vm3, %v5457_v40  ;;  %v4399_v28 = vrot.slane %v4397_v20, 4  ;;  %v7783_v21 = vrot.slane %v3924_v55, 4  ;;  %v3948_v47 = vshrl.u32 %v5444_v63, 16  ;;  %v7787_v45 = vsel %vm6750_vm7, %v5506_v37, %v4404_v11  ;;  %v5218_v55 = vld [vmem:[%s6498_s28 + $0x78] sm:$0xf]  ;;  %v8343_v59 = vld [vmem:[#allocation16_spill] sm:$0xff] }
 0x108   : > { %5802 = vmatprep.mubr.msk.bf16.mxu1 %vm680_vm3, %v5108_v12  ;;  %v7765_v60 = vsel %vm6750_vm7, %v4392_v30, %v4393_v27  ;;  %v7769_v12 = vrot.slane %v3906_v8, 4  ;;  %v4406_v1 = vrot.slane %v4404_v11, 4  ;;  %v7791_v8 = vrot.slane %v3916_v50, 4 }
 0x109   : > { %v5521_v40 = vcombine.low %v7751_v15, %v7765_v60  ;;  %v7793_v62 = vrot.slane %v3927_v49, 5  ;;  %v3951_v29 = vshll.u32 %v5444_v63, 16  ;;  %v7797_v26 = vsel %vm6750_vm7, %v4399_v28, %v4400_v51  ;;  %v8346_v28 = vld [vmem:[#allocation14_spill] sm:$0xff] }
 0x10a   : > { %v7800_v4 = vrot.slane %v3933_v22, 5  ;;  %v7802_v52 = vrot.slane %v3937_v33, 4  ;;  %v5522_v54 = vcombine.low %v7781_v14, %v7797_v26  ;;  %v7808_v27 = vsel %vm6750_vm7, %v4406_v1, %v4407_v46  ;;  %v5492_v33 = vld [vmem:[%s6498_s28 + $0x84] sm:$0xe]  ;;  %v6336_v1 = vld [vmem:[%s6498_s28 + $0x18] sm:$0xff]  }
 0x10b   : > { %v3943_v49 = vshll.u32 %v7772_v35, 16  ;;  %v3957_v50 = vshll.u32 %v7775_v58, 16  ;;  %v5523_v53 = vcombine.low %v7787_v45, %v7808_v27  ;;  %v5507_v22 = vrot.slane %v5491_v19, 9  ;;  %v6398_v60 = vld [vmem:[%s6498_s28 + $0xa0] sm:$0xf] }
 0x10c   : > { %v3950_v38 = vrot.slane %v3948_v47, 4  ;;  %v4414_v30 = vrot.slane %v8343_v59, 5  ;;  %v2270_v61 = vshrl.u32 %v5218_v55, 16  ;;  %v3953_v63 = vrot.slane %v3951_v29, 5  ;;  %v5447_v29 = vld [vmem:[%s6498_s28 + $0xcc] sm:$0xf] }
 0x10d   : > { %v3961_v18 = vshrl.u32 %v7775_v58, 16  ;;  %v2273_v43 = vshll.u32 %v5218_v55, 16  ;;  %v5508_v37 = vrot.slane %v5492_v33, 9  ;;  %v3912_v9 = vsel %vm6524_vm4, %v7769_v12, %v7708_v42  ;;  %v7851_v55 = vld [vmem:[%s6498_s28 + $0xd0] sm:$0xf] }
 0x10e   : > { %5957 = vmatmul.mubr.msk.bf16.gmra.mrb[12].mxu0 %vm680_vm3, %v7706_v44  ;;  %v4411_v44 = vrot.slane %v8342_v23, 5  ;;  %v2272_v51 = vrot.slane %v2270_v61, 4  ;;  %v3930_v11 = vor.u32 %v7793_v62, %v7783_v21  ;;  %v4418_v47 = vrot.slane %v8346_v28, 5  ;;  %v6337_v21 = vld [vmem:[%s6498_s28 + $0x24] sm:$0xff]   ;;  %v6402_v27 = vld [vmem:[%s6498_s28 + $0xac] sm:$0xf] }
 0x10f   : > { %5803 = vmatmul.mubr.msk.bf16.gmra.mrb[28].mxu1 %vm680_vm3, %v5109_v56  ;;  %5960 = vmatprep.mubr.msk.bf16.mxu0 %vm680_vm3, %v7710_v41  ;;  %v8345_v56 = vld [vmem:[#allocation5_spill] sm:$0xff]  ;;  %v2275_v46 = vrot.slane %v2273_v43, 5  ;;  %v3922_v19 = vsel %vm6524_vm4, %v7791_v8, %v7720_v17  ;;  %v4421_v12 = vrot.slane %v7603_v2, 5  ;;  %v7859_v62 = vrot.slane %v3957_v50, 5  ;;  %v5493_v8 = vld [vmem:[%s6498_s28 + $0x90] sm:$0xe] }
 0x110   : > { %5808 = vmatprep.mubr.msk.bf16.mxu1 %vm680_vm3, %v6335_v6  ;;  %v2292_v41 = vsel %vm6524_vm4, %v8345_v56, %v8344_v16  ;;  %v7833_v20 = vsel %vm6750_vm7, %v5507_v22, %v4411_v44  ;;  %v4413_v31 = vrot.slane %v4411_v44, 4  ;;  %v3940_v6 = vor.u32 %v7802_v52, %v7800_v4  ;;  %v7865_v52 = vld [vmem:[%s6498_s28 + $0xc8] sm:$0x1]  ;;  %v8348_v16 = vld [vmem:[#allocation2_spill] sm:$0xff] }
 0x111   : > { %v3963_v22 = vrot.slane %v3961_v18, 4  ;;  %v2276_v17 = vor.u32 %v2275_v46, %v2272_v51  ;;  %v3945_v23 = vrot.slane %v3943_v49, 5  ;;  %v3954_v44 = vor.u32 %v3953_v63, %v3950_v38  ;;  %v8349_v51 = vld [vmem:[#allocation3_spill] sm:$0xff] }
 0x112   : > { %v7855_v42 = vsel %vm6750_vm7, %v4413_v31, %v4414_v30  ;;  %v7869_v59 = vsel %vm6750_vm7, %v5508_v37, %v4418_v47  ;;  %v4420_v30 = vrot.slane %v4418_v47, 4  ;;  %v3972_v2 = vshrl.u32 %v5447_v29, 16 }
 0x113   : > { %v5524_v33 = vcombine.low %v7833_v20, %v7855_v42  ;;  %v3975_v50 = vshll.u32 %v5447_v29, 16  ;;  %v3981_v61 = vshll.u32 %v7851_v55, 16  ;;  %v2277_v18 = vrot.slane %v2276_v17, 4  ;;  %v6338_v29 = vld [vmem:[%s6498_s28 + $0x30] sm:$0xff]  }
 0x114   : > { %v3985_v49 = vshrl.u32 %v7851_v55, 16  ;;  %v7880_v38 = vsel %vm6750_vm7, %v4420_v30, %v4421_v12  ;;  %v5509_v63 = vrot.slane %v5493_v8, 9  ;;  %v3964_v56 = vor.u32 %v3963_v22, %v7859_v62 }
 0x115   : > { %v3967_v31 = vshll.u32 %v7865_v52, 16  ;;  %v5525_v37 = vcombine.low %v7869_v59, %v7880_v38  ;;  %v5463_v46 = vcombine.low %v3912_v9, %v3922_v19  ;;  %v3931_v28 = vrot.slane %v3930_v11, 4  ;;  %v5494_v11 = vld [vmem:[%s6498_s28 + $0x9c] sm:$0xe] }
 0x116   : > { %5961 = vmatmul.mubr.msk.bf16.gmra.mrb[16].mxu0 %vm680_vm3, %v7712_v5  ;;  %v8347_v5 = vld [vmem:[#allocation15_spill] sm:$0xff]  ;;  %v3941_v47 = vrot.slane %v3940_v6, 4  ;;  %v3955_v12 = vrot.slane %v3954_v44, 4  ;;  %v4428_v8 = vrot.slane %v7612_v3, 5  ;;  %v3974_v30 = vrot.slane %v3972_v2, 4  ;;  %v6339_v19 = vld [vmem:[%s6498_s28 + $0x3c] sm:$0xff]  }
 0x117   : > { %5809 = vmatmul.mubr.msk.bf16.vlgmr.msra.gmra.mrb[0].mxu1 %vm680_vm3, %v6336_v1  ;;  %5964 = vmatprep.mubr.msk.bf16.mxu0 %vm680_vm3, %v7714_v7  ;;  %v4425_v43 = vrot.slane %v8347_v5, 5  ;;  %v2282_v7 = vsel %vm6524_vm4, %v2277_v18, %v8349_v51  ;;  %v3977_v18 = vrot.slane %v3975_v50, 5  ;;  %v7903_v5 = vrot.slane %v3981_v61, 5 }
 0x118   : > { %6011 = vmatpush3.bf16.msra.mxu1 %v8348_v16  ;;  %5812 = vmatprep.mubr.msk.bf16.mxu1 %vm680_vm3, %v6337_v21  ;;  %v7892_v1 = vcombine.low %v2282_v7, %v2292_v41  ;;  %v7896_v21 = vld [vmem:[%s6498_s28 + $0xd4] sm:$0x1]  ;;  %v3987_v9 = vrot.slane %v3985_v49, 4  ;;  %v3965_v41 = vrot.slane %v3964_v56, 4  ;;  %v3969_v6 = vrot.slane %v3967_v31, 5 }
 0x119   : > { %v7900_v22 = vsel %vm6750_vm7, %v5509_v63, %v4425_v43  ;;  %v4427_v17 = vrot.slane %v4425_v43, 4  ;;  %v3936_v63 = vsel %vm6524_vm4, %v3931_v28, %v7800_v4  ;;  %v3946_v2 = vsel %vm6524_vm4, %v3941_v47, %v3945_v23  ;;  %v6389_v16 = vld [vmem:[%s6498_s28 + $0x1c] sm:$0xf]  ;;  %v5495_v28 = vld [vmem:[%s6498_s28 + $0xa8] sm:$0xe] }
 0x11a   : > { %v3991_v50 = vshll.u32 %v7896_v21, 16  ;;  %v5510_v61 = vrot.slane %v5494_v11, 9  ;;  %v4432_v49 = vrot.slane %v7600_v25, 5  ;;  %v3960_v4 = vsel %vm6524_vm4, %v3955_v12, %v7859_v62  ;;  %v5483_v62 = vld [vmem:[%s6498_s28 + $0x18] sm:$0xe]  ;;  %v6340_v47 = vld [vmem:[%s6498_s28 + $0x48] sm:$0xff]  }
 0x11b   : > { %v7909_v44 = vsel %vm6750_vm7, %v4427_v17, %v4428_v8  ;;  %v3988_v43 = vor.u32 %v3987_v9, %v7903_v5  ;;  %v4435_v23 = vrot.slane %v7645_v57, 5  ;;  %v3970_v25 = vsel %vm6524_vm4, %v3965_v41, %v3969_v6  ;;  %v6390_v11 = vld [vmem:[%s6498_s28 + $0x20] sm:$0x1] }
 0x11c   : > { %v5526_v3 = vcombine.low %v7900_v22, %v7909_v44  ;;  %v4355_v56 = vrot.slane %v6389_v16, 5  ;;  %v7935_v31 = vsel %vm6750_vm7, %v5510_v61, %v4432_v49  ;;  %v4434_v51 = vrot.slane %v4432_v49, 4  ;;  %v5496_v49 = vld [vmem:[%s6498_s28 + $0xb4] sm:$0xe] }
 0x11d   : > { %v5464_v7 = vcombine.low %v3936_v63, %v3946_v2  ;;  %v3989_v17 = vrot.slane %v3988_v43, 4  ;;  %v5511_v41 = vrot.slane %v5495_v28, 9  ;;  %v4439_v6 = vrot.slane %v7648_v34, 5  ;;  %v5484_v2 = vld [vmem:[%s6498_s28 + $0x24] sm:$0xe] }
 0x11e   : > { %5965 = vmatmul.mubr.msk.bf16.gmra.mrb[20].mxu0 %vm680_vm3, %v7747_v24  ;;  %v3978_v24 = vor.u32 %v3977_v18, %v3974_v30  ;;  %v7940_v57 = vsel %vm6750_vm7, %v4434_v51, %v4435_v23  ;;  %v6341_v30 = vld [vmem:[%s6498_s28 + $0x54] sm:$0xff]   ;;  %v5499_v18 = vrot.slane %v5483_v62, 9  ;;  %v4357_v9 = vrot.slane %v4355_v56, 4  ;;  %v6393_v28 = vld [vmem:[%s6498_s28 + $0x2c] sm:$0x1] }
 0x11f   : > { %5813 = vmatmul.mubr.msk.bf16.gmra.mrb[4].mxu1 %vm680_vm3, %v6338_v29  ;;  %5968 = vmatprep.mubr.msk.bf16.mxu0 %vm680_vm3, %v5463_v46  ;;  %v3993_v46 = vrot.slane %v3991_v50, 5  ;;  %v5465_v29 = vcombine.low %v3960_v4, %v3970_v25  ;;  %v5527_v8 = vcombine.low %v7935_v31, %v7940_v57  ;;  %v4442_v63 = vrot.slane %v7658_v48, 5  ;;  %v6391_v50 = vld [vmem:[%s6498_s28 + $0x28] sm:$0xf]  ;;  %v5485_v25 = vld [vmem:[%s6498_s28 + $0x30] sm:$0xe] }
 0x120   : > { %5816 = vmatprep.mubr.msk.bf16.mxu1 %vm680_vm3, %v6339_v19  ;;  %v3979_v12 = vrot.slane %v3978_v24, 4  ;;  %v4358_v19 = vrot.slane %v6390_v11, 5  ;;  %v4362_v61 = vrot.slane %v6391_v50, 5  ;;  %v7963_v48 = vsel %vm6750_vm7, %v5511_v41, %v4439_v6  ;;  %v6343_v11 = vld [vmem:[%s6498_s28 + $0x6c] sm:$0xff]   ;;  %v8350_v41 = vld [vmem:[#allocation6_spill] sm:$0xff] }
 0x121   : > { %v3994_v34 = vsel %vm6524_vm4, %v3989_v17, %v3993_v46  ;;  %v4441_v24 = vrot.slane %v4439_v6, 4  ;;  %v4356_v43 = vsel %vm6750_vm7, %v5499_v18, %v4355_v56  ;;  %v5500_v51 = vrot.slane %v5484_v2, 9  ;;  %v5497_v50 = vld [vmem:[%s6498_s28 + $0xc0] sm:$0xe]  ;;  %v6407_v31 = vld [vmem:[%s6498_s28 + $0xc8] sm:$0x1] }
 0x122   : > { %v3984_v4 = vsel %vm6524_vm4, %v3979_v12, %v7903_v5  ;;  %v4359_v23 = vsel %vm6750_vm7, %v4357_v9, %v4358_v19  ;;  %v6392_v5 = vld [vmem:[%s6498_s28 + $0x34] sm:$0xf]  ;;  %v6342_v12 = vld [vmem:[%s6498_s28 + $0x60] sm:$0xff]   ;;  %v5501_v18 = vrot.slane %v5485_v25, 9  ;;  %v4449_v9 = vrot.slane %v7772_v35, 5 }
 0x123   : > { %v4369_v16 = vrot.slane %v6392_v5, 5  ;;  %v7974_v62 = vsel %vm6750_vm7, %v4441_v24, %v4442_v63  ;;  %v5466_v46 = vcombine.low %v3984_v4, %v3994_v34  ;;  %v5516_v17 = vcombine.low %v4356_v43, %v4359_v23  ;;  %v5486_v24 = vld [vmem:[%s6498_s28 + $0x3c] sm:$0xe] }
 0x124   : > { %v5528_v56 = vcombine.low %v7963_v48, %v7974_v62  ;;  %v4372_v6 = vrot.slane %v8350_v41, 5  ;;  %v4363_v35 = vsel %vm6750_vm7, %v5500_v51, %v4362_v61  ;;  %v5513_v5 = vrot.slane %v5497_v50, 9 }
 0x125   : > { %v4371_v19 = vrot.slane %v4369_v16, 4  ;;  %v4370_v23 = vsel %vm6750_vm7, %v5501_v18, %v4369_v16  ;;  %v4456_v51 = vrot.slane %v7865_v52, 5  ;;  %v2433_v57 = vshll.u32 %v6407_v31, 16 }
 0x126   : > { %5969 = vmatmul.mubr.msk.bf16.gmra.mrb[24].mxu0 %vm680_vm3, %v5464_v7  ;;  %v5512_v7 = vrot.slane %v5496_v49, 9 }
 0x127   : > { %5817 = vmatmul.mubr.msk.bf16.gmra.mrb[8].mxu1 %vm680_vm3, %v6340_v47  ;;  %5972 = vmatprep.mubr.msk.bf16.mxu0 %vm680_vm3, %v5465_v29  ;;  %v4365_v47 = vrot.slane %v6393_v28, 5  ;;  %v4446_v29 = vrot.slane %v7723_v39, 5  ;;  %v8351_v39 = vld [vmem:[#allocation7_spill] sm:$0xff]  ;;  %v4373_v25 = vsel %vm6750_vm7, %v4371_v19, %v4372_v6  ;;  %v5502_v28 = vrot.slane %v5486_v24, 9 }
 0x128   : > { %5820 = vmatprep.mubr.msk.bf16.mxu1 %vm680_vm3, %v6341_v30  ;;  %v4364_v30 = vrot.slane %v4362_v61, 4  ;;  %v4376_v49 = vrot.slane %v8351_v39, 5  ;;  %v4453_v61 = vrot.slane %v7775_v58, 5  ;;  %v6394_v39 = vld [vmem:[%s6498_s28 + $0x70] sm:$0xf]  ;;  %v4460_v24 = vrot.slane %v7851_v55, 5 }
 0x129   : > { %v7986_v63 = vsel %vm6750_vm7, %v5512_v7, %v4446_v29  ;;  %v4448_v2 = vrot.slane %v4446_v29, 4  ;;  %v5215_v7 = vld [vmem:[%s6498_s28 + $0x6c] sm:$0xf]  ;;  %v8352_v29 = vld [vmem:[#allocation8_spill] sm:$0xff] }
 0x12a   : > { %v4366_v34 = vsel %vm6750_vm7, %v4364_v30, %v4365_v47  ;;  %v4378_v47 = vrot.slane %v4376_v49, 4  ;;  %v6344_v30 = vld [vmem:[%s6498_s28 + $0x78] sm:$0xff]   ;;  %v8017_v16 = vsel %vm6750_vm7, %v5513_v5, %v4453_v61  ;;  %v4455_v18 = vrot.slane %v4453_v61, 4 }
 0x12b   : > { %v7993_v4 = vsel %vm6750_vm7, %v4448_v2, %v4449_v9  ;;  %v5518_v9 = vcombine.low %v4370_v23, %v4373_v25  ;;  %v2246_v19 = vshrl.u32 %v5215_v7, 16  ;;  %v2249_v41 = vshll.u32 %v5215_v7, 16 }
 0x12c   : > { %v5529_v43 = vcombine.low %v7986_v63, %v7993_v4  ;;  %v8022_v58 = vsel %vm6750_vm7, %v4455_v18, %v4456_v51  ;;  %v4377_v6 = vsel %vm6750_vm7, %v5502_v28, %v4376_v49  ;;  %v4463_v49 = vrot.slane %v7896_v21, 5  ;;  %v6346_v51 = vld [vmem:[%s6498_s28 + $0x90] sm:$0xff]   ;;  %v6347_v21 = vld [vmem:[%s6498_s28 + $0x9c] sm:$0xff]  }
 0x12d   : > { %v5530_v50 = vcombine.low %v8017_v16, %v8022_v58  ;;  %v2248_v23 = vrot.slane %v2246_v19, 4  ;;  %v2251_v25 = vrot.slane %v2249_v41, 5  ;;  %v4462_v7 = vrot.slane %v4460_v24, 4 }
 0x12e   : > { %5973 = vmatmul.mubr.msk.bf16.gmra.mrb[28].mxu0 %vm680_vm3, %v5466_v46  ;;  %v5517_v46 = vcombine.low %v4363_v35, %v4366_v34  ;;  %v2255_v35 = vshll.u32 %v6394_v39, 16  ;;  %v2259_v34 = vshrl.u32 %v6394_v39, 16 }
 0x12f   : > { %5821 = vmatmul.mubr.msk.bf16.gmra.mrb[12].mxu1 %vm680_vm3, %v6342_v12  ;;  %5978 = vmatprep.mubr.msk.bf16.mxu0 %vm680_vm3, %v5516_v17  ;;  %v4379_v12 = vrot.slane %v8352_v29, 5  ;;  %v5498_v17 = vld [vmem:[%s6498_s28 + $0xcc] sm:$0xe]  ;;  %v8044_v55 = vsel %vm6750_vm7, %v4462_v7, %v4463_v49 }
 0x130   : > { %5824 = vmatprep.mubr.msk.bf16.mxu1 %vm680_vm3, %v6343_v11  ;;  %v6345_v11 = vld [vmem:[%s6498_s28 + $0x84] sm:$0xff]   ;;  %v5514_v52 = vrot.slane %v5498_v17, 9  ;;  %v2261_v28 = vrot.slane %v2259_v34, 4  ;;  %v6395_v17 = vld [vmem:[%s6498_s28 + $0x74] sm:$0x1] }
 0x131   : > { %v4380_v2 = vsel %vm6750_vm7, %v4378_v47, %v4379_v12  ;;  %v5221_v47 = vld [vmem:[%s6498_s28 + $0x84] sm:$0xf]  ;;  %v2252_v12 = vor.u32 %v2251_v25, %v2248_v23  ;;  %v6349_v34 = vld [vmem:[%s6498_s28 + $0xb4] sm:$0xff]  }
 0x132   : > { %v8039_v5 = vsel %vm6750_vm7, %v5514_v52, %v4460_v24  ;;  %v5519_v61 = vcombine.low %v4377_v6, %v4380_v2  ;;  %v2297_v18 = vshll.u32 %v5221_v47, 16  ;;  %v5224_v6 = vld [vmem:[%s6498_s28 + $0x90] sm:$0xf]  ;;  %v6348_v2 = vld [vmem:[%s6498_s28 + $0xa8] sm:$0xff]  }
 0x133   : > { %v5531_v29 = vcombine.low %v8039_v5, %v8044_v55  ;;  %v2253_v52 = vrot.slane %v2252_v12, 4  ;;  %v2318_v23 = vshrl.u32 %v5224_v6, 16  ;;  %v2321_v25 = vshll.u32 %v5224_v6, 16 }
 0x134   : > { %v2351_v12 = vshll.u32 %v6398_v60, 16 }
 0x135   : > { %v2323_v14 = vrot.slane %v2321_v25, 5  ;;  %v6401_v25 = vld [vmem:[%s6498_s28 + $0xa4] sm:$0x1] }
 0x136   : > { %5979 = vmatmul.mubr.msk.bf16.vlgmr.msra.gmra.mrb[0].mxu0 %vm680_vm3, %v5517_v46  ;;  %v2257_v46 = vrot.slane %v2255_v35, 5  ;;  %v5227_v35 = vld [vmem:[%s6498_s28 + $0x9c] sm:$0xf]  ;;  %v8086_v6 = vrot.slane %v2351_v12, 5 }
 0x137   : > { %5825 = vmatmul.mubr.msk.bf16.gmra.mrb[16].mxu1 %vm680_vm3, %v6344_v30  ;;  %5982 = vmatprep.mubr.msk.bf16.mxu0 %vm680_vm3, %v5518_v9  ;;  %v2265_v30 = vshll.u32 %v6395_v17, 16  ;;  %v2294_v9 = vshrl.u32 %v5221_v47, 16  ;;  %v2345_v47 = vshll.u32 %v5227_v35, 16  ;;  %v6399_v17 = vld [vmem:[%s6498_s28 + $0x8c] sm:$0x1] }
 0x138   : > { %5828 = vmatprep.mubr.msk.bf16.mxu1 %vm680_vm3, %v6345_v11  ;;  %v2262_v13 = vor.u32 %v2261_v28, %v2257_v46  ;;  %v6396_v11 = vld [vmem:[%s6498_s28 + $0x88] sm:$0xf]  ;;  %v2258_v7 = vsel %vm6524_vm4, %v2253_v52, %v2257_v46 }
 0x139   : > { %v2303_v19 = vshll.u32 %v6396_v11, 16  ;;  %v2307_v41 = vshrl.u32 %v6396_v11, 16  ;;  %v2267_v0 = vrot.slane %v2265_v30, 5  ;;  %v2296_v36 = vrot.slane %v2294_v9, 4 }
 0x13a   : > { %v2263_v39 = vrot.slane %v2262_v13, 4  ;;  %v2313_v30 = vshll.u32 %v6399_v17, 16  ;;  %v2320_v9 = vrot.slane %v2318_v23, 4  ;;  %v2347_v11 = vrot.slane %v2345_v47, 5 }
 0x13b   : > { %v8063_v24 = vrot.slane %v2303_v19, 5  ;;  %v2309_v49 = vrot.slane %v2307_v41, 4  ;;  %v6350_v19 = vld [vmem:[%s6498_s28 + $0xc0] sm:$0xff]  }
 0x13c   : > { %v2268_v46 = vsel %vm6524_vm4, %v2263_v39, %v2267_v0  ;;  %v5230_v39 = vld [vmem:[%s6498_s28 + $0xa8] sm:$0xf] }
 0x13d   : > { %v2310_v13 = vor.u32 %v2309_v49, %v8063_v24  ;;  %v5248_v41 = vcombine.low %v2258_v7, %v2268_v46  ;;  %v2361_v7 = vshll.u32 %v6401_v25, 16  ;;  %v2369_v45 = vshll.u32 %v5230_v39, 16 }
 0x13e   : > { %5983 = vmatmul.mubr.msk.bf16.gmra.mrb[4].mxu0 %vm680_vm3, %v5519_v61  ;;  %v6397_v61 = vld [vmem:[%s6498_s28 + $0x94] sm:$0xf] }
 0x13f   : > { %5829 = vmatmul.mubr.msk.bf16.gmra.mrb[20].mxu1 %vm680_vm3, %v6346_v51  ;;  %5986 = vmatprep.mubr.msk.bf16.mxu0 %vm680_vm3, %v5520_v10  ;;  %v2299_v10 = vrot.slane %v2297_v18, 5  ;;  %v2327_v51 = vshll.u32 %v6397_v61, 16  ;;  %v2331_v28 = vshrl.u32 %v6397_v61, 16  ;;  %v2311_v0 = vrot.slane %v2310_v13, 4 }
 0x140   : > { %5832 = vmatprep.mubr.msk.bf16.mxu1 %vm680_vm3, %v6347_v21  ;;  %v2342_v21 = vshrl.u32 %v5227_v35, 16  ;;  %v6400_v35 = vld [vmem:[%s6498_s28 + $0x98] sm:$0x1]  ;;  %v2366_v61 = vshrl.u32 %v5230_v39, 16  ;;  %v5236_v39 = vld [vmem:[%s6498_s28 + $0xc0] sm:$0xf] }
 0x141   : > { %v2300_v15 = vor.u32 %v2299_v10, %v2296_v36  ;;  %v8083_v26 = vrot.slane %v2327_v51, 5  ;;  %v2315_v36 = vrot.slane %v2313_v30, 5  ;;  %v2324_v10 = vor.u32 %v2323_v14, %v2320_v9  ;;  %v5233_v51 = vld [vmem:[%s6498_s28 + $0xb4] sm:$0xf] }
 0x142   : > { %v2344_v18 = vrot.slane %v2342_v21, 4  ;;  %v2379_v21 = vshrl.u32 %v6402_v27, 16  ;;  %v2390_v20 = vshrl.u32 %v5233_v51, 16  ;;  %v2393_v42 = vshll.u32 %v5233_v51, 16 }
 0x143   : > { %v2301_v52 = vrot.slane %v2300_v15, 4  ;;  %v2316_v46 = vsel %vm6524_vm4, %v2311_v0, %v2315_v36  ;;  %v2325_v15 = vrot.slane %v2324_v10, 4  ;;  %v2363_v30 = vrot.slane %v2361_v7, 5 }
 0x144   : > { %v2348_v23 = vor.u32 %v2347_v11, %v2344_v18  ;;  %v2368_v9 = vrot.slane %v2366_v61, 4  ;;  %v2381_v11 = vrot.slane %v2379_v21, 4  ;;  %v6406_v61 = vld [vmem:[%s6498_s28 + $0xbc] sm:$0x1] }
 0x145   : > { %v2306_v47 = vsel %vm6524_vm4, %v2301_v52, %v8063_v24  ;;  %v2330_v0 = vsel %vm6524_vm4, %v2325_v15, %v8083_v26  ;;  %v2409_v22 = vshll.u32 %v6406_v61, 16 }
 0x146   : > { %5987 = vmatmul.mubr.msk.bf16.gmra.mrb[8].mxu0 %vm680_vm3, %v5521_v40  ;;  %v2355_v40 = vshrl.u32 %v6398_v60, 16  ;;  %v2349_v17 = vrot.slane %v2348_v23, 4  ;;  %v5250_v24 = vcombine.low %v2306_v47, %v2316_v46 }
 0x147   : > { %5833 = vmatmul.mubr.msk.bf16.gmra.mrb[24].mxu1 %vm680_vm3, %v6348_v2  ;;  %5990 = vmatprep.mubr.msk.bf16.mxu0 %vm680_vm3, %v5522_v54  ;;  %v2333_v54 = vrot.slane %v2331_v28, 4 }
 0x148   : > { %5836 = vmatprep.mubr.msk.bf16.mxu1 %vm680_vm3, %v6349_v34  ;;  %v2357_v2 = vrot.slane %v2355_v40, 4  ;;  %v2337_v34 = vshll.u32 %v6400_v35, 16  ;;  %v2354_v10 = vsel %vm6524_vm4, %v2349_v17, %v8086_v6  ;;  %v2435_v17 = vrot.slane %v2433_v57, 5 }
 0x149   : > { %v2334_v49 = vor.u32 %v2333_v54, %v8083_v26  ;;  %v2371_v54 = vrot.slane %v2369_v45, 5  ;;  %v6404_v26 = vld [vmem:[%s6498_s28 + $0xb0] sm:$0x1] }
 0x14a   : > { %v2358_v28 = vor.u32 %v2357_v2, %v8086_v6  ;;  %v2339_v60 = vrot.slane %v2337_v34, 5  ;;  %v2385_v35 = vshll.u32 %v6404_v26, 16  ;;  %v2414_v34 = vshrl.u32 %v5236_v39, 16 }
 0x14b   : > { %v2335_v13 = vrot.slane %v2334_v49, 4  ;;  %v2372_v38 = vor.u32 %v2371_v54, %v2368_v9  ;;  %v2417_v6 = vshll.u32 %v5236_v39, 16  ;;  %v6405_v49 = vld [vmem:[%s6498_s28 + $0xc4] sm:$0xf] }
 0x14c   : > { %v2359_v14 = vrot.slane %v2358_v28, 4  ;;  %v2423_v23 = vshll.u32 %v6405_v49, 16  ;;  %v2427_v25 = vshrl.u32 %v6405_v49, 16  ;;  %v2387_v45 = vrot.slane %v2385_v35, 5 }
 0x14d   : > { %v2340_v36 = vsel %vm6524_vm4, %v2335_v13, %v2339_v60  ;;  %v2373_v51 = vrot.slane %v2372_v38, 4  ;;  %v2411_v60 = vrot.slane %v2409_v22, 5 }
 0x14e   : > { %5991 = vmatmul.mubr.msk.bf16.gmra.mrb[12].mxu0 %vm680_vm3, %v5523_v53  ;;  %v2375_v53 = vshll.u32 %v6402_v27, 16  ;;  %v2364_v59 = vsel %vm6524_vm4, %v2359_v14, %v2363_v30  ;;  %v5251_v44 = vcombine.low %v2330_v0, %v2340_v36  ;;  %v2416_v27 = vrot.slane %v2414_v34, 4 }
 0x14f   : > { %5837 = vmatmul.mubr.msk.bf16.gmra.mrb[28].mxu1 %vm680_vm3, %v6350_v19  ;;  %5994 = vmatprep.mubr.msk.bf16.mxu0 %vm680_vm3, %v5524_v33  ;;  %v6403_v33 = vld [vmem:[%s6498_s28 + $0xb8] sm:$0xf]  ;;  %v2392_v19 = vrot.slane %v2390_v20, 4  ;;  %v2425_v21 = vrot.slane %v2423_v23, 5  ;;  %v2429_v47 = vrot.slane %v2427_v25, 4 }
 0x150   : > { %5858 = vmatprep.mubr.msk.bf16.mxu1 %vm680_vm3, %v5248_v41  ;;  %v2399_v12 = vshll.u32 %v6403_v33, 16  ;;  %v2403_v40 = vshrl.u32 %v6403_v33, 16  ;;  %v2377_v18 = vrot.slane %v2375_v53, 5  ;;  %v2395_v41 = vrot.slane %v2393_v42, 5 }
 0x151   : > { %v2419_v53 = vrot.slane %v2417_v6, 5 }
 0x152   : > { %v2401_v52 = vrot.slane %v2399_v12, 5  ;;  %v2405_v2 = vrot.slane %v2403_v40, 4  ;;  %v2378_v20 = vsel %vm6524_vm4, %v2373_v51, %v2377_v18  ;;  %v2430_v12 = vor.u32 %v2429_v47, %v2425_v21 }
 0x153   : > { %v2420_v33 = vor.u32 %v2419_v53, %v2416_v27 }
 0x154   : > { %v2406_v7 = vor.u32 %v2405_v2, %v2401_v52  ;;  %v2431_v13 = vrot.slane %v2430_v12, 4  ;;  %v8194_v2 = vld [vmem:[%s8284_s2] ss:$0 sm:$0xff] }
 0x155   : > { %v2421_v40 = vrot.slane %v2420_v33, 4 }
 0x156   : > { %5995 = vmatmul.mubr.msk.bf16.gmra.mrb[16].mxu0 %vm680_vm3, %v5525_v37  ;;  %v2382_v37 = vor.u32 %v2381_v11, %v2377_v18  ;;  %v2407_v15 = vrot.slane %v2406_v7, 4  ;;  %v2436_v9 = vsel %vm6524_vm4, %v2431_v13, %v2435_v17 }
 0x157   : > { %5859 = vmatmul.mubr.msk.bf16.vlgmr.msra.gmra.mrb[16].mxu1 %vm680_vm3, %v7892_v1  ;;  %5998 = vmatprep.mubr.msk.bf16.mxu0 %vm680_vm3, %v5526_v3  ;;  %v2396_v1 = vor.u32 %v2395_v41, %v2392_v19  ;;  %v5252_v3 = vcombine.low %v2354_v10, %v2364_v59  ;;  %v2426_v30 = vsel %vm6524_vm4, %v2421_v40, %v2425_v21 }
 0x158   : > { %5862 = vmatprep.mubr.msk.bf16.mxu1 %vm680_vm3, %v5250_v24  ;;  %v2383_v28 = vrot.slane %v2382_v37, 4  ;;  %v2412_v48 = vsel %vm6524_vm4, %v2407_v15, %v2411_v60  ;;  %v5255_v14 = vcombine.low %v2426_v30, %v2436_v9 }
 0x159   : > { %v2397_v46 = vrot.slane %v2396_v1, 4 }
 0x15a   : > { %v2388_v42 = vsel %vm6524_vm4, %v2383_v28, %v2387_v45 }
 0x15b   : > { %v5253_v62 = vcombine.low %v2378_v20, %v2388_v42 }
 0x15e   : > { %5999 = vmatmul.mubr.msk.bf16.gmra.mrb[20].mxu0 %vm680_vm3, %v5527_v8  ;;  %v2402_v8 = vsel %vm6524_vm4, %v2397_v46, %v2401_v52 }
 0x15f   : > { %5863 = vmatmul.mubr.msk.bf16.gmra.mrb[20].mxu1 %vm680_vm3, %v5251_v44  ;;  %6002 = vmatprep.mubr.msk.bf16.mxu0 %vm680_vm3, %v5528_v56  ;;  %v5254_v56 = vcombine.low %v2402_v8, %v2412_v48 }
 0x160   : > { %5866 = vmatprep.mubr.msk.bf16.mxu1 %vm680_vm3, %v5252_v3 }
 0x166   : > { %6003 = vmatmul.mubr.msk.bf16.gmra.mrb[24].mxu0 %vm680_vm3, %v5529_v43 }
 0x167   : > { %5867 = vmatmul.mubr.msk.bf16.gmra.mrb[24].mxu1 %vm680_vm3, %v5253_v62  ;;  %6006 = vmatprep.mubr.msk.bf16.mxu0 %vm680_vm3, %v5530_v50 }
 0x168   : > { %5870 = vmatprep.mubr.msk.bf16.mxu1 %vm680_vm3, %v5254_v56 }
 0x16e   : > { %6007 = vmatmul.mubr.msk.bf16.gmra.mrb[28].mxu0 %vm680_vm3, %v5531_v29 }
 0x16f   : > { %5871 = vmatmul.mubr.msk.bf16.gmra.mrb[28].mxu1 %vm680_vm3, %v5255_v14 }
 0x1ea   : > { %v5810_v63 = vpop.f32.mrb[0].mxu1 }
 0x1eb   : > { %v1846_v4 = vpop.f32.mrb[1].mxu1 }
 0x1ec   : > { %v5811_v43 = vpop.f32.mrb[2].mxu1 }
 0x1ed   : > { %v1849_v16 = vpop.f32.mrb[3].mxu1 }
 0x1f2   : > { %v5814_v58 = vpop.f32.mrb[4].mxu1 }
 0x1f3   : > { %v1862_v50 = vpop.f32.mrb[5].mxu1 }
 0x1f4   : > { %v5815_v54 = vpop.f32.mrb[6].mxu1 }
 0x1f5   : > { %v1865_v18 = vpop.f32.mrb[7].mxu1 }
 0x1fa   : > { %v8174_v11 = vpop.f32.mrb[8].mxu1 }
 0x1fb   : > { %v8176_v32 = vpop.f32.mrb[9].mxu1 }
 0x1fc   : > { %v8178_v24 = vpop.f32.mrb[10].mxu1 }
 0x1fd   : > { %v8180_v19 = vpop.f32.mrb[11].mxu1 }
 0x202   : > { %v8183_v5 = vpop.f32.mrb[12].mxu1 }
 0x203   : > { %v8185_v55 = vpop.f32.mrb[13].mxu1 }
 0x204   : > { %v8187_v29 = vpop.f32.mrb[14].mxu1 }
 0x205   : > { %v8189_v41 = vpop.f32.mrb[15].mxu1 }
 0x209   : > { %v5980_v52 = vpop.f32.mrb[0].mxu0 }
 0x20a   : > { %v6012_v39 = vadd.f32 %v5980_v52, %v5810_v63  ;;  %v4600_v0 = vpop.f32.mrb[1].mxu0 }
 0x20b   : > { %v6013_v36 = vadd.f32 %v4600_v0, %v1846_v4  ;;  %v5981_v10 = vpop.f32.mrb[2].mxu0 }
 0x20c   : > { %v4768_v59 = vadd.f32 %v6012_v39, %v8194_v2  ;;  %v6014_v38 = vadd.f32 %v5981_v10, %v5811_v43  ;;  %v4603_v37 = vpop.f32.mrb[3].mxu0 }
 0x20d   : > { %v4766_v26 = vadd.f32 %v6013_v36, %v8194_v2  ;;  %v6015_v35 = vadd.f32 %v4603_v37, %v1849_v16 }
 0x20e   : > { %vm4800_vm8 = vcmp.ge.f32.partialorder %v4768_v59, 0.0  ;;  %v4832_v34 = vmul.f32 0.1, %v4768_v59  ;;  %v4769_v6 = vadd.f32 %v6014_v38, %v8194_v2 }
 0x20f   : > { %vm4798_vm9 = vcmp.ge.f32.partialorder %v4766_v26, 0.0  ;;  %v4830_v49 = vmul.f32 0.1, %v4766_v26  ;;  %v4767_v23 = vadd.f32 %v6015_v35, %v8194_v2 }
 0x210   : > { %v4864_v25 = vsel %vm4800_vm8, %v4768_v59, %v4832_v34  ;;  %vm4801_vm10 = vcmp.ge.f32.partialorder %v4769_v6, 0.0  ;;  %v4833_v1 = vmul.f32 0.1, %v4769_v6 }
 0x211   : > { %4896 = vst [vmem:[%s8201_s25 + $0x10] sm:$0xff] %v4864_v25  ;;  %v4862_v7 = vsel %vm4798_vm9, %v4766_v26, %v4830_v49  ;;  %vm4799_vm11 = vcmp.ge.f32.partialorder %v4767_v23, 0.0  ;;  %v4831_v61 = vmul.f32 0.1, %v4767_v23  ;;  %v5984_v22 = vpop.f32.mrb[4].mxu0 }
 0x212   : > { %4894 = vst [vmem:[%s8201_s25] sm:$0xff] %v4862_v7  ;;  %v4865_v44 = vsel %vm4801_vm10, %v4769_v6, %v4833_v1  ;;  %v6016_v3 = vadd.f32 %v5984_v22, %v5814_v58  ;;  %v4616_v51 = vpop.f32.mrb[5].mxu0 }
 0x213   : > { %4897 = vst [vmem:[%s8201_s25 + $0x18] sm:$0xff] %v4865_v44  ;;  %v4863_v28 = vsel %vm4799_vm11, %v4767_v23, %v4831_v61  ;;  %v6017_v45 = vadd.f32 %v4616_v51, %v1862_v50  ;;  %v5985_v27 = vpop.f32.mrb[6].mxu0 }
 0x214   : > { %4895 = vst [vmem:[%s8201_s25 + $0x8] sm:$0xff] %v4863_v28  ;;  %v4772_v53 = vadd.f32 %v6016_v3, %v8194_v2  ;;  %v6018_v21 = vadd.f32 %v5985_v27, %v5815_v54  ;;  %v4619_v47 = vpop.f32.mrb[7].mxu0 }
 0x215   : > { %v4770_v46 = vadd.f32 %v6017_v45, %v8194_v2  ;;  %v6019_v15 = vadd.f32 %v4619_v47, %v1865_v18 }
 0x216   : > { %vm4804_vm12 = vcmp.ge.f32.partialorder %v4772_v53, 0.0  ;;  %v4836_v60 = vmul.f32 0.1, %v4772_v53  ;;  %v4773_v20 = vadd.f32 %v6018_v21, %v8194_v2 }
 0x217   : > { %vm4802_vm13 = vcmp.ge.f32.partialorder %v4770_v46, 0.0  ;;  %v4834_v42 = vmul.f32 0.1, %v4770_v46  ;;  %v4771_v33 = vadd.f32 %v6019_v15, %v8194_v2 }
 0x218   : > { %v4868_v12 = vsel %vm4804_vm12, %v4772_v53, %v4836_v60  ;;  %vm4805_vm14 = vcmp.ge.f32.partialorder %v4773_v20, 0.0  ;;  %v4837_v31 = vmul.f32 0.1, %v4773_v20 }
 0x219   : > { %4900 = vst [vmem:[%s8201_s25 + $0x30] sm:$0xff] %v4868_v12  ;;  %v4866_v57 = vsel %vm4802_vm13, %v4770_v46, %v4834_v42  ;;  %vm4803_vm15 = vcmp.ge.f32.partialorder %v4771_v33, 0.0  ;;  %v4835_v8 = vmul.f32 0.1, %v4771_v33  ;;  %v5988_v48 = vpop.f32.mrb[8].mxu0 }
 0x21a   : > { %4898 = vst [vmem:[%s8201_s25 + $0x20] sm:$0xff] %v4866_v57  ;;  %v4869_v62 = vsel %vm4805_vm14, %v4773_v20, %v4837_v31  ;;  %v6020_v56 = vadd.f32 %v5988_v48, %v8174_v11  ;;  %v4632_v40 = vpop.f32.mrb[9].mxu0 }
 0x21b   : > { %4901 = vst [vmem:[%s8201_s25 + $0x38] sm:$0xff] %v4869_v62  ;;  %v4867_v13 = vsel %vm4803_vm15, %v4771_v33, %v4835_v8  ;;  %v6021_v17 = vadd.f32 %v4632_v40, %v8176_v32  ;;  %v5989_v30 = vpop.f32.mrb[10].mxu0 }
 0x21c   : > { %4899 = vst [vmem:[%s8201_s25 + $0x28] sm:$0xff] %v4867_v13  ;;  %v4776_v9 = vadd.f32 %v6020_v56, %v8194_v2  ;;  %v6022_v14 = vadd.f32 %v5989_v30, %v8178_v24  ;;  %v4635_v63 = vpop.f32.mrb[11].mxu0 }
 0x21d   : > { %v4774_v4 = vadd.f32 %v6021_v17, %v8194_v2  ;;  %v6023_v43 = vadd.f32 %v4635_v63, %v8180_v19 }
 0x21e   : > { %vm4808_vm0 = vcmp.ge.f32.partialorder %v4776_v9, 0.0  ;;  %v4840_v16 = vmul.f32 0.1, %v4776_v9  ;;  %v4777_v58 = vadd.f32 %v6022_v14, %v8194_v2 }
 0x21f   : > { %vm4806_vm1 = vcmp.ge.f32.partialorder %v4774_v4, 0.0  ;;  %v4838_v50 = vmul.f32 0.1, %v4774_v4  ;;  %v4775_v54 = vadd.f32 %v6023_v43, %v8194_v2 }
 0x220   : > { %v4872_v18 = vsel %vm4808_vm0, %v4776_v9, %v4840_v16  ;;  %vm4809_vm2 = vcmp.ge.f32.partialorder %v4777_v58, 0.0  ;;  %v4841_v11 = vmul.f32 0.1, %v4777_v58 }
 0x221   : > { %4904 = vst [vmem:[%s8201_s25 + $0x50] sm:$0xff] %v4872_v18  ;;  %v4870_v32 = vsel %vm4806_vm1, %v4774_v4, %v4838_v50  ;;  %vm4807_vm3 = vcmp.ge.f32.partialorder %v4775_v54, 0.0  ;;  %v4839_v24 = vmul.f32 0.1, %v4775_v54  ;;  %v5992_v52 = vpop.f32.mrb[12].mxu0 }
 0x222   : > { %4902 = vst [vmem:[%s8201_s25 + $0x40] sm:$0xff] %v4870_v32  ;;  %v4873_v19 = vsel %vm4809_vm2, %v4777_v58, %v4841_v11  ;;  %v6024_v39 = vadd.f32 %v5992_v52, %v8183_v5  ;;  %v4648_v0 = vpop.f32.mrb[13].mxu0 }
 0x223   : > { %4905 = vst [vmem:[%s8201_s25 + $0x58] sm:$0xff] %v4873_v19  ;;  %v4871_v36 = vsel %vm4807_vm3, %v4775_v54, %v4839_v24  ;;  %v6025_v10 = vadd.f32 %v4648_v0, %v8185_v55  ;;  %v5993_v59 = vpop.f32.mrb[14].mxu0 }
 0x224   : > { %4903 = vst [vmem:[%s8201_s25 + $0x48] sm:$0xff] %v4871_v36  ;;  %v4780_v38 = vadd.f32 %v6024_v39, %v8194_v2  ;;  %v6026_v37 = vadd.f32 %v5993_v59, %v8187_v29  ;;  %v4651_v26 = vpop.f32.mrb[15].mxu0 }
 0x225   : > { %v4778_v35 = vadd.f32 %v6025_v10, %v8194_v2  ;;  %v6027_v34 = vadd.f32 %v4651_v26, %v8189_v41 }
 0x226   : > { %vm4812_vm4 = vcmp.ge.f32.partialorder %v4780_v38, 0.0  ;;  %v4844_v5 = vmul.f32 0.1, %v4780_v38  ;;  %v4781_v6 = vadd.f32 %v6026_v37, %v8194_v2 }
 0x227   : > { %vm4810_vm5 = vcmp.ge.f32.partialorder %v4778_v35, 0.0  ;;  %v4842_v55 = vmul.f32 0.1, %v4778_v35  ;;  %v4779_v49 = vadd.f32 %v6027_v34, %v8194_v2 }
 0x228   : > { %v4876_v23 = vsel %vm4812_vm4, %v4780_v38, %v4844_v5  ;;  %vm4813_vm6 = vcmp.ge.f32.partialorder %v4781_v6, 0.0  ;;  %v4845_v25 = vmul.f32 0.1, %v4781_v6 }
 0x229   : > { %4908 = vst [vmem:[%s8201_s25 + $0x70] sm:$0xff] %v4876_v23  ;;  %v4874_v29 = vsel %vm4810_vm5, %v4778_v35, %v4842_v55  ;;  %vm4811_vm7 = vcmp.ge.f32.partialorder %v4779_v49, 0.0  ;;  %v4843_v1 = vmul.f32 0.1, %v4779_v49  ;;  %v5996_v7 = vpop.f32.mrb[16].mxu0 }
 0x22a   : > { %4906 = vst [vmem:[%s8201_s25 + $0x60] sm:$0xff] %v4874_v29  ;;  %v4877_v41 = vsel %vm4813_vm6, %v4781_v6, %v4845_v25  ;;  %v5860_v61 = vpop.f32.mrb[16].mxu1  ;;  %v4664_v22 = vpop.f32.mrb[17].mxu0 }
 0x22b   : > { %4909 = vst [vmem:[%s8201_s25 + $0x78] sm:$0xff] %v4877_v41  ;;  %v4875_v44 = vsel %vm4811_vm7, %v4779_v49, %v4843_v1  ;;  %v6028_v3 = vadd.f32 %v5996_v7, %v5860_v61  ;;  %v2636_v51 = vpop.f32.mrb[17].mxu1  ;;  %v5997_v28 = vpop.f32.mrb[18].mxu0 }
 0x22c   : > { %4907 = vst [vmem:[%s8201_s25 + $0x68] sm:$0xff] %v4875_v44  ;;  %v6029_v45 = vadd.f32 %v4664_v22, %v2636_v51  ;;  %v5861_v27 = vpop.f32.mrb[18].mxu1  ;;  %v4667_v53 = vpop.f32.mrb[19].mxu0 }
 0x22d   : > { %v4784_v21 = vadd.f32 %v6028_v3, %v8194_v2  ;;  %v6030_v47 = vadd.f32 %v5997_v28, %v5861_v27  ;;  %v2639_v46 = vpop.f32.mrb[19].mxu1 }
 0x22e   : > { %v4782_v15 = vadd.f32 %v6029_v45, %v8194_v2  ;;  %v6031_v60 = vadd.f32 %v4667_v53, %v2639_v46 }
 0x22f   : > { %vm4816_vm8 = vcmp.ge.f32.partialorder %v4784_v21, 0.0  ;;  %v4848_v20 = vmul.f32 0.1, %v4784_v21  ;;  %v4785_v42 = vadd.f32 %v6030_v47, %v8194_v2 }
 0x230   : > { %vm4814_vm9 = vcmp.ge.f32.partialorder %v4782_v15, 0.0  ;;  %v4846_v33 = vmul.f32 0.1, %v4782_v15  ;;  %v4783_v12 = vadd.f32 %v6031_v60, %v8194_v2 }
 0x231   : > { %v4880_v31 = vsel %vm4816_vm8, %v4784_v21, %v4848_v20  ;;  %vm4817_vm10 = vcmp.ge.f32.partialorder %v4785_v42, 0.0  ;;  %v4849_v57 = vmul.f32 0.1, %v4785_v42  ;;  %v6000_v8 = vpop.f32.mrb[20].mxu0 }
 0x232   : > { %4912 = vst [vmem:[%s8201_s25 + $0x90] sm:$0xff] %v4880_v31  ;;  %v4878_v48 = vsel %vm4814_vm9, %v4782_v15, %v4846_v33  ;;  %vm4815_vm11 = vcmp.ge.f32.partialorder %v4783_v12, 0.0  ;;  %v4847_v62 = vmul.f32 0.1, %v4783_v12  ;;  %v5864_v56 = vpop.f32.mrb[20].mxu1  ;;  %v4680_v40 = vpop.f32.mrb[21].mxu0 }
 0x233   : > { %4910 = vst [vmem:[%s8201_s25 + $0x80] sm:$0xff] %v4878_v48  ;;  %v4881_v13 = vsel %vm4817_vm10, %v4785_v42, %v4849_v57  ;;  %v6032_v17 = vadd.f32 %v6000_v8, %v5864_v56  ;;  %v2652_v30 = vpop.f32.mrb[21].mxu1  ;;  %v6001_v9 = vpop.f32.mrb[22].mxu0 }
 0x234   : > { %4913 = vst [vmem:[%s8201_s25 + $0x98] sm:$0xff] %v4881_v13  ;;  %v4879_v14 = vsel %vm4815_vm11, %v4783_v12, %v4847_v62  ;;  %v6033_v63 = vadd.f32 %v4680_v40, %v2652_v30  ;;  %v5865_v4 = vpop.f32.mrb[22].mxu1  ;;  %v4683_v43 = vpop.f32.mrb[23].mxu0 }
 0x235   : > { %4911 = vst [vmem:[%s8201_s25 + $0x88] sm:$0xff] %v4879_v14  ;;  %v4788_v16 = vadd.f32 %v6032_v17, %v8194_v2  ;;  %v6034_v58 = vadd.f32 %v6001_v9, %v5865_v4  ;;  %v2655_v50 = vpop.f32.mrb[23].mxu1 }
 0x236   : > { %v4786_v54 = vadd.f32 %v6033_v63, %v8194_v2  ;;  %v6035_v18 = vadd.f32 %v4683_v43, %v2655_v50 }
 0x237   : > { %vm4820_vm12 = vcmp.ge.f32.partialorder %v4788_v16, 0.0  ;;  %v4852_v11 = vmul.f32 0.1, %v4788_v16  ;;  %v4789_v32 = vadd.f32 %v6034_v58, %v8194_v2 }
 0x238   : > { %vm4818_vm13 = vcmp.ge.f32.partialorder %v4786_v54, 0.0  ;;  %v4850_v24 = vmul.f32 0.1, %v4786_v54  ;;  %v4787_v52 = vadd.f32 %v6035_v18, %v8194_v2 }
 0x239   : > { %v4884_v19 = vsel %vm4820_vm12, %v4788_v16, %v4852_v11  ;;  %vm4821_vm14 = vcmp.ge.f32.partialorder %v4789_v32, 0.0  ;;  %v4853_v39 = vmul.f32 0.1, %v4789_v32  ;;  %v6004_v0 = vpop.f32.mrb[24].mxu0 }
 0x23a   : > { %4916 = vst [vmem:[%s8201_s25 + $0xb0] sm:$0xff] %v4884_v19  ;;  %v4882_v36 = vsel %vm4818_vm13, %v4786_v54, %v4850_v24  ;;  %vm4819_vm15 = vcmp.ge.f32.partialorder %v4787_v52, 0.0  ;;  %v4851_v10 = vmul.f32 0.1, %v4787_v52  ;;  %v5868_v59 = vpop.f32.mrb[24].mxu1  ;;  %v4696_v38 = vpop.f32.mrb[25].mxu0 }
 0x23b   : > { %4914 = vst [vmem:[%s8201_s25 + $0xa0] sm:$0xff] %v4882_v36  ;;  %v4885_v37 = vsel %vm4821_vm14, %v4789_v32, %v4853_v39  ;;  %v6036_v26 = vadd.f32 %v6004_v0, %v5868_v59  ;;  %v2668_v35 = vpop.f32.mrb[25].mxu1  ;;  %v6005_v34 = vpop.f32.mrb[26].mxu0 }
 0x23c   : > { %4917 = vst [vmem:[%s8201_s25 + $0xb8] sm:$0xff] %v4885_v37  ;;  %v4883_v5 = vsel %vm4819_vm15, %v4787_v52, %v4851_v10  ;;  %v6037_v6 = vadd.f32 %v4696_v38, %v2668_v35  ;;  %v5869_v55 = vpop.f32.mrb[26].mxu1  ;;  %v4699_v49 = vpop.f32.mrb[27].mxu0 }
 0x23d   : > { %4915 = vst [vmem:[%s8201_s25 + $0xa8] sm:$0xff] %v4883_v5  ;;  %v4792_v23 = vadd.f32 %v6036_v26, %v8194_v2  ;;  %v6038_v25 = vadd.f32 %v6005_v34, %v5869_v55  ;;  %v2671_v29 = vpop.f32.mrb[27].mxu1 }
 0x23e   : > { %v4790_v1 = vadd.f32 %v6037_v6, %v8194_v2  ;;  %v6039_v7 = vadd.f32 %v4699_v49, %v2671_v29 }
 0x23f   : > { %vm4824_vm0 = vcmp.ge.f32.partialorder %v4792_v23, 0.0  ;;  %v4856_v41 = vmul.f32 0.1, %v4792_v23  ;;  %v4793_v61 = vadd.f32 %v6038_v25, %v8194_v2 }
 0x240   : > { %vm4822_vm1 = vcmp.ge.f32.partialorder %v4790_v1, 0.0  ;;  %v4854_v22 = vmul.f32 0.1, %v4790_v1  ;;  %v4791_v44 = vadd.f32 %v6039_v7, %v8194_v2 }
 0x241   : > { %v4888_v3 = vsel %vm4824_vm0, %v4792_v23, %v4856_v41  ;;  %vm4825_vm2 = vcmp.ge.f32.partialorder %v4793_v61, 0.0  ;;  %v4857_v51 = vmul.f32 0.1, %v4793_v61  ;;  %v6008_v28 = vpop.f32.mrb[28].mxu0 }
 0x242   : > { %4920 = vst [vmem:[%s8201_s25 + $0xd0] sm:$0xff] %v4888_v3  ;;  %v4886_v45 = vsel %vm4822_vm1, %v4790_v1, %v4854_v22  ;;  %vm4823_vm3 = vcmp.ge.f32.partialorder %v4791_v44, 0.0  ;;  %v4855_v27 = vmul.f32 0.1, %v4791_v44  ;;  %v5872_v53 = vpop.f32.mrb[28].mxu1  ;;  %v4712_v21 = vpop.f32.mrb[29].mxu0 }
 0x243   : > { %4918 = vst [vmem:[%s8201_s25 + $0xc0] sm:$0xff] %v4886_v45  ;;  %v4889_v47 = vsel %vm4825_vm2, %v4793_v61, %v4857_v51  ;;  %v6040_v46 = vadd.f32 %v6008_v28, %v5872_v53  ;;  %v2684_v15 = vpop.f32.mrb[29].mxu1  ;;  %v6009_v60 = vpop.f32.mrb[30].mxu0 }
 0x244   : > { %4921 = vst [vmem:[%s8201_s25 + $0xd8] sm:$0xff] %v4889_v47  ;;  %v4887_v20 = vsel %vm4823_vm3, %v4791_v44, %v4855_v27  ;;  %v6041_v42 = vadd.f32 %v4712_v21, %v2684_v15  ;;  %v5873_v33 = vpop.f32.mrb[30].mxu1  ;;  %v4715_v12 = vpop.f32.mrb[31].mxu0 }
 0x245   : > { %4919 = vst [vmem:[%s8201_s25 + $0xc8] sm:$0xff] %v4887_v20  ;;  %v4796_v31 = vadd.f32 %v6040_v46, %v8194_v2  ;;  %v6042_v57 = vadd.f32 %v6009_v60, %v5873_v33  ;;  %v2687_v8 = vpop.f32.mrb[31].mxu1 }
 0x246   : > { %v4794_v48 = vadd.f32 %v6041_v42, %v8194_v2  ;;  %v6043_v62 = vadd.f32 %v4715_v12, %v2687_v8 }
 0x247   : > { %vm4828_vm4 = vcmp.ge.f32.partialorder %v4796_v31, 0.0  ;;  %v4860_v56 = vmul.f32 0.1, %v4796_v31  ;;  %v4797_v40 = vadd.f32 %v6042_v57, %v8194_v2 }
 0x248   : > { %vm4826_vm5 = vcmp.ge.f32.partialorder %v4794_v48, 0.0  ;;  %v4858_v13 = vmul.f32 0.1, %v4794_v48  ;;  %v4795_v17 = vadd.f32 %v6043_v62, %v8194_v2 }
 0x249   : > { %v4892_v30 = vsel %vm4828_vm4, %v4796_v31, %v4860_v56  ;;  %vm4829_vm6 = vcmp.ge.f32.partialorder %v4797_v40, 0.0  ;;  %v4861_v9 = vmul.f32 0.1, %v4797_v40 }
 0x24a   : > { %4924 = vst [vmem:[%s8201_s25 + $0xf0] sm:$0xff] %v4892_v30  ;;  %v4890_v14 = vsel %vm4826_vm5, %v4794_v48, %v4858_v13  ;;  %vm4827_vm7 = vcmp.ge.f32.partialorder %v4795_v17, 0.0  ;;  %v4859_v63 = vmul.f32 0.1, %v4795_v17 }
 0x24b   : > { %4922 = vst [vmem:[%s8201_s25 + $0xe0] sm:$0xff] %v4890_v14  ;;  %v4893_v4 = vsel %vm4829_vm6, %v4797_v40, %v4861_v9 }
 0x24c   : > { %4925 = vst [vmem:[%s8201_s25 + $0xf8] sm:$0xff] %v4893_v4  ;;  %v4891_v43 = vsel %vm4827_vm7, %v4795_v17, %v4859_v63 }
 0x24d   : > { %4923 = vst [vmem:[%s8201_s25 + $0xe8] sm:$0xff] %v4891_v43 }
 0x24e PF: > { %s13_s14 = sadd.s32 1, %s6430_s14   ;;  %s8353_s12 = smov %s6426_s13 }
 0x24f   : > { %p10_p6 = scmp.ge.s32.totalorder %s13_s14, 4   ;;  %s8354_s13 = smov %s8356_s15 }
 0x251   :  { %12 = sbr.rel (!%p10_p6) target bundleno = 2 (0x2), region = 73 }

</bundles_post_ra>
